<compile_context>
chip_gen: v5e
topology: v5e:2x2
jax: 0.10.0
libtpu: 0.0.40
codegen_flags: <defaults>
</compile_context>

<pallas_src>
import math

import jax
import jax.numpy as jnp
from jax import lax
from jax.experimental import pallas as pl
from jax.experimental.pallas import tpu as pltpu


# -----------------------------------------------------------------------------
# fused block kernel, stride == 1 (identity shortcut)
# -----------------------------------------------------------------------------
def _preact_block_kernel_s1(x_ref, s1_ref, b1_ref, w1_ref, b2_ref, w2_ref,
                            o_ref, ypad_ref, apad_ref, col1_ref, col2_ref):
    Bn, H, W, Cin = x_ref.shape
    Cout = apad_ref.shape[-1]
    M = Bn * H * W

    # --- bn1 + relu1 (pre-activation); quantizers are identity ---
    s1 = s1_ref[...].reshape(1, 1, 1, Cin)
    b1 = b1_ref[...].reshape(1, 1, 1, Cin)
    y = jnp.maximum(x_ref[...] * s1 + b1, 0.0)

    # padded bf16 copy of y in VMEM; zero ONLY the 1-pixel border (every step:
    # interior is fully overwritten; per-step keeps megacore correctness).
    ypad_ref[:, 0:1, :, :] = jnp.zeros((Bn, 1, W + 2, Cin), ypad_ref.dtype)
    ypad_ref[:, H + 1:H + 2, :, :] = jnp.zeros((Bn, 1, W + 2, Cin), ypad_ref.dtype)
    ypad_ref[:, 1:H + 1, 0:1, :] = jnp.zeros((Bn, H, 1, Cin), ypad_ref.dtype)
    ypad_ref[:, 1:H + 1, W + 1:W + 2, :] = jnp.zeros((Bn, H, 1, Cin), ypad_ref.dtype)
    ypad_ref[:, 1:H + 1, 1:W + 1, :] = y.astype(ypad_ref.dtype)

    # --- conv1 (3x3, stride 1, pad 1): im2col + ONE K=9*Cin matmul
    #     (bn2 scale pre-folded into w1) ---
    for kh in range(3):
        for kw in range(3):
            t = kh * 3 + kw
            col1_ref[:, t * Cin:(t + 1) * Cin] = (
                ypad_ref[:, kh:kh + H, kw:kw + W, :].reshape(M, Cin))
    z1 = jnp.dot(col1_ref[...], w1_ref[...], preferred_element_type=jnp.float32)

    # --- bn2 bias + relu2 ---
    a = jnp.maximum(z1 + b2_ref[...], 0.0)

    apad_ref[:, 0:1, :, :] = jnp.zeros((Bn, 1, W + 2, Cout), apad_ref.dtype)
    apad_ref[:, H + 1:H + 2, :, :] = jnp.zeros((Bn, 1, W + 2, Cout), apad_ref.dtype)
    apad_ref[:, 1:H + 1, 0:1, :] = jnp.zeros((Bn, H, 1, Cout), apad_ref.dtype)
    apad_ref[:, 1:H + 1, W + 1:W + 2, :] = jnp.zeros((Bn, H, 1, Cout), apad_ref.dtype)
    apad_ref[:, 1:H + 1, 1:W + 1, :] = a.reshape(Bn, H, W, Cout).astype(apad_ref.dtype)

    # --- conv2 (3x3, stride 1, pad 1): im2col + ONE K=9*Cout matmul ---
    for kh in range(3):
        for kw in range(3):
            t = kh * 3 + kw
            col2_ref[:, t * Cout:(t + 1) * Cout] = (
                apad_ref[:, kh:kh + H, kw:kw + W, :].reshape(M, Cout))
    z2 = jnp.dot(col2_ref[...], w2_ref[...], preferred_element_type=jnp.float32)

    # --- identity shortcut (raw x) + store; x re-read from the VMEM block so it
    #     is not kept live across the two convs ---
    o_ref[...] = (z2.reshape(Bn, H, W, Cout) + x_ref[...]).astype(o_ref.dtype)


# -----------------------------------------------------------------------------
# fused block kernel, stride == 2 (projection shortcut fused into conv2 matmul)
# The wrapper supplies x packed as the four (row,col)-parity phases:
#   x_ref[b, 2*pr+pc, a, bb, :] == x[b, 2a+pr, 2b+pc, :]
# so every in-kernel access is a static contiguous slice.
# -----------------------------------------------------------------------------
def _preact_block_kernel_s2(x_ref, s1_ref, b1_ref, w1_ref, b2_ref, w2sk_ref,
                            bsk_ref, o_ref,
                            yp00_ref, yp01_ref, yp10_ref, yp11_ref,
                            apad_ref, col1_ref, col2_ref):
    Bn = x_ref.shape[0]
    H1, W1, Cin = x_ref.shape[2], x_ref.shape[3], x_ref.shape[4]
    Cout = apad_ref.shape[-1]
    M = Bn * H1 * W1

    s1 = s1_ref[...].reshape(1, 1, 1, Cin)
    b1 = b1_ref[...].reshape(1, 1, 1, Cin)
    yph = {(0, 0): yp00_ref, (0, 1): yp01_ref, (1, 0): yp10_ref, (1, 1): yp11_ref}

    # --- bn1 + relu1 per spatial-parity phase; each phase stored into its own
    #     top/left zero-padded bf16 VMEM scratch (border zeroed every step) ---
    for pr in range(2):
        for pc in range(2):
            p = 2 * pr + pc
            xp = x_ref[:, p:p + 1, :, :, :].reshape(Bn, H1, W1, Cin)
            yv = jnp.maximum(xp * s1 + b1, 0.0)
            yr = yph[(pr, pc)]
            yr[:, 0:1, :, :] = jnp.zeros((Bn, 1, W1 + 1, Cin), yr.dtype)
            yr[:, 1:H1 + 1, 0:1, :] = jnp.zeros((Bn, H1, 1, Cin), yr.dtype)
            yr[:, 1:H1 + 1, 1:W1 + 1, :] = yv.astype(yr.dtype)
            if (pr, pc) == (0, 0):
                # projection shortcut (1x1 conv, stride 2, then skip_bn) reads y
                # at even spatial positions; append it as Cin extra K-rows of the
                # conv2 matmul (weights concatenated wrapper-side).
                col2_ref[:, 9 * Cout:9 * Cout + Cin] = (
                    yv.reshape(M, Cin).astype(col2_ref.dtype))

    # --- conv1 (3x3, stride 2, pad 1): taps read from the parity phases.
    #     tap offset k in {0,1,2} -> (phase parity, padded start offset) ---
    def _ps(k):
        return (k + 1) % 2, (0 if k == 0 else 1)

    for kh in range(3):
        pr, r0 = _ps(kh)
        for kw in range(3):
            pc, c0 = _ps(kw)
            t = kh * 3 + kw
            col1_ref[:, t * Cin:(t + 1) * Cin] = (
                yph[(pr, pc)][:, r0:r0 + H1, c0:c0 + W1, :].reshape(M, Cin))
    z1 = jnp.dot(col1_ref[...], w1_ref[...], preferred_element_type=jnp.float32)

    # --- bn2 bias + relu2 ---
    a = jnp.maximum(z1 + b2_ref[...], 0.0)

    apad_ref[:, 0:1, :, :] = jnp.zeros((Bn, 1, W1 + 2, Cout), apad_ref.dtype)
    apad_ref[:, H1 + 1:H1 + 2, :, :] = jnp.zeros((Bn, 1, W1 + 2, Cout), apad_ref.dtype)
    apad_ref[:, 1:H1 + 1, 0:1, :] = jnp.zeros((Bn, H1, 1, Cout), apad_ref.dtype)
    apad_ref[:, 1:H1 + 1, W1 + 1:W1 + 2, :] = jnp.zeros((Bn, H1, 1, Cout), apad_ref.dtype)
    apad_ref[:, 1:H1 + 1, 1:W1 + 1, :] = a.reshape(Bn, H1, W1, Cout).astype(apad_ref.dtype)

    # --- conv2 (3x3, stride 1, pad 1) + fused projection shortcut:
    #     [im2col(a) | y_even] @ [[w2], [wskip*skip_bn_scale]]  (one matmul) ---
    for kh in range(3):
        for kw in range(3):
            t = kh * 3 + kw
            col2_ref[:, t * Cout:(t + 1) * Cout] = (
                apad_ref[:, kh:kh + H1, kw:kw + W1, :].reshape(M, Cout))
    z = jnp.dot(col2_ref[...], w2sk_ref[...], preferred_element_type=jnp.float32)

    # skip_bn bias + store
    o_ref[...] = (z + bsk_ref[...]).reshape(Bn, H1, W1, Cout).astype(o_ref.dtype)


# -----------------------------------------------------------------------------
# wrapper helpers
# -----------------------------------------------------------------------------
def _lane_pad(c):
    return ((c + 127) // 128) * 128


def _per_image_vmem_bytes(stride, H, W, Cin, Cout):
    """Rough per-image VMEM footprint (lane-padded, with I/O double buffering)."""
    if stride == 1:
        H1, W1 = H, W
        io = H * W * _lane_pad(Cin) * 4 * 2 + H1 * W1 * _lane_pad(Cout) * 4 * 2
        pads = ((H + 2) * (W + 2) * (_lane_pad(Cin) + _lane_pad(Cout))) * 2
        cols = H1 * W1 * (_lane_pad(9 * Cin) + _lane_pad(9 * Cout)) * 2
    else:
        H1, W1 = H // 2, W // 2
        io = 4 * H1 * W1 * _lane_pad(Cin) * 4 * 2 + H1 * W1 * _lane_pad(Cout) * 4 * 2
        pads = (4 * (H1 + 1) * (W1 + 1) * _lane_pad(Cin)
                + (H1 + 2) * (W1 + 2) * _lane_pad(Cout)) * 2
        cols = H1 * W1 * (_lane_pad(9 * Cin) + _lane_pad(9 * Cout + Cin)) * 2
    return io + pads + cols


def _pick_images_per_step(n, per_image_bytes, budget_bytes=8 << 20):
    """Largest divisor of n fitting the VMEM budget while keeping >= 2 grid
    steps when n >= 2 (so both TensorCores of a v7x chip get work)."""
    best = 1
    for bn in range(1, n + 1):
        if n % bn:
            continue
        if n >= 2 and n // bn < 2:
            continue
        if bn * per_image_bytes > budget_bytes:
            continue
        best = bn
    return best


def _compiler_params(est_bytes):
    kwargs = dict(dimension_semantics=("parallel",))
    if est_bytes > 12 * 1024 * 1024:
        # v7x: 64 MiB physical VMEM, 32 MiB default scoped; raise only if needed.
        kwargs["vmem_limit_bytes"] = min(64 * 1024 * 1024, int(est_bytes * 2))
    return pltpu.CompilerParams(**kwargs)


# -----------------------------------------------------------------------------
# wrappers (NHWC core + NCHW shim for PyTorch-module API parity)
# -----------------------------------------------------------------------------
def preact_basic_block_nhwc(x_nhwc, params):
    stride = params["stride"]
    assert stride in (1, 2), "only stride 1 or 2 is supported"
    x = x_nhwc.astype(jnp.float32)
    N, H, W, Cin = x.shape
    Cout = params["w1"].shape[-1]

    s1 = params["bn1_scale"].reshape(1, Cin)
    b1 = params["bn1_bias"].reshape(1, Cin)
    b2 = params["bn2_bias"].reshape(1, Cout)
    w1c = params["w1_col_bf16"]                 # (9*Cin, Cout), bn2-scale folded
    w2c = params["w2_col_bf16"]                 # (9*Cout, Cout)

    per_img = _per_image_vmem_bytes(stride, H, W, Cin, Cout)
    Bn = _pick_images_per_step(N, per_img)
    grid = (N // Bn,)
    cparams = _compiler_params(Bn * per_img)

    if stride == 1:
        assert Cin == Cout, "identity shortcut needs in_planes == out_planes"
        return pl.pallas_call(
            _preact_block_kernel_s1,
            out_shape=jax.ShapeDtypeStruct((N, H, W, Cout), jnp.float32),
            grid=grid,
            in_specs=[
                pl.BlockSpec((Bn, H, W, Cin), lambda n: (n, 0, 0, 0)),
                pl.BlockSpec((1, Cin), lambda n: (0, 0)),
                pl.BlockSpec((1, Cin), lambda n: (0, 0)),
                pl.BlockSpec((9 * Cin, Cout), lambda n: (0, 0)),
                pl.BlockSpec((1, Cout), lambda n: (0, 0)),
                pl.BlockSpec((9 * Cout, Cout), lambda n: (0, 0)),
            ],
            out_specs=pl.BlockSpec((Bn, H, W, Cout), lambda n: (n, 0, 0, 0)),
            scratch_shapes=[
                pltpu.VMEM((Bn, H + 2, W + 2, Cin), jnp.bfloat16),
                pltpu.VMEM((Bn, H + 2, W + 2, Cout), jnp.bfloat16),
                pltpu.VMEM((Bn * H * W, 9 * Cin), jnp.bfloat16),
                pltpu.VMEM((Bn * H * W, 9 * Cout), jnp.bfloat16),
            ],
            compiler_params=cparams,
        )(x, s1, b1, w1c, b2, w2c)

    # ---- stride == 2 ----
    assert H % 2 == 0 and W % 2 == 0, "stride-2 path requires even H and W"
    H1, W1 = H // 2, W // 2

    # Pack the four (row,col)-parity phases into ONE array so the kernel gets a
    # single well-formed DMA per step (no per-phase strided gathers / 4 inputs).
    xp = x.reshape(N, H1, 2, W1, 2, Cin).transpose(0, 2, 4, 1, 3, 5)
    xp = xp.reshape(N, 4, H1, W1, Cin)

    w2sk = params["w2sk_col_bf16"]              # (9*Cout + Cin, Cout)
    bsk = params["skip_bn_bias"].reshape(1, Cout)

    return pl.pallas_call(
        _preact_block_kernel_s2,
        out_shape=jax.ShapeDtypeStruct((N, H1, W1, Cout), jnp.float32),
        grid=grid,
        in_specs=[
            pl.BlockSpec((Bn, 4, H1, W1, Cin), lambda n: (n, 0, 0, 0, 0)),
            pl.BlockSpec((1, Cin), lambda n: (0, 0)),
            pl.BlockSpec((1, Cin), lambda n: (0, 0)),
            pl.BlockSpec((9 * Cin, Cout), lambda n: (0, 0)),
            pl.BlockSpec((1, Cout), lambda n: (0, 0)),
            pl.BlockSpec((9 * Cout + Cin, Cout), lambda n: (0, 0)),
            pl.BlockSpec((1, Cout), lambda n: (0, 0)),
        ],
        out_specs=pl.BlockSpec((Bn, H1, W1, Cout), lambda n: (n, 0, 0, 0)),
        scratch_shapes=[
            pltpu.VMEM((Bn, H1 + 1, W1 + 1, Cin), jnp.bfloat16),
            pltpu.VMEM((Bn, H1 + 1, W1 + 1, Cin), jnp.bfloat16),
            pltpu.VMEM((Bn, H1 + 1, W1 + 1, Cin), jnp.bfloat16),
            pltpu.VMEM((Bn, H1 + 1, W1 + 1, Cin), jnp.bfloat16),
            pltpu.VMEM((Bn, H1 + 2, W1 + 2, Cout), jnp.bfloat16),
            pltpu.VMEM((Bn * H1 * W1, 9 * Cin), jnp.bfloat16),
            pltpu.VMEM((Bn * H1 * W1, 9 * Cout + Cin), jnp.bfloat16),
        ],
        compiler_params=cparams,
    )(xp, s1, b1, w1c, b2, w2sk, bsk)


def preact_basic_block(x_nchw, params):
    """PyTorch-layout (NCHW) entry point. Prefer the NHWC core between blocks."""
    x = jnp.transpose(x_nchw, (0, 2, 3, 1))
    y = preact_basic_block_nhwc(x, params)
    return jnp.transpose(y, (0, 3, 1, 2))


# -----------------------------------------------------------------------------
# parameters (deterministic random weights; BN at fresh-init inference stats)
# -----------------------------------------------------------------------------
def make_preact_block_params(key, in_planes, out_planes, stride,
                             track_running_stats=True, eps=1e-5):
    k1, k2, k3 = jax.random.split(key, 3)

    def conv_w(k, taps, cin, cout):
        bound = 1.0 / math.sqrt(taps * cin)                # kaiming_uniform-ish
        return jax.random.uniform(k, (taps, cin, cout), jnp.float32, -bound, bound)

    def bn_fold(c):
        gamma = jnp.ones((c,), jnp.float32)
        beta = jnp.zeros((c,), jnp.float32)
        mean = jnp.zeros((c,), jnp.float32)
        var = jnp.ones((c,), jnp.float32)
        scale = gamma / jnp.sqrt(var + eps)
        bias = beta - mean * scale
        return scale, bias

    w1 = conv_w(k1, 9, in_planes, out_planes)              # rows ordered kh*3+kw
    w2 = conv_w(k2, 9, out_planes, out_planes)
    s1, b1 = bn_fold(in_planes)
    s2, b2 = bn_fold(out_planes)

    params = {
        "stride": stride,
        "bn1_scale": s1, "bn1_bias": b1,
        "w1": w1, "bn2_scale": s2, "bn2_bias": b2, "w2": w2,
        # MXU-ready forms: taps flattened into the contraction dim (K = 9*C),
        # bn2 scale folded into conv1's weight, bf16 operands.
        "w1_col_bf16": (w1 * s2[None, None, :]).reshape(
            9 * in_planes, out_planes).astype(jnp.bfloat16),
        "w2_col_bf16": w2.reshape(9 * out_planes, out_planes).astype(jnp.bfloat16),
    }
    if stride != 1:
        wsk = conv_w(k3, 1, in_planes, out_planes)[0]      # (Cin, Cout)
        ssk, bsk = bn_fold(out_planes)
        params["wskip"] = wsk
        params["skip_bn_scale"] = ssk
        params["skip_bn_bias"] = bsk
        # conv2 weight with the (skip_bn-folded) 1x1 projection appended as
        # extra K-rows -> conv2 + shortcut become one matmul.
        params["w2sk_col_bf16"] = jnp.concatenate(
            [params["w2_col_bf16"],
             (wsk * ssk[None, :]).astype(jnp.bfloat16)], axis=0)
    return params


# -----------------------------------------------------------------------------
# pure-JAX (XLA) reference, for a numerical sanity check only
# -----------------------------------------------------------------------------
def preact_basic_block_reference_nhwc(x_nhwc, params):
    stride = params["stride"]
    x = x_nhwc.astype(jnp.float32)

    def conv3x3(inp, w9, s):
        cin, cout = w9.shape[1], w9.shape[2]
        w = w9.reshape(3, 3, cin, cout)
        return lax.conv_general_dilated(
            inp, w, window_strides=(s, s), padding=((1, 1), (1, 1)),
            dimension_numbers=("NHWC", "HWIO", "NHWC"))

    y = jnp.maximum(x * params["bn1_scale"] + params["bn1_bias"], 0.0)
    z = conv3x3(y, params["w1"], stride)
    z = jnp.maximum(z * params["bn2_scale"] + params["bn2_bias"], 0.0)
    z = conv3x3(z, params["w2"], 1)
    if stride == 1:
        sc = x
    else:
        sc = y[:, ::stride, ::stride, :] @ params["wskip"]
        sc = sc * params["skip_bn_scale"] + params["skip_bn_bias"]
    return z + sc


# -----------------------------------------------------------------------------
if __name__ == "__main__":
    key = jax.random.PRNGKey(0)
    kp1, kp2, kx = jax.random.split(key, 3)

    N, H, W = 2, 16, 16
    in_planes, out_planes = 16, 32

    x_nchw = jax.random.normal(kx, (N, in_planes, H, W), jnp.float32)
    x_nhwc = jnp.transpose(x_nchw, (0, 2, 3, 1))       # network kept NHWC below

    # Block A: stride 2 -> projection shortcut; Block B: stride 1 -> identity.
    p_s2 = make_preact_block_params(kp1, in_planes, out_planes, stride=2)
    p_s1 = make_preact_block_params(kp2, out_planes, out_planes, stride=1)

    @jax.jit
    def two_blocks(inp):
        h = preact_basic_block_nhwc(inp, p_s2)         # 16x16x16 -> 8x8x32
        return preact_basic_block_nhwc(h, p_s1)        # 8x8x32   -> 8x8x32

    y = two_blocks(x_nhwc)
    jax.block_until_ready(y)
    assert y.shape == (N, H // 2, W // 2, out_planes), y.shape

    # Also exercise the PyTorch-layout (NCHW) wrapper once.
    y_nchw = jax.jit(lambda a: preact_basic_block(a, p_s2))(x_nchw)
    jax.block_until_ready(y_nchw)
    assert y_nchw.shape == (N, out_planes, H // 2, W // 2), y_nchw.shape

    # Numerical sanity check vs the pure-JAX reference (loose tolerance: the
    # kernel's matmul / shortcut operands are bf16, the reference is full f32).
    r = preact_basic_block_reference_nhwc(
        preact_basic_block_reference_nhwc(x_nhwc, p_s2), p_s1)
    err = float(jnp.max(jnp.abs(y - r)))
    r2 = preact_basic_block_reference_nhwc(x_nhwc, p_s2)
    err2 = float(jnp.max(jnp.abs(jnp.transpose(y_nchw, (0, 2, 3, 1)) - r2)))
    assert err < 0.1 and err2 < 0.1, (err, err2)

    print("KERNEL_OK")
</pallas_src>

<mosaic_0001>
module attributes {stable_mosaic.version = 11 : i64} {
  func.func @_preact_block_kernel_s2(%arg0: i32, %arg1: memref<1x4x8x8x16xf32, #tpu.memory_space<vmem>>, %arg2: memref<1x16xf32, #tpu.memory_space<vmem>>, %arg3: memref<1x16xf32, #tpu.memory_space<vmem>>, %arg4: memref<144x32xbf16, #tpu.memory_space<vmem>>, %arg5: memref<1x32xf32, #tpu.memory_space<vmem>>, %arg6: memref<304x32xbf16, #tpu.memory_space<vmem>>, %arg7: memref<1x32xf32, #tpu.memory_space<vmem>>, %arg8: memref<1x8x8x32xf32, #tpu.memory_space<vmem>>, %arg9: memref<1x9x9x16xbf16, #tpu.memory_space<vmem>>, %arg10: memref<1x9x9x16xbf16, #tpu.memory_space<vmem>>, %arg11: memref<1x9x9x16xbf16, #tpu.memory_space<vmem>>, %arg12: memref<1x9x9x16xbf16, #tpu.memory_space<vmem>>, %arg13: memref<1x10x10x32xbf16, #tpu.memory_space<vmem>>, %arg14: memref<64x144xbf16, #tpu.memory_space<vmem>>, %arg15: memref<64x304xbf16, #tpu.memory_space<vmem>>) attributes {dimension_semantics = [#tpu.dimension_semantics<parallel>], iteration_bounds = array<i64: 2>, scalar_prefetch = 0 : i64, scratch_operands = 7 : i64, tpu.core_type = #tpu.core_type<tc>, window_params = [{transform_indices = @transform_0, window_bounds = array<i64: 1, 4, 8, 8, 16>}, {pipeline_mode = #tpu.pipeline_mode<synchronous>, transform_indices = @transform_1, window_bounds = array<i64: 1, 16>}, {pipeline_mode = #tpu.pipeline_mode<synchronous>, transform_indices = @transform_2, window_bounds = array<i64: 1, 16>}, {pipeline_mode = #tpu.pipeline_mode<synchronous>, transform_indices = @transform_3, window_bounds = array<i64: 144, 32>}, {pipeline_mode = #tpu.pipeline_mode<synchronous>, transform_indices = @transform_4, window_bounds = array<i64: 1, 32>}, {pipeline_mode = #tpu.pipeline_mode<synchronous>, transform_indices = @transform_5, window_bounds = array<i64: 304, 32>}, {pipeline_mode = #tpu.pipeline_mode<synchronous>, transform_indices = @transform_6, window_bounds = array<i64: 1, 32>}, {transform_indices = @transform_7, window_bounds = array<i64: 1, 8, 8, 32>}]} {
    %c0 = arith.constant 0 : index
    %c0_0 = arith.constant 0 : index
    %0 = vector.load %arg2[%c0, %c0_0] : memref<1x16xf32, #tpu.memory_space<vmem>>, vector<1x16xf32>
    %1 = vector.shape_cast %0 : vector<1x16xf32> to vector<1x1x1x16xf32>
    %c0_1 = arith.constant 0 : index
    %c0_2 = arith.constant 0 : index
    %2 = vector.load %arg3[%c0_1, %c0_2] : memref<1x16xf32, #tpu.memory_space<vmem>>, vector<1x16xf32>
    %3 = vector.shape_cast %2 : vector<1x16xf32> to vector<1x1x1x16xf32>
    %c0_3 = arith.constant 0 : index
    %c0_4 = arith.constant 0 : index
    %c0_5 = arith.constant 0 : index
    %c0_6 = arith.constant 0 : index
    %c0_7 = arith.constant 0 : index
    %4 = vector.load %arg1[%c0_3, %c0_4, %c0_5, %c0_6, %c0_7] : memref<1x4x8x8x16xf32, #tpu.memory_space<vmem>>, vector<1x1x8x8x16xf32>
    %5 = vector.shape_cast %4 : vector<1x1x8x8x16xf32> to vector<1x8x8x16xf32>
    %6 = vector.broadcast %1 : vector<1x1x1x16xf32> to vector<1x8x8x16xf32>
    %7 = arith.mulf %5, %6 : vector<1x8x8x16xf32>
    %8 = vector.broadcast %3 : vector<1x1x1x16xf32> to vector<1x8x8x16xf32>
    %9 = arith.addf %7, %8 : vector<1x8x8x16xf32>
    %cst = arith.constant 0.000000e+00 : f32
    %10 = vector.broadcast %cst : f32 to vector<1x8x8x16xf32>
    %11 = arith.maximumf %9, %10 : vector<1x8x8x16xf32>
    %cst_8 = arith.constant 0.000000e+00 : bf16
    %12 = vector.broadcast %cst_8 : bf16 to vector<1x1x9x16xbf16>
    %c0_9 = arith.constant 0 : index
    %c0_10 = arith.constant 0 : index
    %c0_11 = arith.constant 0 : index
    %c0_12 = arith.constant 0 : index
    %13 = vector.load %arg9[%c0_9, %c0_10, %c0_11, %c0_12] : memref<1x9x9x16xbf16, #tpu.memory_space<vmem>>, vector<1x1x9x16xbf16>
    tpu.vector_store %arg9[%c0_9, %c0_10, %c0_11, %c0_12], %12 {strides = array<i32>} : memref<1x9x9x16xbf16, #tpu.memory_space<vmem>>, vector<1x1x9x16xbf16>,
    %cst_13 = arith.constant 0.000000e+00 : bf16
    %14 = vector.broadcast %cst_13 : bf16 to vector<1x8x1x16xbf16>
    %c0_14 = arith.constant 0 : index
    %c1 = arith.constant 1 : index
    %c0_15 = arith.constant 0 : index
    %c0_16 = arith.constant 0 : index
    %15 = vector.load %arg9[%c0_14, %c1, %c0_15, %c0_16] : memref<1x9x9x16xbf16, #tpu.memory_space<vmem>>, vector<1x8x1x16xbf16>
    tpu.vector_store %arg9[%c0_14, %c1, %c0_15, %c0_16], %14 {strides = array<i32>} : memref<1x9x9x16xbf16, #tpu.memory_space<vmem>>, vector<1x8x1x16xbf16>,
    %16 = arith.truncf %11 : vector<1x8x8x16xf32> to vector<1x8x8x16xbf16>
    %c0_17 = arith.constant 0 : index
    %c1_18 = arith.constant 1 : index
    %c1_19 = arith.constant 1 : index
    %c0_20 = arith.constant 0 : index
    %17 = vector.load %arg9[%c0_17, %c1_18, %c1_19, %c0_20] : memref<1x9x9x16xbf16, #tpu.memory_space<vmem>>, vector<1x8x8x16xbf16>
    tpu.vector_store %arg9[%c0_17, %c1_18, %c1_19, %c0_20], %16 {strides = array<i32>} : memref<1x9x9x16xbf16, #tpu.memory_space<vmem>>, vector<1x8x8x16xbf16>,
    %18 = vector.shape_cast %11 : vector<1x8x8x16xf32> to vector<64x16xf32>
    %19 = arith.truncf %18 : vector<64x16xf32> to vector<64x16xbf16>
    %c0_21 = arith.constant 0 : index
    %c288 = arith.constant 288 : index
    %20 = vector.load %arg15[%c0_21, %c288] : memref<64x304xbf16, #tpu.memory_space<vmem>>, vector<64x16xbf16>
    tpu.vector_store %arg15[%c0_21, %c288], %19 {strides = array<i32>} : memref<64x304xbf16, #tpu.memory_space<vmem>>, vector<64x16xbf16>,
    %c0_22 = arith.constant 0 : index
    %c1_23 = arith.constant 1 : index
    %c0_24 = arith.constant 0 : index
    %c0_25 = arith.constant 0 : index
    %c0_26 = arith.constant 0 : index
    %21 = vector.load %arg1[%c0_22, %c1_23, %c0_24, %c0_25, %c0_26] : memref<1x4x8x8x16xf32, #tpu.memory_space<vmem>>, vector<1x1x8x8x16xf32>
    %22 = vector.shape_cast %21 : vector<1x1x8x8x16xf32> to vector<1x8x8x16xf32>
    %23 = vector.broadcast %1 : vector<1x1x1x16xf32> to vector<1x8x8x16xf32>
    %24 = arith.mulf %22, %23 : vector<1x8x8x16xf32>
    %25 = vector.broadcast %3 : vector<1x1x1x16xf32> to vector<1x8x8x16xf32>
    %26 = arith.addf %24, %25 : vector<1x8x8x16xf32>
    %cst_27 = arith.constant 0.000000e+00 : f32
    %27 = vector.broadcast %cst_27 : f32 to vector<1x8x8x16xf32>
    %28 = arith.maximumf %26, %27 : vector<1x8x8x16xf32>
    %cst_28 = arith.constant 0.000000e+00 : bf16
    %29 = vector.broadcast %cst_28 : bf16 to vector<1x1x9x16xbf16>
    %c0_29 = arith.constant 0 : index
    %c0_30 = arith.constant 0 : index
    %c0_31 = arith.constant 0 : index
    %c0_32 = arith.constant 0 : index
    %30 = vector.load %arg10[%c0_29, %c0_30, %c0_31, %c0_32] : memref<1x9x9x16xbf16, #tpu.memory_space<vmem>>, vector<1x1x9x16xbf16>
    tpu.vector_store %arg10[%c0_29, %c0_30, %c0_31, %c0_32], %29 {strides = array<i32>} : memref<1x9x9x16xbf16, #tpu.memory_space<vmem>>, vector<1x1x9x16xbf16>,
    %cst_33 = arith.constant 0.000000e+00 : bf16
    %31 = vector.broadcast %cst_33 : bf16 to vector<1x8x1x16xbf16>
    %c0_34 = arith.constant 0 : index
    %c1_35 = arith.constant 1 : index
    %c0_36 = arith.constant 0 : index
    %c0_37 = arith.constant 0 : index
    %32 = vector.load %arg10[%c0_34, %c1_35, %c0_36, %c0_37] : memref<1x9x9x16xbf16, #tpu.memory_space<vmem>>, vector<1x8x1x16xbf16>
    tpu.vector_store %arg10[%c0_34, %c1_35, %c0_36, %c0_37], %31 {strides = array<i32>} : memref<1x9x9x16xbf16, #tpu.memory_space<vmem>>, vector<1x8x1x16xbf16>,
    %33 = arith.truncf %28 : vector<1x8x8x16xf32> to vector<1x8x8x16xbf16>
    %c0_38 = arith.constant 0 : index
    %c1_39 = arith.constant 1 : index
    %c1_40 = arith.constant 1 : index
    %c0_41 = arith.constant 0 : index
    %34 = vector.load %arg10[%c0_38, %c1_39, %c1_40, %c0_41] : memref<1x9x9x16xbf16, #tpu.memory_space<vmem>>, vector<1x8x8x16xbf16>
    tpu.vector_store %arg10[%c0_38, %c1_39, %c1_40, %c0_41], %33 {strides = array<i32>} : memref<1x9x9x16xbf16, #tpu.memory_space<vmem>>, vector<1x8x8x16xbf16>,
    %c0_42 = arith.constant 0 : index
    %c2 = arith.constant 2 : index
    %c0_43 = arith.constant 0 : index
    %c0_44 = arith.constant 0 : index
    %c0_45 = arith.constant 0 : index
    %35 = vector.load %arg1[%c0_42, %c2, %c0_43, %c0_44, %c0_45] : memref<1x4x8x8x16xf32, #tpu.memory_space<vmem>>, vector<1x1x8x8x16xf32>
    %36 = vector.shape_cast %35 : vector<1x1x8x8x16xf32> to vector<1x8x8x16xf32>
    %37 = vector.broadcast %1 : vector<1x1x1x16xf32> to vector<1x8x8x16xf32>
    %38 = arith.mulf %36, %37 : vector<1x8x8x16xf32>
    %39 = vector.broadcast %3 : vector<1x1x1x16xf32> to vector<1x8x8x16xf32>
    %40 = arith.addf %38, %39 : vector<1x8x8x16xf32>
    %cst_46 = arith.constant 0.000000e+00 : f32
    %41 = vector.broadcast %cst_46 : f32 to vector<1x8x8x16xf32>
    %42 = arith.maximumf %40, %41 : vector<1x8x8x16xf32>
    %cst_47 = arith.constant 0.000000e+00 : bf16
    %43 = vector.broadcast %cst_47 : bf16 to vector<1x1x9x16xbf16>
    %c0_48 = arith.constant 0 : index
    %c0_49 = arith.constant 0 : index
    %c0_50 = arith.constant 0 : index
    %c0_51 = arith.constant 0 : index
    %44 = vector.load %arg11[%c0_48, %c0_49, %c0_50, %c0_51] : memref<1x9x9x16xbf16, #tpu.memory_space<vmem>>, vector<1x1x9x16xbf16>
    tpu.vector_store %arg11[%c0_48, %c0_49, %c0_50, %c0_51], %43 {strides = array<i32>} : memref<1x9x9x16xbf16, #tpu.memory_space<vmem>>, vector<1x1x9x16xbf16>,
    %cst_52 = arith.constant 0.000000e+00 : bf16
    %45 = vector.broadcast %cst_52 : bf16 to vector<1x8x1x16xbf16>
    %c0_53 = arith.constant 0 : index
    %c1_54 = arith.constant 1 : index
    %c0_55 = arith.constant 0 : index
    %c0_56 = arith.constant 0 : index
    %46 = vector.load %arg11[%c0_53, %c1_54, %c0_55, %c0_56] : memref<1x9x9x16xbf16, #tpu.memory_space<vmem>>, vector<1x8x1x16xbf16>
    tpu.vector_store %arg11[%c0_53, %c1_54, %c0_55, %c0_56], %45 {strides = array<i32>} : memref<1x9x9x16xbf16, #tpu.memory_space<vmem>>, vector<1x8x1x16xbf16>,
    %47 = arith.truncf %42 : vector<1x8x8x16xf32> to vector<1x8x8x16xbf16>
    %c0_57 = arith.constant 0 : index
    %c1_58 = arith.constant 1 : index
    %c1_59 = arith.constant 1 : index
    %c0_60 = arith.constant 0 : index
    %48 = vector.load %arg11[%c0_57, %c1_58, %c1_59, %c0_60] : memref<1x9x9x16xbf16, #tpu.memory_space<vmem>>, vector<1x8x8x16xbf16>
    tpu.vector_store %arg11[%c0_57, %c1_58, %c1_59, %c0_60], %47 {strides = array<i32>} : memref<1x9x9x16xbf16, #tpu.memory_space<vmem>>, vector<1x8x8x16xbf16>,
    %c0_61 = arith.constant 0 : index
    %c3 = arith.constant 3 : index
    %c0_62 = arith.constant 0 : index
    %c0_63 = arith.constant 0 : index
    %c0_64 = arith.constant 0 : index
    %49 = vector.load %arg1[%c0_61, %c3, %c0_62, %c0_63, %c0_64] : memref<1x4x8x8x16xf32, #tpu.memory_space<vmem>>, vector<1x1x8x8x16xf32>
    %50 = vector.shape_cast %49 : vector<1x1x8x8x16xf32> to vector<1x8x8x16xf32>
    %51 = vector.broadcast %1 : vector<1x1x1x16xf32> to vector<1x8x8x16xf32>
    %52 = arith.mulf %50, %51 : vector<1x8x8x16xf32>
    %53 = vector.broadcast %3 : vector<1x1x1x16xf32> to vector<1x8x8x16xf32>
    %54 = arith.addf %52, %53 : vector<1x8x8x16xf32>
    %cst_65 = arith.constant 0.000000e+00 : f32
    %55 = vector.broadcast %cst_65 : f32 to vector<1x8x8x16xf32>
    %56 = arith.maximumf %54, %55 : vector<1x8x8x16xf32>
    %cst_66 = arith.constant 0.000000e+00 : bf16
    %57 = vector.broadcast %cst_66 : bf16 to vector<1x1x9x16xbf16>
    %c0_67 = arith.constant 0 : index
    %c0_68 = arith.constant 0 : index
    %c0_69 = arith.constant 0 : index
    %c0_70 = arith.constant 0 : index
    %58 = vector.load %arg12[%c0_67, %c0_68, %c0_69, %c0_70] : memref<1x9x9x16xbf16, #tpu.memory_space<vmem>>, vector<1x1x9x16xbf16>
    tpu.vector_store %arg12[%c0_67, %c0_68, %c0_69, %c0_70], %57 {strides = array<i32>} : memref<1x9x9x16xbf16, #tpu.memory_space<vmem>>, vector<1x1x9x16xbf16>,
    %cst_71 = arith.constant 0.000000e+00 : bf16
    %59 = vector.broadcast %cst_71 : bf16 to vector<1x8x1x16xbf16>
    %c0_72 = arith.constant 0 : index
    %c1_73 = arith.constant 1 : index
    %c0_74 = arith.constant 0 : index
    %c0_75 = arith.constant 0 : index
    %60 = vector.load %arg12[%c0_72, %c1_73, %c0_74, %c0_75] : memref<1x9x9x16xbf16, #tpu.memory_space<vmem>>, vector<1x8x1x16xbf16>
    tpu.vector_store %arg12[%c0_72, %c1_73, %c0_74, %c0_75], %59 {strides = array<i32>} : memref<1x9x9x16xbf16, #tpu.memory_space<vmem>>, vector<1x8x1x16xbf16>,
    %61 = arith.truncf %56 : vector<1x8x8x16xf32> to vector<1x8x8x16xbf16>
    %c0_76 = arith.constant 0 : index
    %c1_77 = arith.constant 1 : index
    %c1_78 = arith.constant 1 : index
    %c0_79 = arith.constant 0 : index
    %62 = vector.load %arg12[%c0_76, %c1_77, %c1_78, %c0_79] : memref<1x9x9x16xbf16, #tpu.memory_space<vmem>>, vector<1x8x8x16xbf16>
    tpu.vector_store %arg12[%c0_76, %c1_77, %c1_78, %c0_79], %61 {strides = array<i32>} : memref<1x9x9x16xbf16, #tpu.memory_space<vmem>>, vector<1x8x8x16xbf16>,
    %c0_80 = arith.constant 0 : index
    %c0_81 = arith.constant 0 : index
    %c0_82 = arith.constant 0 : index
    %c0_83 = arith.constant 0 : index
    %63 = vector.load %arg12[%c0_80, %c0_81, %c0_82, %c0_83] : memref<1x9x9x16xbf16, #tpu.memory_space<vmem>>, vector<1x8x8x16xbf16>
    %64 = vector.shape_cast %63 : vector<1x8x8x16xbf16> to vector<64x16xbf16>
    %c0_84 = arith.constant 0 : index
    %c0_85 = arith.constant 0 : index
    %65 = vector.load %arg14[%c0_84, %c0_85] : memref<64x144xbf16, #tpu.memory_space<vmem>>, vector<64x16xbf16>
    tpu.vector_store %arg14[%c0_84, %c0_85], %64 {strides = array<i32>} : memref<64x144xbf16, #tpu.memory_space<vmem>>, vector<64x16xbf16>,
    %c0_86 = arith.constant 0 : index
    %c0_87 = arith.constant 0 : index
    %c1_88 = arith.constant 1 : index
    %c0_89 = arith.constant 0 : index
    %66 = vector.load %arg11[%c0_86, %c0_87, %c1_88, %c0_89] : memref<1x9x9x16xbf16, #tpu.memory_space<vmem>>, vector<1x8x8x16xbf16>
    %67 = vector.shape_cast %66 : vector<1x8x8x16xbf16> to vector<64x16xbf16>
    %c0_90 = arith.constant 0 : index
    %c16 = arith.constant 16 : index
    %68 = vector.load %arg14[%c0_90, %c16] : memref<64x144xbf16, #tpu.memory_space<vmem>>, vector<64x16xbf16>
    tpu.vector_store %arg14[%c0_90, %c16], %67 {strides = array<i32>} : memref<64x144xbf16, #tpu.memory_space<vmem>>, vector<64x16xbf16>,
    %c0_91 = arith.constant 0 : index
    %c0_92 = arith.constant 0 : index
    %c1_93 = arith.constant 1 : index
    %c0_94 = arith.constant 0 : index
    %69 = vector.load %arg12[%c0_91, %c0_92, %c1_93, %c0_94] : memref<1x9x9x16xbf16, #tpu.memory_space<vmem>>, vector<1x8x8x16xbf16>
    %70 = vector.shape_cast %69 : vector<1x8x8x16xbf16> to vector<64x16xbf16>
    %c0_95 = arith.constant 0 : index
    %c32 = arith.constant 32 : index
    %71 = vector.load %arg14[%c0_95, %c32] : memref<64x144xbf16, #tpu.memory_space<vmem>>, vector<64x16xbf16>
    tpu.vector_store %arg14[%c0_95, %c32], %70 {strides = array<i32>} : memref<64x144xbf16, #tpu.memory_space<vmem>>, vector<64x16xbf16>,
    %c0_96 = arith.constant 0 : index
    %c1_97 = arith.constant 1 : index
    %c0_98 = arith.constant 0 : index
    %c0_99 = arith.constant 0 : index
    %72 = vector.load %arg10[%c0_96, %c1_97, %c0_98, %c0_99] : memref<1x9x9x16xbf16, #tpu.memory_space<vmem>>, vector<1x8x8x16xbf16>
    %73 = vector.shape_cast %72 : vector<1x8x8x16xbf16> to vector<64x16xbf16>
    %c0_100 = arith.constant 0 : index
    %c48 = arith.constant 48 : index
    %74 = vector.load %arg14[%c0_100, %c48] : memref<64x144xbf16, #tpu.memory_space<vmem>>, vector<64x16xbf16>
    tpu.vector_store %arg14[%c0_100, %c48], %73 {strides = array<i32>} : memref<64x144xbf16, #tpu.memory_space<vmem>>, vector<64x16xbf16>,
    %c0_101 = arith.constant 0 : index
    %c1_102 = arith.constant 1 : index
    %c1_103 = arith.constant 1 : index
    %c0_104 = arith.constant 0 : index
    %75 = vector.load %arg9[%c0_101, %c1_102, %c1_103, %c0_104] : memref<1x9x9x16xbf16, #tpu.memory_space<vmem>>, vector<1x8x8x16xbf16>
    %76 = vector.shape_cast %75 : vector<1x8x8x16xbf16> to vector<64x16xbf16>
    %c0_105 = arith.constant 0 : index
    %c64 = arith.constant 64 : index
    %77 = vector.load %arg14[%c0_105, %c64] : memref<64x144xbf16, #tpu.memory_space<vmem>>, vector<64x16xbf16>
    tpu.vector_store %arg14[%c0_105, %c64], %76 {strides = array<i32>} : memref<64x144xbf16, #tpu.memory_space<vmem>>, vector<64x16xbf16>,
    %c0_106 = arith.constant 0 : index
    %c1_107 = arith.constant 1 : index
    %c1_108 = arith.constant 1 : index
    %c0_109 = arith.constant 0 : index
    %78 = vector.load %arg10[%c0_106, %c1_107, %c1_108, %c0_109] : memref<1x9x9x16xbf16, #tpu.memory_space<vmem>>, vector<1x8x8x16xbf16>
    %79 = vector.shape_cast %78 : vector<1x8x8x16xbf16> to vector<64x16xbf16>
    %c0_110 = arith.constant 0 : index
    %c80 = arith.constant 80 : index
    %80 = vector.load %arg14[%c0_110, %c80] : memref<64x144xbf16, #tpu.memory_space<vmem>>, vector<64x16xbf16>
    tpu.vector_store %arg14[%c0_110, %c80], %79 {strides = array<i32>} : memref<64x144xbf16, #tpu.memory_space<vmem>>, vector<64x16xbf16>,
    %c0_111 = arith.constant 0 : index
    %c1_112 = arith.constant 1 : index
    %c0_113 = arith.constant 0 : index
    %c0_114 = arith.constant 0 : index
    %81 = vector.load %arg12[%c0_111, %c1_112, %c0_113, %c0_114] : memref<1x9x9x16xbf16, #tpu.memory_space<vmem>>, vector<1x8x8x16xbf16>
    %82 = vector.shape_cast %81 : vector<1x8x8x16xbf16> to vector<64x16xbf16>
    %c0_115 = arith.constant 0 : index
    %c96 = arith.constant 96 : index
    %83 = vector.load %arg14[%c0_115, %c96] : memref<64x144xbf16, #tpu.memory_space<vmem>>, vector<64x16xbf16>
    tpu.vector_store %arg14[%c0_115, %c96], %82 {strides = array<i32>} : memref<64x144xbf16, #tpu.memory_space<vmem>>, vector<64x16xbf16>,
    %c0_116 = arith.constant 0 : index
    %c1_117 = arith.constant 1 : index
    %c1_118 = arith.constant 1 : index
    %c0_119 = arith.constant 0 : index
    %84 = vector.load %arg11[%c0_116, %c1_117, %c1_118, %c0_119] : memref<1x9x9x16xbf16, #tpu.memory_space<vmem>>, vector<1x8x8x16xbf16>
    %85 = vector.shape_cast %84 : vector<1x8x8x16xbf16> to vector<64x16xbf16>
    %c0_120 = arith.constant 0 : index
    %c112 = arith.constant 112 : index
    %86 = vector.load %arg14[%c0_120, %c112] : memref<64x144xbf16, #tpu.memory_space<vmem>>, vector<64x16xbf16>
    tpu.vector_store %arg14[%c0_120, %c112], %85 {strides = array<i32>} : memref<64x144xbf16, #tpu.memory_space<vmem>>, vector<64x16xbf16>,
    %c0_121 = arith.constant 0 : index
    %c1_122 = arith.constant 1 : index
    %c1_123 = arith.constant 1 : index
    %c0_124 = arith.constant 0 : index
    %87 = vector.load %arg12[%c0_121, %c1_122, %c1_123, %c0_124] : memref<1x9x9x16xbf16, #tpu.memory_space<vmem>>, vector<1x8x8x16xbf16>
    %88 = vector.shape_cast %87 : vector<1x8x8x16xbf16> to vector<64x16xbf16>
    %c0_125 = arith.constant 0 : index
    %c128 = arith.constant 128 : index
    %89 = vector.load %arg14[%c0_125, %c128] : memref<64x144xbf16, #tpu.memory_space<vmem>>, vector<64x16xbf16>
    tpu.vector_store %arg14[%c0_125, %c128], %88 {strides = array<i32>} : memref<64x144xbf16, #tpu.memory_space<vmem>>, vector<64x16xbf16>,
    %c0_126 = arith.constant 0 : index
    %c0_127 = arith.constant 0 : index
    %90 = vector.load %arg14[%c0_126, %c0_127] : memref<64x144xbf16, #tpu.memory_space<vmem>>, vector<64x144xbf16>
    %c0_128 = arith.constant 0 : index
    %c0_129 = arith.constant 0 : index
    %91 = vector.load %arg4[%c0_128, %c0_129] : memref<144x32xbf16, #tpu.memory_space<vmem>>, vector<144x32xbf16>
    %cst_130 = arith.constant dense<0.000000e+00> : vector<64x32xf32>
    %92 = tpu.matmul %90, %91, %cst_130 {dimension_numbers = #tpu.dot_dimension_numbers<[1], [0], [0], [1], [0, 0, 1, 1], [], []>} : vector<64x144xbf16>, vector<144x32xbf16>, vector<64x32xf32> -> vector<64x32xf32>
    %c0_131 = arith.constant 0 : index
    %c0_132 = arith.constant 0 : index
    %93 = vector.load %arg5[%c0_131, %c0_132] : memref<1x32xf32, #tpu.memory_space<vmem>>, vector<1x32xf32>
    %94 = vector.broadcast %93 : vector<1x32xf32> to vector<64x32xf32>
    %95 = arith.addf %92, %94 : vector<64x32xf32>
    %cst_133 = arith.constant 0.000000e+00 : f32
    %96 = vector.broadcast %cst_133 : f32 to vector<64x32xf32>
    %97 = arith.maximumf %95, %96 : vector<64x32xf32>
    %cst_134 = arith.constant 0.000000e+00 : bf16
    %98 = vector.broadcast %cst_134 : bf16 to vector<1x1x10x32xbf16>
    %c0_135 = arith.constant 0 : index
    %c0_136 = arith.constant 0 : index
    %c0_137 = arith.constant 0 : index
    %c0_138 = arith.constant 0 : index
    %99 = vector.load %arg13[%c0_135, %c0_136, %c0_137, %c0_138] : memref<1x10x10x32xbf16, #tpu.memory_space<vmem>>, vector<1x1x10x32xbf16>
    tpu.vector_store %arg13[%c0_135, %c0_136, %c0_137, %c0_138], %98 {strides = array<i32>} : memref<1x10x10x32xbf16, #tpu.memory_space<vmem>>, vector<1x1x10x32xbf16>,
    %cst_139 = arith.constant 0.000000e+00 : bf16
    %100 = vector.broadcast %cst_139 : bf16 to vector<1x1x10x32xbf16>
    %c0_140 = arith.constant 0 : index
    %c9 = arith.constant 9 : index
    %c0_141 = arith.constant 0 : index
    %c0_142 = arith.constant 0 : index
    %101 = vector.load %arg13[%c0_140, %c9, %c0_141, %c0_142] : memref<1x10x10x32xbf16, #tpu.memory_space<vmem>>, vector<1x1x10x32xbf16>
    tpu.vector_store %arg13[%c0_140, %c9, %c0_141, %c0_142], %100 {strides = array<i32>} : memref<1x10x10x32xbf16, #tpu.memory_space<vmem>>, vector<1x1x10x32xbf16>,
    %cst_143 = arith.constant 0.000000e+00 : bf16
    %102 = vector.broadcast %cst_143 : bf16 to vector<1x8x1x32xbf16>
    %c0_144 = arith.constant 0 : index
    %c1_145 = arith.constant 1 : index
    %c0_146 = arith.constant 0 : index
    %c0_147 = arith.constant 0 : index
    %103 = vector.load %arg13[%c0_144, %c1_145, %c0_146, %c0_147] : memref<1x10x10x32xbf16, #tpu.memory_space<vmem>>, vector<1x8x1x32xbf16>
    tpu.vector_store %arg13[%c0_144, %c1_145, %c0_146, %c0_147], %102 {strides = array<i32>} : memref<1x10x10x32xbf16, #tpu.memory_space<vmem>>, vector<1x8x1x32xbf16>,
    %cst_148 = arith.constant 0.000000e+00 : bf16
    %104 = vector.broadcast %cst_148 : bf16 to vector<1x8x1x32xbf16>
    %c0_149 = arith.constant 0 : index
    %c1_150 = arith.constant 1 : index
    %c9_151 = arith.constant 9 : index
    %c0_152 = arith.constant 0 : index
    %105 = vector.load %arg13[%c0_149, %c1_150, %c9_151, %c0_152] : memref<1x10x10x32xbf16, #tpu.memory_space<vmem>>, vector<1x8x1x32xbf16>
    tpu.vector_store %arg13[%c0_149, %c1_150, %c9_151, %c0_152], %104 {strides = array<i32>} : memref<1x10x10x32xbf16, #tpu.memory_space<vmem>>, vector<1x8x1x32xbf16>,
    %106 = vector.shape_cast %97 : vector<64x32xf32> to vector<1x8x8x32xf32>
    %107 = arith.truncf %106 : vector<1x8x8x32xf32> to vector<1x8x8x32xbf16>
    %c0_153 = arith.constant 0 : index
    %c1_154 = arith.constant 1 : index
    %c1_155 = arith.constant 1 : index
    %c0_156 = arith.constant 0 : index
    %108 = vector.load %arg13[%c0_153, %c1_154, %c1_155, %c0_156] : memref<1x10x10x32xbf16, #tpu.memory_space<vmem>>, vector<1x8x8x32xbf16>
    tpu.vector_store %arg13[%c0_153, %c1_154, %c1_155, %c0_156], %107 {strides = array<i32>} : memref<1x10x10x32xbf16, #tpu.memory_space<vmem>>, vector<1x8x8x32xbf16>,
    %c0_157 = arith.constant 0 : index
    %c0_158 = arith.constant 0 : index
    %c0_159 = arith.constant 0 : index
    %c0_160 = arith.constant 0 : index
    %109 = vector.load %arg13[%c0_157, %c0_158, %c0_159, %c0_160] : memref<1x10x10x32xbf16, #tpu.memory_space<vmem>>, vector<1x8x8x32xbf16>
    %110 = vector.shape_cast %109 : vector<1x8x8x32xbf16> to vector<64x32xbf16>
    %c0_161 = arith.constant 0 : index
    %c0_162 = arith.constant 0 : index
    %111 = vector.load %arg15[%c0_161, %c0_162] : memref<64x304xbf16, #tpu.memory_space<vmem>>, vector<64x32xbf16>
    tpu.vector_store %arg15[%c0_161, %c0_162], %110 {strides = array<i32>} : memref<64x304xbf16, #tpu.memory_space<vmem>>, vector<64x32xbf16>,
    %c0_163 = arith.constant 0 : index
    %c0_164 = arith.constant 0 : index
    %c1_165 = arith.constant 1 : index
    %c0_166 = arith.constant 0 : index
    %112 = vector.load %arg13[%c0_163, %c0_164, %c1_165, %c0_166] : memref<1x10x10x32xbf16, #tpu.memory_space<vmem>>, vector<1x8x8x32xbf16>
    %113 = vector.shape_cast %112 : vector<1x8x8x32xbf16> to vector<64x32xbf16>
    %c0_167 = arith.constant 0 : index
    %c32_168 = arith.constant 32 : index
    %114 = vector.load %arg15[%c0_167, %c32_168] : memref<64x304xbf16, #tpu.memory_space<vmem>>, vector<64x32xbf16>
    tpu.vector_store %arg15[%c0_167, %c32_168], %113 {strides = array<i32>} : memref<64x304xbf16, #tpu.memory_space<vmem>>, vector<64x32xbf16>,
    %c0_169 = arith.constant 0 : index
    %c0_170 = arith.constant 0 : index
    %c2_171 = arith.constant 2 : index
    %c0_172 = arith.constant 0 : index
    %115 = vector.load %arg13[%c0_169, %c0_170, %c2_171, %c0_172] : memref<1x10x10x32xbf16, #tpu.memory_space<vmem>>, vector<1x8x8x32xbf16>
    %116 = vector.shape_cast %115 : vector<1x8x8x32xbf16> to vector<64x32xbf16>
    %c0_173 = arith.constant 0 : index
    %c64_174 = arith.constant 64 : index
    %117 = vector.load %arg15[%c0_173, %c64_174] : memref<64x304xbf16, #tpu.memory_space<vmem>>, vector<64x32xbf16>
    tpu.vector_store %arg15[%c0_173, %c64_174], %116 {strides = array<i32>} : memref<64x304xbf16, #tpu.memory_space<vmem>>, vector<64x32xbf16>,
    %c0_175 = arith.constant 0 : index
    %c1_176 = arith.constant 1 : index
    %c0_177 = arith.constant 0 : index
    %c0_178 = arith.constant 0 : index
    %118 = vector.load %arg13[%c0_175, %c1_176, %c0_177, %c0_178] : memref<1x10x10x32xbf16, #tpu.memory_space<vmem>>, vector<1x8x8x32xbf16>
    %119 = vector.shape_cast %118 : vector<1x8x8x32xbf16> to vector<64x32xbf16>
    %c0_179 = arith.constant 0 : index
    %c96_180 = arith.constant 96 : index
    %120 = vector.load %arg15[%c0_179, %c96_180] : memref<64x304xbf16, #tpu.memory_space<vmem>>, vector<64x32xbf16>
    tpu.vector_store %arg15[%c0_179, %c96_180], %119 {strides = array<i32>} : memref<64x304xbf16, #tpu.memory_space<vmem>>, vector<64x32xbf16>,
    %c0_181 = arith.constant 0 : index
    %c1_182 = arith.constant 1 : index
    %c1_183 = arith.constant 1 : index
    %c0_184 = arith.constant 0 : index
    %121 = vector.load %arg13[%c0_181, %c1_182, %c1_183, %c0_184] : memref<1x10x10x32xbf16, #tpu.memory_space<vmem>>, vector<1x8x8x32xbf16>
    %122 = vector.shape_cast %121 : vector<1x8x8x32xbf16> to vector<64x32xbf16>
    %c0_185 = arith.constant 0 : index
    %c128_186 = arith.constant 128 : index
    %123 = vector.load %arg15[%c0_185, %c128_186] : memref<64x304xbf16, #tpu.memory_space<vmem>>, vector<64x32xbf16>
    tpu.vector_store %arg15[%c0_185, %c128_186], %122 {strides = array<i32>} : memref<64x304xbf16, #tpu.memory_space<vmem>>, vector<64x32xbf16>,
    %c0_187 = arith.constant 0 : index
    %c1_188 = arith.constant 1 : index
    %c2_189 = arith.constant 2 : index
    %c0_190 = arith.constant 0 : index
    %124 = vector.load %arg13[%c0_187, %c1_188, %c2_189, %c0_190] : memref<1x10x10x32xbf16, #tpu.memory_space<vmem>>, vector<1x8x8x32xbf16>
    %125 = vector.shape_cast %124 : vector<1x8x8x32xbf16> to vector<64x32xbf16>
    %c0_191 = arith.constant 0 : index
    %c160 = arith.constant 160 : index
    %126 = vector.load %arg15[%c0_191, %c160] : memref<64x304xbf16, #tpu.memory_space<vmem>>, vector<64x32xbf16>
    tpu.vector_store %arg15[%c0_191, %c160], %125 {strides = array<i32>} : memref<64x304xbf16, #tpu.memory_space<vmem>>, vector<64x32xbf16>,
    %c0_192 = arith.constant 0 : index
    %c2_193 = arith.constant 2 : index
    %c0_194 = arith.constant 0 : index
    %c0_195 = arith.constant 0 : index
    %127 = vector.load %arg13[%c0_192, %c2_193, %c0_194, %c0_195] : memref<1x10x10x32xbf16, #tpu.memory_space<vmem>>, vector<1x8x8x32xbf16>
    %128 = vector.shape_cast %127 : vector<1x8x8x32xbf16> to vector<64x32xbf16>
    %c0_196 = arith.constant 0 : index
    %c192 = arith.constant 192 : index
    %129 = vector.load %arg15[%c0_196, %c192] : memref<64x304xbf16, #tpu.memory_space<vmem>>, vector<64x32xbf16>
    tpu.vector_store %arg15[%c0_196, %c192], %128 {strides = array<i32>} : memref<64x304xbf16, #tpu.memory_space<vmem>>, vector<64x32xbf16>,
    %c0_197 = arith.constant 0 : index
    %c2_198 = arith.constant 2 : index
    %c1_199 = arith.constant 1 : index
    %c0_200 = arith.constant 0 : index
    %130 = vector.load %arg13[%c0_197, %c2_198, %c1_199, %c0_200] : memref<1x10x10x32xbf16, #tpu.memory_space<vmem>>, vector<1x8x8x32xbf16>
    %131 = vector.shape_cast %130 : vector<1x8x8x32xbf16> to vector<64x32xbf16>
    %c0_201 = arith.constant 0 : index
    %c224 = arith.constant 224 : index
    %132 = vector.load %arg15[%c0_201, %c224] : memref<64x304xbf16, #tpu.memory_space<vmem>>, vector<64x32xbf16>
    tpu.vector_store %arg15[%c0_201, %c224], %131 {strides = array<i32>} : memref<64x304xbf16, #tpu.memory_space<vmem>>, vector<64x32xbf16>,
    %c0_202 = arith.constant 0 : index
    %c2_203 = arith.constant 2 : index
    %c2_204 = arith.constant 2 : index
    %c0_205 = arith.constant 0 : index
    %133 = vector.load %arg13[%c0_202, %c2_203, %c2_204, %c0_205] : memref<1x10x10x32xbf16, #tpu.memory_space<vmem>>, vector<1x8x8x32xbf16>
    %134 = vector.shape_cast %133 : vector<1x8x8x32xbf16> to vector<64x32xbf16>
    %c0_206 = arith.constant 0 : index
    %c256 = arith.constant 256 : index
    %135 = vector.load %arg15[%c0_206, %c256] : memref<64x304xbf16, #tpu.memory_space<vmem>>, vector<64x32xbf16>
    tpu.vector_store %arg15[%c0_206, %c256], %134 {strides = array<i32>} : memref<64x304xbf16, #tpu.memory_space<vmem>>, vector<64x32xbf16>,
    %c0_207 = arith.constant 0 : index
    %c0_208 = arith.constant 0 : index
    %136 = vector.load %arg15[%c0_207, %c0_208] : memref<64x304xbf16, #tpu.memory_space<vmem>>, vector<64x304xbf16>
    %c0_209 = arith.constant 0 : index
    %c0_210 = arith.constant 0 : index
    %137 = vector.load %arg6[%c0_209, %c0_210] : memref<304x32xbf16, #tpu.memory_space<vmem>>, vector<304x32xbf16>
    %cst_211 = arith.constant dense<0.000000e+00> : vector<64x32xf32>
    %138 = tpu.matmul %136, %137, %cst_211 {dimension_numbers = #tpu.dot_dimension_numbers<[1], [0], [0], [1], [0, 0, 1, 1], [], []>} : vector<64x304xbf16>, vector<304x32xbf16>, vector<64x32xf32> -> vector<64x32xf32>
    %c0_212 = arith.constant 0 : index
    %c0_213 = arith.constant 0 : index
    %139 = vector.load %arg7[%c0_212, %c0_213] : memref<1x32xf32, #tpu.memory_space<vmem>>, vector<1x32xf32>
    %140 = vector.broadcast %139 : vector<1x32xf32> to vector<64x32xf32>
    %141 = arith.addf %138, %140 : vector<64x32xf32>
    %142 = vector.shape_cast %141 : vector<64x32xf32> to vector<1x8x8x32xf32>
    %c0_214 = arith.constant 0 : index
    %c0_215 = arith.constant 0 : index
    %c0_216 = arith.constant 0 : index
    %c0_217 = arith.constant 0 : index
    %143 = vector.load %arg8[%c0_214, %c0_215, %c0_216, %c0_217] : memref<1x8x8x32xf32, #tpu.memory_space<vmem>>, vector<1x8x8x32xf32>
    tpu.vector_store %arg8[%c0_214, %c0_215, %c0_216, %c0_217], %142 {strides = array<i32>} : memref<1x8x8x32xf32, #tpu.memory_space<vmem>>, vector<1x8x8x32xf32>,
    return
  }
  func.func @transform_0(%arg0: i32) -> (i32, i32, i32, i32, i32) {
    %c0_i32 = arith.constant 0 : i32
    %c0_i32_0 = arith.constant 0 : i32
    %c0_i32_1 = arith.constant 0 : i32
    %c0_i32_2 = arith.constant 0 : i32
    %c0_i32_3 = arith.constant 0 : i32
    return %arg0, %c0_i32, %c0_i32_0, %c0_i32_1, %c0_i32_2 : i32, i32, i32, i32, i32
  }
  func.func @transform_1(%arg0: i32) -> (i32, i32) {
    %c0_i32 = arith.constant 0 : i32
    %c0_i32_0 = arith.constant 0 : i32
    %c0_i32_1 = arith.constant 0 : i32
    return %c0_i32, %c0_i32_0 : i32, i32
  }
  func.func @transform_2(%arg0: i32) -> (i32, i32) {
    %c0_i32 = arith.constant 0 : i32
    %c0_i32_0 = arith.constant 0 : i32
    %c0_i32_1 = arith.constant 0 : i32
    return %c0_i32, %c0_i32_0 : i32, i32
  }
  func.func @transform_3(%arg0: i32) -> (i32, i32) {
    %c0_i32 = arith.constant 0 : i32
    %c0_i32_0 = arith.constant 0 : i32
    %c0_i32_1 = arith.constant 0 : i32
    return %c0_i32, %c0_i32_0 : i32, i32
  }
  func.func @transform_4(%arg0: i32) -> (i32, i32) {
    %c0_i32 = arith.constant 0 : i32
    %c0_i32_0 = arith.constant 0 : i32
    %c0_i32_1 = arith.constant 0 : i32
    return %c0_i32, %c0_i32_0 : i32, i32
  }
  func.func @transform_5(%arg0: i32) -> (i32, i32) {
    %c0_i32 = arith.constant 0 : i32
    %c0_i32_0 = arith.constant 0 : i32
    %c0_i32_1 = arith.constant 0 : i32
    return %c0_i32, %c0_i32_0 : i32, i32
  }
  func.func @transform_6(%arg0: i32) -> (i32, i32) {
    %c0_i32 = arith.constant 0 : i32
    %c0_i32_0 = arith.constant 0 : i32
    %c0_i32_1 = arith.constant 0 : i32
    return %c0_i32, %c0_i32_0 : i32, i32
  }
  func.func @transform_7(%arg0: i32) -> (i32, i32, i32, i32) {
    %c0_i32 = arith.constant 0 : i32
    %c0_i32_0 = arith.constant 0 : i32
    %c0_i32_1 = arith.constant 0 : i32
    %c0_i32_2 = arith.constant 0 : i32
    return %arg0, %c0_i32, %c0_i32_0, %c0_i32_1 : i32, i32, i32, i32
  }
}

module attributes {stable_mosaic.version = 11 : i64} {
  func.func @_preact_block_kernel_s1(%arg0: i32, %arg1: memref<1x8x8x32xf32, #tpu.memory_space<vmem>>, %arg2: memref<1x32xf32, #tpu.memory_space<vmem>>, %arg3: memref<1x32xf32, #tpu.memory_space<vmem>>, %arg4: memref<288x32xbf16, #tpu.memory_space<vmem>>, %arg5: memref<1x32xf32, #tpu.memory_space<vmem>>, %arg6: memref<288x32xbf16, #tpu.memory_space<vmem>>, %arg7: memref<1x8x8x32xf32, #tpu.memory_space<vmem>>, %arg8: memref<1x10x10x32xbf16, #tpu.memory_space<vmem>>, %arg9: memref<1x10x10x32xbf16, #tpu.memory_space<vmem>>, %arg10: memref<64x288xbf16, #tpu.memory_space<vmem>>, %arg11: memref<64x288xbf16, #tpu.memory_space<vmem>>) attributes {dimension_semantics = [#tpu.dimension_semantics<parallel>], iteration_bounds = array<i64: 2>, scalar_prefetch = 0 : i64, scratch_operands = 4 : i64, tpu.core_type = #tpu.core_type<tc>, window_params = [{transform_indices = @transform_0, window_bounds = array<i64: 1, 8, 8, 32>}, {pipeline_mode = #tpu.pipeline_mode<synchronous>, transform_indices = @transform_1, window_bounds = array<i64: 1, 32>}, {pipeline_mode = #tpu.pipeline_mode<synchronous>, transform_indices = @transform_2, window_bounds = array<i64: 1, 32>}, {pipeline_mode = #tpu.pipeline_mode<synchronous>, transform_indices = @transform_3, window_bounds = array<i64: 288, 32>}, {pipeline_mode = #tpu.pipeline_mode<synchronous>, transform_indices = @transform_4, window_bounds = array<i64: 1, 32>}, {pipeline_mode = #tpu.pipeline_mode<synchronous>, transform_indices = @transform_5, window_bounds = array<i64: 288, 32>}, {transform_indices = @transform_6, window_bounds = array<i64: 1, 8, 8, 32>}]} {
    %c0 = arith.constant 0 : index
    %c0_0 = arith.constant 0 : index
    %0 = vector.load %arg2[%c0, %c0_0] : memref<1x32xf32, #tpu.memory_space<vmem>>, vector<1x32xf32>
    %1 = vector.shape_cast %0 : vector<1x32xf32> to vector<1x1x1x32xf32>
    %c0_1 = arith.constant 0 : index
    %c0_2 = arith.constant 0 : index
    %2 = vector.load %arg3[%c0_1, %c0_2] : memref<1x32xf32, #tpu.memory_space<vmem>>, vector<1x32xf32>
    %3 = vector.shape_cast %2 : vector<1x32xf32> to vector<1x1x1x32xf32>
    %c0_3 = arith.constant 0 : index
    %c0_4 = arith.constant 0 : index
    %c0_5 = arith.constant 0 : index
    %c0_6 = arith.constant 0 : index
    %4 = vector.load %arg1[%c0_3, %c0_4, %c0_5, %c0_6] : memref<1x8x8x32xf32, #tpu.memory_space<vmem>>, vector<1x8x8x32xf32>
    %5 = vector.broadcast %1 : vector<1x1x1x32xf32> to vector<1x8x8x32xf32>
    %6 = arith.mulf %4, %5 : vector<1x8x8x32xf32>
    %7 = vector.broadcast %3 : vector<1x1x1x32xf32> to vector<1x8x8x32xf32>
    %8 = arith.addf %6, %7 : vector<1x8x8x32xf32>
    %cst = arith.constant 0.000000e+00 : f32
    %9 = vector.broadcast %cst : f32 to vector<1x8x8x32xf32>
    %10 = arith.maximumf %8, %9 : vector<1x8x8x32xf32>
    %cst_7 = arith.constant 0.000000e+00 : bf16
    %11 = vector.broadcast %cst_7 : bf16 to vector<1x1x10x32xbf16>
    %c0_8 = arith.constant 0 : index
    %c0_9 = arith.constant 0 : index
    %c0_10 = arith.constant 0 : index
    %c0_11 = arith.constant 0 : index
    %12 = vector.load %arg8[%c0_8, %c0_9, %c0_10, %c0_11] : memref<1x10x10x32xbf16, #tpu.memory_space<vmem>>, vector<1x1x10x32xbf16>
    tpu.vector_store %arg8[%c0_8, %c0_9, %c0_10, %c0_11], %11 {strides = array<i32>} : memref<1x10x10x32xbf16, #tpu.memory_space<vmem>>, vector<1x1x10x32xbf16>,
    %cst_12 = arith.constant 0.000000e+00 : bf16
    %13 = vector.broadcast %cst_12 : bf16 to vector<1x1x10x32xbf16>
    %c0_13 = arith.constant 0 : index
    %c9 = arith.constant 9 : index
    %c0_14 = arith.constant 0 : index
    %c0_15 = arith.constant 0 : index
    %14 = vector.load %arg8[%c0_13, %c9, %c0_14, %c0_15] : memref<1x10x10x32xbf16, #tpu.memory_space<vmem>>, vector<1x1x10x32xbf16>
    tpu.vector_store %arg8[%c0_13, %c9, %c0_14, %c0_15], %13 {strides = array<i32>} : memref<1x10x10x32xbf16, #tpu.memory_space<vmem>>, vector<1x1x10x32xbf16>,
    %cst_16 = arith.constant 0.000000e+00 : bf16
    %15 = vector.broadcast %cst_16 : bf16 to vector<1x8x1x32xbf16>
    %c0_17 = arith.constant 0 : index
    %c1 = arith.constant 1 : index
    %c0_18 = arith.constant 0 : index
    %c0_19 = arith.constant 0 : index
    %16 = vector.load %arg8[%c0_17, %c1, %c0_18, %c0_19] : memref<1x10x10x32xbf16, #tpu.memory_space<vmem>>, vector<1x8x1x32xbf16>
    tpu.vector_store %arg8[%c0_17, %c1, %c0_18, %c0_19], %15 {strides = array<i32>} : memref<1x10x10x32xbf16, #tpu.memory_space<vmem>>, vector<1x8x1x32xbf16>,
    %cst_20 = arith.constant 0.000000e+00 : bf16
    %17 = vector.broadcast %cst_20 : bf16 to vector<1x8x1x32xbf16>
    %c0_21 = arith.constant 0 : index
    %c1_22 = arith.constant 1 : index
    %c9_23 = arith.constant 9 : index
    %c0_24 = arith.constant 0 : index
    %18 = vector.load %arg8[%c0_21, %c1_22, %c9_23, %c0_24] : memref<1x10x10x32xbf16, #tpu.memory_space<vmem>>, vector<1x8x1x32xbf16>
    tpu.vector_store %arg8[%c0_21, %c1_22, %c9_23, %c0_24], %17 {strides = array<i32>} : memref<1x10x10x32xbf16, #tpu.memory_space<vmem>>, vector<1x8x1x32xbf16>,
    %19 = arith.truncf %10 : vector<1x8x8x32xf32> to vector<1x8x8x32xbf16>
    %c0_25 = arith.constant 0 : index
    %c1_26 = arith.constant 1 : index
    %c1_27 = arith.constant 1 : index
    %c0_28 = arith.constant 0 : index
    %20 = vector.load %arg8[%c0_25, %c1_26, %c1_27, %c0_28] : memref<1x10x10x32xbf16, #tpu.memory_space<vmem>>, vector<1x8x8x32xbf16>
    tpu.vector_store %arg8[%c0_25, %c1_26, %c1_27, %c0_28], %19 {strides = array<i32>} : memref<1x10x10x32xbf16, #tpu.memory_space<vmem>>, vector<1x8x8x32xbf16>,
    %c0_29 = arith.constant 0 : index
    %c0_30 = arith.constant 0 : index
    %c0_31 = arith.constant 0 : index
    %c0_32 = arith.constant 0 : index
    %21 = vector.load %arg8[%c0_29, %c0_30, %c0_31, %c0_32] : memref<1x10x10x32xbf16, #tpu.memory_space<vmem>>, vector<1x8x8x32xbf16>
    %22 = vector.shape_cast %21 : vector<1x8x8x32xbf16> to vector<64x32xbf16>
    %c0_33 = arith.constant 0 : index
    %c0_34 = arith.constant 0 : index
    %23 = vector.load %arg10[%c0_33, %c0_34] : memref<64x288xbf16, #tpu.memory_space<vmem>>, vector<64x32xbf16>
    tpu.vector_store %arg10[%c0_33, %c0_34], %22 {strides = array<i32>} : memref<64x288xbf16, #tpu.memory_space<vmem>>, vector<64x32xbf16>,
    %c0_35 = arith.constant 0 : index
    %c0_36 = arith.constant 0 : index
    %c1_37 = arith.constant 1 : index
    %c0_38 = arith.constant 0 : index
    %24 = vector.load %arg8[%c0_35, %c0_36, %c1_37, %c0_38] : memref<1x10x10x32xbf16, #tpu.memory_space<vmem>>, vector<1x8x8x32xbf16>
    %25 = vector.shape_cast %24 : vector<1x8x8x32xbf16> to vector<64x32xbf16>
    %c0_39 = arith.constant 0 : index
    %c32 = arith.constant 32 : index
    %26 = vector.load %arg10[%c0_39, %c32] : memref<64x288xbf16, #tpu.memory_space<vmem>>, vector<64x32xbf16>
    tpu.vector_store %arg10[%c0_39, %c32], %25 {strides = array<i32>} : memref<64x288xbf16, #tpu.memory_space<vmem>>, vector<64x32xbf16>,
    %c0_40 = arith.constant 0 : index
    %c0_41 = arith.constant 0 : index
    %c2 = arith.constant 2 : index
    %c0_42 = arith.constant 0 : index
    %27 = vector.load %arg8[%c0_40, %c0_41, %c2, %c0_42] : memref<1x10x10x32xbf16, #tpu.memory_space<vmem>>, vector<1x8x8x32xbf16>
    %28 = vector.shape_cast %27 : vector<1x8x8x32xbf16> to vector<64x32xbf16>
    %c0_43 = arith.constant 0 : index
    %c64 = arith.constant 64 : index
    %29 = vector.load %arg10[%c0_43, %c64] : memref<64x288xbf16, #tpu.memory_space<vmem>>, vector<64x32xbf16>
    tpu.vector_store %arg10[%c0_43, %c64], %28 {strides = array<i32>} : memref<64x288xbf16, #tpu.memory_space<vmem>>, vector<64x32xbf16>,
    %c0_44 = arith.constant 0 : index
    %c1_45 = arith.constant 1 : index
    %c0_46 = arith.constant 0 : index
    %c0_47 = arith.constant 0 : index
    %30 = vector.load %arg8[%c0_44, %c1_45, %c0_46, %c0_47] : memref<1x10x10x32xbf16, #tpu.memory_space<vmem>>, vector<1x8x8x32xbf16>
    %31 = vector.shape_cast %30 : vector<1x8x8x32xbf16> to vector<64x32xbf16>
    %c0_48 = arith.constant 0 : index
    %c96 = arith.constant 96 : index
    %32 = vector.load %arg10[%c0_48, %c96] : memref<64x288xbf16, #tpu.memory_space<vmem>>, vector<64x32xbf16>
    tpu.vector_store %arg10[%c0_48, %c96], %31 {strides = array<i32>} : memref<64x288xbf16, #tpu.memory_space<vmem>>, vector<64x32xbf16>,
    %c0_49 = arith.constant 0 : index
    %c1_50 = arith.constant 1 : index
    %c1_51 = arith.constant 1 : index
    %c0_52 = arith.constant 0 : index
    %33 = vector.load %arg8[%c0_49, %c1_50, %c1_51, %c0_52] : memref<1x10x10x32xbf16, #tpu.memory_space<vmem>>, vector<1x8x8x32xbf16>
    %34 = vector.shape_cast %33 : vector<1x8x8x32xbf16> to vector<64x32xbf16>
    %c0_53 = arith.constant 0 : index
    %c128 = arith.constant 128 : index
    %35 = vector.load %arg10[%c0_53, %c128] : memref<64x288xbf16, #tpu.memory_space<vmem>>, vector<64x32xbf16>
    tpu.vector_store %arg10[%c0_53, %c128], %34 {strides = array<i32>} : memref<64x288xbf16, #tpu.memory_space<vmem>>, vector<64x32xbf16>,
    %c0_54 = arith.constant 0 : index
    %c1_55 = arith.constant 1 : index
    %c2_56 = arith.constant 2 : index
    %c0_57 = arith.constant 0 : index
    %36 = vector.load %arg8[%c0_54, %c1_55, %c2_56, %c0_57] : memref<1x10x10x32xbf16, #tpu.memory_space<vmem>>, vector<1x8x8x32xbf16>
    %37 = vector.shape_cast %36 : vector<1x8x8x32xbf16> to vector<64x32xbf16>
    %c0_58 = arith.constant 0 : index
    %c160 = arith.constant 160 : index
    %38 = vector.load %arg10[%c0_58, %c160] : memref<64x288xbf16, #tpu.memory_space<vmem>>, vector<64x32xbf16>
    tpu.vector_store %arg10[%c0_58, %c160], %37 {strides = array<i32>} : memref<64x288xbf16, #tpu.memory_space<vmem>>, vector<64x32xbf16>,
    %c0_59 = arith.constant 0 : index
    %c2_60 = arith.constant 2 : index
    %c0_61 = arith.constant 0 : index
    %c0_62 = arith.constant 0 : index
    %39 = vector.load %arg8[%c0_59, %c2_60, %c0_61, %c0_62] : memref<1x10x10x32xbf16, #tpu.memory_space<vmem>>, vector<1x8x8x32xbf16>
    %40 = vector.shape_cast %39 : vector<1x8x8x32xbf16> to vector<64x32xbf16>
    %c0_63 = arith.constant 0 : index
    %c192 = arith.constant 192 : index
    %41 = vector.load %arg10[%c0_63, %c192] : memref<64x288xbf16, #tpu.memory_space<vmem>>, vector<64x32xbf16>
    tpu.vector_store %arg10[%c0_63, %c192], %40 {strides = array<i32>} : memref<64x288xbf16, #tpu.memory_space<vmem>>, vector<64x32xbf16>,
    %c0_64 = arith.constant 0 : index
    %c2_65 = arith.constant 2 : index
    %c1_66 = arith.constant 1 : index
    %c0_67 = arith.constant 0 : index
    %42 = vector.load %arg8[%c0_64, %c2_65, %c1_66, %c0_67] : memref<1x10x10x32xbf16, #tpu.memory_space<vmem>>, vector<1x8x8x32xbf16>
    %43 = vector.shape_cast %42 : vector<1x8x8x32xbf16> to vector<64x32xbf16>
    %c0_68 = arith.constant 0 : index
    %c224 = arith.constant 224 : index
    %44 = vector.load %arg10[%c0_68, %c224] : memref<64x288xbf16, #tpu.memory_space<vmem>>, vector<64x32xbf16>
    tpu.vector_store %arg10[%c0_68, %c224], %43 {strides = array<i32>} : memref<64x288xbf16, #tpu.memory_space<vmem>>, vector<64x32xbf16>,
    %c0_69 = arith.constant 0 : index
    %c2_70 = arith.constant 2 : index
    %c2_71 = arith.constant 2 : index
    %c0_72 = arith.constant 0 : index
    %45 = vector.load %arg8[%c0_69, %c2_70, %c2_71, %c0_72] : memref<1x10x10x32xbf16, #tpu.memory_space<vmem>>, vector<1x8x8x32xbf16>
    %46 = vector.shape_cast %45 : vector<1x8x8x32xbf16> to vector<64x32xbf16>
    %c0_73 = arith.constant 0 : index
    %c256 = arith.constant 256 : index
    %47 = vector.load %arg10[%c0_73, %c256] : memref<64x288xbf16, #tpu.memory_space<vmem>>, vector<64x32xbf16>
    tpu.vector_store %arg10[%c0_73, %c256], %46 {strides = array<i32>} : memref<64x288xbf16, #tpu.memory_space<vmem>>, vector<64x32xbf16>,
    %c0_74 = arith.constant 0 : index
    %c0_75 = arith.constant 0 : index
    %48 = vector.load %arg10[%c0_74, %c0_75] : memref<64x288xbf16, #tpu.memory_space<vmem>>, vector<64x288xbf16>
    %c0_76 = arith.constant 0 : index
    %c0_77 = arith.constant 0 : index
    %49 = vector.load %arg4[%c0_76, %c0_77] : memref<288x32xbf16, #tpu.memory_space<vmem>>, vector<288x32xbf16>
    %cst_78 = arith.constant dense<0.000000e+00> : vector<64x32xf32>
    %50 = tpu.matmul %48, %49, %cst_78 {dimension_numbers = #tpu.dot_dimension_numbers<[1], [0], [0], [1], [0, 0, 1, 1], [], []>} : vector<64x288xbf16>, vector<288x32xbf16>, vector<64x32xf32> -> vector<64x32xf32>
    %c0_79 = arith.constant 0 : index
    %c0_80 = arith.constant 0 : index
    %51 = vector.load %arg5[%c0_79, %c0_80] : memref<1x32xf32, #tpu.memory_space<vmem>>, vector<1x32xf32>
    %52 = vector.broadcast %51 : vector<1x32xf32> to vector<64x32xf32>
    %53 = arith.addf %50, %52 : vector<64x32xf32>
    %cst_81 = arith.constant 0.000000e+00 : f32
    %54 = vector.broadcast %cst_81 : f32 to vector<64x32xf32>
    %55 = arith.maximumf %53, %54 : vector<64x32xf32>
    %cst_82 = arith.constant 0.000000e+00 : bf16
    %56 = vector.broadcast %cst_82 : bf16 to vector<1x1x10x32xbf16>
    %c0_83 = arith.constant 0 : index
    %c0_84 = arith.constant 0 : index
    %c0_85 = arith.constant 0 : index
    %c0_86 = arith.constant 0 : index
    %57 = vector.load %arg9[%c0_83, %c0_84, %c0_85, %c0_86] : memref<1x10x10x32xbf16, #tpu.memory_space<vmem>>, vector<1x1x10x32xbf16>
    tpu.vector_store %arg9[%c0_83, %c0_84, %c0_85, %c0_86], %56 {strides = array<i32>} : memref<1x10x10x32xbf16, #tpu.memory_space<vmem>>, vector<1x1x10x32xbf16>,
    %cst_87 = arith.constant 0.000000e+00 : bf16
    %58 = vector.broadcast %cst_87 : bf16 to vector<1x1x10x32xbf16>
    %c0_88 = arith.constant 0 : index
    %c9_89 = arith.constant 9 : index
    %c0_90 = arith.constant 0 : index
    %c0_91 = arith.constant 0 : index
    %59 = vector.load %arg9[%c0_88, %c9_89, %c0_90, %c0_91] : memref<1x10x10x32xbf16, #tpu.memory_space<vmem>>, vector<1x1x10x32xbf16>
    tpu.vector_store %arg9[%c0_88, %c9_89, %c0_90, %c0_91], %58 {strides = array<i32>} : memref<1x10x10x32xbf16, #tpu.memory_space<vmem>>, vector<1x1x10x32xbf16>,
    %cst_92 = arith.constant 0.000000e+00 : bf16
    %60 = vector.broadcast %cst_92 : bf16 to vector<1x8x1x32xbf16>
    %c0_93 = arith.constant 0 : index
    %c1_94 = arith.constant 1 : index
    %c0_95 = arith.constant 0 : index
    %c0_96 = arith.constant 0 : index
    %61 = vector.load %arg9[%c0_93, %c1_94, %c0_95, %c0_96] : memref<1x10x10x32xbf16, #tpu.memory_space<vmem>>, vector<1x8x1x32xbf16>
    tpu.vector_store %arg9[%c0_93, %c1_94, %c0_95, %c0_96], %60 {strides = array<i32>} : memref<1x10x10x32xbf16, #tpu.memory_space<vmem>>, vector<1x8x1x32xbf16>,
    %cst_97 = arith.constant 0.000000e+00 : bf16
    %62 = vector.broadcast %cst_97 : bf16 to vector<1x8x1x32xbf16>
    %c0_98 = arith.constant 0 : index
    %c1_99 = arith.constant 1 : index
    %c9_100 = arith.constant 9 : index
    %c0_101 = arith.constant 0 : index
    %63 = vector.load %arg9[%c0_98, %c1_99, %c9_100, %c0_101] : memref<1x10x10x32xbf16, #tpu.memory_space<vmem>>, vector<1x8x1x32xbf16>
    tpu.vector_store %arg9[%c0_98, %c1_99, %c9_100, %c0_101], %62 {strides = array<i32>} : memref<1x10x10x32xbf16, #tpu.memory_space<vmem>>, vector<1x8x1x32xbf16>,
    %64 = vector.shape_cast %55 : vector<64x32xf32> to vector<1x8x8x32xf32>
    %65 = arith.truncf %64 : vector<1x8x8x32xf32> to vector<1x8x8x32xbf16>
    %c0_102 = arith.constant 0 : index
    %c1_103 = arith.constant 1 : index
    %c1_104 = arith.constant 1 : index
    %c0_105 = arith.constant 0 : index
    %66 = vector.load %arg9[%c0_102, %c1_103, %c1_104, %c0_105] : memref<1x10x10x32xbf16, #tpu.memory_space<vmem>>, vector<1x8x8x32xbf16>
    tpu.vector_store %arg9[%c0_102, %c1_103, %c1_104, %c0_105], %65 {strides = array<i32>} : memref<1x10x10x32xbf16, #tpu.memory_space<vmem>>, vector<1x8x8x32xbf16>,
    %c0_106 = arith.constant 0 : index
    %c0_107 = arith.constant 0 : index
    %c0_108 = arith.constant 0 : index
    %c0_109 = arith.constant 0 : index
    %67 = vector.load %arg9[%c0_106, %c0_107, %c0_108, %c0_109] : memref<1x10x10x32xbf16, #tpu.memory_space<vmem>>, vector<1x8x8x32xbf16>
    %68 = vector.shape_cast %67 : vector<1x8x8x32xbf16> to vector<64x32xbf16>
    %c0_110 = arith.constant 0 : index
    %c0_111 = arith.constant 0 : index
    %69 = vector.load %arg11[%c0_110, %c0_111] : memref<64x288xbf16, #tpu.memory_space<vmem>>, vector<64x32xbf16>
    tpu.vector_store %arg11[%c0_110, %c0_111], %68 {strides = array<i32>} : memref<64x288xbf16, #tpu.memory_space<vmem>>, vector<64x32xbf16>,
    %c0_112 = arith.constant 0 : index
    %c0_113 = arith.constant 0 : index
    %c1_114 = arith.constant 1 : index
    %c0_115 = arith.constant 0 : index
    %70 = vector.load %arg9[%c0_112, %c0_113, %c1_114, %c0_115] : memref<1x10x10x32xbf16, #tpu.memory_space<vmem>>, vector<1x8x8x32xbf16>
    %71 = vector.shape_cast %70 : vector<1x8x8x32xbf16> to vector<64x32xbf16>
    %c0_116 = arith.constant 0 : index
    %c32_117 = arith.constant 32 : index
    %72 = vector.load %arg11[%c0_116, %c32_117] : memref<64x288xbf16, #tpu.memory_space<vmem>>, vector<64x32xbf16>
    tpu.vector_store %arg11[%c0_116, %c32_117], %71 {strides = array<i32>} : memref<64x288xbf16, #tpu.memory_space<vmem>>, vector<64x32xbf16>,
    %c0_118 = arith.constant 0 : index
    %c0_119 = arith.constant 0 : index
    %c2_120 = arith.constant 2 : index
    %c0_121 = arith.constant 0 : index
    %73 = vector.load %arg9[%c0_118, %c0_119, %c2_120, %c0_121] : memref<1x10x10x32xbf16, #tpu.memory_space<vmem>>, vector<1x8x8x32xbf16>
    %74 = vector.shape_cast %73 : vector<1x8x8x32xbf16> to vector<64x32xbf16>
    %c0_122 = arith.constant 0 : index
    %c64_123 = arith.constant 64 : index
    %75 = vector.load %arg11[%c0_122, %c64_123] : memref<64x288xbf16, #tpu.memory_space<vmem>>, vector<64x32xbf16>
    tpu.vector_store %arg11[%c0_122, %c64_123], %74 {strides = array<i32>} : memref<64x288xbf16, #tpu.memory_space<vmem>>, vector<64x32xbf16>,
    %c0_124 = arith.constant 0 : index
    %c1_125 = arith.constant 1 : index
    %c0_126 = arith.constant 0 : index
    %c0_127 = arith.constant 0 : index
    %76 = vector.load %arg9[%c0_124, %c1_125, %c0_126, %c0_127] : memref<1x10x10x32xbf16, #tpu.memory_space<vmem>>, vector<1x8x8x32xbf16>
    %77 = vector.shape_cast %76 : vector<1x8x8x32xbf16> to vector<64x32xbf16>
    %c0_128 = arith.constant 0 : index
    %c96_129 = arith.constant 96 : index
    %78 = vector.load %arg11[%c0_128, %c96_129] : memref<64x288xbf16, #tpu.memory_space<vmem>>, vector<64x32xbf16>
    tpu.vector_store %arg11[%c0_128, %c96_129], %77 {strides = array<i32>} : memref<64x288xbf16, #tpu.memory_space<vmem>>, vector<64x32xbf16>,
    %c0_130 = arith.constant 0 : index
    %c1_131 = arith.constant 1 : index
    %c1_132 = arith.constant 1 : index
    %c0_133 = arith.constant 0 : index
    %79 = vector.load %arg9[%c0_130, %c1_131, %c1_132, %c0_133] : memref<1x10x10x32xbf16, #tpu.memory_space<vmem>>, vector<1x8x8x32xbf16>
    %80 = vector.shape_cast %79 : vector<1x8x8x32xbf16> to vector<64x32xbf16>
    %c0_134 = arith.constant 0 : index
    %c128_135 = arith.constant 128 : index
    %81 = vector.load %arg11[%c0_134, %c128_135] : memref<64x288xbf16, #tpu.memory_space<vmem>>, vector<64x32xbf16>
    tpu.vector_store %arg11[%c0_134, %c128_135], %80 {strides = array<i32>} : memref<64x288xbf16, #tpu.memory_space<vmem>>, vector<64x32xbf16>,
    %c0_136 = arith.constant 0 : index
    %c1_137 = arith.constant 1 : index
    %c2_138 = arith.constant 2 : index
    %c0_139 = arith.constant 0 : index
    %82 = vector.load %arg9[%c0_136, %c1_137, %c2_138, %c0_139] : memref<1x10x10x32xbf16, #tpu.memory_space<vmem>>, vector<1x8x8x32xbf16>
    %83 = vector.shape_cast %82 : vector<1x8x8x32xbf16> to vector<64x32xbf16>
    %c0_140 = arith.constant 0 : index
    %c160_141 = arith.constant 160 : index
    %84 = vector.load %arg11[%c0_140, %c160_141] : memref<64x288xbf16, #tpu.memory_space<vmem>>, vector<64x32xbf16>
    tpu.vector_store %arg11[%c0_140, %c160_141], %83 {strides = array<i32>} : memref<64x288xbf16, #tpu.memory_space<vmem>>, vector<64x32xbf16>,
    %c0_142 = arith.constant 0 : index
    %c2_143 = arith.constant 2 : index
    %c0_144 = arith.constant 0 : index
    %c0_145 = arith.constant 0 : index
    %85 = vector.load %arg9[%c0_142, %c2_143, %c0_144, %c0_145] : memref<1x10x10x32xbf16, #tpu.memory_space<vmem>>, vector<1x8x8x32xbf16>
    %86 = vector.shape_cast %85 : vector<1x8x8x32xbf16> to vector<64x32xbf16>
    %c0_146 = arith.constant 0 : index
    %c192_147 = arith.constant 192 : index
    %87 = vector.load %arg11[%c0_146, %c192_147] : memref<64x288xbf16, #tpu.memory_space<vmem>>, vector<64x32xbf16>
    tpu.vector_store %arg11[%c0_146, %c192_147], %86 {strides = array<i32>} : memref<64x288xbf16, #tpu.memory_space<vmem>>, vector<64x32xbf16>,
    %c0_148 = arith.constant 0 : index
    %c2_149 = arith.constant 2 : index
    %c1_150 = arith.constant 1 : index
    %c0_151 = arith.constant 0 : index
    %88 = vector.load %arg9[%c0_148, %c2_149, %c1_150, %c0_151] : memref<1x10x10x32xbf16, #tpu.memory_space<vmem>>, vector<1x8x8x32xbf16>
    %89 = vector.shape_cast %88 : vector<1x8x8x32xbf16> to vector<64x32xbf16>
    %c0_152 = arith.constant 0 : index
    %c224_153 = arith.constant 224 : index
    %90 = vector.load %arg11[%c0_152, %c224_153] : memref<64x288xbf16, #tpu.memory_space<vmem>>, vector<64x32xbf16>
    tpu.vector_store %arg11[%c0_152, %c224_153], %89 {strides = array<i32>} : memref<64x288xbf16, #tpu.memory_space<vmem>>, vector<64x32xbf16>,
    %c0_154 = arith.constant 0 : index
    %c2_155 = arith.constant 2 : index
    %c2_156 = arith.constant 2 : index
    %c0_157 = arith.constant 0 : index
    %91 = vector.load %arg9[%c0_154, %c2_155, %c2_156, %c0_157] : memref<1x10x10x32xbf16, #tpu.memory_space<vmem>>, vector<1x8x8x32xbf16>
    %92 = vector.shape_cast %91 : vector<1x8x8x32xbf16> to vector<64x32xbf16>
    %c0_158 = arith.constant 0 : index
    %c256_159 = arith.constant 256 : index
    %93 = vector.load %arg11[%c0_158, %c256_159] : memref<64x288xbf16, #tpu.memory_space<vmem>>, vector<64x32xbf16>
    tpu.vector_store %arg11[%c0_158, %c256_159], %92 {strides = array<i32>} : memref<64x288xbf16, #tpu.memory_space<vmem>>, vector<64x32xbf16>,
    %c0_160 = arith.constant 0 : index
    %c0_161 = arith.constant 0 : index
    %94 = vector.load %arg11[%c0_160, %c0_161] : memref<64x288xbf16, #tpu.memory_space<vmem>>, vector<64x288xbf16>
    %c0_162 = arith.constant 0 : index
    %c0_163 = arith.constant 0 : index
    %95 = vector.load %arg6[%c0_162, %c0_163] : memref<288x32xbf16, #tpu.memory_space<vmem>>, vector<288x32xbf16>
    %cst_164 = arith.constant dense<0.000000e+00> : vector<64x32xf32>
    %96 = tpu.matmul %94, %95, %cst_164 {dimension_numbers = #tpu.dot_dimension_numbers<[1], [0], [0], [1], [0, 0, 1, 1], [], []>} : vector<64x288xbf16>, vector<288x32xbf16>, vector<64x32xf32> -> vector<64x32xf32>
    %97 = vector.shape_cast %96 : vector<64x32xf32> to vector<1x8x8x32xf32>
    %c0_165 = arith.constant 0 : index
    %c0_166 = arith.constant 0 : index
    %c0_167 = arith.constant 0 : index
    %c0_168 = arith.constant 0 : index
    %98 = vector.load %arg1[%c0_165, %c0_166, %c0_167, %c0_168] : memref<1x8x8x32xf32, #tpu.memory_space<vmem>>, vector<1x8x8x32xf32>
    %99 = arith.addf %97, %98 : vector<1x8x8x32xf32>
    %c0_169 = arith.constant 0 : index
    %c0_170 = arith.constant 0 : index
    %c0_171 = arith.constant 0 : index
    %c0_172 = arith.constant 0 : index
    %100 = vector.load %arg7[%c0_169, %c0_170, %c0_171, %c0_172] : memref<1x8x8x32xf32, #tpu.memory_space<vmem>>, vector<1x8x8x32xf32>
    tpu.vector_store %arg7[%c0_169, %c0_170, %c0_171, %c0_172], %99 {strides = array<i32>} : memref<1x8x8x32xf32, #tpu.memory_space<vmem>>, vector<1x8x8x32xf32>,
    return
  }
  func.func @transform_0(%arg0: i32) -> (i32, i32, i32, i32) {
    %c0_i32 = arith.constant 0 : i32
    %c0_i32_0 = arith.constant 0 : i32
    %c0_i32_1 = arith.constant 0 : i32
    %c0_i32_2 = arith.constant 0 : i32
    return %arg0, %c0_i32, %c0_i32_0, %c0_i32_1 : i32, i32, i32, i32
  }
  func.func @transform_1(%arg0: i32) -> (i32, i32) {
    %c0_i32 = arith.constant 0 : i32
    %c0_i32_0 = arith.constant 0 : i32
    %c0_i32_1 = arith.constant 0 : i32
    return %c0_i32, %c0_i32_0 : i32, i32
  }
  func.func @transform_2(%arg0: i32) -> (i32, i32) {
    %c0_i32 = arith.constant 0 : i32
    %c0_i32_0 = arith.constant 0 : i32
    %c0_i32_1 = arith.constant 0 : i32
    return %c0_i32, %c0_i32_0 : i32, i32
  }
  func.func @transform_3(%arg0: i32) -> (i32, i32) {
    %c0_i32 = arith.constant 0 : i32
    %c0_i32_0 = arith.constant 0 : i32
    %c0_i32_1 = arith.constant 0 : i32
    return %c0_i32, %c0_i32_0 : i32, i32
  }
  func.func @transform_4(%arg0: i32) -> (i32, i32) {
    %c0_i32 = arith.constant 0 : i32
    %c0_i32_0 = arith.constant 0 : i32
    %c0_i32_1 = arith.constant 0 : i32
    return %c0_i32, %c0_i32_0 : i32, i32
  }
  func.func @transform_5(%arg0: i32) -> (i32, i32) {
    %c0_i32 = arith.constant 0 : i32
    %c0_i32_0 = arith.constant 0 : i32
    %c0_i32_1 = arith.constant 0 : i32
    return %c0_i32, %c0_i32_0 : i32, i32
  }
  func.func @transform_6(%arg0: i32) -> (i32, i32, i32, i32) {
    %c0_i32 = arith.constant 0 : i32
    %c0_i32_0 = arith.constant 0 : i32
    %c0_i32_1 = arith.constant 0 : i32
    %c0_i32_2 = arith.constant 0 : i32
    return %arg0, %c0_i32, %c0_i32_0, %c0_i32_1 : i32, i32, i32, i32
  }
}

</mosaic_0001>

<bundles_post_ra>
// kernel: two_blocks.3
= control target key start
LH: loop header
LB: loop body
LE: loop exit
PB: predicated region body
PF: predicated region fallthrough
CT: control target
= control target key end

     0   :  { %11 = vsyncpa [#allocation7], 0  ;;  %s4644_s0 = inlined_call_operand.vmem [shape: f32[2,8,8,32], index: 0, kind: input, shape index: {}]   ;;  %s4645_s1 = inlined_call_operand.vmem [shape: f32[1,32], index: 1, kind: input, shape index: {}]   ;;  %s4646_s2 = inlined_call_operand.vmem [shape: f32[1,32], index: 2, kind: input, shape index: {}, may-alias: {2,4}]   ;;  %s4647_s3 = inlined_call_operand.vmem [shape: bf16[288,32], index: 3, kind: input, shape index: {}]   ;;  %s4648_s4 = inlined_call_operand.vmem [shape: f32[1,32], index: 4, kind: input, shape index: {}, may-alias: {2,4}]   ;;  %s4649_s5 = inlined_call_operand.vmem [shape: bf16[288,32], index: 5, kind: input, shape index: {}]   ;;  %s4650_s6 = inlined_call_operand.hbm [shape: f32[2,8,8,32], index: 6, kind: output, shape index: {}]  }
   0x1   :  { %13 = vsyncpa [#allocation7 + $0x1], 0  ;;  %s3673_s21 = smov 0   ;;  %s3675_s22 = smov 0  }
   0x2   :  { %s3677_s23 = smov 0   ;;  %s3679_s24 = smov 0  }
   0x3 LB: > { %s3694_s25 = sadd.s32 4294967295, %s3630_s24   ;;  %s3140_s26 = sadd.s32 4294967294, %s3630_s24   ;;  %s3630_s24 = sphi %s3679_s24, %s4666_s24   ;;  %s3626_s23 = sphi %s3677_s23, %s4665_s23   ;;  %s3622_s22 = sphi %s3675_s22, %s4664_s22   ;;  %s3618_s21 = sphi %s3673_s21, %s4663_s21  }
   0x4   : > { %s3698_s27 = sadd.s32 1, %s3630_s24   ;;  %s157_s28 = sadd.s32 1, %s3626_s23 }
   0x5   : > { %s154_s29 = ssub.s32 %s3630_s24, %s3698_s27  ;;  %p167_p0 = scmp.ne.s32.totalorder %s3626_s23, %s3622_s22 }
   0x6   : > { %p155_p1 = scmp.eq.s32.totalorder %s154_s29, 0  ;;  %p168_p2 = scmp.eq.s32.totalorder %s3694_s25, 1 }
   0x7   : > { %p173_p3 = scmp.ne.s32.totalorder %s3622_s22, %s3618_s21  ;;  %p174_p4 = scmp.eq.s32.totalorder %s3140_s26, 1 }
   0x8   : > { %s3709_s30 = scalar_select %p155_p1, %s3626_s23, %s157_s28  }
   0x9   : > { %p3711_p5 = por %p168_p2, %p167_p0  ;;  %p3715_p6 = por %p174_p4, %p173_p3 }
   0xa   : > { %p3143_p7 = scmp.ge.s32.totalorder %s3630_s24, 1  ;;  %p215_p8 = scmp.lt.s32.totalorder %s3630_s24, 3 }
   0xc   : > { %p216_p9 = pnand %p3143_p7, %p215_p8 }
   0xd   : > { %p245_p10 = scmp.lt.s32.totalorder (!%p216_p9), %s3694_s25, 1  ;;  %s3633_s18 = smov (!%p216_p9), 32  }
   0xe   : > { %219 = sbr.rel (%p216_p9) target bundleno = 777 (0x309), region = 44  ;;  %s3634_s19 = smov (!%p216_p9), 64  }
   0xf   : > { %s3635_s20 = smov (!%p216_p9), 96   ;;  %s3509_s13 = sshll.u32 (!%p216_p9), %s3694_s25, 6 }
  0x13   : > { %vm291_vm0 = vcmask 257024   ;;  %vm293_vm1 = vcmask 253952   ;;  %vm300_vm2 = vsmask.f32 256  ;;  %v3632_v0 = vmov 0   ;;  %s246_s9 = scalar_select %p245_p10, %s3694_s25, 1 }
  0x14   : > { %292 = vst.msk [vmem:[#allocation2] sm:$0xf] %vm291_vm0, %v3632_v0  ;;  %vm326_vm3 = vsmask.f32 7938  ;;  %vm3725_vm4 = vmand %vm293_vm1, %vm300_vm2  ;;  %vm522_vm5 = vsmask.f32 3328 }
  0x15   : > { %294 = vst.msk [vmem:[#allocation2 + $0x4] sm:$0x1] %vm293_vm1, %v3632_v0  ;;  %vm3732_vm6 = vmand %vm293_vm1, %vm326_vm3  ;;  %vm523_vm7 = vsmask.f32 7440  ;;  %v3742_v3 = vld [vmem:[%s4645_s1] ss:$0 sm:$0xff] }
  0x16   : > { %1684 = vst.msk [vmem:[#allocation3 + $0x4c] sm:$0x1] %vm293_vm1, %v3632_v0  ;;  %v320_v4 = vld [vmem:[#allocation2 + $0x38] sm:$0x1]  ;;  %s3448_s12 = sshll.u32 %s246_s9, 6  ;;  %vm3779_vm8 = vmor %vm522_vm5, %vm523_vm7  ;;  %vm702_vm9 = vcmask 1042432  }
  0x17   : > { %296 = vst.msk [vmem:[#allocation2 + $0x48] sm:$0xf] %vm291_vm0, %v3632_v0  ;;  %v321_v5 = vsel %vm3725_vm4, 0, %v320_v4  ;;  %v346_v6 = vld [vmem:[#allocation2 + $0x3c] sm:$0x1]  ;;  %s3751_s15 = scalar_lea.vmem %s4644_s0, %s3448_s12  ;;  %vm703_vm10 = vcmask 1046532   ;;  %vm3797_vm11 = vmand %vm291_vm0, %vm326_vm3 }
  0x18   : > { %297 = vst.msk [vmem:[#allocation2 + $0x4c] sm:$0x1] %vm293_vm1, %v3632_v0  ;;  %v3756_v7 = vld [vmem:[%s4646_s2] ss:$0 sm:$0xff]  ;;  %v347_v8 = vsel %vm3732_vm6, 0, %v346_v6  ;;  %v259_v10 = vld [vmem:[%s3751_s15 + $0x30] sm:$0xff]  ;;  %vm3803_vm12 = vmor %vm702_vm9, %vm703_vm10 }
  0x19   : > { %1680 = vst.msk [vmem:[#allocation3] sm:$0xf] %vm291_vm0, %v3632_v0  ;;  %v270_v14 = vmul.f32 %v3742_v3, %v259_v10  ;;  %v256_v16 = vld [vmem:[%s3751_s15 + $0x18] sm:$0xff]  ;;  %v311_v17 = vld [vmem:[#allocation2 + $0x20] sm:$0x1]  ;;  %v258_v24 = vld [vmem:[%s3751_s15 + $0x28] sm:$0xff] }
  0x1a   : > { %1681 = vst.msk [vmem:[#allocation3 + $0x4] sm:$0x1] %vm293_vm1, %v3632_v0  ;;  %v267_v21 = vmul.f32 %v3742_v3, %v256_v16  ;;  %v337_v22 = vld [vmem:[#allocation2 + $0x24] sm:$0x1]  ;;  %v312_v26 = vsel %vm3725_vm4, 0, %v311_v17  ;;  %v269_v39 = vmul.f32 %v3742_v3, %v258_v24  ;;  %vm661_vm13 = vcmask 519424  }
  0x1b   : > { %v506_v9 = vld [vmem:[#allocation2] sm:$0xf]  ;;  %1683 = vst.msk [vmem:[#allocation3 + $0x48] sm:$0xf] %vm291_vm0, %v3632_v0  ;;  %v281_v20 = vadd.f32 %v3756_v7, %v270_v14  ;;  %v338_v27 = vsel %vm3732_vm6, 0, %v337_v22  ;;  %vm761_vm14 = vcmask 781824  }
  0x1c   : > { %v507_v11 = vld [vmem:[#allocation2 + $0x4] sm:$0x1]  ;;  %v526_v12 = vshrl.u32 %v506_v9, 16  ;;  %v529_v13 = vshll.u32 %v506_v9, 16  ;;  %322 = vst [vmem:[#allocation2 + $0x38] sm:$0x1] %v321_v5  ;;  %v278_v33 = vadd.f32 %v3756_v7, %v267_v21  ;;  %v280_v47 = vadd.f32 %v3756_v7, %v269_v39 }
  0x1d   : > { %v535_v15 = vshll.u32 %v507_v11, 16  ;;  %348 = vst [vmem:[#allocation2 + $0x3c] sm:$0x1] %v347_v8  ;;  %v257_v23 = vld [vmem:[%s3751_s15 + $0x20] sm:$0xff]  ;;  %v314_v29 = vld [vmem:[#allocation2 + $0x28] sm:$0x1] }
  0x1e   : > { %v528_v18 = vrot.slane %v526_v12, 4  ;;  %v531_v19 = vrot.slane %v529_v13, 5  ;;  %v268_v28 = vmul.f32 %v3742_v3, %v257_v23  ;;  %v253_v30 = vld [vmem:[%s3751_s15] sm:$0xff]  ;;  %v289_v32 = vmax.f32 %v281_v20, 0.0  ;;  %313 = vst [vmem:[#allocation2 + $0x20] sm:$0x1] %v312_v26 }
  0x1f   : > { %v537_v25 = vrot.slane %v535_v15, 5  ;;  %v315_v34 = vsel %vm3725_vm4, 0, %v314_v29  ;;  %v340_v35 = vld [vmem:[#allocation2 + $0x2c] sm:$0x1]  ;;  %339 = vst [vmem:[#allocation2 + $0x24] sm:$0x1] %v338_v27  ;;  %v264_v41 = vmul.f32 %v3742_v3, %v253_v30 }
  0x20   : > { %v532_v31 = vor.u32 %v531_v19, %v528_v18  ;;  %v279_v37 = vadd.f32 %v3756_v7, %v268_v28  ;;  %v341_v38 = vsel %vm3732_vm6, 0, %v340_v35  ;;  %v317_v40 = vld [vmem:[#allocation2 + $0x30] sm:$0x1]  ;;  %v358_v43 = vpack.c.bf16 %v289_v32, %v289_v32  ;;  %316 = vst [vmem:[#allocation2 + $0x28] sm:$0x1] %v315_v34  ;;  %v260_v27 = vld [vmem:[%s3751_s15 + $0x38] sm:$0xff] }
  0x21   : > { %v286_v44 = vmax.f32 %v278_v33, 0.0  ;;  %v318_v45 = vsel %vm3725_vm4, 0, %v317_v40  ;;  %342 = vst [vmem:[#allocation2 + $0x2c] sm:$0x1] %v341_v38  ;;  %v670_v52 = vld [vmem:[#allocation2] sm:$0xe]  ;;  %v275_v58 = vadd.f32 %v3756_v7, %v264_v41  ;;  %v271_v35 = vmul.f32 %v3742_v3, %v260_v27 }
  0x22   : > { %v533_v42 = vrot.slane %v532_v31, 4  ;;  %v287_v46 = vmax.f32 %v279_v37, 0.0  ;;  %v409_v49 = vshrl.u32 %v358_v43, 16  ;;  %v412_v50 = vshll.u32 %v358_v43, 16  ;;  %v671_v55 = vld [vmem:[#allocation2 + $0x4] sm:$0x1] }
  0x23   : > { %v355_v51 = vpack.c.bf16 %v286_v44, %v286_v44  ;;  %v478_v53 = vld [vmem:[#allocation2 + $0x38] sm:$0xf]  ;;  %v3147_v56 = vrot.slane %v670_v52, 9  ;;  %v288_v57 = vmax.f32 %v280_v47, 0.0  ;;  %319 = vst [vmem:[#allocation2 + $0x30] sm:$0x1] %v318_v45  ;;  %v282_v44 = vadd.f32 %v3756_v7, %v271_v35 }
  0x24   : > { %v538_v48 = vsel %vm3779_vm8, %v533_v42, %v537_v25  ;;  %v356_v54 = vpack.c.bf16 %v287_v46, %v287_v46  ;;  %v411_v59 = vrot.slane %v409_v49, 7  ;;  %v707_v63 = vrot.slane %v671_v55, 5  ;;  %v343_v0 = vld [vmem:[#allocation2 + $0x34] sm:$0x1]  ;;  %v481_v4 = vld [vmem:[#allocation2 + $0x3c] sm:$0x1] }
  0x25   : > { %637 = vrot.lane.b32.xlu0 %v538_v48, %s3633_s18  ;;  %v385_v61 = vshrl.u32 %v355_v51, 16  ;;  %v388_v62 = vshll.u32 %v355_v51, 16  ;;  %v344_v9 = vsel %vm3732_vm6, 0, %v343_v0  ;;  %v357_v10 = vpack.c.bf16 %v288_v57, %v288_v57  ;;  %v460_v14 = vld [vmem:[#allocation2 + $0x20] sm:$0xf]  ;;  %v254_v45 = vld [vmem:[%s3751_s15 + $0x8] sm:$0xff] }
  0x26   : > { %v393_v6 = vshrl.u32 %v356_v54, 16  ;;  %v396_v8 = vshll.u32 %v356_v54, 16  ;;  %v414_v11 = vor.u32 %v412_v50, %v411_v59  ;;  %v415_v12 = vrot.slane %v411_v59, 4  ;;  %345 = vst [vmem:[#allocation2 + $0x34] sm:$0x1] %v344_v9 }
  0x27   : > { %v387_v13 = vrot.slane %v385_v61, 7  ;;  %v708_v15 = vsel %vm3803_vm12, %v3147_v56, %v707_v63  ;;  %v463_v16 = vld [vmem:[#allocation2 + $0x24] sm:$0x1]  ;;  %v401_v18 = vshrl.u32 %v357_v10, 16  ;;  %v404_v19 = vshll.u32 %v357_v10, 16 }
  0x28   : > { %v395_v17 = vrot.slane %v393_v6, 7  ;;  %737 = vrot.lane.b32.xlu2 %v708_v15, %s3634_s19  ;;  %v283_v20 = vmax.f32 %v275_v58, 0.0  ;;  %v479_v21 = vsel %vm3797_vm11, %v414_v11, %v478_v53  ;;  %v482_v22 = vsel %vm3725_vm4, %v415_v12, %v481_v4  ;;  %v466_v25 = vld [vmem:[#allocation2 + $0x28] sm:$0xf]  ;;  %v469_v26 = vld [vmem:[#allocation2 + $0x2c] sm:$0x1] }
  0x29   : > { %v390_v23 = vor.u32 %v388_v62, %v387_v13  ;;  %v391_v24 = vrot.slane %v387_v13, 4  ;;  %480 = vst [vmem:[#allocation2 + $0x38] sm:$0xf] %v479_v21  ;;  %v403_v30 = vrot.slane %v401_v18, 7  ;;  %v3826_v40 = vld [vmem:[#allocation2 + $0x8] sm:$0x1]  ;;  %v265_v55 = vmul.f32 %v3742_v3, %v254_v45 }
  0x2a   : > { %v398_v28 = vor.u32 %v396_v8, %v395_v17  ;;  %v399_v29 = vrot.slane %v395_v17, 4  ;;  %483 = vst [vmem:[#allocation2 + $0x3c] sm:$0x1] %v482_v22  ;;  %v472_v33 = vld [vmem:[#allocation2 + $0x30] sm:$0xf]  ;;  %v352_v34 = vpack.c.bf16 %v283_v20, %v283_v20  ;;  %v303_v47 = vsel %vm3725_vm4, 0, %v3826_v40 }
  0x2b   : > { %v461_v31 = vsel %vm3797_vm11, %v390_v23, %v460_v14  ;;  %v464_v32 = vsel %vm3725_vm4, %v391_v24, %v463_v16  ;;  %v406_v39 = vor.u32 %v404_v19, %v403_v30  ;;  %v3828_v41 = vld [vmem:[#allocation2 + $0xc] sm:$0x1]  ;;  %v407_v46 = vrot.slane %v403_v30, 4  ;;  %v3840_v54 = vld [vmem:[#allocation2 + $0x40] sm:$0x1]  ;;  %v255_v17 = vld [vmem:[%s3751_s15 + $0x10] sm:$0xff] }
  0x2c   : > { %462 = vst [vmem:[#allocation2 + $0x20] sm:$0xf] %v461_v31  ;;  %v467_v37 = vsel %vm3797_vm11, %v398_v28, %v466_v25  ;;  %v470_v38 = vsel %vm3725_vm4, %v399_v29, %v469_v26  ;;  %v361_v43 = vshrl.u32 %v352_v34, 16  ;;  %v329_v49 = vsel %vm3732_vm6, 0, %v3828_v41 }
  0x2d   : > { %465 = vst [vmem:[#allocation2 + $0x24] sm:$0x1] %v464_v32  ;;  %v473_v42 = vsel %vm3797_vm11, %v406_v39, %v472_v33  ;;  %v475_v48 = vld [vmem:[#allocation2 + $0x34] sm:$0x1]  ;;  %v364_v50 = vshll.u32 %v352_v34, 16  ;;  %v290_v61 = vmax.f32 %v282_v44, 0.0  ;;  %v276_v23 = vadd.f32 %v3756_v7, %v265_v55 }
  0x2e   : > { %468 = vst [vmem:[#allocation2 + $0x28] sm:$0xf] %v467_v37  ;;  %v3844_v59 = vrot.slane %v361_v43, 7  ;;  %v476_v11 = vsel %vm3725_vm4, %v407_v46, %v475_v48  ;;  %v324_v22 = vsel %vm3725_vm4, 0, %v3840_v54  ;;  %v266_v29 = vmul.f32 %v3742_v3, %v255_v17  ;;  %v331_v55 = vld [vmem:[#allocation2 + $0x14] sm:$0x1] }
  0x2f   : > { %471 = vst [vmem:[#allocation2 + $0x2c] sm:$0x1] %v470_v38  ;;  %v359_v40 = vpack.c.bf16 %v290_v61, %v290_v61  ;;  %vm810_vm15 = vcmask 1044224   ;;  %vm1572_vm1 = vcmask 261120  }
  0x30   : > { %474 = vst [vmem:[#allocation2 + $0x30] sm:$0xf] %v473_v42  ;;  %v776_v51 = vld [vmem:[#allocation2 + $0x38] sm:$0xf]  ;;  %v3853_v21 = vor.u32 %v364_v50, %v3844_v59  ;;  %v305_v42 = vld [vmem:[#allocation2 + $0x10] sm:$0x1] }
  0x31   : > { %v684_v52 = vld [vmem:[#allocation2 + $0x38] sm:$0xe]  ;;  %798 = vrot.lane.b32.xlu1 %v776_v51, %s3635_s20  ;;  %v685_v56 = vld [vmem:[#allocation2 + $0x3c] sm:$0x1]  ;;  %477 = vst [vmem:[#allocation2 + $0x34] sm:$0x1] %v476_v11 }
  0x32   : > { %v520_v53 = vld [vmem:[#allocation2 + $0x38] sm:$0xf]  ;;  %v3154_v57 = vrot.slane %v684_v52, 9  ;;  %v735_v62 = vrot.slane %v685_v56, 5  ;;  %v521_v20 = vld [vmem:[#allocation2 + $0x3c] sm:$0x1]  ;;  %v277_v56 = vadd.f32 %v3756_v7, %v266_v29 }
  0x33   : > { %v624_v58 = vshrl.u32 %v520_v53, 16  ;;  %v678_v63 = vld [vmem:[#allocation2 + $0x20] sm:$0xe]  ;;  %v627_v4 = vshll.u32 %v520_v53, 16  ;;  %304 = vst [vmem:[#allocation2 + $0x8] sm:$0x1] %v303_v47 }
  0x34   : > { %v514_v0 = vld [vmem:[#allocation2 + $0x20] sm:$0xf]  ;;  %v679_v6 = vld [vmem:[#allocation2 + $0x24] sm:$0x1]  ;;  %v3151_v8 = vrot.slane %v678_v63, 9  ;;  %v736_v12 = vsel %vm3803_vm12, %v3154_v57, %v735_v62  ;;  %v633_v50 = vshll.u32 %v521_v20, 16 }
  0x35   : > { %v515_v9 = vld [vmem:[#allocation2 + $0x24] sm:$0x1]  ;;  %v582_v10 = vshrl.u32 %v514_v0, 16  ;;  %v723_v13 = vrot.slane %v679_v6, 5  ;;  %v585_v14 = vshll.u32 %v514_v0, 16  ;;  %751 = vrot.lane.b32.xlu0 %v736_v12, %s3634_s19  ;;  %v626_v33 = vrot.slane %v624_v58, 4 }
  0x36   : > { %v591_v15 = vshll.u32 %v515_v9, 16  ;;  %v680_v16 = vld [vmem:[#allocation2 + $0x28] sm:$0xe]  ;;  %v681_v26 = vld [vmem:[#allocation2 + $0x2c] sm:$0x1]  ;;  %v629_v37 = vrot.slane %v627_v4, 5 }
  0x37   : > { %v584_v18 = vrot.slane %v582_v10, 4  ;;  %v516_v19 = vld [vmem:[#allocation2 + $0x28] sm:$0xf]  ;;  %v724_v24 = vsel %vm3803_vm12, %v3151_v8, %v723_v13  ;;  %v587_v25 = vrot.slane %v585_v14, 5  ;;  %v3152_v27 = vrot.slane %v680_v16, 9 }
  0x38   : > { %v517_v28 = vld [vmem:[#allocation2 + $0x2c] sm:$0x1]  ;;  %v596_v30 = vshrl.u32 %v516_v19, 16  ;;  %v599_v31 = vshll.u32 %v516_v19, 16  ;;  %v593_v35 = vrot.slane %v591_v15, 5  ;;  %v727_v43 = vrot.slane %v681_v26, 5 }
  0x39   : > { %v605_v32 = vshll.u32 %v517_v28, 16  ;;  %v588_v34 = vor.u32 %v587_v25, %v584_v18  ;;  %v518_v38 = vld [vmem:[#allocation2 + $0x30] sm:$0xf]  ;;  %v774_v39 = vld [vmem:[#allocation2 + $0x28] sm:$0xf]  ;;  %745 = vrot.lane.b32.xlu1 %v724_v24, %s3634_s19  ;;  %v630_v53 = vor.u32 %v629_v37, %v626_v33  ;;  %v367_v58 = vrot.slane %v3844_v59, 4 }
  0x3a   : > { %v598_v44 = vrot.slane %v596_v30, 4  ;;  %v601_v45 = vrot.slane %v599_v31, 5  ;;  %v610_v46 = vshrl.u32 %v518_v38, 16  ;;  %794 = vrot.lane.b32.xlu2 %v774_v39, %s3635_s20  ;;  %v613_v51 = vshll.u32 %v518_v38, 16  ;;  %330 = vst [vmem:[#allocation2 + $0xc] sm:$0x1] %v329_v49 }
  0x3b   : > { %v589_v3 = vrot.slane %v588_v34, 4  ;;  %v607_v48 = vrot.slane %v605_v32, 5  ;;  %325 = vst [vmem:[#allocation2 + $0x40] sm:$0x1] %v324_v22  ;;  %v417_v61 = vshrl.u32 %v359_v40, 16  ;;  %v420_v41 = vshll.u32 %v359_v40, 16 }
  0x3c   : > { %v602_v52 = vor.u32 %v601_v45, %v598_v44  ;;  %v612_v54 = vrot.slane %v610_v46, 4  ;;  %v615_v47 = vrot.slane %v613_v51, 5  ;;  %v775_v63 = vld [vmem:[#allocation2 + $0x30] sm:$0xf]  ;;  %v284_v49 = vmax.f32 %v276_v23, 0.0 }
  0x3d   : > { %v594_v57 = vsel %vm3779_vm8, %v589_v3, %v593_v35  ;;  %v306_v0 = vsel %vm3725_vm4, 0, %v305_v42  ;;  %v728_v4 = vsel %vm3803_vm12, %v3152_v27, %v727_v43  ;;  %v3877_v7 = vrot.slane %v417_v61, 7  ;;  %v308_v59 = vld [vmem:[#allocation2 + $0x18] sm:$0x1]  ;;  %v519_v8 = vld [vmem:[#allocation2 + $0x34] sm:$0x1] }
  0x3e   : > { %645 = vrot.lane.b32.xlu0 %v594_v57, %s3633_s18  ;;  %v603_v62 = vrot.slane %v602_v52, 4  ;;  %307 = vst [vmem:[#allocation2 + $0x10] sm:$0x1] %v306_v0  ;;  %v332_v6 = vsel %vm3732_vm6, 0, %v331_v55  ;;  %v353_v9 = vpack.c.bf16 %v284_v49, %v284_v49  ;;  %v285_v10 = vmax.f32 %v277_v56, 0.0 }
  0x3f   : > { %333 = vst [vmem:[#allocation2 + $0x14] sm:$0x1] %v332_v6  ;;  %v631_v11 = vrot.slane %v630_v53, 4  ;;  %v635_v12 = vrot.slane %v633_v50, 5  ;;  %v616_v13 = vor.u32 %v615_v47, %v612_v54  ;;  %v442_v14 = vld [vmem:[#allocation2 + $0x8] sm:$0xf]  ;;  %v422_v15 = vor.u32 %v420_v41, %v3877_v7 }
  0x40   : > { %v334_v16 = vld [vmem:[#allocation2 + $0x1c] sm:$0x1]  ;;  %v608_v17 = vsel %vm3779_vm8, %v603_v62, %v607_v48  ;;  %v443_v18 = vsel %vm3797_vm11, %v3853_v21, %v442_v14  ;;  %v369_v20 = vshrl.u32 %v353_v9, 16  ;;  %v372_v22 = vshll.u32 %v353_v9, 16  ;;  %v682_v44 = vld [vmem:[#allocation2 + $0x30] sm:$0xe] }
  0x41   : > { %747 = vrot.lane.b32.xlu1 %v728_v4, %s3634_s19  ;;  %v445_v19 = vld [vmem:[#allocation2 + $0xc] sm:$0x1]  ;;  %v619_v23 = vshll.u32 %v519_v8, 16  ;;  %444 = vst [vmem:[#allocation2 + $0x8] sm:$0xf] %v443_v18  ;;  %v309_v26 = vsel %vm3725_vm4, 0, %v308_v59  ;;  %v354_v27 = vpack.c.bf16 %v285_v10, %v285_v10  ;;  %v636_v33 = vsel %vm3779_vm8, %v631_v11, %v635_v12 }
  0x42   : > { %796 = vrot.lane.b32.xlu2 %v775_v63, %s3635_s20  ;;  %v446_v24 = vsel %vm3725_vm4, %v367_v58, %v445_v19  ;;  %v484_v25 = vld [vmem:[#allocation2 + $0x40] sm:$0xf]  ;;  %v371_v21 = vrot.slane %v369_v20, 7  ;;  %v335_v29 = vsel %vm3732_vm6, 0, %v334_v16  ;;  %310 = vst [vmem:[#allocation2 + $0x18] sm:$0x1] %v309_v26 }
  0x43   : > { %447 = vst [vmem:[#allocation2 + $0xc] sm:$0x1] %v446_v24  ;;  %v485_v28 = vsel %vm3797_vm11, %v422_v15, %v484_v25  ;;  %v377_v30 = vshrl.u32 %v354_v27, 16  ;;  %v617_v34 = vrot.slane %v616_v13, 4  ;;  %v621_v35 = vrot.slane %v619_v23, 5 }
  0x44   : > { %486 = vst [vmem:[#allocation2 + $0x40] sm:$0xf] %v485_v28  ;;  %v374_v31 = vor.u32 %v372_v22, %v371_v21  ;;  %v375_v37 = vrot.slane %v371_v21, 4  ;;  %v380_v42 = vshll.u32 %v354_v27, 16  ;;  %v683_v45 = vld [vmem:[#allocation2 + $0x34] sm:$0x1] }
  0x45   : > { %v448_v32 = vld [vmem:[#allocation2 + $0x10] sm:$0xf]  ;;  %336 = vst [vmem:[#allocation2 + $0x1c] sm:$0x1] %v335_v29  ;;  %v379_v40 = vrot.slane %v377_v30, 7  ;;  %v622_v46 = vsel %vm3779_vm8, %v617_v34, %v621_v35  ;;  %v3153_v62 = vrot.slane %v682_v44, 9 }
  0x46   : > { %647 = vrot.lane.b32.xlu0 %v608_v17, %s3633_s18  ;;  %v449_v38 = vsel %vm3797_vm11, %v374_v31, %v448_v32  ;;  %v451_v39 = vld [vmem:[#allocation2 + $0x14] sm:$0x1]  ;;  %v731_v63 = vrot.slane %v683_v45, 5 }
  0x47   : > { %450 = vst [vmem:[#allocation2 + $0x10] sm:$0xf] %v449_v38  ;;  %v452_v52 = vsel %vm3725_vm4, %v375_v37, %v451_v39  ;;  %v382_v56 = vor.u32 %v380_v42, %v379_v40  ;;  %v383_v57 = vrot.slane %v379_v40, 4 }
  0x48   : > { %v508_v43 = vld [vmem:[#allocation2 + $0x8] sm:$0xf]  ;;  %453 = vst [vmem:[#allocation2 + $0x14] sm:$0x1] %v452_v52  ;;  %v732_v10 = vsel %vm3803_vm12, %v3153_v62, %v731_v63 }
  0x49   : > { %651 = vrot.lane.b32.xlu1 %v636_v33, %s3633_s18  ;;  %v540_v48 = vshrl.u32 %v508_v43, 16  ;;  %v543_v50 = vshll.u32 %v508_v43, 16  ;;  %v672_v51 = vld [vmem:[#allocation2 + $0x8] sm:$0xe]  ;;  %v454_v4 = vld [vmem:[#allocation2 + $0x18] sm:$0xf] }
  0x4a   : > { %v509_v3 = vld [vmem:[#allocation2 + $0xc] sm:$0x1]  ;;  %v3148_v61 = vrot.slane %v672_v51, 9  ;;  %v455_v59 = vsel %vm3797_vm11, %v382_v56, %v454_v4  ;;  %v963_v13 = vld [vmem:[#allocation2 + $0x8] sm:$0xe] }
  0x4b   : > { %v549_v53 = vshll.u32 %v509_v3, 16  ;;  %v673_v54 = vld [vmem:[#allocation2 + $0xc] sm:$0x1]  ;;  %v777_v55 = vld [vmem:[#allocation2 + $0x40] sm:$0xf]  ;;  %v542_v47 = vrot.slane %v540_v48, 4 }
  0x4c   : > { %v545_v58 = vrot.slane %v543_v50, 5  ;;  %800 = vrot.lane.b32.xlu2 %v777_v55, %s3635_s20  ;;  %v711_v0 = vrot.slane %v673_v54, 5  ;;  %v457_v6 = vld [vmem:[#allocation2 + $0x1c] sm:$0x1]  ;;  %456 = vst [vmem:[#allocation2 + $0x18] sm:$0xf] %v455_v59 }
  0x4d   : > { %v551_v49 = vrot.slane %v549_v53, 5  ;;  %v458_v8 = vsel %vm3725_vm4, %v383_v57, %v457_v6  ;;  %v964_v14 = vld [vmem:[#allocation2 + $0xc] sm:$0x1]  ;;  %v3155_v16 = vrot.slane %v963_v13, 9  ;;  %v770_v22 = vld [vmem:[#allocation2 + $0x8] sm:$0xf] }
  0x4e   : > { %649 = vrot.lane.b32.xlu0 %v622_v46, %s3633_s18  ;;  %v546_v41 = vor.u32 %v545_v58, %v542_v47  ;;  %459 = vst [vmem:[#allocation2 + $0x1c] sm:$0x1] %v458_v8  ;;  %v712_v12 = vsel %vm3803_vm12, %v3148_v61, %v711_v0  ;;  %v1108_v15 = vld [vmem:[#allocation2 + $0x10] sm:$0xf]  ;;  %v997_v17 = vrot.slane %v964_v14, 5 }
  0x4f   : > { %v1125_v18 = vshrl.u32 %v1108_v15, 16  ;;  %v1128_v19 = vshll.u32 %v1108_v15, 16  ;;  %v510_v20 = vld [vmem:[#allocation2 + $0x10] sm:$0xf]  ;;  %v966_v24 = vld [vmem:[#allocation2 + $0x14] sm:$0x1] }
  0x50   : > { %v547_v9 = vrot.slane %v546_v41, 4  ;;  %v965_v23 = vld [vmem:[#allocation2 + $0x10] sm:$0xe]  ;;  %v998_v26 = vsel %vm3803_vm12, %v3155_v16, %v997_v17  ;;  %v554_v27 = vshrl.u32 %v510_v20, 16  ;;  %v557_v28 = vshll.u32 %v510_v20, 16 }
  0x51   : > { %v771_v25 = vld [vmem:[#allocation2 + $0x10] sm:$0xf]  ;;  %v1127_v29 = vrot.slane %v1125_v18, 4  ;;  %v1130_v30 = vrot.slane %v1128_v19, 5  ;;  %v3156_v31 = vrot.slane %v965_v23, 9  ;;  %v1001_v32 = vrot.slane %v966_v24, 5 }
  0x52   : > { %v552_v11 = vsel %vm3779_vm8, %v547_v9, %v551_v49  ;;  %v1109_v33 = vld [vmem:[#allocation2 + $0x14] sm:$0x1]  ;;  %v556_v38 = vrot.slane %v554_v27, 4  ;;  %v559_v39 = vrot.slane %v557_v28, 5  ;;  %v1060_v51 = vld [vmem:[#allocation2 + $0x10] sm:$0xf] }
  0x53   : > { %639 = vrot.lane.b32.xlu1 %v552_v11, %s3633_s18  ;;  %v1110_v21 = vld [vmem:[#allocation2 + $0x18] sm:$0xf]  ;;  %v1131_v42 = vor.u32 %v1130_v30, %v1127_v29  ;;  %v511_v43 = vld [vmem:[#allocation2 + $0x14] sm:$0x1]  ;;  %v1002_v46 = vsel %vm3803_vm12, %v3156_v31, %v1001_v32  ;;  %v1134_v3 = vshll.u32 %v1109_v33, 16  ;;  %v423_v28 = vrot.slane %v3877_v7, 4 }
  0x54   : > { %749 = vrot.lane.b32.xlu2 %v732_v10, %s3634_s19  ;;  %v512_v34 = vld [vmem:[#allocation2 + $0x18] sm:$0xf]  ;;  %v1139_v35 = vshrl.u32 %v1110_v21, 16  ;;  %v1142_v37 = vshll.u32 %v1110_v21, 16  ;;  %v560_v55 = vor.u32 %v559_v39, %v556_v38  ;;  %v563_v56 = vshll.u32 %v511_v43, 16 }
  0x55   : > { %v1111_v40 = vld [vmem:[#allocation2 + $0x1c] sm:$0x1]  ;;  %v568_v48 = vshrl.u32 %v512_v34, 16  ;;  %v571_v50 = vshll.u32 %v512_v34, 16  ;;  %v1061_v54 = vld [vmem:[#allocation2 + $0x18] sm:$0xf] }
  0x56   : > { %739 = vrot.lane.b32.xlu0 %v712_v12, %s3634_s19  ;;  %v1141_v44 = vrot.slane %v1139_v35, 4  ;;  %v1144_v45 = vrot.slane %v1142_v37, 5  ;;  %v1148_v53 = vshll.u32 %v1111_v40, 16  ;;  %v1132_v57 = vrot.slane %v1131_v42, 4  ;;  %v513_v62 = vld [vmem:[#allocation2 + $0x1c] sm:$0x1] }
  0x57   : > { %v1136_v47 = vrot.slane %v1134_v3, 5  ;;  %v570_v58 = vrot.slane %v568_v48, 4  ;;  %v573_v61 = vrot.slane %v571_v50, 5  ;;  %v561_v49 = vrot.slane %v560_v55, 4  ;;  %v674_v10 = vld [vmem:[#allocation2 + $0x10] sm:$0xe] }
  0x58   : > { %v1145_v52 = vor.u32 %v1144_v45, %v1141_v44  ;;  %v1150_v41 = vrot.slane %v1148_v53, 5  ;;  %v565_v0 = vrot.slane %v563_v56, 5  ;;  %v577_v59 = vshll.u32 %v513_v62, 16  ;;  %v675_v11 = vld [vmem:[#allocation2 + $0x14] sm:$0x1] }
  0x59   : > { %v1137_v4 = vsel %vm3779_vm8, %v1132_v57, %v1136_v47  ;;  %v574_v6 = vor.u32 %v573_v61, %v570_v58  ;;  %v676_v12 = vld [vmem:[#allocation2 + $0x18] sm:$0xe]  ;;  %v677_v13 = vld [vmem:[#allocation2 + $0x1c] sm:$0x1]  ;;  %v3149_v16 = vrot.slane %v674_v10, 9  ;;  %v715_v17 = vrot.slane %v675_v11, 5 }
  0x5a   : > { %v1146_v63 = vrot.slane %v1145_v52, 4  ;;  %v566_v9 = vsel %vm3779_vm8, %v561_v49, %v565_v0  ;;  %v579_v15 = vrot.slane %v577_v59, 5  ;;  %v3150_v18 = vrot.slane %v676_v12, 9  ;;  %v349_v20 = vld [vmem:[#allocation2 + $0x44] sm:$0x1]  ;;  %v3467_v10 = vld [vmem:[%s4647_s3 + $0x30] sm:$0xff] }
  0x5b   : > { %786 = vrot.lane.b32.xlu1 %v770_v22, %s3635_s20  ;;  %v575_v14 = vrot.slane %v574_v6, 4  ;;  %v719_v19 = vrot.slane %v677_v13, 5  ;;  %v350_v22 = vsel %vm3732_vm6, 0, %v349_v20  ;;  %v716_v24 = vsel %vm3803_vm12, %v3149_v16, %v715_v17  ;;  %v968_v27 = vld [vmem:[#allocation2 + $0x1c] sm:$0x1] }
  0x5c   : > { %788 = vrot.lane.b32.xlu2 %v771_v25, %s3635_s20  ;;  %v1151_v8 = vsel %vm3779_vm8, %v1146_v63, %v1150_v41  ;;  %351 = vst [vmem:[#allocation2 + $0x44] sm:$0x1] %v350_v22  ;;  %v1112_v21 = vld [vmem:[#allocation2 + $0x20] sm:$0xf]  ;;  %v1005_v30 = vrot.slane %v968_v27, 5  ;;  %v3468_v41 = vld [vmem:[%s4647_s3 + $0x38] sm:$0xff] }
  0x5d   : > { %v580_v23 = vsel %vm3779_vm8, %v575_v14, %v579_v15  ;;  %v720_v25 = vsel %vm3803_vm12, %v3150_v18, %v719_v19  ;;  %v772_v31 = vld [vmem:[#allocation2 + $0x18] sm:$0xf]  ;;  %v969_v33 = vld [vmem:[#allocation2 + $0x20] sm:$0xe]  ;;  %v970_v34 = vld [vmem:[#allocation2 + $0x24] sm:$0x1]  ;;  %3510 = vmatpush.bf16.msra.mxu1 %v3468_v41  ;;  %1585 = vmatpush.bf16.msra.mxu0 %v3468_v41 }
  0x5e   : > { %1027 = vrot.lane.b32.xlu0 %v998_v26, %s3633_s18  ;;  %v967_v26 = vld [vmem:[#allocation2 + $0x18] sm:$0xe]  ;;  %v1153_v35 = vshrl.u32 %v1112_v21, 16  ;;  %v1156_v37 = vshll.u32 %v1112_v21, 16  ;;  %v773_v39 = vld [vmem:[#allocation2 + $0x20] sm:$0xf] }
  0x5f   : > { %v3157_v29 = vrot.slane %v967_v26, 9  ;;  %v1114_v40 = vld [vmem:[#allocation2 + $0x28] sm:$0xf]  ;;  %v490_v44 = vld [vmem:[#allocation2] sm:$0xf]  ;;  %v3158_v45 = vrot.slane %v969_v33, 9 }
  0x60   : > { %v1167_v42 = vshrl.u32 %v1114_v40, 16  ;;  %v1170_v43 = vshll.u32 %v1114_v40, 16  ;;  %v1155_v3 = vrot.slane %v1153_v35, 4  ;;  %v1158_v48 = vrot.slane %v1156_v37, 5  ;;  %498 = vst.msk [vmem:[#allocation4] sm:$0xf] %vm291_vm0, %v490_v44 }
  0x61   : > { %v1006_v7 = vsel %vm3803_vm12, %v3157_v29, %v1005_v30  ;;  %v1113_v50 = vld [vmem:[#allocation2 + $0x24] sm:$0x1]  ;;  %v1115_v53 = vld [vmem:[#allocation2 + $0x2c] sm:$0x1]  ;;  %v1062_v57 = vld [vmem:[#allocation2 + $0x20] sm:$0xf]  ;;  %3511 = vmatpush.bf16.msra.mxu1 %v3467_v10  ;;  %1586 = vmatpush.bf16.msra.mxu0 %v3467_v10 }
  0x62   : > { %v1172_v52 = vrot.slane %v1170_v43, 5  ;;  %v1159_v55 = vor.u32 %v1158_v48, %v1155_v3  ;;  %v1162_v56 = vshll.u32 %v1113_v50, 16  ;;  %v1176_v58 = vshll.u32 %v1115_v53, 16  ;;  %v1063_v61 = vld [vmem:[#allocation2 + $0x28] sm:$0xf]  ;;  %v3465_v35 = vld [vmem:[%s4647_s3 + $0x20] sm:$0xff] }
  0x63   : > { %1029 = vrot.lane.b32.xlu1 %v1002_v46, %s3633_s18  ;;  %v487_v32 = vld [vmem:[#allocation2 + $0x44] sm:$0x1]  ;;  %v1009_v46 = vrot.slane %v970_v34, 5  ;;  %v971_v62 = vld [vmem:[#allocation2 + $0x28] sm:$0xe]  ;;  %v3464_v44 = vld [vmem:[%s4647_s3 + $0x18] sm:$0xff] }
  0x64   : > { %1076 = vrot.lane.b32.xlu2 %v1060_v51, %s3634_s19  ;;  %v488_v38 = vsel %vm3725_vm4, %v423_v28, %v487_v32  ;;  %v1169_v51 = vrot.slane %v1167_v42, 4  ;;  %v972_v63 = vld [vmem:[#allocation2 + $0x2c] sm:$0x1]  ;;  %v1160_v49 = vrot.slane %v1159_v55, 4  ;;  %v1164_v0 = vrot.slane %v1162_v56, 5 }
  0x65   : > { %489 = vst [vmem:[#allocation2 + $0x44] sm:$0x1] %v488_v38  ;;  %v1178_v59 = vrot.slane %v1176_v58, 5  ;;  %v973_v14 = vld [vmem:[#allocation2 + $0x30] sm:$0xe] }
  0x66   : > { %1078 = vrot.lane.b32.xlu0 %v1061_v54, %s3634_s19  ;;  %v1010_v54 = vsel %vm3803_vm12, %v3158_v45, %v1009_v46  ;;  %v1173_v47 = vor.u32 %v1172_v52, %v1169_v51  ;;  %v1165_v11 = vsel %vm3779_vm8, %v1160_v49, %v1164_v0  ;;  %v974_v15 = vld [vmem:[#allocation2 + $0x34] sm:$0x1]  ;;  %v1118_v18 = vld [vmem:[#allocation2 + $0x38] sm:$0xf]  ;;  %v1119_v30 = vld [vmem:[#allocation2 + $0x3c] sm:$0x1] }
  0x67   : > { %v1195_v20 = vshrl.u32 %v1118_v18, 16  ;;  %v1198_v22 = vshll.u32 %v1118_v18, 16  ;;  %v1117_v28 = vld [vmem:[#allocation2 + $0x34] sm:$0x1]  ;;  %v1064_v37 = vld [vmem:[#allocation2 + $0x30] sm:$0xf] }
  0x68   : > { %v1174_v6 = vrot.slane %v1173_v47, 4  ;;  %v1190_v34 = vshll.u32 %v1117_v28, 16  ;;  %v1065_v40 = vld [vmem:[#allocation2 + $0x38] sm:$0xf]  ;;  %v976_v42 = vld [vmem:[#allocation2 + $0x3c] sm:$0x1] }
  0x69   : > { %v1197_v21 = vrot.slane %v1195_v20, 4  ;;  %v1200_v29 = vrot.slane %v1198_v22, 5  ;;  %v495_v45 = vld [vmem:[#allocation2 + $0x28] sm:$0xf]  ;;  %v1120_v50 = vld [vmem:[#allocation2 + $0x40] sm:$0xf] }
  0x6a   : > { %v1179_v17 = vsel %vm3779_vm8, %v1174_v6, %v1178_v59  ;;  %v1192_v3 = vrot.slane %v1190_v34, 5  ;;  %503 = vst.msk [vmem:[#allocation4 + $0x3c] sm:$0xf] %vm291_vm0, %v495_v45  ;;  %v1209_v56 = vshrl.u32 %v1120_v50, 16  ;;  %v3463_v47 = vld [vmem:[%s4647_s3 + $0x10] sm:$0xff]  ;;  %v3461_v20 = vld [vmem:[%s4647_s3] sm:$0xff] }
  0x6b   : > { %1236 = vrot.lane.b32.xlu1 %v1137_v4, %s3635_s20  ;;  %v1116_v4 = vld [vmem:[#allocation2 + $0x30] sm:$0xf]  ;;  %v1201_v38 = vor.u32 %v1200_v29, %v1197_v21  ;;  %v977_v58 = vld [vmem:[#allocation2 + $0x40] sm:$0xe]  ;;  %v497_v49 = vld [vmem:[#allocation2 + $0x38] sm:$0xf] }
  0x6c   : > { %1238 = vrot.lane.b32.xlu2 %v1151_v8, %s3635_s20  ;;  %v3159_v8 = vrot.slane %v971_v62, 9  ;;  %v1181_v12 = vshrl.u32 %v1116_v4, 16  ;;  %v1184_v13 = vshll.u32 %v1116_v4, 16  ;;  %505 = vst.msk [vmem:[#allocation4 + $0x54] sm:$0xf] %vm291_vm0, %v497_v49  ;;  %v3162_v6 = vrot.slane %v977_v58, 9 }
  0x6d   : > { %v1202_v51 = vrot.slane %v1201_v38, 4  ;;  %v1066_v22 = vld [vmem:[#allocation2 + $0x40] sm:$0xf]  ;;  %v491_v21 = vld [vmem:[#allocation2 + $0x8] sm:$0xf] }
  0x6e   : > { %641 = vrot.lane.b32.xlu0 %v566_v9, %s3633_s18  ;;  %v1013_v9 = vrot.slane %v972_v63, 5  ;;  %v1183_v26 = vrot.slane %v1181_v12, 4  ;;  %v1186_v27 = vrot.slane %v1184_v13, 5  ;;  %v1122_v63 = vld [vmem:[#allocation2 + $0x48] sm:$0xf] }
  0x6f   : > { %v1223_v0 = vshrl.u32 %v1122_v63, 16  ;;  %v1226_v4 = vshll.u32 %v1122_v63, 16  ;;  %v1121_v12 = vld [vmem:[#allocation2 + $0x44] sm:$0x1]  ;;  %499 = vst.msk [vmem:[#allocation4 + $0xc] sm:$0xf] %vm291_vm0, %v491_v21 }
  0x70   : > { %v1014_v19 = vsel %vm3803_vm12, %v3159_v8, %v1013_v9  ;;  %v1187_v33 = vor.u32 %v1186_v27, %v1183_v26  ;;  %v1211_v8 = vrot.slane %v1209_v56, 4  ;;  %v819_v38 = vld [vmem:[#allocation2 + $0x8] sm:$0xf]  ;;  %v1268_v58 = vld [vmem:[#allocation2 + $0x10] sm:$0xe] }
  0x71   : > { %v1225_v13 = vrot.slane %v1223_v0, 4  ;;  %v1269_v63 = vld [vmem:[#allocation2 + $0x14] sm:$0x1]  ;;  %v3470_v21 = vld [vmem:[%s4647_s3 + $0x48] sm:$0xff] }
  0x72   : > { %v1188_v46 = vrot.slane %v1187_v33, 4 }
  0x73   : > { %643 = vrot.lane.b32.xlu1 %v580_v23, %s3633_s18  ;;  %v3466_v23 = vld [vmem:[%s4647_s3 + $0x28] sm:$0xff] }
  0x74   : > { %741 = vrot.lane.b32.xlu2 %v716_v24, %s3634_s19  ;;  %v3160_v24 = vrot.slane %v973_v14, 9  ;;  %3512 = vmatpush.bf16.msra.mxu1 %v3466_v23  ;;  %v1193_v55 = vsel %vm3779_vm8, %v1188_v46, %v1192_v3  ;;  %v1228_v14 = vrot.slane %v1226_v4, 5  ;;  %v1270_v4 = vld [vmem:[#allocation2 + $0x18] sm:$0xe] }
  0x75   : > { %1587 = vmatpush.bf16.msra.mxu0 %v3466_v23 }
  0x76   : > { %743 = vrot.lane.b32.xlu0 %v720_v25, %s3634_s19  ;;  %v1017_v25 = vrot.slane %v974_v15, 5  ;;  %v496_v15 = vld [vmem:[#allocation2 + $0x30] sm:$0xf]  ;;  %v1229_v23 = vor.u32 %v1228_v14, %v1225_v13  ;;  %v1302_v13 = vrot.slane %v1269_v63, 5  ;;  %v3164_v14 = vrot.slane %v1270_v4, 9 }
  0x77   : > { %504 = vst.msk [vmem:[#allocation4 + $0x48] sm:$0xf] %vm291_vm0, %v496_v15  ;;  %v1273_v4 = vld [vmem:[#allocation2 + $0x24] sm:$0x1] }
  0x78   : > { %v1018_v32 = vsel %vm3803_vm12, %v3160_v24, %v1017_v25  ;;  %3513 = vmatpush.bf16.msra.mxu1 %v3465_v35  ;;  %v1067_v25 = vld [vmem:[#allocation2 + $0x48] sm:$0xf]  ;;  %v1230_v29 = vrot.slane %v1229_v23, 4  ;;  %v3471_v23 = vld [vmem:[%s4647_s3 + $0x50] sm:$0xff] }
  0x79   : > { %1588 = vmatpush.bf16.msra.mxu0 %v3465_v35  ;;  %v3475_v35 = vld [vmem:[%s4647_s3 + $0x70] sm:$0xff] }
  0x7b   : > { %790 = vrot.lane.b32.xlu1 %v772_v31, %s3635_s20  ;;  %v494_v31 = vld [vmem:[#allocation2 + $0x20] sm:$0xf] }
  0x7c   : > { %792 = vrot.lane.b32.xlu2 %v773_v39, %s3635_s20  ;;  %502 = vst.msk [vmem:[#allocation4 + $0x30] sm:$0xf] %vm291_vm0, %v494_v31  ;;  %v1204_v39 = vshll.u32 %v1119_v30, 16  ;;  %3514 = vmatpush.bf16.msra.mxu1 %v3464_v44 }
  0x7d   : > { %1589 = vmatpush.bf16.msra.mxu0 %v3464_v44 }
  0x7e   : > { %1031 = vrot.lane.b32.xlu0 %v1006_v7, %s3633_s18  ;;  %v975_v7 = vld [vmem:[#allocation2 + $0x38] sm:$0xe]  ;;  %v1206_v52 = vrot.slane %v1204_v39, 5 }
  0x7f   : > { %v3161_v53 = vrot.slane %v975_v7, 9  ;;  %v839_v7 = vshll.u32 %v819_v38, 16 }
  0x80   : > { %v1207_v62 = vsel %vm3779_vm8, %v1202_v51, %v1206_v52  ;;  %3515 = vmatpush.bf16.msra.mxu1 %v3463_v47  ;;  %v820_v51 = vld [vmem:[#allocation2 + $0xc] sm:$0x1] }
  0x81   : > { %1590 = vmatpush.bf16.msra.mxu0 %v3463_v47  ;;  %v841_v3 = vrot.slane %v839_v7, 5  ;;  %v822_v47 = vld [vmem:[#allocation2 + $0x14] sm:$0x1] }
  0x82   : > { %v738_v16 = vpop.permute.xlu2 %737 }
  0x83   : > { %1033 = vrot.lane.b32.xlu1 %v1010_v54, %s3633_s18  ;;  %v1021_v54 = vrot.slane %v976_v42, 5  ;;  %v821_v42 = vld [vmem:[#allocation2 + $0x10] sm:$0xf] }
  0x84   : > { %1080 = vrot.lane.b32.xlu2 %v1062_v57, %s3634_s19  ;;  %v1212_v57 = vshll.u32 %v1120_v50, 16  ;;  %v850_v44 = vshrl.u32 %v821_v42, 16  ;;  %v853_v45 = vshll.u32 %v821_v42, 16  ;;  %v3474_v50 = vld [vmem:[%s4647_s3 + $0x68] sm:$0xff] }
  0x85   : > { %v1022_v41 = vsel %vm3803_vm12, %v3161_v53, %v1021_v54 }
  0x86   : > { %1082 = vrot.lane.b32.xlu0 %v1063_v61, %s3634_s19  ;;  %v978_v61 = vld [vmem:[#allocation2 + $0x44] sm:$0x1]  ;;  %v1214_v9 = vrot.slane %v1212_v57, 5  ;;  %v852_v52 = vrot.slane %v850_v44, 4  ;;  %v855_v53 = vrot.slane %v853_v45, 5  ;;  %v845_v57 = vshll.u32 %v820_v51, 16 }
  0x87   : > { %v1025_v59 = vrot.slane %v978_v61, 5  ;;  %v824_v51 = vld [vmem:[#allocation2 + $0x1c] sm:$0x1] }
  0x88   : > { %v1215_v18 = vor.u32 %v1214_v9, %v1211_v8  ;;  %v856_v61 = vor.u32 %v855_v53, %v852_v52  ;;  %v847_v0 = vrot.slane %v845_v57, 5  ;;  %v1271_v8 = vld [vmem:[#allocation2 + $0x1c] sm:$0x1]  ;;  %v826_v57 = vld [vmem:[#allocation2 + $0x24] sm:$0x1] }
  0x89   : > { %v1306_v15 = vrot.slane %v1271_v8, 5  ;;  %v887_v63 = vshll.u32 %v826_v57, 16 }
  0x8a   : > { %v1216_v27 = vrot.slane %v1215_v18, 4 }
  0x8b   : > { %1240 = vrot.lane.b32.xlu1 %v1165_v11, %s3635_s20  ;;  %v3462_v11 = vld [vmem:[%s4647_s3 + $0x8] sm:$0xff]  ;;  %v889_v8 = vrot.slane %v887_v63, 5 }
  0x8c   : > { %1242 = vrot.lane.b32.xlu2 %v1179_v17, %s3635_s20  ;;  %3516 = vmatpush.bf16.msra.mxu1 %v3462_v11  ;;  %v1026_v17 = vsel %vm3803_vm12, %v3162_v6, %v1025_v59  ;;  %v857_v6 = vrot.slane %v856_v61, 4 }
  0x8d   : > { %1591 = vmatpush.bf16.msra.mxu0 %v3462_v11 }
  0x8e   : > { %1035 = vrot.lane.b32.xlu0 %v1014_v19, %s3633_s18  ;;  %v1218_v19 = vshll.u32 %v1121_v12, 16  ;;  %v3478_v12 = vld [vmem:[%s4647_s3 + $0x88] sm:$0xff] }
  0x8f   : > { %1649 = vmatpush.bf16.msra.mxu2 %v3478_v12  ;;  %3518 = vmatpush.bf16.msra.mxu3 %v3478_v12 }
  0x90   : > { %3517 = vmatpush.bf16.msra.mxu1 %v3461_v20  ;;  %v1220_v28 = vrot.slane %v1218_v19, 5 }
  0x91   : > { %1592 = vmatpush.bf16.msra.mxu0 %v3461_v20  ;;  %v3472_v20 = vld [vmem:[%s4647_s3 + $0x58] sm:$0xff] }
  0x92   : > { %v1221_v34 = vsel %vm3779_vm8, %v1216_v27, %v1220_v28 }
  0x93   : > { %1037 = vrot.lane.b32.xlu1 %v1018_v32, %s3633_s18  ;;  %v3476_v32 = vld [vmem:[%s4647_s3 + $0x78] sm:$0xff] }
  0x94   : > { %v3991_v43 = vpop.permute.xlu2 %794  ;;  %1084 = vrot.lane.b32.xlu2 %v1064_v37, %s3634_s19  ;;  %1614 = vmatpush.bf16.msrb.mxu1 %v3476_v32  ;;  %v3469_v32 = vld [vmem:[%s4647_s3 + $0x40] sm:$0xff] }
  0x96   : > { %1086 = vrot.lane.b32.xlu0 %v1065_v40, %s3634_s19  ;;  %v836_v40 = vshrl.u32 %v819_v38, 16 }
  0x97   : > { %v638_v48 = vpop.permute.xlu0 %637 }
  0x98   : > { %662 = vst.msk [vmem:[#allocation4] sm:$0xf] %vm661_vm13, %v638_v48  ;;  %1615 = vmatpush.bf16.msrb.mxu1 %v3475_v35  ;;  %v838_v46 = vrot.slane %v836_v40, 4  ;;  %v823_v40 = vld [vmem:[#allocation2 + $0x18] sm:$0xf] }
  0x99   : > { %762 = vst.msk [vmem:[#allocation4] sm:$0xf] %vm761_vm14, %v738_v16  ;;  %v1123_v16 = vld [vmem:[#allocation2 + $0x4c] sm:$0x1]  ;;  %v864_v7 = vshrl.u32 %v823_v40, 16  ;;  %v867_v42 = vshll.u32 %v823_v40, 16 }
  0x9a   : > { %v1232_v24 = vshll.u32 %v1123_v16, 16  ;;  %v842_v56 = vor.u32 %v841_v3, %v838_v46 }
  0x9b   : > { %1244 = vrot.lane.b32.xlu1 %v1193_v55, %s3635_s20  ;;  %v3473_v55 = vld [vmem:[%s4647_s3 + $0x60] sm:$0xff] }
  0x9c   : > { %v4012_v10 = vpop.permute.xlu2 %796  ;;  %1246 = vrot.lane.b32.xlu2 %v1207_v62, %s3635_s20  ;;  %v1234_v30 = vrot.slane %v1232_v24, 5  ;;  %1616 = vmatpush.bf16.msrb.mxu1 %v3474_v50  ;;  %v859_v62 = vshll.u32 %v822_v47, 16  ;;  %v843_v49 = vrot.slane %v842_v56, 4  ;;  %v869_v50 = vrot.slane %v867_v42, 5  ;;  %v1272_v47 = vld [vmem:[#allocation2 + $0x20] sm:$0xe] }
  0x9d   : > { %v873_v56 = vshll.u32 %v824_v51, 16 }
  0x9e   : > { %1039 = vrot.lane.b32.xlu0 %v1022_v41, %s3633_s18  ;;  %v1235_v37 = vsel %vm3779_vm8, %v1230_v29, %v1234_v30  ;;  %v3163_v41 = vrot.slane %v1268_v58, 9  ;;  %v861_v59 = vrot.slane %v859_v62, 5  ;;  %v848_v11 = vsel %vm3779_vm8, %v843_v49, %v847_v0 }
  0x9f   : > { %955 = vst.msk [vmem:[#allocation4 + $0x4] sm:$0xf] %vm291_vm0, %v848_v11  ;;  %v875_v0 = vrot.slane %v873_v56, 5  ;;  %v1275_v11 = vld [vmem:[#allocation2 + $0x2c] sm:$0x1] }
  0xa0   : > { %1617 = vmatpush.bf16.msrb.mxu1 %v3473_v55  ;;  %v1303_v16 = vsel %vm3803_vm12, %v3163_v41, %v1302_v13  ;;  %v3165_v41 = vrot.slane %v1272_v47, 9 }
  0xa1   : > { %1340 = vst.msk [vmem:[#allocation4 + $0x8] sm:$0xf] %vm291_vm0, %v1303_v16 }
  0xa3   : > { %1041 = vrot.lane.b32.xlu1 %v1026_v17, %s3633_s18  ;;  %v4026_v26 = vpop.permute.xlu1 %798  ;;  %v1307_v17 = vsel %vm3803_vm12, %v3164_v14, %v1306_v15  ;;  %v1310_v14 = vrot.slane %v1273_v4, 5 }
  0xa4   : > { %1088 = vrot.lane.b32.xlu2 %v1066_v22, %s3634_s19  ;;  %v3477_v22 = vld [vmem:[%s4647_s3 + $0x80] sm:$0xff]  ;;  %1341 = vst.msk [vmem:[#allocation4 + $0x14] sm:$0xf] %vm291_vm0, %v1307_v17  ;;  %1618 = vmatpush.bf16.msrb.mxu1 %v3472_v20 }
  0xa5   : > { %1650 = vmatpush.bf16.msra.mxu2 %v3477_v22  ;;  %3519 = vmatpush.bf16.msra.mxu3 %v3477_v22 }
  0xa6   : > { %1090 = vrot.lane.b32.xlu0 %v1067_v25, %s3634_s19  ;;  %v4031_v31 = vpop.permute.xlu2 %800 }
  0xa7   : > { %v4036_v33 = vpop.permute.xlu0 %751 }
  0xa8   : > { %1619 = vmatpush.bf16.msrb.mxu1 %v3471_v23  ;;  %v3181_v25 = vld [vmem:[#allocation4 + $0x8] sm:$0xf] }
  0xab   : > { %1248 = vrot.lane.b32.xlu1 %v1221_v34, %s3635_s20  ;;  %v746_v39 = vpop.permute.xlu1 %745  ;;  %v3451_v28 = vld [vmem:[#allocation4 + $0x10] sm:$0xf0]  ;;  %v493_v34 = vld [vmem:[#allocation2 + $0x18] sm:$0xf] }
  0xac   : > { %1250 = vrot.lane.b32.xlu2 %v1235_v37, %s3635_s20  ;;  %v3182_v30 = vor.u32 %v3451_v28, %v3181_v25  ;;  %1620 = vmatpush.bf16.msrb.mxu1 %v3470_v21  ;;  %501 = vst.msk [vmem:[#allocation4 + $0x24] sm:$0xf] %vm291_vm0, %v493_v34 }
  0xae   : > { %v4047_v48 = vpop.permute.xlu2 %749  ;;  %3291 = vmatmul.msk.bf16.vlgmr.msra.gmra.mxu2 %vm1572_vm1, %v3182_v30 }
  0xb0   : > { %v646_v54 = vpop.permute.xlu0 %645  ;;  %1621 = vmatpush.bf16.msrb.mxu1 %v3469_v32 }
  0xb1   : > { %666 = vst.msk [vmem:[#allocation4 + $0x30] sm:$0xf] %vm661_vm13, %v646_v54 }
  0xb2   : > { %766 = vst.msk [vmem:[#allocation4 + $0x30] sm:$0xf] %vm761_vm14, %v746_v39 }
  0xb3   : > { %815 = vst.msk [vmem:[#allocation4 + $0x30] sm:$0xf] %vm810_vm15, %v3991_v43  ;;  %v748_v9 = vpop.permute.xlu1 %747  ;;  %v862_v43 = vsel %vm3779_vm8, %v857_v6, %v861_v59 }
  0xb4   : > { %956 = vst.msk [vmem:[#allocation4 + $0x10] sm:$0xf] %vm291_vm0, %v862_v43  ;;  %v1314_v43 = vrot.slane %v1275_v11, 5  ;;  %v831_v11 = vld [vmem:[#allocation2 + $0x38] sm:$0xf] }
  0xb6   : > { %v789_v18 = vpop.permute.xlu2 %788 }
  0xb8   : > { %v648_v19 = vpop.permute.xlu0 %647 }
  0xb9   : > { %667 = vst.msk [vmem:[#allocation4 + $0x3c] sm:$0xf] %vm661_vm13, %v648_v19  ;;  %v1311_v19 = vsel %vm3803_vm12, %v3165_v41, %v1310_v14  ;;  %v920_v14 = vshrl.u32 %v831_v11, 16 }
  0xba   : > { %767 = vst.msk [vmem:[#allocation4 + $0x3c] sm:$0xf] %vm761_vm14, %v748_v9  ;;  %v3197_v29 = vld [vmem:[#allocation4 + $0x30] sm:$0xf]  ;;  %v1274_v9 = vld [vmem:[#allocation2 + $0x28] sm:$0xe] }
  0xbb   : > { %816 = vst.msk [vmem:[#allocation4 + $0x3c] sm:$0xf] %vm810_vm15, %v4012_v10  ;;  %v652_v24 = vpop.permute.xlu1 %651  ;;  %v3166_v15 = vrot.slane %v1274_v9, 9 }
  0xbc   : > { %669 = vst.msk [vmem:[#allocation4 + $0x54] sm:$0xf] %vm661_vm13, %v652_v24 }
  0xbd   : > { %769 = vst.msk [vmem:[#allocation4 + $0x54] sm:$0xf] %vm761_vm14, %v4036_v33  ;;  %v492_v33 = vld [vmem:[#allocation2 + $0x10] sm:$0xf]  ;;  %v1315_v23 = vsel %vm3803_vm12, %v3166_v15, %v1314_v43  ;;  %v923_v15 = vshll.u32 %v831_v11, 16 }
  0xbe   : > { %818 = vst.msk [vmem:[#allocation4 + $0x54] sm:$0xf] %vm810_vm15, %v4031_v31  ;;  %v1077_v27 = vpop.permute.xlu2 %1076 }
  0xbf   : > { %500 = vst.msk [vmem:[#allocation4 + $0x18] sm:$0xf] %vm291_vm0, %v492_v33 }
  0xc0   : > { %v650_v10 = vpop.permute.xlu0 %649  ;;  %1342 = vst.msk [vmem:[#allocation4 + $0x20] sm:$0xf] %vm291_vm0, %v1311_v19 }
  0xc1   : > { %668 = vst.msk [vmem:[#allocation4 + $0x48] sm:$0xf] %vm661_vm13, %v650_v10  ;;  %v828_v10 = vld [vmem:[#allocation2 + $0x2c] sm:$0x1] }
  0xc2   : > { %768 = vst.msk [vmem:[#allocation4 + $0x48] sm:$0xf] %vm761_vm14, %v4047_v48  ;;  %v3456_v31 = vld [vmem:[#allocation4 + $0x38] sm:$0xf0]  ;;  %v866_v48 = vrot.slane %v864_v7, 4  ;;  %v901_v32 = vshll.u32 %v828_v10, 16 }
  0xc3   : > { %817 = vst.msk [vmem:[#allocation4 + $0x48] sm:$0xf] %vm810_vm15, %v4026_v26  ;;  %v3198_v35 = vor.u32 %v3456_v31, %v3197_v29  ;;  %v825_v26 = vld [vmem:[#allocation2 + $0x20] sm:$0xf] }
  0xc4   : > { %v878_v44 = vshrl.u32 %v825_v26, 16  ;;  %v881_v45 = vshll.u32 %v825_v26, 16  ;;  %v870_v55 = vor.u32 %v869_v50, %v866_v48  ;;  %1343 = vst.msk [vmem:[#allocation4 + $0x2c] sm:$0xf] %vm291_vm0, %v1315_v23 }
  0xc5   : > { %1603 = vmatmul.bf16.vlgmr.msra.gmra.mxu1 %v3198_v35  ;;  %v640_v37 = vpop.permute.xlu1 %639  ;;  %v3459_v58 = vld [vmem:[#allocation4 + $0x50] sm:$0xf0] }
  0xc6   : > { %663 = vst.msk [vmem:[#allocation4 + $0xc] sm:$0xf] %vm661_vm13, %v640_v37  ;;  %v1239_v38 = vpop.permute.xlu2 %1238  ;;  %v880_v52 = vrot.slane %v878_v44, 4  ;;  %v883_v53 = vrot.slane %v881_v45, 5  ;;  %v871_v49 = vrot.slane %v870_v55, 4  ;;  %v903_v37 = vrot.slane %v901_v32, 5 }
  0xc7   : > { %v3193_v21 = vld [vmem:[#allocation4 + $0x20] sm:$0xf]  ;;  %v1277_v55 = vld [vmem:[#allocation2 + $0x34] sm:$0x1] }
  0xc8   : > { %v740_v39 = vpop.permute.xlu0 %739  ;;  %v884_v62 = vor.u32 %v883_v53, %v880_v52  ;;  %v876_v13 = vsel %vm3779_vm8, %v871_v49, %v875_v0  ;;  %v1318_v63 = vrot.slane %v1277_v55, 5 }
  0xc9   : > { %763 = vst.msk [vmem:[#allocation4 + $0xc] sm:$0xf] %vm761_vm14, %v740_v39  ;;  %v830_v39 = vld [vmem:[#allocation2 + $0x34] sm:$0x1] }
  0xca   : > { %812 = vst.msk [vmem:[#allocation4 + $0xc] sm:$0xf] %vm810_vm15, %v789_v18  ;;  %v3209_v3 = vld [vmem:[#allocation4 + $0x48] sm:$0xf]  ;;  %v885_v59 = vrot.slane %v884_v62, 4  ;;  %v915_v44 = vshll.u32 %v830_v39, 16 }
  0xcb   : > { %v3210_v6 = vor.u32 %v3459_v58, %v3209_v3  ;;  %957 = vst.msk [vmem:[#allocation4 + $0x1c] sm:$0xf] %vm291_vm0, %v876_v13  ;;  %v3454_v33 = vld [vmem:[#allocation4 + $0x28] sm:$0xf0]  ;;  %v1278_v58 = vld [vmem:[#allocation2 + $0x38] sm:$0xe] }
  0xcc   : > { %v890_v16 = vsel %vm3779_vm8, %v885_v59, %v889_v8  ;;  %v3194_v35 = vor.u32 %v3454_v33, %v3193_v21  ;;  %v917_v52 = vrot.slane %v915_v44, 5  ;;  %v3168_v41 = vrot.slane %v1278_v58, 9 }
  0xcd   : > { %v787_v46 = vpop.permute.xlu1 %786  ;;  %958 = vst.msk [vmem:[#allocation4 + $0x28] sm:$0xf] %vm291_vm0, %v890_v16  ;;  %v922_v16 = vrot.slane %v920_v14, 4 }
  0xce   : > { %811 = vst.msk [vmem:[#allocation4] sm:$0xf] %vm810_vm15, %v787_v46  ;;  %v742_v61 = vpop.permute.xlu2 %741  ;;  %3292 = vmatmul.msk.bf16.gmra.mxu2 %vm1572_vm1, %v3194_v35 }
  0xd0   : > { %v1028_v54 = vpop.permute.xlu0 %1027 }
  0xd1   : > { %1051 = vst.msk [vmem:[#allocation4 + $0x4] sm:$0xf] %vm661_vm13, %v1028_v54  ;;  %v3450_v12 = vld [vmem:[#allocation4 + $0x8] sm:$0xf0]  ;;  %v1276_v54 = vld [vmem:[#allocation2 + $0x30] sm:$0xe] }
  0xd2   : > { %1100 = vst.msk [vmem:[#allocation4 + $0x4] sm:$0xf] %vm761_vm14, %v1077_v27  ;;  %v827_v27 = vld [vmem:[#allocation2 + $0x28] sm:$0xf]  ;;  %v3167_v62 = vrot.slane %v1276_v54, 9 }
  0xd3   : > { %v892_v29 = vshrl.u32 %v827_v27, 16  ;;  %v895_v30 = vshll.u32 %v827_v27, 16 }
  0xd4   : > { %v1319_v4 = vsel %vm3803_vm12, %v3167_v62, %v1318_v63 }
  0xd5   : > { %1608 = vmatmul.bf16.gmra.mxu1 %v3210_v6  ;;  %v1030_v17 = vpop.permute.xlu1 %1029  ;;  %v3173_v18 = vld [vmem:[#allocation4] sm:$0xf]  ;;  %v894_v31 = vrot.slane %v892_v29, 4  ;;  %v897_v34 = vrot.slane %v895_v30, 5  ;;  %1344 = vst.msk [vmem:[#allocation4 + $0x38] sm:$0xf] %vm291_vm0, %v1319_v4 }
  0xd6   : > { %1052 = vst.msk [vmem:[#allocation4 + $0x10] sm:$0xf] %vm661_vm13, %v1030_v17  ;;  %v3174_v20 = vor.u32 %v3450_v12, %v3173_v18  ;;  %v793_v24 = vpop.permute.xlu2 %792  ;;  %v832_v12 = vld [vmem:[#allocation2 + $0x3c] sm:$0x1]  ;;  %v925_v17 = vrot.slane %v923_v15, 5 }
  0xd7   : > { %v898_v7 = vor.u32 %v897_v34, %v894_v31  ;;  %v929_v43 = vshll.u32 %v832_v12, 16 }
  0xd8   : > { %v1079_v22 = vpop.permute.xlu0 %1078  ;;  %1593 = vmatmul.bf16.vlgmr.msra.gmra.mxu0 %v3174_v20  ;;  %v833_v20 = vld [vmem:[#allocation2 + $0x40] sm:$0xf] }
  0xd9   : > { %1101 = vst.msk [vmem:[#allocation4 + $0x10] sm:$0xf] %vm761_vm14, %v1079_v22  ;;  %v899_v48 = vrot.slane %v898_v7, 4  ;;  %v931_v18 = vrot.slane %v929_v43, 5  ;;  %v834_v22 = vld [vmem:[#allocation2 + $0x44] sm:$0x1] }
  0xda   : > { %1261 = vst.msk [vmem:[#allocation4 + $0x10] sm:$0xf] %vm810_vm15, %v1239_v38  ;;  %v829_v38 = vld [vmem:[#allocation2 + $0x30] sm:$0xf]  ;;  %v937_v27 = vshll.u32 %v833_v20, 16 }
  0xdb   : > { %v906_v42 = vshrl.u32 %v829_v38, 16  ;;  %v909_v26 = vshll.u32 %v829_v38, 16  ;;  %v904_v57 = vsel %vm3779_vm8, %v899_v48, %v903_v37  ;;  %v1280_v37 = vld [vmem:[#allocation2 + $0x40] sm:$0xe]  ;;  %v1281_v7 = vld [vmem:[#allocation2 + $0x44] sm:$0x1] }
  0xdc   : > { %959 = vst.msk [vmem:[#allocation4 + $0x34] sm:$0xf] %vm291_vm0, %v904_v57  ;;  %v3205_v19 = vld [vmem:[#allocation4 + $0x38] sm:$0xf]  ;;  %v939_v31 = vrot.slane %v937_v27, 5 }
  0xdd   : > { %v1237_v25 = vpop.permute.xlu1 %1236  ;;  %v908_v50 = vrot.slane %v906_v42, 4  ;;  %v911_v51 = vrot.slane %v909_v26, 5  ;;  %v1282_v42 = vld [vmem:[#allocation2 + $0x48] sm:$0xe]  ;;  %v1283_v26 = vld [vmem:[#allocation2 + $0x4c] sm:$0x1] }
  0xde   : > { %1260 = vst.msk [vmem:[#allocation4 + $0x4] sm:$0xf] %vm810_vm15, %v1237_v25  ;;  %v1081_v45 = vpop.permute.xlu2 %1080  ;;  %v934_v25 = vshrl.u32 %v833_v20, 16  ;;  %v1330_v48 = vrot.slane %v1283_v26, 5  ;;  %v2046_v27 = vld [vmem:[#allocation3] sm:$0xe] }
  0xdf   : > { %v912_v47 = vor.u32 %v911_v51, %v908_v50  ;;  %v1689_v26 = vld [vmem:[#allocation3 + $0x10] sm:$0x1] }
  0xe0   : > { %v642_v28 = vpop.permute.xlu0 %641  ;;  %v936_v33 = vrot.slane %v934_v25, 4 }
  0xe1   : > { %664 = vst.msk [vmem:[#allocation4 + $0x18] sm:$0xf] %vm661_vm13, %v642_v28  ;;  %v3175_v40 = vld [vmem:[#allocation4 + $0xc] sm:$0xf0]  ;;  %v913_v0 = vrot.slane %v912_v47, 4  ;;  %v943_v28 = vshll.u32 %v834_v22, 16 }
  0xe2   : > { %764 = vst.msk [vmem:[#allocation4 + $0x18] sm:$0xf] %vm761_vm14, %v742_v61  ;;  %v1279_v61 = vld [vmem:[#allocation2 + $0x3c] sm:$0x1] }
  0xe3   : > { %v1322_v49 = vrot.slane %v1279_v61, 5  ;;  %v918_v59 = vsel %vm3779_vm8, %v913_v0, %v917_v52  ;;  %v945_v35 = vrot.slane %v943_v28, 5  ;;  %v2047_v28 = vld [vmem:[#allocation3 + $0x4] sm:$0x1] }
  0xe4   : > { %960 = vst.msk [vmem:[#allocation4 + $0x40] sm:$0xf] %vm291_vm0, %v918_v59 }
  0xe5   : > { %v644_v46 = vpop.permute.xlu1 %643  ;;  %v3449_v3 = vld [vmem:[#allocation4 + $0x4] sm:$0xf]  ;;  %v1323_v6 = vsel %vm3803_vm12, %v3168_v41, %v1322_v49 }
  0xe6   : > { %665 = vst.msk [vmem:[#allocation4 + $0x24] sm:$0xf] %vm661_vm13, %v644_v46  ;;  %v3178_v53 = vor.u32 %v3449_v3, %v3175_v40  ;;  %v1243_v9 = vpop.permute.xlu2 %1242  ;;  %v940_v40 = vor.u32 %v939_v31, %v936_v33  ;;  %v1326_v46 = vrot.slane %v1281_v7, 5  ;;  %v3170_v3 = vrot.slane %v1282_v42, 9 }
  0xe7   : > { %1345 = vst.msk [vmem:[#allocation4 + $0x44] sm:$0xf] %vm291_vm0, %v1323_v6 }
  0xe8   : > { %v744_v56 = vpop.permute.xlu0 %743  ;;  %1622 = vmatmul.bf16.vlgmr.msrb.gmra.mxu1 %v3178_v53  ;;  %v941_v50 = vrot.slane %v940_v40, 4  ;;  %v1331_v52 = vsel %vm3803_vm12, %v3170_v3, %v1330_v48  ;;  %v4196_v40 = vld [vmem:[%s4648_s4] ss:$0 sm:$0xff] }
  0xe9   : > { %765 = vst.msk [vmem:[#allocation4 + $0x24] sm:$0xf] %vm761_vm14, %v744_v56 }
  0xea   : > { %814 = vst.msk [vmem:[#allocation4 + $0x24] sm:$0xf] %vm810_vm15, %v793_v24  ;;  %v926_v24 = vor.u32 %v925_v17, %v922_v16  ;;  %v946_v53 = vsel %vm3779_vm8, %v941_v50, %v945_v35  ;;  %v1886_v17 = vld [vmem:[#allocation3] sm:$0xf]  ;;  %v1686_v35 = vld [vmem:[#allocation3 + $0x8] sm:$0x1] }
  0xeb   : > { %962 = vst.msk [vmem:[#allocation4 + $0x58] sm:$0xf] %vm291_vm0, %v946_v53  ;;  %v2438_v50 = vld [vmem:[#allocation3 + $0x48] sm:$0xf] }
  0xec   : > { %v927_v32 = vrot.slane %v926_v24, 4  ;;  %1347 = vst.msk [vmem:[#allocation4 + $0x5c] sm:$0xf] %vm291_vm0, %v1331_v52 }
  0xed   : > { %v791_v8 = vpop.permute.xlu1 %790 }
  0xee   : > { %813 = vst.msk [vmem:[#allocation4 + $0x18] sm:$0xf] %vm810_vm15, %v791_v8  ;;  %v3457_v21 = vld [vmem:[#allocation4 + $0x40] sm:$0xf0]  ;;  %v932_v39 = vsel %vm3779_vm8, %v927_v32, %v931_v18  ;;  %v1085_v44 = vpop.permute.xlu2 %1084  ;;  %v1903_v18 = vshrl.u32 %v1886_v17, 16 }
  0xef   : > { %v3206_v30 = vor.u32 %v3457_v21, %v3205_v19  ;;  %961 = vst.msk [vmem:[#allocation4 + $0x4c] sm:$0xf] %vm291_vm0, %v932_v39  ;;  %v1906_v19 = vshll.u32 %v1886_v17, 16  ;;  %v3295_v21 = vrot.slane %v2046_v27, 9 }
  0xf0   : > { %v1032_v13 = vpop.permute.xlu0 %1031  ;;  %v1905_v20 = vrot.slane %v1903_v18, 4 }
  0xf1   : > { %1053 = vst.msk [vmem:[#allocation4 + $0x1c] sm:$0xf] %vm661_vm13, %v1032_v13  ;;  %v3453_v23 = vld [vmem:[#allocation4 + $0x20] sm:$0xf0]  ;;  %3293 = vmatmul.msk.bf16.vlgmr.msra.gmra.mxu3 %vm1572_vm1, %v3206_v30  ;;  %v1908_v22 = vrot.slane %v1906_v19, 5 }
  0xf2   : > { %1102 = vst.msk [vmem:[#allocation4 + $0x1c] sm:$0xf] %vm761_vm14, %v1081_v45  ;;  %v3169_v45 = vrot.slane %v1280_v37, 9  ;;  %v1710_v37 = vld [vmem:[#allocation3 + $0xc] sm:$0x1] }
  0xf3   : > { %v3460_v58 = vld [vmem:[#allocation4 + $0x58] sm:$0xf0]  ;;  %v1909_v24 = vor.u32 %v1908_v22, %v1905_v20  ;;  %v1711_v39 = vsel %vm3732_vm6, 0, %v1710_v37  ;;  %v1695_v19 = vld [vmem:[#allocation3 + $0x20] sm:$0x1] }
  0xf4   : > { %v1327_v51 = vsel %vm3803_vm12, %v3169_v45, %v1326_v46  ;;  %1712 = vst [vmem:[#allocation3 + $0xc] sm:$0x1] %v1711_v39  ;;  %v1690_v45 = vsel %vm3725_vm4, 0, %v1689_v26  ;;  %v1719_v20 = vld [vmem:[#allocation3 + $0x24] sm:$0x1]  ;;  %v1696_v22 = vsel %vm3725_vm4, 0, %v1695_v19 }
  0xf5   : > { %v1034_v10 = vpop.permute.xlu1 %1033  ;;  %v3185_v29 = vld [vmem:[#allocation4 + $0x18] sm:$0xf]  ;;  %1346 = vst.msk [vmem:[#allocation4 + $0x50] sm:$0xf] %vm291_vm0, %v1327_v51 }
  0xf6   : > { %1054 = vst.msk [vmem:[#allocation4 + $0x28] sm:$0xf] %vm661_vm13, %v1034_v10  ;;  %v3186_v34 = vor.u32 %v3453_v23, %v3185_v29  ;;  %v1247_v56 = vpop.permute.xlu2 %1246  ;;  %v1887_v23 = vld [vmem:[#allocation3 + $0x4] sm:$0x1]  ;;  %v2080_v10 = vrot.slane %v2047_v28, 5  ;;  %v1910_v29 = vrot.slane %v1909_v24, 4 }
  0xf7   : > { %v1912_v25 = vshll.u32 %v1887_v23, 16  ;;  %1691 = vst [vmem:[#allocation3 + $0x10] sm:$0x1] %v1690_v45  ;;  %v1720_v23 = vsel %vm3732_vm6, 0, %v1719_v20  ;;  %v3508_v20 = vld [vmem:[%s4649_s5 + $0x88] sm:$0xff] }
  0xf8   : > { %v1083_v38 = vpop.permute.xlu0 %1082  ;;  %1598 = vmatmul.bf16.gmra.mxu0 %v3186_v34  ;;  %v2081_v33 = vsel %vm3803_vm12, %v3295_v21, %v2080_v10  ;;  %1697 = vst [vmem:[#allocation3 + $0x20] sm:$0x1] %v1696_v22 }
  0xf9   : > { %1103 = vst.msk [vmem:[#allocation4 + $0x28] sm:$0xf] %vm761_vm14, %v1083_v38  ;;  %v1914_v30 = vrot.slane %v1912_v25, 5  ;;  %2110 = vrot.lane.b32.xlu1 %v2081_v33, %s3634_s19  ;;  %v1687_v38 = vsel %vm3725_vm4, 0, %v1686_v35  ;;  %3015 = vmatpush.bf16.msrb.mxu0 %v3508_v20 }
  0xfa   : > { %1263 = vst.msk [vmem:[#allocation4 + $0x28] sm:$0xf] %vm810_vm15, %v1243_v9 }
  0xfb   : > { %v1915_v31 = vsel %vm3779_vm8, %v1910_v29, %v1914_v30  ;;  %1688 = vst [vmem:[#allocation3 + $0x8] sm:$0x1] %v1687_v38 }
  0xfc   : > { %v3217_v57 = vld [vmem:[#allocation4 + $0x50] sm:$0xf]  ;;  %2014 = vrot.lane.b32.xlu0 %v1915_v31, %s3633_s18  ;;  %1721 = vst [vmem:[#allocation3 + $0x24] sm:$0x1] %v1720_v23 }
  0xfd   : > { %v1241_v54 = vpop.permute.xlu1 %1240  ;;  %v3218_v63 = vor.u32 %v3460_v58, %v3217_v57  ;;  %v1692_v58 = vld [vmem:[#allocation3 + $0x18] sm:$0x1] }
  0xfe   : > { %1262 = vst.msk [vmem:[#allocation4 + $0x1c] sm:$0xf] %vm810_vm15, %v1241_v54  ;;  %v1089_v0 = vpop.permute.xlu2 %1088  ;;  %v1828_v28 = vld [vmem:[#allocation3 + $0x10] sm:$0xf] }
 0x100   : > { %v1036_v55 = vpop.permute.xlu0 %1035 }
 0x101   : > { %1055 = vst.msk [vmem:[#allocation4 + $0x34] sm:$0xf] %vm661_vm13, %v1036_v55  ;;  %v3187_v47 = vld [vmem:[#allocation4 + $0x24] sm:$0xf0]  ;;  %3294 = vmatmul.msk.bf16.gmra.mxu3 %vm1572_vm1, %v3218_v63  ;;  %2461 = vrot.lane.b32.xlu1 %v2438_v50, %s3634_s19 }
 0x102   : > { %1104 = vst.msk [vmem:[#allocation4 + $0x34] sm:$0xf] %vm761_vm14, %v1085_v44  ;;  %v1713_v44 = vld [vmem:[#allocation3 + $0x14] sm:$0x1] }
 0x103   : > { %v1714_v46 = vsel %vm3732_vm6, 0, %v1713_v44 }
 0x104   : > { %1715 = vst [vmem:[#allocation3 + $0x14] sm:$0x1] %v1714_v46 }
 0x105   : > { %v1038_v61 = vpop.permute.xlu1 %1037  ;;  %v3452_v62 = vld [vmem:[#allocation4 + $0x1c] sm:$0xf] }
 0x106   : > { %1056 = vst.msk [vmem:[#allocation4 + $0x40] sm:$0xf] %vm661_vm13, %v1038_v61  ;;  %v3190_v41 = vor.u32 %v3452_v62, %v3187_v47  ;;  %v1251_v12 = vpop.permute.xlu2 %1250  ;;  %v1716_v61 = vld [vmem:[#allocation3 + $0x1c] sm:$0x1]  ;;  %v1693_v62 = vsel %vm3725_vm4, 0, %v1692_v58 }
 0x107   : > { %v1717_v63 = vsel %vm3732_vm6, 0, %v1716_v61  ;;  %1694 = vst [vmem:[#allocation3 + $0x18] sm:$0x1] %v1693_v62 }
 0x108   : > { %v1087_v49 = vpop.permute.xlu0 %1086  ;;  %1627 = vmatmul.bf16.gmra.mxu1 %v3190_v41  ;;  %1718 = vst [vmem:[#allocation3 + $0x1c] sm:$0x1] %v1717_v63 }
 0x109   : > { %1105 = vst.msk [vmem:[#allocation4 + $0x40] sm:$0xf] %vm761_vm14, %v1087_v49 }
 0x10a   : > { %1265 = vst.msk [vmem:[#allocation4 + $0x40] sm:$0xf] %vm810_vm15, %v1247_v56 }
 0x10b   : > { %v1831_v21 = vld [vmem:[#allocation3 + $0x14] sm:$0x1] }
 0x10d   : > { %v1245_v4 = vpop.permute.xlu1 %1244 }
 0x10e   : > { %1264 = vst.msk [vmem:[#allocation4 + $0x34] sm:$0xf] %vm810_vm15, %v1245_v4 }
 0x110   : > { %v1040_v6 = vpop.permute.xlu0 %1039 }
 0x111   : > { %1057 = vst.msk [vmem:[#allocation4 + $0x4c] sm:$0xf] %vm661_vm13, %v1040_v6  ;;  %v3199_v59 = vld [vmem:[#allocation4 + $0x3c] sm:$0xf0] }
 0x112   : > { %1106 = vst.msk [vmem:[#allocation4 + $0x4c] sm:$0xf] %vm761_vm14, %v1089_v0 }
 0x115   : > { %v1042_v8 = vpop.permute.xlu1 %1041  ;;  %v3455_v9 = vld [vmem:[#allocation4 + $0x34] sm:$0xf] }
 0x116   : > { %1058 = vst.msk [vmem:[#allocation4 + $0x58] sm:$0xf] %vm661_vm13, %v1042_v8  ;;  %v3202_v11 = vor.u32 %v3455_v9, %v3199_v59 }
 0x118   : > { %v1091_v13 = vpop.permute.xlu0 %1090  ;;  %1632 = vmatmul.bf16.gmra.mxu1 %v3202_v11 }
 0x119   : > { %1107 = vst.msk [vmem:[#allocation4 + $0x58] sm:$0xf] %vm761_vm14, %v1091_v13  ;;  %v1825_v13 = vld [vmem:[#allocation3 + $0xc] sm:$0x1] }
 0x11a   : > { %1267 = vst.msk [vmem:[#allocation4 + $0x58] sm:$0xf] %vm810_vm15, %v1251_v12  ;;  %v1822_v12 = vld [vmem:[#allocation3 + $0x8] sm:$0xf] }
 0x11d   : > { %v1249_v14 = vpop.permute.xlu1 %1248 }
 0x11e   : > { %1266 = vst.msk [vmem:[#allocation4 + $0x4c] sm:$0xf] %vm810_vm15, %v1249_v14 }
 0x121   : > { %v3211_v15 = vld [vmem:[#allocation4 + $0x54] sm:$0xf0] }
 0x125   : > { %v3458_v43 = vld [vmem:[#allocation4 + $0x4c] sm:$0xf] }
 0x126   : > { %v3214_v16 = vor.u32 %v3458_v43, %v3211_v15 }
 0x128   : > { %1637 = vmatmul.bf16.gmra.mxu1 %v3214_v16 }
 0x131   : > { %v1652_v53 = vpop.f32.mrf.mxu2 }
 0x139   : > { %v1654_v59 = vpop.f32.mrf.mxu2 }
 0x142   : > { %v4179_v32 = vpop.f32.mrf.mxu1 }
 0x14a   : > { %v4187_v34 = vpop.f32.mrf.mxu1 }
 0x152   : > { %v1609_v7 = vpop.f32.mrf.mxu1 }
 0x153   : > { %v4199_v42 = vadd.f32 %v4196_v40, %v1609_v7 }
 0x155   : > { %v1594_v51 = vpop.f32.mrf.mxu0 }
 0x156   : > { %v1595_v52 = vadd.f32 %v4196_v40, %v1594_v51 }
 0x15a   : > { %v1611_v3 = vpop.f32.mrf.mxu1 }
 0x15b   : > { %v4206_v48 = vadd.f32 %v4196_v40, %v1611_v3 }
 0x15d   : > { %v1596_v57 = vpop.f32.mrf.mxu0 }
 0x15e   : > { %v1597_v41 = vadd.f32 %v4196_v40, %v1596_v57 }
 0x165   : > { %v1623_v54 = vpop.f32.mrf.mxu1 }
 0x166   : > { %v1624_v55 = vadd.f32 %v1623_v54, %v1595_v52  ;;  %v1698_v52 = vld [vmem:[#allocation3 + $0x28] sm:$0x1] }
 0x168   : > { %v1653_v56 = vadd.f32 %v1652_v53, %v1624_v55  ;;  %v1699_v55 = vsel %vm3725_vm4, 0, %v1698_v52 }
 0x169   : > { %1700 = vst [vmem:[#allocation3 + $0x28] sm:$0x1] %v1699_v55 }
 0x16a   : > { %v1672_v47 = vmax.f32 %v1653_v56, 0.0  ;;  %v1722_v56 = vld [vmem:[#allocation3 + $0x2c] sm:$0x1] }
 0x16c   : > { %v1734_v49 = vpack.c.bf16 %v1672_v47, %v1672_v47  ;;  %v1723_v47 = vsel %vm3732_vm6, 0, %v1722_v56 }
 0x16d   : > { %v1625_v0 = vpop.f32.mrf.mxu1  ;;  %1724 = vst [vmem:[#allocation3 + $0x2c] sm:$0x1] %v1723_v47 }
 0x16e   : > { %v1743_v4 = vshrl.u32 %v1734_v49, 16  ;;  %v1626_v6 = vadd.f32 %v1625_v0, %v1597_v41  ;;  %v1746_v9 = vshll.u32 %v1734_v49, 16  ;;  %v1657_v49 = vpop.f32.mrf.mxu2 }
 0x170   : > { %v1745_v8 = vrot.slane %v1743_v4, 7  ;;  %v1655_v11 = vadd.f32 %v1654_v59, %v1626_v6 }
 0x172   : > { %v1748_v14 = vor.u32 %v1746_v9, %v1745_v8  ;;  %v1749_v15 = vrot.slane %v1745_v8, 4  ;;  %v1673_v43 = vmax.f32 %v1655_v11, 0.0 }
 0x174   : > { %v1823_v16 = vsel %vm3797_vm11, %v1748_v14, %v1822_v12  ;;  %v1826_v17 = vsel %vm3725_vm4, %v1749_v15, %v1825_v13  ;;  %v1735_v18 = vpack.c.bf16 %v1673_v43, %v1673_v43  ;;  %v1701_v14 = vld [vmem:[#allocation3 + $0x30] sm:$0x1]  ;;  %v1725_v15 = vld [vmem:[#allocation3 + $0x34] sm:$0x1]  ;;  %v1662_v56 = vpop.f32.mrf.mxu3 }
 0x175   : > { %1824 = vst [vmem:[#allocation3 + $0x8] sm:$0xf] %v1823_v16  ;;  %v1599_v44 = vpop.f32.mrf.mxu0  ;;  %v1726_v19 = vsel %vm3732_vm6, 0, %v1725_v15 }
 0x176   : > { %1827 = vst [vmem:[#allocation3 + $0xc] sm:$0x1] %v1826_v17  ;;  %v1751_v24 = vshrl.u32 %v1735_v18, 16  ;;  %v1754_v27 = vshll.u32 %v1735_v18, 16  ;;  %v1600_v58 = vadd.f32 %v4196_v40, %v1599_v44  ;;  %v1702_v18 = vsel %vm3725_vm4, 0, %v1701_v14  ;;  %v1659_v55 = vpop.f32.mrf.mxu2 }
 0x177   : > { %1703 = vst [vmem:[#allocation3 + $0x30] sm:$0x1] %v1702_v18 }
 0x178   : > { %v1753_v25 = vrot.slane %v1751_v24, 7  ;;  %1727 = vst [vmem:[#allocation3 + $0x34] sm:$0x1] %v1726_v19 }
 0x17a   : > { %v1756_v10 = vor.u32 %v1754_v27, %v1753_v25  ;;  %v1757_v29 = vrot.slane %v1753_v25, 4 }
 0x17c   : > { %v1829_v30 = vsel %vm3797_vm11, %v1756_v10, %v1828_v28  ;;  %v1832_v33 = vsel %vm3725_vm4, %v1757_v29, %v1831_v21  ;;  %v2142_v31 = vld [vmem:[#allocation3 + $0x8] sm:$0xf] }
 0x17d   : > { %v2334_v35 = vld [vmem:[#allocation3 + $0x8] sm:$0xe]  ;;  %1830 = vst [vmem:[#allocation3 + $0x10] sm:$0xf] %v1829_v30  ;;  %2158 = vrot.lane.b32.xlu2 %v2142_v31, %s3635_s20  ;;  %v2335_v38 = vld [vmem:[#allocation3 + $0xc] sm:$0x1]  ;;  %v1601_v16 = vpop.f32.mrf.mxu0 }
 0x17e   : > { %v1888_v37 = vld [vmem:[#allocation3 + $0x8] sm:$0xf]  ;;  %1833 = vst [vmem:[#allocation3 + $0x14] sm:$0x1] %v1832_v33  ;;  %v1889_v7 = vld [vmem:[#allocation3 + $0xc] sm:$0x1]  ;;  %v1602_v21 = vadd.f32 %v4196_v40, %v1601_v16 }
 0x17f   : > { %v1917_v39 = vshrl.u32 %v1888_v37, 16  ;;  %v1920_v26 = vshll.u32 %v1888_v37, 16  ;;  %v3303_v46 = vrot.slane %v2334_v35, 9  ;;  %v2368_v3 = vrot.slane %v2335_v38, 5  ;;  %v2048_v54 = vld [vmem:[#allocation3 + $0x8] sm:$0xe] }
 0x180   : > { %v1926_v51 = vshll.u32 %v1889_v7, 16  ;;  %v2049_v57 = vld [vmem:[#allocation3 + $0xc] sm:$0x1]  ;;  %v3296_v59 = vrot.slane %v2048_v54, 9  ;;  %v2190_v43 = vld [vmem:[#allocation3 + $0x8] sm:$0xf] }
 0x181   : > { %v1919_v45 = vrot.slane %v1917_v39, 4  ;;  %v1922_v50 = vrot.slane %v1920_v26, 5  ;;  %v2369_v62 = vsel %vm3803_vm12, %v3303_v46, %v2368_v3  ;;  %v2084_v8 = vrot.slane %v2049_v57, 5  ;;  %v3507_v38 = vld [vmem:[%s4649_s5 + $0x80] sm:$0xff]  ;;  %v2191_v39 = vld [vmem:[#allocation3 + $0xc] sm:$0x1] }
 0x182   : > { %v1928_v41 = vrot.slane %v1926_v51, 5  ;;  %v2207_v7 = vshrl.u32 %v2190_v43, 16  ;;  %v2210_v26 = vshll.u32 %v2190_v43, 16  ;;  %v1837_v54 = vld [vmem:[#allocation3 + $0x1c] sm:$0x1]  ;;  %3016 = vmatpush.bf16.msrb.mxu0 %v3507_v38 }
 0x183   : > { %v1923_v53 = vor.u32 %v1922_v50, %v1919_v45  ;;  %v2085_v30 = vsel %vm3803_vm12, %v3296_v59, %v2084_v8  ;;  %v1704_v50 = vld [vmem:[#allocation3 + $0x38] sm:$0x1] }
 0x184   : > { %v2431_v61 = vld [vmem:[#allocation3 + $0x10] sm:$0xf]  ;;  %v1705_v47 = vsel %vm3725_vm4, 0, %v1704_v50 }
 0x185   : > { %v1924_v63 = vrot.slane %v1923_v53, 4  ;;  %v1628_v0 = vpop.f32.mrf.mxu1  ;;  %2447 = vrot.lane.b32.xlu0 %v2431_v61, %s3634_s19  ;;  %2398 = vrot.lane.b32.xlu2 %v2369_v62, %s3633_s18  ;;  %v2050_v9 = vld [vmem:[#allocation3 + $0x10] sm:$0xe]  ;;  %v2051_v11 = vld [vmem:[#allocation3 + $0x14] sm:$0x1] }
 0x186   : > { %v1629_v4 = vadd.f32 %v1628_v0, %v1600_v58  ;;  %v1890_v12 = vld [vmem:[#allocation3 + $0x10] sm:$0xf]  ;;  %v3297_v23 = vrot.slane %v2050_v9, 9  ;;  %v2088_v24 = vrot.slane %v2051_v11, 5  ;;  %v2337_v25 = vld [vmem:[#allocation3 + $0x14] sm:$0x1] }
 0x187   : > { %v1929_v6 = vsel %vm3779_vm8, %v1924_v63, %v1928_v41  ;;  %v4240_v17 = vld [vmem:[#allocation3 + $0x10] sm:$0xe]  ;;  %v1931_v27 = vshrl.u32 %v1890_v12, 16  ;;  %v1934_v28 = vshll.u32 %v1890_v12, 16  ;;  %v2372_v37 = vrot.slane %v2337_v25, 5 }
 0x188   : > { %2016 = vrot.lane.b32.xlu1 %v1929_v6, %s3633_s18  ;;  %v1658_v13 = vadd.f32 %v1657_v49, %v1629_v4  ;;  %v2143_v29 = vld [vmem:[#allocation3 + $0x10] sm:$0xf]  ;;  %v3304_v35 = vrot.slane %v4240_v17, 9  ;;  %v2089_v46 = vsel %vm3803_vm12, %v3297_v23, %v2088_v24  ;;  %v2640_v51 = vld [vmem:[#allocation3 + $0x14] sm:$0x1]  ;;  %v2209_v4 = vrot.slane %v2207_v7, 4 }
 0x189   : > { %v2639_v33 = vld [vmem:[#allocation3 + $0x10] sm:$0xe]  ;;  %v1933_v3 = vrot.slane %v1931_v27, 4  ;;  %v1834_v53 = vld [vmem:[#allocation3 + $0x18] sm:$0xf]  ;;  %v1936_v57 = vrot.slane %v1934_v28, 5 }
 0x18a   : > { %v1674_v22 = vmax.f32 %v1658_v13, 0.0  ;;  %v1728_v58 = vld [vmem:[#allocation3 + $0x3c] sm:$0x1]  ;;  %v3311_v61 = vrot.slane %v2639_v33, 9  ;;  %1706 = vst [vmem:[#allocation3 + $0x38] sm:$0x1] %v1705_v47  ;;  %v1605_v13 = vadd.f32 %v4196_v40, %v4179_v32  ;;  %v2373_v20 = vsel %vm3803_vm12, %v3304_v35, %v2372_v37 }
 0x18b   : > { %v1729_v41 = vsel %vm3732_vm6, 0, %v1728_v58  ;;  %v1871_v49 = vld [vmem:[#allocation3 + $0x8] sm:$0xf]  ;;  %v2673_v0 = vrot.slane %v2640_v51, 5  ;;  %v2212_v6 = vrot.slane %v2210_v26, 5  ;;  %v2216_v12 = vshll.u32 %v2191_v39, 16 }
 0x18c   : > { %v1736_v10 = vpack.c.bf16 %v1674_v22, %v1674_v22  ;;  %1730 = vst [vmem:[#allocation3 + $0x3c] sm:$0x1] %v1729_v41  ;;  %v2479_v11 = vld [vmem:[#allocation3 + $0x10] sm:$0xf]  ;;  %v1891_v14 = vld [vmem:[#allocation3 + $0x14] sm:$0x1]  ;;  %v1937_v15 = vor.u32 %v1936_v57, %v1933_v3 }
 0x18d   : > { %v1630_v31 = vpop.f32.mrf.mxu1  ;;  %2160 = vrot.lane.b32.xlu0 %v2143_v29, %s3635_s20  ;;  %2112 = vrot.lane.b32.xlu2 %v2085_v30, %s3634_s19  ;;  %v2674_v43 = vsel %vm3803_vm12, %v3311_v61, %v2673_v0  ;;  %v2213_v16 = vor.u32 %v2212_v6, %v2209_v4  ;;  %1879 = vst.msk [vmem:[#allocation5 + $0xc] sm:$0xf] %vm291_vm0, %v1871_v49  ;;  %v2496_v22 = vshrl.u32 %v2479_v11, 16  ;;  %v2499_v23 = vshll.u32 %v2479_v11, 16  ;;  %v1840_v29 = vld [vmem:[#allocation3 + $0x20] sm:$0xf] }
 0x18e   : > { %v1759_v44 = vshrl.u32 %v1736_v10, 16  ;;  %v1631_v45 = vadd.f32 %v1630_v31, %v1602_v21  ;;  %v1762_v52 = vshll.u32 %v1736_v10, 16  ;;  %2711 = vst.msk [vmem:[#allocation5 + $0x8] sm:$0xf] %vm291_vm0, %v2674_v43  ;;  %v2218_v25 = vrot.slane %v2216_v12, 5 }
 0x18f   : > { %v2214_v24 = vrot.slane %v2213_v16, 4  ;;  %v1940_v21 = vshll.u32 %v1891_v14, 16  ;;  %v1707_v10 = vld [vmem:[#allocation3 + $0x40] sm:$0x1]  ;;  %v1938_v30 = vrot.slane %v1937_v15, 4 }
 0x190   : > { %2114 = vrot.lane.b32.xlu1 %v2089_v46, %s3634_s19  ;;  %v1761_v62 = vrot.slane %v1759_v44, 7  ;;  %v1660_v63 = vadd.f32 %v1659_v55, %v1631_v45  ;;  %v1708_v33 = vsel %vm3725_vm4, 0, %v1707_v10  ;;  %v1731_v31 = vld [vmem:[#allocation3 + $0x44] sm:$0x1]  ;;  %v1664_v44 = vpop.f32.mrf.mxu3  ;;  %v2498_v45 = vrot.slane %v2496_v22, 4 }
 0x191   : > { %v2219_v35 = vsel %vm3779_vm8, %v2214_v24, %v2218_v25  ;;  %1709 = vst [vmem:[#allocation3 + $0x40] sm:$0x1] %v1708_v33  ;;  %v1732_v7 = vsel %vm3732_vm6, 0, %v1731_v31  ;;  %v1843_v26 = vld [vmem:[#allocation3 + $0x24] sm:$0x1]  ;;  %v2501_v46 = vrot.slane %v2499_v23, 5 }
 0x192   : > { %v1764_v59 = vor.u32 %v1762_v52, %v1761_v62  ;;  %v1765_v8 = vrot.slane %v1761_v62, 4  ;;  %v1675_v9 = vmax.f32 %v1660_v63, 0.0  ;;  %1733 = vst [vmem:[#allocation3 + $0x44] sm:$0x1] %v1732_v7  ;;  %v1942_v52 = vrot.slane %v1940_v21, 5 }
 0x193   : > { %2326 = vst.msk [vmem:[#allocation5 + $0x4] sm:$0xf] %vm291_vm0, %v2219_v35  ;;  %v1846_v4 = vld [vmem:[#allocation3 + $0x28] sm:$0xf]  ;;  %v1849_v6 = vld [vmem:[#allocation3 + $0x2c] sm:$0x1] }
 0x194   : > { %v1835_v17 = vsel %vm3797_vm11, %v1764_v59, %v1834_v53  ;;  %v1838_v18 = vsel %vm3725_vm4, %v1765_v8, %v1837_v54  ;;  %v1737_v19 = vpack.c.bf16 %v1675_v9, %v1675_v9  ;;  %v1607_v53 = vadd.f32 %v4196_v40, %v4187_v34  ;;  %v2480_v54 = vld [vmem:[#allocation3 + $0x14] sm:$0x1] }
 0x195   : > { %1836 = vst [vmem:[#allocation3 + $0x18] sm:$0xf] %v1835_v17  ;;  %v1633_v32 = vpop.f32.mrf.mxu1  ;;  %2400 = vrot.lane.b32.xlu0 %v2373_v20, %s3633_s18  ;;  %v1943_v57 = vsel %vm3779_vm8, %v1938_v30, %v1942_v52  ;;  %v2502_v40 = vor.u32 %v2501_v46, %v2498_v45  ;;  %v2505_v49 = vshll.u32 %v2480_v54, 16  ;;  %v1852_v52 = vld [vmem:[#allocation3 + $0x30] sm:$0xf] }
 0x196   : > { %1839 = vst [vmem:[#allocation3 + $0x1c] sm:$0x1] %v1838_v18  ;;  %v1767_v27 = vshrl.u32 %v1737_v19, 16  ;;  %v1634_v28 = vadd.f32 %v1633_v32, %v1605_v13  ;;  %v1770_v38 = vshll.u32 %v1737_v19, 16 }
 0x197   : > { %v2503_v43 = vrot.slane %v2502_v40, 4  ;;  %v2507_v24 = vrot.slane %v2505_v49, 5 }
 0x198   : > { %v1769_v37 = vrot.slane %v1767_v27, 7  ;;  %v1663_v39 = vadd.f32 %v1662_v56, %v1634_v28  ;;  %v1667_v25 = vpop.f32.mrf.mxu3 }
 0x19a   : > { %v1772_v3 = vor.u32 %v1770_v38, %v1769_v37  ;;  %v1773_v50 = vrot.slane %v1769_v37, 4  ;;  %v1676_v51 = vmax.f32 %v1663_v39, 0.0  ;;  %v2508_v39 = vsel %vm3779_vm8, %v2503_v43, %v2507_v24 }
 0x19c   : > { %v1841_v55 = vsel %vm3797_vm11, %v1772_v3, %v1840_v29  ;;  %v1844_v2 = vsel %vm3725_vm4, %v1773_v50, %v1843_v26  ;;  %v1738_v56 = vpack.c.bf16 %v1676_v51, %v1676_v51  ;;  %v2144_v47 = vld [vmem:[#allocation3 + $0x18] sm:$0xf] }
 0x19d   : > { %v2432_v58 = vld [vmem:[#allocation3 + $0x18] sm:$0xf]  ;;  %1842 = vst [vmem:[#allocation3 + $0x20] sm:$0xf] %v1841_v55  ;;  %v1635_v62 = vpop.f32.mrf.mxu1  ;;  %2018 = vrot.lane.b32.xlu0 %v1943_v57, %s3633_s18  ;;  %2162 = vrot.lane.b32.xlu2 %v2144_v47, %s3635_s20  ;;  %v2339_v34 = vld [vmem:[#allocation3 + $0x1c] sm:$0x1] }
 0x19e   : > { %v2338_v61 = vld [vmem:[#allocation3 + $0x18] sm:$0xe]  ;;  %1845 = vst [vmem:[#allocation3 + $0x24] sm:$0x1] %v1844_v2  ;;  %v1775_v63 = vshrl.u32 %v1738_v56, 16  ;;  %v1636_v41 = vadd.f32 %v1635_v62, %v1607_v53  ;;  %2449 = vrot.lane.b32.xlu1 %v2432_v58, %s3634_s19  ;;  %v1778_v0 = vshll.u32 %v1738_v56, 16 }
 0x19f   : > { %v3305_v59 = vrot.slane %v2338_v61, 9  ;;  %v2641_v8 = vld [vmem:[#allocation3 + $0x18] sm:$0xe]  ;;  %v2642_v9 = vld [vmem:[#allocation3 + $0x1c] sm:$0x1]  ;;  %v2376_v13 = vrot.slane %v2339_v34, 5 }
 0x1a0   : > { %v1777_v11 = vrot.slane %v1775_v63, 7  ;;  %v1665_v12 = vadd.f32 %v1664_v44, %v1636_v41  ;;  %v3312_v14 = vrot.slane %v2641_v8, 9  ;;  %v1892_v15 = vld [vmem:[#allocation3 + $0x18] sm:$0xf]  ;;  %v2677_v16 = vrot.slane %v2642_v9, 5 }
 0x1a1   : > { %v1893_v17 = vld [vmem:[#allocation3 + $0x1c] sm:$0x1]  ;;  %v1945_v18 = vshrl.u32 %v1892_v15, 16  ;;  %v2052_v22 = vld [vmem:[#allocation3 + $0x18] sm:$0xe]  ;;  %v1948_v23 = vshll.u32 %v1892_v15, 16  ;;  %v2377_v35 = vsel %vm3803_vm12, %v3305_v59, %v2376_v13 }
 0x1a2   : > { %v1780_v19 = vor.u32 %v1778_v0, %v1777_v11  ;;  %v1781_v20 = vrot.slane %v1777_v11, 4  ;;  %v1677_v32 = vmax.f32 %v1665_v12, 0.0  ;;  %v2678_v27 = vsel %vm3803_vm12, %v3312_v14, %v2677_v16  ;;  %v2053_v28 = vld [vmem:[#allocation3 + $0x1c] sm:$0x1]  ;;  %v2481_v37 = vld [vmem:[#allocation3 + $0x18] sm:$0xf] }
 0x1a3   : > { %v1947_v21 = vrot.slane %v1945_v18, 4  ;;  %v1954_v10 = vshll.u32 %v1893_v17, 16  ;;  %2712 = vst.msk [vmem:[#allocation5 + $0x14] sm:$0xf] %vm291_vm0, %v2678_v27  ;;  %v3298_v7 = vrot.slane %v2052_v22, 9  ;;  %v1950_v26 = vrot.slane %v1948_v23, 5 }
 0x1a4   : > { %v1847_v29 = vsel %vm3797_vm11, %v1780_v19, %v1846_v4  ;;  %v1850_v30 = vsel %vm3725_vm4, %v1781_v20, %v1849_v6  ;;  %v1739_v33 = vpack.c.bf16 %v1677_v32, %v1677_v32  ;;  %v2433_v31 = vld [vmem:[#allocation3 + $0x20] sm:$0xf]  ;;  %v2092_v3 = vrot.slane %v2053_v28, 5  ;;  %v2482_v55 = vld [vmem:[#allocation3 + $0x1c] sm:$0x1]  ;;  %v1669_v32 = vpop.f32.mrf.mxu3 }
 0x1a5   : > { %1848 = vst [vmem:[#allocation3 + $0x28] sm:$0xf] %v1847_v29  ;;  %v1638_v38 = vpop.f32.mrf.mxu1  ;;  %2451 = vrot.lane.b32.xlu0 %v2433_v31, %s3634_s19  ;;  %2402 = vrot.lane.b32.xlu2 %v2377_v35, %s3633_s18  ;;  %v4309_v44 = vld [vmem:[#allocation3 + $0x20] sm:$0xe]  ;;  %v4313_v50 = vld [vmem:[#allocation3 + $0x24] sm:$0x1]  ;;  %v1951_v53 = vor.u32 %v1950_v26, %v1947_v21 }
 0x1a6   : > { %1851 = vst [vmem:[#allocation3 + $0x2c] sm:$0x1] %v1850_v30  ;;  %v1783_v45 = vshrl.u32 %v1739_v33, 16  ;;  %v1639_v46 = vadd.f32 %v1638_v38, %v4199_v42  ;;  %2607 = vrot.lane.b32.xlu1 %v2508_v39, %s3635_s20  ;;  %v1786_v51 = vshll.u32 %v1739_v33, 16  ;;  %v1956_v54 = vrot.slane %v1954_v10, 5 }
 0x1a7   : > { %v2510_v2 = vshrl.u32 %v2481_v37, 16  ;;  %v1855_v57 = vld [vmem:[#allocation3 + $0x34] sm:$0x1]  ;;  %v3306_v58 = vrot.slane %v4309_v44, 9  ;;  %v2513_v61 = vshll.u32 %v2481_v37, 16  ;;  %v1952_v34 = vrot.slane %v1951_v53, 4 }
 0x1a8   : > { %v1785_v56 = vrot.slane %v1783_v45, 7  ;;  %v1668_v47 = vadd.f32 %v1667_v25, %v1639_v46  ;;  %v3329_v62 = vld [vmem:[#allocation5 + $0x8] sm:$0xf]  ;;  %v2380_v42 = vrot.slane %v4313_v50, 5  ;;  %v2519_v63 = vshll.u32 %v2482_v55, 16 }
 0x1a9   : > { %v2512_v40 = vrot.slane %v2510_v2, 4  ;;  %v2145_v4 = vld [vmem:[#allocation3 + $0x20] sm:$0xf]  ;;  %v2515_v6 = vrot.slane %v2513_v61, 5  ;;  %v2093_v9 = vsel %vm3803_vm12, %v3298_v7, %v2092_v3  ;;  %v2644_v12 = vld [vmem:[#allocation3 + $0x24] sm:$0x1]  ;;  %v1957_v20 = vsel %vm3779_vm8, %v1952_v34, %v1956_v54 }
 0x1aa   : > { %v1788_v41 = vor.u32 %v1786_v51, %v1785_v56  ;;  %v1789_v49 = vrot.slane %v1785_v56, 4  ;;  %v1678_v0 = vmax.f32 %v1668_v47, 0.0  ;;  %v2643_v59 = vld [vmem:[#allocation3 + $0x20] sm:$0xe]  ;;  %v3481_v8 = vld [vmem:[#allocation5 + $0x10] sm:$0xf0]  ;;  %v2381_v55 = vsel %vm3803_vm12, %v3306_v58, %v2380_v42 }
 0x1ab   : > { %v2054_v11 = vld [vmem:[#allocation3 + $0x20] sm:$0xe]  ;;  %v3330_v43 = vor.u32 %v3481_v8, %v3329_v62  ;;  %v2055_v16 = vld [vmem:[#allocation3 + $0x24] sm:$0x1]  ;;  %v2516_v22 = vor.u32 %v2515_v6, %v2512_v40  ;;  %v3313_v24 = vrot.slane %v2643_v59, 9  ;;  %v2681_v25 = vrot.slane %v2644_v12, 5 }
 0x1ac   : > { %v1853_v13 = vsel %vm3797_vm11, %v1788_v41, %v1852_v52  ;;  %v1856_v14 = vsel %vm3725_vm4, %v1789_v49, %v1855_v57  ;;  %v1740_v15 = vpack.c.bf16 %v1678_v0, %v1678_v0  ;;  %v2645_v17 = vld [vmem:[#allocation3 + $0x28] sm:$0xe]  ;;  %v1894_v18 = vld [vmem:[#allocation3 + $0x20] sm:$0xf]  ;;  %v3299_v21 = vrot.slane %v2054_v11, 9 }
 0x1ad   : > { %1854 = vst [vmem:[#allocation3 + $0x30] sm:$0xf] %v1853_v13  ;;  %v1640_v19 = vpop.f32.mrf.mxu1  ;;  %2164 = vrot.lane.b32.xlu0 %v2145_v4, %s3635_s20  ;;  %2116 = vrot.lane.b32.xlu2 %v2093_v9, %s3634_s19  ;;  %v2646_v23 = vld [vmem:[#allocation3 + $0x2c] sm:$0x1]  ;;  %v3314_v10 = vrot.slane %v2645_v17, 9  ;;  %v2517_v33 = vrot.slane %v2516_v22, 4  ;;  %v2682_v31 = vsel %vm3803_vm12, %v3313_v24, %v2681_v25 }
 0x1ae   : > { %1857 = vst [vmem:[#allocation3 + $0x34] sm:$0x1] %v1856_v14  ;;  %v1791_v27 = vshrl.u32 %v1740_v15, 16  ;;  %3439 = vmatmul.msk.bf16.vlgmr.msrb.gmra.mxu0 %vm1572_vm1, %v3330_v43  ;;  %v1641_v28 = vadd.f32 %v1640_v19, %v4206_v48  ;;  %2020 = vrot.lane.b32.xlu1 %v1957_v20, %s3633_s18  ;;  %v1858_v29 = vld [vmem:[#allocation3 + $0x38] sm:$0xf]  ;;  %v2685_v35 = vrot.slane %v2646_v23, 5 }
 0x1af   : > { %v1861_v30 = vld [vmem:[#allocation3 + $0x3c] sm:$0x1]  ;;  %v1959_v37 = vshrl.u32 %v1894_v18, 16  ;;  %v1794_v39 = vshll.u32 %v1740_v15, 16  ;;  %2713 = vst.msk [vmem:[#allocation5 + $0x20] sm:$0xf] %vm291_vm0, %v2682_v31 }
 0x1b0   : > { %v1793_v38 = vrot.slane %v1791_v27, 7  ;;  %v1670_v7 = vadd.f32 %v1669_v32, %v1641_v28  ;;  %v1962_v26 = vshll.u32 %v1894_v18, 16  ;;  %v2521_v45 = vrot.slane %v2519_v63, 5  ;;  %v1895_v3 = vld [vmem:[#allocation3 + $0x24] sm:$0x1] }
 0x1b1   : > { %v2096_v48 = vrot.slane %v2055_v16, 5  ;;  %v2686_v46 = vsel %vm3803_vm12, %v3314_v10, %v2685_v35  ;;  %v1961_v50 = vrot.slane %v1959_v37, 4  ;;  %v2483_v56 = vld [vmem:[#allocation3 + $0x20] sm:$0xf]  ;;  %v1968_v58 = vshll.u32 %v1895_v3, 16 }
 0x1b2   : > { %v1796_v51 = vor.u32 %v1794_v39, %v1793_v38  ;;  %v1797_v52 = vrot.slane %v1793_v38, 4  ;;  %v1679_v53 = vmax.f32 %v1670_v7, 0.0  ;;  %2714 = vst.msk [vmem:[#allocation5 + $0x2c] sm:$0xf] %vm291_vm0, %v2686_v46  ;;  %v1964_v54 = vrot.slane %v1962_v26, 5  ;;  %v2015_v39 = vpop.permute.xlu0 %2014 }
 0x1b3   : > { %v2522_v2 = vsel %vm3779_vm8, %v2517_v33, %v2521_v45  ;;  %v2097_v44 = vsel %vm3803_vm12, %v3299_v21, %v2096_v48  ;;  %v2524_v42 = vshrl.u32 %v2483_v56, 16  ;;  %v2527_v40 = vshll.u32 %v2483_v56, 16  ;;  %v1864_v41 = vld [vmem:[#allocation3 + $0x40] sm:$0xf]  ;;  %v1867_v49 = vld [vmem:[#allocation3 + $0x44] sm:$0x1] }
 0x1b4   : > { %v1859_v57 = vsel %vm3797_vm11, %v1796_v51, %v1858_v29  ;;  %v1862_v47 = vsel %vm3725_vm4, %v1797_v52, %v1861_v30  ;;  %v1741_v61 = vpack.c.bf16 %v1679_v53, %v1679_v53  ;;  %v1965_v62 = vor.u32 %v1964_v54, %v1961_v50  ;;  %v2647_v34 = vld [vmem:[#allocation3 + $0x30] sm:$0xe]  ;;  %v2146_v18 = vld [vmem:[#allocation3 + $0x28] sm:$0xf]  ;;  %v2343_v23 = vld [vmem:[#allocation3 + $0x2c] sm:$0x1]  ;;  %v2111_v50 = vpop.permute.xlu1 %2110 }
 0x1b5   : > { %1860 = vst [vmem:[#allocation3 + $0x38] sm:$0xf] %v1859_v57  ;;  %2404 = vrot.lane.b32.xlu0 %v2381_v55, %s3633_s18  ;;  %2609 = vrot.lane.b32.xlu2 %v2522_v2, %s3635_s20  ;;  %v3315_v4 = vrot.slane %v2647_v34, 9  ;;  %v2648_v9 = vld [vmem:[#allocation3 + $0x34] sm:$0x1]  ;;  %v1970_v12 = vrot.slane %v1968_v58, 5 }
 0x1b6   : > { %1863 = vst [vmem:[#allocation3 + $0x3c] sm:$0x1] %v1862_v47  ;;  %v1799_v63 = vshrl.u32 %v1741_v61, 16  ;;  %2118 = vrot.lane.b32.xlu1 %v2097_v44, %s3634_s19  ;;  %v1966_v0 = vrot.slane %v1965_v62, 4  ;;  %v1802_v59 = vshll.u32 %v1741_v61, 16  ;;  %v2526_v13 = vrot.slane %v2524_v42, 4 }
 0x1b7   : > { %v3341_v8 = vld [vmem:[#allocation5 + $0x20] sm:$0xf]  ;;  %v2529_v14 = vrot.slane %v2527_v40, 5  ;;  %v2689_v15 = vrot.slane %v2648_v9, 5  ;;  %v1896_v19 = vld [vmem:[#allocation3 + $0x28] sm:$0xf] }
 0x1b8   : > { %v1801_v6 = vrot.slane %v1799_v63, 7  ;;  %v1971_v20 = vsel %vm3779_vm8, %v1966_v0, %v1970_v12  ;;  %v2434_v32 = vld [vmem:[#allocation3 + $0x28] sm:$0xf]  ;;  %v2484_v24 = vld [vmem:[#allocation3 + $0x24] sm:$0x1]  ;;  %v1973_v10 = vshrl.u32 %v1896_v19, 16 }
 0x1b9   : > { %v3484_v11 = vld [vmem:[#allocation5 + $0x28] sm:$0xf0]  ;;  %v2342_v22 = vld [vmem:[#allocation3 + $0x28] sm:$0xe]  ;;  %v2690_v25 = vsel %vm3803_vm12, %v3315_v4, %v2689_v15  ;;  %v1976_v29 = vshll.u32 %v1896_v19, 16  ;;  %v2530_v30 = vor.u32 %v2529_v14, %v2526_v13  ;;  %v2384_v35 = vrot.slane %v2343_v23, 5 }
 0x1ba   : > { %v1804_v43 = vor.u32 %v1802_v59, %v1801_v6  ;;  %v1805_v16 = vrot.slane %v1801_v6, 4  ;;  %v3342_v17 = vor.u32 %v3484_v11, %v3341_v8  ;;  %2715 = vst.msk [vmem:[#allocation5 + $0x38] sm:$0xf] %vm291_vm0, %v2690_v25  ;;  %v3307_v60 = vrot.slane %v2342_v22, 9  ;;  %v1870_v38 = vld [vmem:[#allocation3] sm:$0xf] }
 0x1bb   : > { %v2533_v37 = vshll.u32 %v2484_v24, 16  ;;  %v2056_v26 = vld [vmem:[#allocation3 + $0x28] sm:$0xe]  ;;  %v1975_v45 = vrot.slane %v1973_v10, 4  ;;  %v1978_v48 = vrot.slane %v1976_v29, 5  ;;  %v2531_v46 = vrot.slane %v2530_v30, 4 }
 0x1bc   : > { %v1865_v27 = vsel %vm3797_vm11, %v1804_v43, %v1864_v41  ;;  %v1868_v28 = vsel %vm3725_vm4, %v1805_v16, %v1867_v49  ;;  %v2649_v21 = vld [vmem:[#allocation3 + $0x38] sm:$0xe]  ;;  %1878 = vst.msk [vmem:[#allocation5] sm:$0xf] %vm291_vm0, %v1870_v38  ;;  %v2485_v3 = vld [vmem:[#allocation3 + $0x28] sm:$0xf]  ;;  %v2385_v55 = vsel %vm3803_vm12, %v3307_v60, %v2384_v35 }
 0x1bd   : > { %1866 = vst [vmem:[#allocation3 + $0x40] sm:$0xf] %v1865_v27  ;;  %2022 = vrot.lane.b32.xlu0 %v1971_v20, %s3633_s18  ;;  %2166 = vrot.lane.b32.xlu2 %v2146_v18, %s3635_s20  ;;  %v2650_v33 = vld [vmem:[#allocation3 + $0x3c] sm:$0x1]  ;;  %v3316_v31 = vrot.slane %v2649_v21, 9  ;;  %v2535_v52 = vrot.slane %v2533_v37, 5  ;;  %v1979_v56 = vor.u32 %v1978_v48, %v1975_v45 }
 0x1be   : > { %1869 = vst [vmem:[#allocation3 + $0x44] sm:$0x1] %v1868_v28  ;;  %3440 = vmatmul.msk.bf16.gmra.mxu0 %vm1572_vm1, %v3342_v17  ;;  %2453 = vrot.lane.b32.xlu1 %v2434_v32, %s3634_s19  ;;  %v2693_v1 = vrot.slane %v2650_v33, 5  ;;  %v2435_v51 = vld [vmem:[#allocation3 + $0x30] sm:$0xf]  ;;  %v3300_v54 = vrot.slane %v2056_v26, 9 }
 0x1bf   : > { %2038 = vst.msk [vmem:[#allocation5] sm:$0xf] %vm661_vm13, %v2015_v39  ;;  %v2057_v53 = vld [vmem:[#allocation3 + $0x2c] sm:$0x1]  ;;  %v2538_v57 = vshrl.u32 %v2485_v3, 16  ;;  %v2541_v47 = vshll.u32 %v2485_v3, 16  ;;  %v2536_v61 = vsel %vm3779_vm8, %v2531_v46, %v2535_v52 }
 0x1c0   : > { %v2694_v7 = vsel %vm3803_vm12, %v3316_v31, %v2693_v1  ;;  %v1897_v2 = vld [vmem:[#allocation3 + $0x2c] sm:$0x1]  ;;  %2134 = vst.msk [vmem:[#allocation5] sm:$0xf] %vm761_vm14, %v2111_v50  ;;  %v2653_v44 = vld [vmem:[#allocation3 + $0x48] sm:$0xe] }
 0x1c1   : > { %2716 = vst.msk [vmem:[#allocation5 + $0x44] sm:$0xf] %vm291_vm0, %v2694_v7  ;;  %v2100_v58 = vrot.slane %v2057_v53, 5  ;;  %v2654_v42 = vld [vmem:[#allocation3 + $0x4c] sm:$0x1]  ;;  %v3318_v41 = vrot.slane %v2653_v44, 9 }
 0x1c2   : > { %v1982_v49 = vshll.u32 %v1897_v2, 16  ;;  %v2486_v0 = vld [vmem:[#allocation3 + $0x2c] sm:$0x1]  ;;  %v2701_v4 = vrot.slane %v2654_v42, 5  ;;  %v1898_v6 = vld [vmem:[#allocation3 + $0x30] sm:$0xf] }
 0x1c3   : > { %v1980_v8 = vrot.slane %v1979_v56, 4  ;;  %v2540_v9 = vrot.slane %v2538_v57, 4  ;;  %v2543_v11 = vrot.slane %v2541_v47, 5  ;;  %v3498_v13 = vld [vmem:[%s4649_s5 + $0x38] sm:$0xff]  ;;  %v1987_v43 = vshrl.u32 %v1898_v6, 16  ;;  %v3497_v30 = vld [vmem:[%s4649_s5 + $0x30] sm:$0xff] }
 0x1c4   : > { %v2651_v62 = vld [vmem:[#allocation3 + $0x40] sm:$0xe]  ;;  %v3353_v14 = vld [vmem:[#allocation5 + $0x38] sm:$0xf]  ;;  %v2702_v15 = vsel %vm3803_vm12, %v3318_v41, %v2701_v4  ;;  %v1990_v16 = vshll.u32 %v1898_v6, 16  ;;  %2951 = vmatpush.bf16.msrb.mxu3 %v3498_v13  ;;  %v1984_v19 = vrot.slane %v1982_v49, 5  ;;  %v2101_v32 = vsel %vm3803_vm12, %v3300_v54, %v2100_v58 }
 0x1c5   : > { %2455 = vrot.lane.b32.xlu0 %v2435_v51, %s3634_s19  ;;  %2406 = vrot.lane.b32.xlu2 %v2385_v55, %s3633_s18  ;;  %v2652_v34 = vld [vmem:[#allocation3 + $0x44] sm:$0x1]  ;;  %v3317_v40 = vrot.slane %v2651_v62, 9  ;;  %2718 = vst.msk [vmem:[#allocation5 + $0x5c] sm:$0xf] %vm291_vm0, %v2702_v15  ;;  %v2544_v23 = vor.u32 %v2543_v11, %v2540_v9  ;;  %v2547_v24 = vshll.u32 %v2486_v0, 16 }
 0x1c6   : > { %2611 = vrot.lane.b32.xlu1 %v2536_v61, %s3635_s20  ;;  %v2697_v63 = vrot.slane %v2652_v34, 5  ;;  %v2147_v18 = vld [vmem:[#allocation3 + $0x30] sm:$0xf]  ;;  %v2345_v22 = vld [vmem:[#allocation3 + $0x34] sm:$0x1]  ;;  %v1985_v27 = vsel %vm3779_vm8, %v1980_v8, %v1984_v19  ;;  %v1989_v10 = vrot.slane %v1987_v43, 4 }
 0x1c7   : > { %v2344_v20 = vld [vmem:[#allocation3 + $0x30] sm:$0xe]  ;;  %v2059_v28 = vld [vmem:[#allocation3 + $0x34] sm:$0x1]  ;;  %v1992_v29 = vrot.slane %v1990_v16, 5  ;;  %v2388_v31 = vrot.slane %v2345_v22, 5 }
 0x1c8   : > { %v3487_v59 = vld [vmem:[#allocation5 + $0x40] sm:$0xf0]  ;;  %v2698_v12 = vsel %vm3803_vm12, %v3317_v40, %v2697_v63  ;;  %v2058_v25 = vld [vmem:[#allocation3 + $0x30] sm:$0xe]  ;;  %v3308_v33 = vrot.slane %v2344_v20, 9  ;;  %v2545_v60 = vrot.slane %v2544_v23, 4  ;;  %2952 = vmatpush.bf16.msrb.mxu3 %v3497_v30 }
 0x1c9   : > { %2717 = vst.msk [vmem:[#allocation5 + $0x50] sm:$0xf] %vm291_vm0, %v2698_v12  ;;  %v3354_v17 = vor.u32 %v3487_v59, %v3353_v14  ;;  %v1899_v21 = vld [vmem:[#allocation3 + $0x34] sm:$0x1]  ;;  %v2487_v1 = vld [vmem:[#allocation3 + $0x30] sm:$0xf]  ;;  %v1993_v26 = vor.u32 %v1992_v29, %v1989_v10 }
 0x1ca   : > { %v3301_v35 = vrot.slane %v2058_v25, 9  ;;  %v2104_v37 = vrot.slane %v2059_v28, 5  ;;  %v1996_v38 = vshll.u32 %v1899_v21, 16  ;;  %v3496_v39 = vld [vmem:[%s4649_s5 + $0x28] sm:$0xff]  ;;  %v2549_v7 = vrot.slane %v2547_v24, 5  ;;  %v3495_v40 = vld [vmem:[%s4649_s5 + $0x20] sm:$0xff] }
 0x1cb   : > { %v2346_v45 = vld [vmem:[#allocation3 + $0x38] sm:$0xe]  ;;  %v2488_v48 = vld [vmem:[#allocation3 + $0x34] sm:$0x1]  ;;  %v2347_v46 = vld [vmem:[#allocation3 + $0x3c] sm:$0x1]  ;;  %v2389_v52 = vsel %vm3803_vm12, %v3308_v33, %v2388_v31 }
 0x1cc   : > { %v4400_v3 = vld [vmem:[#allocation3 + $0x38] sm:$0xe]  ;;  %v2552_v50 = vshrl.u32 %v2487_v1, 16  ;;  %v2555_v51 = vshll.u32 %v2487_v1, 16  ;;  %v4404_v53 = vld [vmem:[#allocation3 + $0x3c] sm:$0x1]  ;;  %v2550_v54 = vsel %vm3779_vm8, %v2545_v60, %v2549_v7  ;;  %v2105_v55 = vsel %vm3803_vm12, %v3301_v35, %v2104_v37  ;;  %2953 = vmatpush.bf16.msrb.mxu3 %v3496_v39 }
 0x1cd   : > { %2168 = vrot.lane.b32.xlu0 %v2147_v18, %s3635_s20  ;;  %2120 = vrot.lane.b32.xlu2 %v2101_v32, %s3634_s19  ;;  %v1998_v2 = vrot.slane %v1996_v38, 5  ;;  %v2561_v56 = vshll.u32 %v2488_v48, 16  ;;  %v4410_v57 = vld [vmem:[#allocation3 + $0x38] sm:$0xf]  ;;  %v1994_v47 = vrot.slane %v1993_v26, 4  ;;  %v3309_v61 = vrot.slane %v2346_v45, 9 }
 0x1ce   : > { %3441 = vmatmul.msk.bf16.gmra.mxu0 %vm1572_vm1, %v3354_v17  ;;  %2024 = vrot.lane.b32.xlu1 %v1985_v27, %s3633_s18  ;;  %v2392_v62 = vrot.slane %v2347_v46, 5  ;;  %v3302_v34 = vrot.slane %v4400_v3, 9  ;;  %v2108_v44 = vrot.slane %v4404_v53, 5  ;;  %v2554_v58 = vrot.slane %v2552_v50, 4  ;;  %v2194_v63 = vld [vmem:[#allocation3 + $0x18] sm:$0xf] }
 0x1cf   : > { %v2557_v42 = vrot.slane %v2555_v51, 5  ;;  %v4420_v0 = vld [vmem:[#allocation3 + $0x3c] sm:$0x1]  ;;  %v2566_v4 = vshrl.u32 %v4410_v57, 16  ;;  %v2235_v59 = vshrl.u32 %v2194_v63, 16  ;;  %v4424_v8 = vrot.slane %v2561_v56, 5 }
 0x1d0   : > { %v3365_v49 = vld [vmem:[#allocation5 + $0x50] sm:$0xf]  ;;  %v2195_v6 = vld [vmem:[#allocation3 + $0x1c] sm:$0x1]  ;;  %v1900_v9 = vld [vmem:[#allocation3 + $0x38] sm:$0xf]  ;;  %2954 = vmatpush.bf16.msrb.mxu3 %v3495_v40  ;;  %v1999_v13 = vsel %vm3779_vm8, %v1994_v47, %v1998_v2  ;;  %v2393_v14 = vsel %vm3803_vm12, %v3309_v61, %v2392_v62 }
 0x1d1   : > { %v2238_v11 = vshll.u32 %v2194_v63, 16  ;;  %v3490_v12 = vld [vmem:[#allocation5 + $0x58] sm:$0xf0]  ;;  %v2569_v15 = vshll.u32 %v4410_v57, 16  ;;  %v2237_v43 = vrot.slane %v2235_v59, 4  ;;  %v2575_v17 = vshll.u32 %v4420_v0, 16 }
 0x1d2   : > { %v2192_v16 = vld [vmem:[#allocation3 + $0x10] sm:$0xf]  ;;  %v2244_v19 = vshll.u32 %v2195_v6, 16  ;;  %v2193_v20 = vld [vmem:[#allocation3 + $0x14] sm:$0x1]  ;;  %v2558_v23 = vor.u32 %v2557_v42, %v2554_v58  ;;  %v4432_v24 = vrot.slane %v2566_v4, 4  ;;  %v3366_v10 = vor.u32 %v3490_v12, %v3365_v49 }
 0x1d3   : > { %v2240_v18 = vrot.slane %v2238_v11, 5  ;;  %v2221_v32 = vshrl.u32 %v2192_v16, 16  ;;  %v2436_v22 = vld [vmem:[#allocation3 + $0x38] sm:$0xf]  ;;  %v2001_v25 = vshrl.u32 %v1900_v9, 16  ;;  %v3494_v27 = vld [vmem:[%s4649_s5 + $0x18] sm:$0xff] }
 0x1d4   : > { %v2224_v28 = vshll.u32 %v2192_v16, 16  ;;  %v1872_v21 = vld [vmem:[#allocation3 + $0x10] sm:$0xf]  ;;  %v2004_v29 = vshll.u32 %v1900_v9, 16  ;;  %v1873_v31 = vld [vmem:[#allocation3 + $0x18] sm:$0xf]  ;;  %2955 = vmatpush.bf16.msrb.mxu3 %v3494_v27  ;;  %v2109_v9 = vsel %vm3803_vm12, %v3302_v34, %v2108_v44 }
 0x1d5   : > { %2408 = vrot.lane.b32.xlu0 %v2389_v52, %s3633_s18  ;;  %2613 = vrot.lane.b32.xlu2 %v2550_v54, %s3635_s20  ;;  %v2241_v30 = vor.u32 %v2240_v18, %v2237_v43  ;;  %v2223_v33 = vrot.slane %v2221_v32, 4  ;;  %1880 = vst.msk [vmem:[#allocation5 + $0x18] sm:$0xf] %vm291_vm0, %v1872_v21  ;;  %v2230_v60 = vshll.u32 %v2193_v20, 16  ;;  %v2196_v35 = vld [vmem:[#allocation3 + $0x20] sm:$0xf] }
 0x1d6   : > { %2122 = vrot.lane.b32.xlu1 %v2105_v55, %s3634_s19  ;;  %v2226_v1 = vrot.slane %v2224_v28, 5  ;;  %1881 = vst.msk [vmem:[#allocation5 + $0x24] sm:$0xf] %vm291_vm0, %v1873_v31  ;;  %v2246_v38 = vrot.slane %v2244_v19, 5  ;;  %v2197_v39 = vld [vmem:[#allocation3 + $0x24] sm:$0x1] }
 0x1d7   : > { %v2159_v41 = vpop.permute.xlu2 %2158  ;;  %v2242_v37 = vrot.slane %v2241_v30, 4  ;;  %v2249_v7 = vshrl.u32 %v2196_v35, 16  ;;  %v2252_v26 = vshll.u32 %v2196_v35, 16  ;;  %v2559_v48 = vrot.slane %v2558_v23, 4  ;;  %v3493_v51 = vld [vmem:[%s4649_s5 + $0x10] sm:$0xff]  ;;  %v3506_v61 = vld [vmem:[%s4649_s5 + $0x78] sm:$0xff] }
 0x1d8   : > { %2182 = vst.msk [vmem:[#allocation5] sm:$0xf] %vm810_vm15, %v2159_v41  ;;  %v2571_v46 = vrot.slane %v2569_v15, 5  ;;  %v2003_v50 = vrot.slane %v2001_v25, 4  ;;  %v2227_v52 = vor.u32 %v2226_v1, %v2223_v33  ;;  %v1874_v54 = vld [vmem:[#allocation3 + $0x20] sm:$0xf]  ;;  %2956 = vmatpush.bf16.msrb.mxu3 %v3493_v51  ;;  %2980 = vmatpush.bf16.msrb.mxu2 %v3506_v61 }
 0x1d9   : > { %v2247_v55 = vsel %vm3779_vm8, %v2242_v37, %v2246_v38  ;;  %v2251_v2 = vrot.slane %v2249_v7, 4  ;;  %v2254_v56 = vrot.slane %v2252_v26, 5  ;;  %v2258_v57 = vshll.u32 %v2197_v39, 16  ;;  %v2437_v42 = vld [vmem:[#allocation3 + $0x40] sm:$0xf]  ;;  %v3492_v4 = vld [vmem:[%s4649_s5 + $0x8] sm:$0xff] }
 0x1da   : > { %v2006_v47 = vrot.slane %v2004_v29, 5  ;;  %2328 = vst.msk [vmem:[#allocation5 + $0x1c] sm:$0xf] %vm291_vm0, %v2247_v55  ;;  %v2228_v62 = vrot.slane %v2227_v52, 4  ;;  %v2232_v58 = vrot.slane %v2230_v60, 5  ;;  %v3505_v6 = vld [vmem:[%s4649_s5 + $0x70] sm:$0xff]  ;;  %v2572_v11 = vor.u32 %v2571_v46, %v4432_v24 }
 0x1db   : > { %v2348_v40 = vld [vmem:[#allocation3 + $0x40] sm:$0xe]  ;;  %v2349_v63 = vld [vmem:[#allocation3 + $0x44] sm:$0x1]  ;;  %v1901_v41 = vld [vmem:[#allocation3 + $0x3c] sm:$0x1]  ;;  %v2255_v59 = vor.u32 %v2254_v56, %v2251_v2  ;;  %v2564_v3 = vsel %vm3779_vm8, %v2559_v48, %v4424_v8 }
 0x1dc   : > { %v2491_v49 = vld [vmem:[#allocation3 + $0x40] sm:$0xf]  ;;  %1882 = vst.msk [vmem:[#allocation5 + $0x30] sm:$0xf] %vm291_vm0, %v1874_v54  ;;  %v2233_v12 = vsel %vm3779_vm8, %v2228_v62, %v2232_v58  ;;  %v1875_v15 = vld [vmem:[#allocation3 + $0x28] sm:$0xf]  ;;  %v2007_v34 = vor.u32 %v2006_v47, %v2003_v50  ;;  %2957 = vmatpush.bf16.msrb.mxu3 %v3492_v4  ;;  %2981 = vmatpush.bf16.msrb.mxu2 %v3505_v6 }
 0x1dd   : > { %2026 = vrot.lane.b32.xlu0 %v1999_v13, %s3633_s18  ;;  %2410 = vrot.lane.b32.xlu2 %v2393_v14, %s3633_s18  ;;  %v2198_v13 = vld [vmem:[#allocation3 + $0x28] sm:$0xf]  ;;  %v2199_v14 = vld [vmem:[#allocation3 + $0x2c] sm:$0x1]  ;;  %2327 = vst.msk [vmem:[#allocation5 + $0x10] sm:$0xf] %vm291_vm0, %v2233_v12 }
 0x1de   : > { %3442 = vmatmul.msk.bf16.gmra.mxu0 %vm1572_vm1, %v3366_v10  ;;  %2457 = vrot.lane.b32.xlu1 %v2436_v22, %s3634_s19  ;;  %v2263_v43 = vshrl.u32 %v2198_v13, 16  ;;  %v2266_v16 = vshll.u32 %v2198_v13, 16  ;;  %v2256_v53 = vrot.slane %v2255_v59, 4  ;;  %v2260_v18 = vrot.slane %v2258_v57, 5  ;;  %1883 = vst.msk [vmem:[#allocation5 + $0x3c] sm:$0xf] %vm291_vm0, %v1875_v15 }
 0x1df   : > { %v2399_v45 = vpop.permute.xlu2 %2398  ;;  %v2580_v44 = vshrl.u32 %v2491_v49, 16  ;;  %v2583_v19 = vshll.u32 %v2491_v49, 16  ;;  %v2272_v22 = vshll.u32 %v2199_v14, 16  ;;  %v3310_v24 = vrot.slane %v2348_v40, 9  ;;  %v3491_v8 = vld [vmem:[%s4649_s5] sm:$0xff]  ;;  %v3504_v1 = vld [vmem:[%s4649_s5 + $0x68] sm:$0xff] }
 0x1e0   : > { %2422 = vst.msk [vmem:[#allocation5 + $0x4] sm:$0xf] %vm661_vm13, %v2399_v45  ;;  %v2265_v20 = vrot.slane %v2263_v43, 4  ;;  %v2268_v32 = vrot.slane %v2266_v16, 5  ;;  %v2261_v23 = vsel %vm3779_vm8, %v2256_v53, %v2260_v18  ;;  %v2396_v25 = vrot.slane %v2349_v63, 5  ;;  %2958 = vmatpush.bf16.msrb.mxu3 %v3491_v8  ;;  %v3503_v45 = vld [vmem:[%s4649_s5 + $0x60] sm:$0xff]  ;;  %2982 = vmatpush.bf16.msrb.mxu2 %v3504_v1 }
 0x1e1   : > { %v2010_v27 = vshll.u32 %v1901_v41, 16  ;;  %2329 = vst.msk [vmem:[#allocation5 + $0x28] sm:$0xf] %vm291_vm0, %v2261_v23  ;;  %v2573_v28 = vrot.slane %v2572_v11, 4  ;;  %v2008_v10 = vrot.slane %v2007_v34, 4  ;;  %v2582_v30 = vrot.slane %v2580_v44, 4 }
 0x1e2   : > { %v2269_v21 = vor.u32 %v2268_v32, %v2265_v20  ;;  %v2492_v29 = vld [vmem:[#allocation3 + $0x44] sm:$0x1]  ;;  %v2585_v33 = vrot.slane %v2583_v19, 5  ;;  %v2577_v31 = vrot.slane %v2575_v17, 5  ;;  %v2493_v60 = vld [vmem:[#allocation3 + $0x48] sm:$0xf]  ;;  %v2397_v38 = vsel %vm3803_vm12, %v3310_v24, %v2396_v25 }
 0x1e3   : > { %v2274_v37 = vrot.slane %v2272_v22, 5  ;;  %v2012_v39 = vrot.slane %v2010_v27, 5  ;;  %v2594_v7 = vshrl.u32 %v2493_v60, 16  ;;  %v2597_v26 = vshll.u32 %v2493_v60, 16  ;;  %v2200_v0 = vld [vmem:[#allocation3 + $0x30] sm:$0xf] }
 0x1e4   : > { %v2270_v35 = vrot.slane %v2269_v21, 4  ;;  %v2578_v17 = vsel %vm3779_vm8, %v2573_v28, %v2577_v31  ;;  %v2201_v46 = vld [vmem:[#allocation3 + $0x34] sm:$0x1]  ;;  %v2277_v50 = vshrl.u32 %v2200_v0, 16  ;;  %v2280_v5 = vshll.u32 %v2200_v0, 16  ;;  %2983 = vmatpush.bf16.msrb.mxu2 %v3503_v45  ;;  %v3502_v15 = vld [vmem:[%s4649_s5 + $0x58] sm:$0xff] }
 0x1e5   : > { %2459 = vrot.lane.b32.xlu0 %v2437_v42, %s3634_s19  ;;  %2124 = vrot.lane.b32.xlu2 %v2109_v9, %s3634_s19  ;;  %v1876_v51 = vld [vmem:[#allocation3 + $0x30] sm:$0xf]  ;;  %v2013_v52 = vsel %vm3779_vm8, %v2008_v10, %v2012_v39  ;;  %v2586_v54 = vor.u32 %v2585_v33, %v2582_v30  ;;  %v2494_v55 = vld [vmem:[#allocation3 + $0x4c] sm:$0x1]  ;;  %v2596_v2 = vrot.slane %v2594_v7, 4  ;;  %v2599_v56 = vrot.slane %v2597_v26, 5  ;;  %v4504_v42 = vpop.permute.xlu1 %2461 }
 0x1e6   : > { %2615 = vrot.lane.b32.xlu1 %v2564_v3, %s3635_s20  ;;  %v2275_v48 = vsel %vm3779_vm8, %v2270_v35, %v2274_v37  ;;  %v2589_v57 = vshll.u32 %v2492_v29, 16  ;;  %v2279_v47 = vrot.slane %v2277_v50, 4  ;;  %v2282_v61 = vrot.slane %v2280_v5, 5  ;;  %1884 = vst.msk [vmem:[#allocation5 + $0x48] sm:$0xf] %vm291_vm0, %v1876_v51  ;;  %v3501_v44 = vld [vmem:[%s4649_s5 + $0x50] sm:$0xff] }
 0x1e7   : > { %2330 = vst.msk [vmem:[#allocation5 + $0x34] sm:$0xf] %vm291_vm0, %v2275_v48  ;;  %v2286_v62 = vshll.u32 %v2201_v46, 16  ;;  %v2113_v58 = vpop.permute.xlu2 %2112  ;;  %v2587_v63 = vrot.slane %v2586_v54, 4  ;;  %v2600_v41 = vor.u32 %v2599_v56, %v2596_v2  ;;  %v2603_v49 = vshll.u32 %v2494_v55, 16  ;;  %v3500_v8 = vld [vmem:[%s4649_s5 + $0x48] sm:$0xff] }
 0x1e8   : > { %v2283_v40 = vor.u32 %v2282_v61, %v2279_v47  ;;  %v2149_v4 = vld [vmem:[#allocation3 + $0x40] sm:$0xf]  ;;  %v2591_v6 = vrot.slane %v2589_v57, 5  ;;  %v2202_v11 = vld [vmem:[#allocation3 + $0x38] sm:$0xf]  ;;  %2984 = vmatpush.bf16.msrb.mxu2 %v3502_v15  ;;  %v3499_v1 = vld [vmem:[%s4649_s5 + $0x40] sm:$0xff] }
 0x1e9   : > { %v2288_v9 = vrot.slane %v2286_v62, 5  ;;  %v2203_v12 = vld [vmem:[#allocation3 + $0x3c] sm:$0x1]  ;;  %v1877_v13 = vld [vmem:[#allocation3 + $0x38] sm:$0xf]  ;;  %v2291_v43 = vshrl.u32 %v2202_v11, 16 }
 0x1ea   : > { %v2284_v59 = vrot.slane %v2283_v40, 4  ;;  %v2148_v14 = vld [vmem:[#allocation3 + $0x38] sm:$0xf]  ;;  %v2294_v16 = vshll.u32 %v2202_v11, 16  ;;  %v2592_v18 = vsel %vm3779_vm8, %v2587_v63, %v2591_v6  ;;  %v2601_v3 = vrot.slane %v2600_v41, 4 }
 0x1eb   : > { %v2605_v34 = vrot.slane %v2603_v49, 5  ;;  %v2293_v19 = vrot.slane %v2291_v43, 4  ;;  %v2300_v32 = vshll.u32 %v2203_v12, 16  ;;  %1885 = vst.msk [vmem:[#allocation5 + $0x54] sm:$0xf] %vm291_vm0, %v1877_v13 }
 0x1ec   : > { %v2289_v53 = vsel %vm3779_vm8, %v2284_v59, %v2288_v9  ;;  %v2296_v20 = vrot.slane %v2294_v16, 5  ;;  %2985 = vmatpush.bf16.msrb.mxu2 %v3501_v44  ;;  %v2204_v10 = vld [vmem:[#allocation3 + $0x40] sm:$0xf]  ;;  %v2205_v29 = vld [vmem:[#allocation3 + $0x44] sm:$0x1] }
 0x1ed   : > { %2412 = vrot.lane.b32.xlu0 %v2397_v38, %s3633_s18  ;;  %2617 = vrot.lane.b32.xlu2 %v2578_v17, %s3635_s20  ;;  %2331 = vst.msk [vmem:[#allocation5 + $0x40] sm:$0xf] %vm291_vm0, %v2289_v53  ;;  %v2606_v27 = vsel %vm3779_vm8, %v2601_v3, %v2605_v34  ;;  %v2302_v21 = vrot.slane %v2300_v32, 5  ;;  %v2305_v33 = vshrl.u32 %v2204_v10, 16  ;;  %v2308_v31 = vshll.u32 %v2204_v10, 16 }
 0x1ee   : > { %2028 = vrot.lane.b32.xlu1 %v2013_v52, %s3633_s18  ;;  %v2297_v24 = vor.u32 %v2296_v20, %v2293_v19  ;;  %v2314_v37 = vshll.u32 %v2205_v29, 16  ;;  %v3321_v46 = vld [vmem:[#allocation5] sm:$0xf]  ;;  %s3074_s18 = scalar_lea.hbm %s4650_s6, %s3509_s13 }
 0x1ef   : > { %v2307_v60 = vrot.slane %v2305_v33, 4  ;;  %v2310_v35 = vrot.slane %v2308_v31, 5  ;;  %s3077_s26 = sshll.u32 %s3074_s18, 4  ;;  %s3078_s26 = int_to_ptr.hbm [resolvable:$true] %s3077_s26 }
 0x1f0   : > { %v2298_v28 = vrot.slane %v2297_v24, 4  ;;  %2986 = vmatpush.bf16.msrb.mxu2 %v3500_v8  ;;  %v2316_v45 = vrot.slane %v2314_v37, 5  ;;  %s3582_s28 = sshra.s32 %s3078_s26, 4  ;;  %s3583_s28 = int_to_ptr.hbm [resolvable:$true] %s3582_s28 }
 0x1f1   : > { %v2311_v7 = vor.u32 %v2310_v35, %v2307_v60  ;;  %s3584_s29 = scalar_lea.hbm %s3583_s28, 64  ;;  %p3589_p0 = scmp.lt.s32.totalorder %s3583_s28, %s4650_s6 }
 0x1f2   : > { %v2303_v30 = vsel %vm3779_vm8, %v2298_v28, %v2302_v21  ;;  %p3585_p11 = scmp.ne.s32.totalorder %s3583_s28, %s3584_s29 }
 0x1f3   : > { %2332 = vst.msk [vmem:[#allocation5 + $0x4c] sm:$0xf] %vm291_vm0, %v2303_v30  ;;  %v2312_v26 = vrot.slane %v2311_v7, 4 }
 0x1f4   : > { %2987 = vmatpush.bf16.msrb.mxu2 %v3499_v1  ;;  %p3586_p12 = pnand %p3585_p11, %p3711_p5 }
 0x1f5   : > { %2172 = vrot.lane.b32.xlu0 %v2149_v4, %s3635_s20  ;;  %2170 = vrot.lane.b32.xlu2 %v2148_v14, %s3635_s20  ;;  %v2317_v0 = vsel %vm3779_vm8, %v2312_v26, %v2316_v45 }
 0x1f6   : > { %2619 = vrot.lane.b32.xlu1 %v2592_v18, %s3635_s20  ;;  %2333 = vst.msk [vmem:[#allocation5 + $0x58] sm:$0xf] %vm291_vm0, %v2317_v0  ;;  %p3587_p13 = pneg %p3586_p12 }
 0x1f7   : > { %v2448_v22 = vpop.permute.xlu0 %2447  ;;  %v2163_v23 = vpop.permute.xlu2 %2162 }
 0x1f8   : > { %2471 = vst.msk [vmem:[#allocation5 + $0x4] sm:$0xf] %vm761_vm14, %v2448_v22 }
 0x1fa   : > { %v2017_v25 = vpop.permute.xlu1 %2016 }
 0x1fb   : > { %2039 = vst.msk [vmem:[#allocation5 + $0xc] sm:$0xf] %vm661_vm13, %v2017_v25 }
 0x1fc   : > { %2135 = vst.msk [vmem:[#allocation5 + $0xc] sm:$0xf] %vm761_vm14, %v2113_v58 }
 0x1fd   : > { %2621 = vrot.lane.b32.xlu2 %v2606_v27, %s3635_s20  ;;  %s242_s20 = sand.u32 1, %s3622_s22  }
 0x1fe   : > { %s3144_s11 = sshll.u32 %s242_s20, 6  ;;  %s3063_s25 = scalar_lea.sflag [#allocation7], %s242_s20 }
 0x1ff   : > { %v2161_v38 = vpop.permute.xlu0 %2160  ;;  %v2403_v39 = vpop.permute.xlu2 %2402  ;;  %s4585_s12 = scalar_lea.vmem [#allocation6], %s3144_s11 }
 0x200   : > { %2183 = vst.msk [vmem:[#allocation5 + $0xc] sm:$0xf] %vm810_vm15, %v2161_v38  ;;  %s3075_s17 = sshll.u32 %s4585_s12, 4  ;;  %s3076_s17 = int_to_ptr.vmem [resolvable:$true] %s3075_s17 }
 0x201   : > { %2424 = vst.msk [vmem:[#allocation5 + $0x1c] sm:$0xf] %vm661_vm13, %v2403_v39 }
 0x202   : > { %v2115_v5 = vpop.permute.xlu1 %2114 }
 0x207   : > { %v2401_v17 = vpop.permute.xlu0 %2400  ;;  %v2117_v48 = vpop.permute.xlu2 %2116  ;;  %v3480_v50 = vld [vmem:[#allocation5 + $0x8] sm:$0xf0] }
 0x208   : > { %2423 = vst.msk [vmem:[#allocation5 + $0x10] sm:$0xf] %vm661_vm13, %v2401_v17  ;;  %v3322_v51 = vor.u32 %v3480_v50, %v3321_v46 }
 0x20a   : > { %2959 = vmatmul.bf16.vlgmr.msrb.gmra.mxu3 %v3322_v51 }
 0x20f   : > { %v2019_v52 = vpop.permute.xlu0 %2018  ;;  %v2610_v54 = vpop.permute.xlu2 %2609 }
 0x210   : > { %2040 = vst.msk [vmem:[#allocation5 + $0x18] sm:$0xf] %vm661_vm13, %v2019_v52  ;;  %v2450_v55 = vpop.permute.xlu1 %2449 }
 0x211   : > { %2136 = vst.msk [vmem:[#allocation5 + $0x18] sm:$0xf] %vm761_vm14, %v2115_v5 }
 0x212   : > { %2184 = vst.msk [vmem:[#allocation5 + $0x18] sm:$0xf] %vm810_vm15, %v2163_v23 }
 0x213   : > { %2472 = vst.msk [vmem:[#allocation5 + $0x10] sm:$0xf] %vm761_vm14, %v2450_v55  ;;  %v3039_v55 = vld [vmem:[%s3751_s15 + $0x8] sm:$0xff] }
 0x214   : > { %2632 = vst.msk [vmem:[#allocation5 + $0x10] sm:$0xf] %vm810_vm15, %v2610_v54 }
 0x217   : > { %v2452_v36 = vpop.permute.xlu0 %2451  ;;  %v2167_v2 = vpop.permute.xlu2 %2166 }
 0x218   : > { %2473 = vst.msk [vmem:[#allocation5 + $0x1c] sm:$0xf] %vm761_vm14, %v2452_v36  ;;  %v2608_v56 = vpop.permute.xlu1 %2607 }
 0x219   : > { %2631 = vst.msk [vmem:[#allocation5 + $0x4] sm:$0xf] %vm810_vm15, %v2608_v56  ;;  %v3333_v4 = vld [vmem:[#allocation5 + $0x18] sm:$0xf] }
 0x21b   : > { %v3323_v58 = vld [vmem:[#allocation5 + $0xc] sm:$0xf0] }
 0x21f   : > { %v2165_v57 = vpop.permute.xlu0 %2164  ;;  %v2407_v47 = vpop.permute.xlu2 %2406 }
 0x220   : > { %2426 = vst.msk [vmem:[#allocation5 + $0x34] sm:$0xf] %vm661_vm13, %v2407_v47  ;;  %v2021_v61 = vpop.permute.xlu1 %2020  ;;  %v3479_v62 = vld [vmem:[#allocation5 + $0x4] sm:$0xf] }
 0x221   : > { %2041 = vst.msk [vmem:[#allocation5 + $0x24] sm:$0xf] %vm661_vm13, %v2021_v61  ;;  %v3326_v40 = vor.u32 %v3479_v62, %v3323_v58  ;;  %v3040_v62 = vld [vmem:[%s3751_s15 + $0x10] sm:$0xff] }
 0x222   : > { %2137 = vst.msk [vmem:[#allocation5 + $0x24] sm:$0xf] %vm761_vm14, %v2117_v48  ;;  %v3038_v48 = vld [vmem:[%s3751_s15] sm:$0xff] }
 0x223   : > { %2185 = vst.msk [vmem:[#allocation5 + $0x24] sm:$0xf] %vm810_vm15, %v2165_v57  ;;  %2988 = vmatmul.bf16.vlgmr.msrb.gmra.mxu2 %v3326_v40 }
 0x227   : > { %v2405_v63 = vpop.permute.xlu0 %2404  ;;  %v2121_v41 = vpop.permute.xlu2 %2120 }
 0x228   : > { %2425 = vst.msk [vmem:[#allocation5 + $0x28] sm:$0xf] %vm661_vm13, %v2405_v63  ;;  %v2119_v49 = vpop.permute.xlu1 %2118 }
 0x22a   : > { %v3483_v6 = vld [vmem:[#allocation5 + $0x20] sm:$0xf0] }
 0x22b   : > { %v3334_v59 = vor.u32 %v3483_v6, %v3333_v4  ;;  %v3018_v45 = vpop.f32.mrf.mxu0  ;;  %v3041_v6 = vld [vmem:[%s3751_s15 + $0x18] sm:$0xff] }
 0x22d   : > { %2964 = vmatmul.bf16.gmra.mxu3 %v3334_v59 }
 0x22f   : > { %v2023_v9 = vpop.permute.xlu0 %2022  ;;  %v2614_v11 = vpop.permute.xlu2 %2613 }
 0x230   : > { %2042 = vst.msk [vmem:[#allocation5 + $0x30] sm:$0xf] %vm661_vm13, %v2023_v9  ;;  %v2454_v12 = vpop.permute.xlu1 %2453 }
 0x231   : > { %2138 = vst.msk [vmem:[#allocation5 + $0x30] sm:$0xf] %vm761_vm14, %v2119_v49 }
 0x232   : > { %2186 = vst.msk [vmem:[#allocation5 + $0x30] sm:$0xf] %vm810_vm15, %v2167_v2 }
 0x233   : > { %2474 = vst.msk [vmem:[#allocation5 + $0x28] sm:$0xf] %vm761_vm14, %v2454_v12  ;;  %v3020_v54 = vpop.f32.mrf.mxu0 }
 0x234   : > { %2634 = vst.msk [vmem:[#allocation5 + $0x28] sm:$0xf] %vm810_vm15, %v2614_v11 }
 0x237   : > { %v2456_v13 = vpop.permute.xlu0 %2455  ;;  %v2411_v14 = vpop.permute.xlu2 %2410 }
 0x238   : > { %2475 = vst.msk [vmem:[#allocation5 + $0x34] sm:$0xf] %vm761_vm14, %v2456_v13  ;;  %v2612_v15 = vpop.permute.xlu1 %2611 }
 0x239   : > { %2428 = vst.msk [vmem:[#allocation5 + $0x4c] sm:$0xf] %vm661_vm13, %v2411_v14  ;;  %v3345_v32 = vld [vmem:[#allocation5 + $0x30] sm:$0xf] }
 0x23a   : > { %2633 = vst.msk [vmem:[#allocation5 + $0x1c] sm:$0xf] %vm810_vm15, %v2612_v15  ;;  %v3042_v15 = vld [vmem:[%s3751_s15 + $0x20] sm:$0xff] }
 0x23b   : > { %v3335_v3 = vld [vmem:[#allocation5 + $0x24] sm:$0xf0]  ;;  %v3023_v57 = vpop.f32.mrf.mxu0 }
 0x23f   : > { %v2169_v43 = vpop.permute.xlu0 %2168  ;;  %v2125_v16 = vpop.permute.xlu2 %2124 }
 0x240   : > { %v2025_v53 = vpop.permute.xlu1 %2024 }
 0x241   : > { %2043 = vst.msk [vmem:[#allocation5 + $0x3c] sm:$0xf] %vm661_vm13, %v2025_v53  ;;  %v3482_v18 = vld [vmem:[#allocation5 + $0x1c] sm:$0xf] }
 0x242   : > { %2139 = vst.msk [vmem:[#allocation5 + $0x3c] sm:$0xf] %vm761_vm14, %v2121_v41  ;;  %v3338_v34 = vor.u32 %v3482_v18, %v3335_v3 }
 0x243   : > { %2187 = vst.msk [vmem:[#allocation5 + $0x3c] sm:$0xf] %vm810_vm15, %v2169_v43  ;;  %v3025_v4 = vpop.f32.mrf.mxu0 }
 0x244   : > { %2993 = vmatmul.bf16.gmra.mxu2 %v3338_v34 }
 0x247   : > { %v2409_v44 = vpop.permute.xlu0 %2408  ;;  %v2618_v19 = vpop.permute.xlu2 %2617 }
 0x248   : > { %2427 = vst.msk [vmem:[#allocation5 + $0x40] sm:$0xf] %vm661_vm13, %v2409_v44  ;;  %v2123_v20 = vpop.permute.xlu1 %2122  ;;  %v3043_v44 = vld [vmem:[%s3751_s15 + $0x28] sm:$0xff] }
 0x24a   : > { %v3486_v22 = vld [vmem:[#allocation5 + $0x38] sm:$0xf0] }
 0x24b   : > { %v3346_v23 = vor.u32 %v3486_v22, %v3345_v32  ;;  %v3028_v11 = vpop.f32.mrf.mxu0 }
 0x24d   : > { %2969 = vmatmul.bf16.gmra.mxu3 %v3346_v23 }
 0x24f   : > { %v2027_v24 = vpop.permute.xlu0 %2026  ;;  %v2171_v27 = vpop.permute.xlu2 %2170 }
 0x250   : > { %2044 = vst.msk [vmem:[#allocation5 + $0x48] sm:$0xf] %vm661_vm13, %v2027_v24  ;;  %v2458_v25 = vpop.permute.xlu1 %2457 }
 0x251   : > { %2140 = vst.msk [vmem:[#allocation5 + $0x48] sm:$0xf] %vm761_vm14, %v2123_v20 }
 0x252   : > { %2188 = vst.msk [vmem:[#allocation5 + $0x48] sm:$0xf] %vm810_vm15, %v2171_v27 }
 0x253   : > { %2476 = vst.msk [vmem:[#allocation5 + $0x40] sm:$0xf] %vm761_vm14, %v2458_v25  ;;  %v3030_v53 = vpop.f32.mrf.mxu0  ;;  %v3044_v25 = vld [vmem:[%s3751_s15 + $0x30] sm:$0xff] }
 0x254   : > { %2636 = vst.msk [vmem:[#allocation5 + $0x40] sm:$0xf] %vm810_vm15, %v2618_v19 }
 0x257   : > { %v2460_v8 = vpop.permute.xlu0 %2459  ;;  %v2622_v31 = vpop.permute.xlu2 %2621 }
 0x258   : > { %2477 = vst.msk [vmem:[#allocation5 + $0x4c] sm:$0xf] %vm761_vm14, %v2460_v8  ;;  %v2616_v28 = vpop.permute.xlu1 %2615 }
 0x259   : > { %2635 = vst.msk [vmem:[#allocation5 + $0x34] sm:$0xf] %vm810_vm15, %v2616_v28 }
 0x25b   : > { %v3347_v30 = vld [vmem:[#allocation5 + $0x3c] sm:$0xf0]  ;;  %v3033_v22 = vpop.f32.mrf.mxu0 }
 0x25f   : > { %v2413_v21 = vpop.permute.xlu0 %2412 }
 0x260   : > { %2429 = vst.msk [vmem:[#allocation5 + $0x58] sm:$0xf] %vm661_vm13, %v2413_v21  ;;  %v2029_v10 = vpop.permute.xlu1 %2028  ;;  %v3485_v29 = vld [vmem:[#allocation5 + $0x34] sm:$0xf] }
 0x261   : > { %2478 = vst.msk [vmem:[#allocation5 + $0x58] sm:$0xf] %vm761_vm14, %v4504_v42  ;;  %v3350_v33 = vor.u32 %v3485_v29, %v3347_v30  ;;  %v3357_v42 = vld [vmem:[#allocation5 + $0x48] sm:$0xf]  ;;  %v3045_v30 = vld [vmem:[%s3751_s15 + $0x38] sm:$0xff]  ;;  %s3588_s15 = scalar_lea.hbm %s4650_s6, 128 }
 0x262   : > { %2045 = vst.msk [vmem:[#allocation5 + $0x54] sm:$0xf] %vm661_vm13, %v2029_v10  ;;  %p3590_p1 = scmp.lt.s32.totalorder %s3588_s15, %s3584_s29 }
 0x263   : > { %2141 = vst.msk [vmem:[#allocation5 + $0x54] sm:$0xf] %vm761_vm14, %v2125_v16  ;;  %2998 = vmatmul.bf16.gmra.mxu2 %v3350_v33  ;;  %v3035_v29 = vpop.f32.mrf.mxu0 }
 0x264   : > { %2638 = vst.msk [vmem:[#allocation5 + $0x58] sm:$0xf] %vm810_vm15, %v2622_v31  ;;  %p3591_p2 = por %p3590_p1, %p3589_p0 }
 0x266   : > { %p3592_p3 = pnand %p3591_p2, %p3587_p13 }
 0x267   : > { %v2173_v1 = vpop.permute.xlu0 %2172 }
 0x268   : > { %2189 = vst.msk [vmem:[#allocation5 + $0x54] sm:$0xf] %vm810_vm15, %v2173_v1  ;;  %v2620_v60 = vpop.permute.xlu1 %2619 }
 0x269   : > { %2637 = vst.msk [vmem:[#allocation5 + $0x4c] sm:$0xf] %vm810_vm15, %v2620_v60 }
 0x26b   : > { %v3359_v35 = vld [vmem:[#allocation5 + $0x54] sm:$0xf0] }
 0x26f   : > { %v3489_v37 = vld [vmem:[#allocation5 + $0x50] sm:$0xf0] }
 0x270   : > { %v3358_v38 = vor.u32 %v3489_v37, %v3357_v42  ;;  %v3488_v39 = vld [vmem:[#allocation5 + $0x4c] sm:$0xf] }
 0x271   : > { %v3362_v7 = vor.u32 %v3488_v39, %v3359_v35 }
 0x272   : > { %2974 = vmatmul.bf16.gmra.mxu3 %v3358_v38 }
 0x273   : > { %3003 = vmatmul.bf16.gmra.mxu2 %v3362_v7 }
 0x28d   : > { %v2960_v26 = vpop.f32.mrf.mxu3 }
 0x295   : > { %v2962_v5 = vpop.f32.mrf.mxu3 }
 0x2a6   : > { %v2989_v0 = vpop.f32.mrf.mxu2 }
 0x2a7   : > { %v2990_v17 = vadd.f32 %v2989_v0, %v2960_v26 }
 0x2a9   : > { %v3019_v46 = vadd.f32 %v3018_v45, %v2990_v17 }
 0x2ab   : > { %v3046_v50 = vadd.f32 %v3038_v48, %v3019_v46 }
 0x2ad   : > { %3054 = vst.msk [vmem:[%s4585_s12] sm:$0xff] %vm1572_vm1, %v3046_v50 }
 0x2ae   : > { %v2991_v51 = vpop.f32.mrf.mxu2 }
 0x2af   : > { %v2992_v52 = vadd.f32 %v2991_v51, %v2962_v5 }
 0x2b0   : > { %v2965_v56 = vpop.f32.mrf.mxu3 }
 0x2b1   : > { %v3021_v36 = vadd.f32 %v3020_v54, %v2992_v52 }
 0x2b3   : > { %v3047_v2 = vadd.f32 %v3039_v55, %v3021_v36 }
 0x2b5   : > { %3055 = vst.msk [vmem:[%s4585_s12 + $0x8] sm:$0xff] %vm1572_vm1, %v3047_v2 }
 0x2b8   : > { %v2967_v63 = vpop.f32.mrf.mxu3 }
 0x2c7   : > { %v2994_v47 = vpop.f32.mrf.mxu2 }
 0x2c8   : > { %v2995_v61 = vadd.f32 %v2994_v47, %v2965_v56 }
 0x2ca   : > { %v3024_v58 = vadd.f32 %v3023_v57, %v2995_v61 }
 0x2cc   : > { %v3048_v40 = vadd.f32 %v3040_v62, %v3024_v58 }
 0x2ce   : > { %3056 = vst.msk [vmem:[%s4585_s12 + $0x10] sm:$0xff] %vm1572_vm1, %v3048_v40 }
 0x2cf   : > { %v2996_v41 = vpop.f32.mrf.mxu2 }
 0x2d0   : > { %v2997_v49 = vadd.f32 %v2996_v41, %v2967_v63  ;;  %v2970_v12 = vpop.f32.mrf.mxu3 }
 0x2d2   : > { %v3026_v59 = vadd.f32 %v3025_v4, %v2997_v49 }
 0x2d4   : > { %v3049_v9 = vadd.f32 %v3041_v6, %v3026_v59 }
 0x2d6   : > { %3057 = vst.msk [vmem:[%s4585_s12 + $0x18] sm:$0xff] %vm1572_vm1, %v3049_v9 }
 0x2d8   : > { %v2972_v18 = vpop.f32.mrf.mxu3 }
 0x2e6   : > { %v2999_v13 = vpop.f32.mrf.mxu2 }
 0x2e7   : > { %v3000_v14 = vadd.f32 %v2999_v13, %v2970_v12 }
 0x2e9   : > { %v3029_v43 = vadd.f32 %v3028_v11, %v3000_v14 }
 0x2eb   : > { %v3050_v16 = vadd.f32 %v3042_v15, %v3029_v43 }
 0x2ed   : > { %3058 = vst.msk [vmem:[%s4585_s12 + $0x20] sm:$0xff] %vm1572_vm1, %v3050_v16 }
 0x2ee   : > { %v3001_v3 = vpop.f32.mrf.mxu2 }
 0x2ef   : > { %v3002_v34 = vadd.f32 %v3001_v3, %v2972_v18 }
 0x2f1   : > { %v3031_v19 = vadd.f32 %v3030_v53, %v3002_v34 }
 0x2f3   : > { %v3051_v20 = vadd.f32 %v3043_v44, %v3031_v19 }
 0x2f5   : > { %3059 = vst.msk [vmem:[%s4585_s12 + $0x28] sm:$0xff] %vm1572_vm1, %v3051_v20  ;;  %v2975_v32 = vpop.f32.mrf.mxu3 }
 0x2f6   : > { %v3004_v23 = vpop.f32.mrf.mxu2 }
 0x2f7   : > { %v3005_v24 = vadd.f32 %v3004_v23, %v2975_v32 }
 0x2f9   : > { %v3034_v27 = vadd.f32 %v3033_v22, %v3005_v24 }
 0x2fb   : > { %v3052_v8 = vadd.f32 %v3044_v25, %v3034_v27 }
 0x2fd   : > { %3060 = vst.msk [vmem:[%s4585_s12 + $0x30] sm:$0xff] %vm1572_vm1, %v3052_v8  ;;  %v2977_v28 = vpop.f32.mrf.mxu3 }
 0x2fe   : > { %v3006_v21 = vpop.f32.mrf.mxu2 }
 0x2ff   : > { %v3007_v10 = vadd.f32 %v3006_v21, %v2977_v28 }
 0x301   : > { %v3036_v33 = vadd.f32 %v3035_v29, %v3007_v10 }
 0x303   : > { %v3053_v31 = vadd.f32 %v3045_v30, %v3036_v33 }
 0x305   : > { %3061 = vst.msk [vmem:[%s4585_s12 + $0x38] sm:$0xff] %vm1572_vm1, %v3053_v31 }
 0x306   : > { %3595 = shalt.err (!%p3592_p3)
}
 0x307   : > { %s3636_s20 = smov 128   ;;  %s3637_s12 = smov 8  }
 0x308   : > { %3520 = dma.vmem_to_hbm [thread:$0]  (%p3711_p5), %s3076_s17, 1024, %s3078_s26, %s3063_s25, %s3636_s20, %s3636_s20, %s3637_s12  }
 0x309 PF: > { %p3526_p4 = scmp.ge.s32.totalorder %s3630_s24, 2  ;;  %s3092_s13 = sand.u32 1, %s3618_s21  }
 0x30a   : > { %s3093_s14 = scalar_lea.sflag [#allocation7], %s3092_s13 }
 0x30b   : > { %p3523_p7 = pnand %p3526_p4, %p3715_p6 }
 0x30d   : > { %p3524_p8 = pneg %p3523_p7 }
 0x30f   : > { %3613 = dma.done.wait (%p3524_p8), %s3093_s14, 1024  }
 0x310   : > { %3615 = vsyncadd (%p3524_p8), %s3093_s14, 4294966272  ;;  %p16_p9 = scmp.ge.s32.totalorder %s3698_s27, 4   ;;  %s4663_s21 = smov %s3622_s22 }
 0x311   : > { %s4664_s22 = smov %s3626_s23  ;;  %s4665_s23 = smov %s3709_s30 }
 0x312   : > { %s4666_s24 = smov %s3698_s27  ;;  %18 = sbr.rel (!%p16_p9) target bundleno = 3 (0x3), region = 85 }
 0x317   :  { %3099 = vsyncpa [#allocation7], 1 }
 0x318   :  { %3101 = vsyncpa [#allocation7 + $0x1], 1 }

// kernel: two_blocks.2
= control target key start
LH: loop header
LB: loop body
LE: loop exit
PB: predicated region body
PF: predicated region fallthrough
CT: control target
= control target key end

     0   :  { %s4230_s24 = smov 0   ;;  %s5509_s0 = inlined_call_operand.vmem [shape: f32[2,4,8,8,16], index: 0, kind: input, shape index: {}]   ;;  %s5510_s1 = inlined_call_operand.vmem [shape: f32[1,16], index: 1, kind: input, shape index: {}]   ;;  %s5511_s2 = inlined_call_operand.vmem [shape: f32[1,16], index: 2, kind: input, shape index: {}]   ;;  %s5512_s3 = inlined_call_operand.vmem [shape: bf16[144,32], index: 3, kind: input, shape index: {}]   ;;  %s5513_s4 = inlined_call_operand.vmem [shape: f32[1,32], index: 4, kind: input, shape index: {}, may-alias: {4,6}]   ;;  %s5514_s5 = inlined_call_operand.vmem [shape: bf16[304,32], index: 5, kind: input, shape index: {}]   ;;  %s5515_s6 = inlined_call_operand.vmem [shape: f32[1,32], index: 6, kind: input, shape index: {}, may-alias: {4,6}]   ;;  %s5516_s7 = inlined_call_operand.vmem [shape: f32[2,8,8,32], index: 7, kind: output, shape index: {}]  }
   0x1 LB: > { %s3839_s25 = sadd.s32 4294967295, %s4180_s24   ;;  %p3843_p0 = scmp.ge.s32.totalorder %s4180_s24, 1  ;;  %s4180_s24 = sphi %s4230_s24, %s17_s24  }
   0x2   : > { %p237_p1 = scmp.lt.s32.totalorder %s4180_s24, 3 }
   0x4   : > { %p238_p2 = pnand %p3843_p0, %p237_p1 }
   0x5   : > { %p269_p3 = scmp.lt.s32.totalorder (!%p238_p2), %s3839_s25, 1  ;;  %s4183_s11 = smov (!%p238_p2), 32  }
   0x6   : > { %241 = sbr.rel (%p238_p2) target bundleno = 801 (0x321), region = 48  ;;  %s4184_s12 = smov (!%p238_p2), 16  }
   0x7   : > { %s4185_s13 = smov (!%p238_p2), 96   ;;  %s4186_s14 = smov (!%p238_p2), 48  }
   0x8   : > { %s4187_s15 = smov (!%p238_p2), 64   ;;  %s4188_s16 = smov (!%p238_p2), 80  }
   0x9   : > { %s4189_s17 = smov (!%p238_p2), 112  }
   0xb   : > { %vm320_vm0 = vcmask 125952   ;;  %vm322_vm1 = vcmask 122880   ;;  %vm323_vm2 = vsmask.f32 256  ;;  %v4182_v1 = vmov 0   ;;  %s5557_s25 = smov (!%p269_p3, %s3839_s25), 1 }
   0xc   : > { %vm4239_vm3 = vmand %vm322_vm1, %vm323_vm2  ;;  %962 = vst.msk [vmem:[#allocation5] sm:$0xf] %vm320_vm0, %v4182_v1  ;;  %v963_v2 = vld [vmem:[#allocation5 + $0x4] sm:$0x1]  ;;  %v765_v4 = vld [vmem:[#allocation4 + $0x4] sm:$0x1] }
   0xd   : > { %v964_v3 = vsel %vm4239_vm3, 0, %v963_v2  ;;  %v766_v5 = vsel %vm4239_vm3, 0, %v765_v4  ;;  %764 = vst.msk [vmem:[#allocation4] sm:$0xf] %vm320_vm0, %v4182_v1  ;;  %vm1159_vm4 = vsmask.f32 3328 }
   0xe   : > { %965 = vst [vmem:[#allocation5 + $0x4] sm:$0x1] %v964_v3  ;;  %v4256_v6 = vld [vmem:[%s5510_s1] ss:$0 sm:$0xff]  ;;  %s4098_s28 = sshll.u32 %s5557_s25, 8  ;;  %vm524_vm9 = vcmask 388352  }
   0xf   : > { %767 = vst [vmem:[#allocation4 + $0x4] sm:$0x1] %v766_v5  ;;  %v4262_v7 = vld [vmem:[%s5511_s2] ss:$0 sm:$0xff]  ;;  %s4267_s10 = scalar_lea.vmem %s5509_s0, %s4098_s28  ;;  %v769_v11 = vld [vmem:[#allocation4 + $0x8] sm:$0x1] }
  0x10   : > { %v967_v8 = vld [vmem:[#allocation5 + $0x8] sm:$0x1]  ;;  %vm1160_vm5 = vsmask.f32 7440  ;;  %v770_v19 = vsel %vm4239_vm3, 0, %v769_v11  ;;  %v283_v50 = vld [vmem:[%s4267_s10 + $0x8] sm:$0xff] }
  0x11   : > { %v968_v10 = vsel %vm4239_vm3, 0, %v967_v8  ;;  %v3864_v14 = vld [vmem:[%s4267_s10 + $0xc0] sm:$0xff]  ;;  %771 = vst [vmem:[#allocation4 + $0x8] sm:$0x1] %v770_v19  ;;  %vm442_vm6 = vsmask.f32 7938  ;;  %vm4285_vm7 = vmor %vm1159_vm4, %vm1160_vm5  ;;  %v294_v4 = vmul.f32 %v4256_v6, %v283_v50 }
  0x12   : > { %969 = vst [vmem:[#allocation5 + $0x8] sm:$0x1] %v968_v10  ;;  %v3856_v15 = vld [vmem:[%s4267_s10 + $0x80] sm:$0xff]  ;;  %v938_v17 = vmul.f32 %v4256_v6, %v3864_v14  ;;  %v329_v29 = vld [vmem:[#allocation2 + $0x8] sm:$0x1]  ;;  %vm4310_vm8 = vmand %vm320_vm0, %vm442_vm6  ;;  %vm1298_vm10 = vcmask 257152  }
  0x13   : > { %v1307_v9 = vld [vmem:[#allocation5] sm:$0xf]  ;;  %v740_v18 = vmul.f32 %v4256_v6, %v3856_v15  ;;  %v282_v20 = vld [vmem:[%s4267_s10] sm:$0xff]  ;;  %v330_v44 = vsel %vm4239_vm3, 0, %v329_v29  ;;  %v571_v45 = vld [vmem:[#allocation3 + $0x8] sm:$0x1] }
  0x14   : > { %v1324_v12 = vshrl.u32 %v1307_v9, 16  ;;  %v1327_v13 = vshll.u32 %v1307_v9, 16  ;;  %v293_v24 = vmul.f32 %v4256_v6, %v282_v20  ;;  %v3848_v25 = vld [vmem:[%s4267_s10 + $0x40] sm:$0xff]  ;;  %v1143_v26 = vld [vmem:[#allocation4] sm:$0xf]  ;;  %v946_v27 = vadd.f32 %v4262_v7, %v938_v17  ;;  %v3849_v56 = vld [vmem:[%s4267_s10 + $0x48] sm:$0xff] }
  0x15   : > { %v1308_v16 = vld [vmem:[#allocation5 + $0x4] sm:$0x1]  ;;  %v748_v28 = vadd.f32 %v4262_v7, %v740_v18  ;;  %v542_v30 = vmul.f32 %v4256_v6, %v3848_v25  ;;  %v1163_v34 = vshrl.u32 %v1143_v26, 16  ;;  %v1166_v35 = vshll.u32 %v1143_v26, 16  ;;  %331 = vst [vmem:[#allocation2 + $0x8] sm:$0x1] %v330_v44 }
  0x16   : > { %v1326_v21 = vrot.slane %v1324_v12, 4  ;;  %v1329_v22 = vrot.slane %v1327_v13, 5  ;;  %v1333_v23 = vshll.u32 %v1308_v16, 16  ;;  %v1144_v33 = vld [vmem:[#allocation4 + $0x4] sm:$0x1]  ;;  %v954_v38 = vmax.f32 %v946_v27, 0.0 }
  0x17   : > { %v1172_v37 = vshll.u32 %v1144_v33, 16  ;;  %v756_v39 = vmax.f32 %v748_v28, 0.0  ;;  %v304_v40 = vadd.f32 %v4262_v7, %v293_v24  ;;  %v1165_v42 = vrot.slane %v1163_v34, 4  ;;  %v332_v55 = vld [vmem:[#allocation2 + $0x10] sm:$0x1]  ;;  %v3857_v28 = vld [vmem:[%s4267_s10 + $0x88] sm:$0xff] }
  0x18   : > { %v1330_v31 = vor.u32 %v1329_v22, %v1326_v21  ;;  %v1335_v32 = vrot.slane %v1333_v23, 5  ;;  %v1168_v43 = vrot.slane %v1166_v35, 5  ;;  %v991_v47 = vpack.c.bf16 %v954_v38, %v954_v38  ;;  %v884_v62 = vld [vmem:[#allocation4 + $0xc] sm:$0x1]  ;;  %v1082_v63 = vld [vmem:[#allocation5 + $0xc] sm:$0x1] }
  0x19   : > { %v1174_v46 = vrot.slane %v1172_v37, 5  ;;  %v793_v48 = vpack.c.bf16 %v756_v39, %v756_v39  ;;  %v312_v49 = vmax.f32 %v304_v40, 0.0  ;;  %v550_v53 = vadd.f32 %v4262_v7, %v542_v30  ;;  %v1079_v8 = vld [vmem:[#allocation5 + $0x8] sm:$0xf]  ;;  %v881_v14 = vld [vmem:[#allocation4 + $0x8] sm:$0xf] }
  0x1a   : > { %v1331_v41 = vrot.slane %v1330_v31, 4  ;;  %v1169_v52 = vor.u32 %v1168_v43, %v1165_v42  ;;  %v572_v54 = vsel %vm4239_vm3, 0, %v571_v45  ;;  %v1000_v57 = vshrl.u32 %v991_v47, 16  ;;  %v447_v22 = vld [vmem:[#allocation2 + $0xc] sm:$0x1]  ;;  %v3858_v45 = vld [vmem:[%s4267_s10 + $0x90] sm:$0xff] }
  0x1b   : > { %v1003_v58 = vshll.u32 %v991_v47, 16  ;;  %v802_v59 = vshrl.u32 %v793_v48, 16  ;;  %v805_v60 = vshll.u32 %v793_v48, 16  ;;  %v4300_v2 = vpack.c.bf16 %v312_v49, %v312_v49  ;;  %573 = vst [vmem:[#allocation3 + $0x8] sm:$0x1] %v572_v54  ;;  %v3865_v40 = vld [vmem:[%s4267_s10 + $0xc8] sm:$0xff] }
  0x1c   : > { %v1336_v51 = vsel %vm4285_vm7, %v1331_v41, %v1335_v32  ;;  %v1170_v61 = vrot.slane %v1169_v52, 4  ;;  %v558_v3 = vmax.f32 %v550_v53, 0.0  ;;  %v1002_v5 = vrot.slane %v1000_v57, 7  ;;  %v574_v27 = vld [vmem:[#allocation3 + $0x10] sm:$0x1]  ;;  %v4137_v36 = vld [vmem:[%s5514_s5 + $0x40] sm:$0xff] }
  0x1d   : > { %1435 = vrot.lane.b32.xlu1 %v1336_v51, %s4183_s11  ;;  %v804_v9 = vrot.slane %v802_v59, 7  ;;  %v333_v10 = vsel %vm4239_vm3, 0, %v332_v55  ;;  %v543_v11 = vmul.f32 %v4256_v6, %v3849_v56  ;;  %v362_v15 = vshrl.u32 %v4300_v2, 16  ;;  %v444_v33 = vld [vmem:[#allocation2 + $0x8] sm:$0xf] }
  0x1e   : > { %v1175_v12 = vsel %vm4285_vm7, %v1170_v61, %v1174_v46  ;;  %v365_v16 = vshll.u32 %v4300_v2, 16  ;;  %v595_v17 = vpack.c.bf16 %v558_v3, %v558_v3  ;;  %334 = vst [vmem:[#allocation2 + $0x10] sm:$0x1] %v333_v10  ;;  %v1005_v18 = vor.u32 %v1003_v58, %v1002_v5  ;;  %v4327_v34 = vld [vmem:[#allocation4 + $0x10] sm:$0x1]  ;;  %v3850_v61 = vld [vmem:[%s4267_s10 + $0x50] sm:$0xff] }
  0x1f   : > { %1274 = vrot.lane.b32.xlu0 %v1175_v12, %s4184_s12  ;;  %v807_v19 = vor.u32 %v805_v60, %v804_v9  ;;  %v808_v20 = vrot.slane %v804_v9, 4  ;;  %v1006_v21 = vrot.slane %v1002_v5, 4  ;;  %v364_v23 = vrot.slane %v362_v15, 7  ;;  %v4344_v50 = vld [vmem:[#allocation5 + $0x10] sm:$0x1]  ;;  %v3851_v60 = vld [vmem:[%s4267_s10 + $0x58] sm:$0xff] }
  0x20   : > { %v604_v24 = vshrl.u32 %v595_v17, 16  ;;  %v607_v25 = vshll.u32 %v595_v17, 16  ;;  %v305_v26 = vadd.f32 %v4262_v7, %v294_v4  ;;  %v1080_v29 = vsel %vm4310_vm8, %v1005_v18, %v1079_v8  ;;  %v4351_v55 = vld [vmem:[#allocation4 + $0x18] sm:$0x1]  ;;  %v453_v8 = vld [vmem:[#allocation2 + $0x14] sm:$0x1] }
  0x21   : > { %v882_v30 = vsel %vm4310_vm8, %v807_v19, %v881_v14  ;;  %v885_v31 = vsel %vm4239_vm3, %v808_v20, %v884_v62  ;;  %v1083_v32 = vsel %vm4239_vm3, %v1006_v21, %v1082_v63  ;;  %1081 = vst [vmem:[#allocation5 + $0x8] sm:$0xf] %v1080_v29  ;;  %v367_v35 = vor.u32 %v365_v16, %v364_v23 }
  0x22   : > { %v368_v37 = vrot.slane %v364_v23, 4  ;;  %v4329_v38 = vrot.slane %v604_v24, 7  ;;  %v313_v39 = vmax.f32 %v305_v26, 0.0  ;;  %883 = vst [vmem:[#allocation4 + $0x8] sm:$0xf] %v882_v30  ;;  %v551_v42 = vadd.f32 %v4262_v7, %v543_v11 }
  0x23   : > { %v683_v41 = vld [vmem:[#allocation3 + $0x8] sm:$0xf]  ;;  %v575_v43 = vsel %vm4239_vm3, 0, %v574_v27  ;;  %v741_v44 = vmul.f32 %v4256_v6, %v3857_v28  ;;  %886 = vst [vmem:[#allocation4 + $0xc] sm:$0x1] %v885_v31  ;;  %v445_v46 = vsel %vm4310_vm8, %v367_v35, %v444_v33  ;;  %v773_v53 = vsel %vm4239_vm3, 0, %v4327_v34 }
  0x24   : > { %v448_v47 = vsel %vm4239_vm3, %v368_v37, %v447_v22  ;;  %v609_v48 = vor.u32 %v607_v25, %v4329_v38  ;;  %v4342_v49 = vpack.c.bf16 %v313_v39, %v313_v39  ;;  %1084 = vst [vmem:[#allocation5 + $0xc] sm:$0x1] %v1083_v32  ;;  %v559_v51 = vmax.f32 %v551_v42, 0.0 }
  0x25   : > { %v749_v52 = vadd.f32 %v4262_v7, %v741_v44  ;;  %v939_v54 = vmul.f32 %v4256_v6, %v3865_v40  ;;  %446 = vst [vmem:[#allocation2 + $0x8] sm:$0xf] %v445_v46  ;;  %v742_v59 = vmul.f32 %v4256_v6, %v3858_v45  ;;  %v450_v62 = vld [vmem:[#allocation2 + $0x10] sm:$0xf]  ;;  %v971_v4 = vsel %vm4239_vm3, 0, %v4344_v50 }
  0x26   : > { %v684_v56 = vsel %vm4310_vm8, %v609_v48, %v683_v41  ;;  %v370_v57 = vshrl.u32 %v4342_v49, 16  ;;  %v373_v58 = vshll.u32 %v4342_v49, 16  ;;  %449 = vst [vmem:[#allocation2 + $0xc] sm:$0x1] %v448_v47  ;;  %v4360_v63 = vpack.c.bf16 %v559_v51, %v559_v51  ;;  %v285_v47 = vld [vmem:[%s4267_s10 + $0x18] sm:$0xff] }
  0x27   : > { %v757_v3 = vmax.f32 %v749_v52, 0.0  ;;  %685 = vst [vmem:[#allocation3 + $0x8] sm:$0xf] %v684_v56  ;;  %v4366_v9 = vadd.f32 %v4262_v7, %v939_v54  ;;  %v776_v10 = vsel %vm4239_vm3, 0, %v4351_v55  ;;  %v610_v11 = vrot.slane %v4329_v38, 4 }
  0x28   : > { %v372_v5 = vrot.slane %v370_v57, 7  ;;  %v1838_v12 = vld [vmem:[#allocation5 + $0x8] sm:$0xf]  ;;  %576 = vst [vmem:[#allocation3 + $0x10] sm:$0x1] %v575_v43  ;;  %v4375_v16 = vadd.f32 %v4262_v7, %v742_v59  ;;  %v545_v17 = vmul.f32 %v4256_v6, %v3851_v60  ;;  %v544_v18 = vmul.f32 %v4256_v6, %v3850_v61 }
  0x29   : > { %v1309_v14 = vld [vmem:[#allocation5 + $0x8] sm:$0xf]  ;;  %v4372_v15 = vpack.c.bf16 %v757_v3, %v757_v3  ;;  %1854 = vrot.lane.b32.xlu1 %v1838_v12, %s4185_s13  ;;  %v1145_v19 = vld [vmem:[#allocation4 + $0x8] sm:$0xf]  ;;  %v612_v27 = vshrl.u32 %v4360_v63, 16  ;;  %v615_v28 = vshll.u32 %v4360_v63, 16 }
  0x2a   : > { %v1338_v20 = vshrl.u32 %v1309_v14, 16  ;;  %v1341_v21 = vshll.u32 %v1309_v14, 16  ;;  %v375_v22 = vor.u32 %v373_v58, %v372_v5  ;;  %v376_v23 = vrot.slane %v372_v5, 4  ;;  %v1146_v24 = vld [vmem:[#allocation4 + $0xc] sm:$0x1] }
  0x2b   : > { %v1177_v25 = vshrl.u32 %v1145_v19, 16  ;;  %v1180_v26 = vshll.u32 %v1145_v19, 16  ;;  %v1186_v29 = vshll.u32 %v1146_v24, 16  ;;  %v1310_v30 = vld [vmem:[#allocation5 + $0xc] sm:$0x1]  ;;  %v4388_v57 = vadd.f32 %v4262_v7, %v545_v17 }
  0x2c   : > { %v1340_v31 = vrot.slane %v1338_v20, 4  ;;  %v1343_v32 = vrot.slane %v1341_v21, 5  ;;  %v451_v33 = vsel %vm4310_vm8, %v375_v22, %v450_v62  ;;  %v1347_v39 = vshll.u32 %v1310_v30, 16  ;;  %v1516_v40 = vld [vmem:[#allocation2 + $0x8] sm:$0xf] }
  0x2d   : > { %v1179_v35 = vrot.slane %v1177_v25, 4  ;;  %v1182_v37 = vrot.slane %v1180_v26, 5  ;;  %v454_v41 = vsel %vm4239_vm3, %v376_v23, %v453_v8  ;;  %v1188_v42 = vrot.slane %v1186_v29, 5  ;;  %v1517_v44 = vld [vmem:[#allocation2 + $0xc] sm:$0x1] }
  0x2e   : > { %v1344_v43 = vor.u32 %v1343_v32, %v1340_v31  ;;  %v1533_v45 = vshrl.u32 %v1516_v40, 16  ;;  %v1536_v46 = vshll.u32 %v1516_v40, 16  ;;  %v1349_v51 = vrot.slane %v1347_v39, 5  ;;  %v1467_v54 = vld [vmem:[#allocation3 + $0x8] sm:$0xf]  ;;  %v3867_v40 = vld [vmem:[%s4267_s10 + $0xd8] sm:$0xff] }
  0x2f   : > { %v1183_v48 = vor.u32 %v1182_v37, %v1179_v35  ;;  %v1542_v52 = vshll.u32 %v1517_v44, 16  ;;  %452 = vst [vmem:[#allocation2 + $0x10] sm:$0xf] %v451_v33  ;;  %v692_v56 = vld [vmem:[#allocation3 + $0x14] sm:$0x1]  ;;  %1483 = vrot.lane.b32.xlu2 %v1467_v54, %s4186_s14  ;;  %v614_v61 = vrot.slane %v612_v27, 7  ;;  %v4398_v5 = vadd.f32 %v4262_v7, %v544_v18 }
  0x30   : > { %v1345_v58 = vrot.slane %v1344_v43, 4  ;;  %v1535_v59 = vrot.slane %v1533_v45, 4  ;;  %v1538_v60 = vrot.slane %v1536_v46, 5  ;;  %455 = vst [vmem:[#allocation2 + $0x14] sm:$0x1] %v454_v41  ;;  %v296_v8 = vmul.f32 %v4256_v6, %v285_v47 }
  0x31   : > { %v1184_v62 = vrot.slane %v1183_v48, 4  ;;  %v4391_v63 = vrot.slane %v1542_v52, 5  ;;  %v689_v3 = vld [vmem:[#allocation3 + $0x10] sm:$0xf]  ;;  %774 = vst [vmem:[#allocation4 + $0x10] sm:$0x1] %v773_v53  ;;  %v617_v17 = vor.u32 %v615_v28, %v614_v61 }
  0x32   : > { %v1350_v12 = vsel %vm4285_vm7, %v1345_v58, %v1349_v51  ;;  %v1539_v14 = vor.u32 %v1538_v60, %v1535_v59  ;;  %v618_v19 = vrot.slane %v614_v61, 4  ;;  %v1887_v20 = vld [vmem:[#allocation4 + $0x8] sm:$0xf]  ;;  %v1888_v21 = vld [vmem:[#allocation4 + $0xc] sm:$0x1]  ;;  %v810_v34 = vshrl.u32 %v4372_v15, 16 }
  0x33   : > { %v1189_v22 = vsel %vm4285_vm7, %v1184_v62, %v1188_v42  ;;  %1437 = vrot.lane.b32.xlu1 %v1350_v12, %s4183_s11  ;;  %v813_v53 = vshll.u32 %v4372_v15, 16  ;;  %v1904_v18 = vshrl.u32 %v1887_v20, 16  ;;  %972 = vst [vmem:[#allocation5 + $0x10] sm:$0x1] %v971_v4  ;;  %v690_v24 = vsel %vm4310_vm8, %v617_v17, %v689_v3  ;;  %v890_v26 = vld [vmem:[#allocation4 + $0x14] sm:$0x1] }
  0x34   : > { %1276 = vrot.lane.b32.xlu0 %v1189_v22, %s4184_s12  ;;  %v1540_v23 = vrot.slane %v1539_v14, 4  ;;  %v693_v25 = vsel %vm4239_vm3, %v618_v19, %v692_v56  ;;  %v1907_v27 = vshll.u32 %v1887_v20, 16  ;;  %777 = vst [vmem:[#allocation4 + $0x18] sm:$0x1] %v776_v10  ;;  %v686_v15 = vld [vmem:[#allocation3 + $0xc] sm:$0x1]  ;;  %v4443_v62 = vadd.f32 %v4262_v7, %v296_v8 }
  0x35   : > { %691 = vst [vmem:[#allocation3 + $0x10] sm:$0xf] %v690_v24  ;;  %v812_v50 = vrot.slane %v810_v34, 7  ;;  %v1906_v4 = vrot.slane %v1904_v18, 4  ;;  %v1913_v28 = vshll.u32 %v1888_v21, 16  ;;  %v955_v29 = vmax.f32 %v4366_v9, 0.0 }
  0x36   : > { %v1545_v30 = vsel %vm4285_vm7, %v1540_v23, %v4391_v63  ;;  %v1518_v31 = vld [vmem:[#allocation2 + $0x10] sm:$0xf]  ;;  %694 = vst [vmem:[#allocation3 + $0x14] sm:$0x1] %v693_v25  ;;  %v1909_v32 = vrot.slane %v1907_v27, 5  ;;  %v758_v33 = vmax.f32 %v4375_v16, 0.0  ;;  %v687_v55 = vsel %vm4239_vm3, %v610_v11, %v686_v15 }
  0x37   : > { %v1519_v10 = vld [vmem:[#allocation2 + $0x14] sm:$0x1]  ;;  %v1547_v35 = vshrl.u32 %v1518_v31, 16  ;;  %v1550_v37 = vshll.u32 %v1518_v31, 16  ;;  %v815_v39 = vor.u32 %v813_v53, %v812_v50  ;;  %v816_v9 = vrot.slane %v812_v50, 4 }
  0x38   : > { %v1556_v41 = vshll.u32 %v1519_v10, 16  ;;  %v887_v42 = vld [vmem:[#allocation4 + $0x10] sm:$0xf]  ;;  %v1910_v43 = vor.u32 %v1909_v32, %v1906_v4  ;;  %v4431_v44 = vrot.slane %v1913_v28, 5  ;;  %v992_v45 = vpack.c.bf16 %v955_v29, %v955_v29  ;;  %688 = vst [vmem:[#allocation3 + $0xc] sm:$0x1] %v687_v55 }
  0x39   : > { %v1549_v16 = vrot.slane %v1547_v35, 4  ;;  %v1552_v46 = vrot.slane %v1550_v37, 5  ;;  %v888_v38 = vsel %vm4310_vm8, %v815_v39, %v887_v42  ;;  %v891_v11 = vsel %vm4239_vm3, %v816_v9, %v890_v26  ;;  %v4437_v47 = vld [vmem:[#allocation3 + $0x8] sm:$0xf]  ;;  %v1088_v60 = vld [vmem:[#allocation5 + $0x14] sm:$0x1] }
  0x3a   : > { %v3866_v48 = vld [vmem:[%s4267_s10 + $0xd0] sm:$0xff]  ;;  %v1558_v51 = vrot.slane %v1556_v41, 5  ;;  %889 = vst [vmem:[#allocation4 + $0x10] sm:$0xf] %v888_v38  ;;  %v4440_v52 = vrot.slane %v1910_v43, 4  ;;  %v1008_v54 = vshrl.u32 %v992_v45, 16  ;;  %v795_v61 = vpack.c.bf16 %v758_v33, %v758_v33 }
  0x3b   : > { %v1011_v56 = vshll.u32 %v992_v45, 16  ;;  %v1553_v58 = vor.u32 %v1552_v46, %v1549_v16  ;;  %892 = vst [vmem:[#allocation4 + $0x14] sm:$0x1] %v891_v11  ;;  %v1085_v59 = vld [vmem:[#allocation5 + $0x10] sm:$0xf]  ;;  %v941_v63 = vmul.f32 %v4256_v6, %v3867_v40  ;;  %v1694_v19 = vshrl.u32 %v4437_v47, 16 }
  0x3c   : > { %1644 = vrot.lane.b32.xlu0 %v1545_v30, %s4187_s15  ;;  %v1679_v3 = vld [vmem:[#allocation3 + $0x10] sm:$0xf]  ;;  %v1916_v14 = vsel %vm4285_vm7, %v4440_v52, %v4431_v44  ;;  %v1010_v17 = vrot.slane %v1008_v54, 7  ;;  %v940_v20 = vmul.f32 %v4256_v6, %v3866_v48  ;;  %v818_v53 = vshrl.u32 %v795_v61, 16  ;;  %v896_v4 = vld [vmem:[#allocation4 + $0x1c] sm:$0x1] }
  0x3d   : > { %v1468_v12 = vld [vmem:[#allocation3 + $0x10] sm:$0xf]  ;;  %v1554_v21 = vrot.slane %v1553_v58, 4  ;;  %v1680_v8 = vld [vmem:[#allocation3 + $0x14] sm:$0x1]  ;;  %v1708_v22 = vshrl.u32 %v1679_v3, 16  ;;  %v4463_v43 = vadd.f32 %v4262_v7, %v941_v63 }
  0x3e   : > { %v1711_v34 = vshll.u32 %v1679_v3, 16  ;;  %1485 = vrot.lane.b32.xlu2 %v1468_v12, %s4186_s14  ;;  %v1717_v18 = vshll.u32 %v1680_v8, 16  ;;  %v1013_v23 = vor.u32 %v1011_v56, %v1010_v17  ;;  %v1014_v24 = vrot.slane %v1010_v17, 4  ;;  %v893_v31 = vld [vmem:[#allocation4 + $0x18] sm:$0xf]  ;;  %v3859_v3 = vld [vmem:[%s4267_s10 + $0x98] sm:$0xff] }
  0x3f   : > { %v821_v25 = vshll.u32 %v795_v61, 16  ;;  %v1559_v26 = vsel %vm4285_vm7, %v1554_v21, %v1558_v51  ;;  %v1710_v27 = vrot.slane %v1708_v22, 4  ;;  %v820_v50 = vrot.slane %v818_v53, 7  ;;  %v1678_v32 = vld [vmem:[#allocation3 + $0xc] sm:$0x1] }
  0x40   : > { %v1713_v15 = vrot.slane %v1711_v34, 5  ;;  %1646 = vrot.lane.b32.xlu1 %v1559_v26, %s4187_s15  ;;  %v1719_v28 = vrot.slane %v1717_v18, 5  ;;  %v1086_v29 = vsel %vm4310_vm8, %v1013_v23, %v1085_v59  ;;  %v1089_v30 = vsel %vm4239_vm3, %v1014_v24, %v1088_v60  ;;  %v580_v55 = vld [vmem:[#allocation3 + $0x20] sm:$0x1]  ;;  %v338_v48 = vld [vmem:[#allocation2 + $0x20] sm:$0x1] }
  0x41   : > { %v1696_v33 = vrot.slane %v1694_v19, 4  ;;  %v1889_v35 = vld [vmem:[#allocation4 + $0x10] sm:$0xf]  ;;  %1087 = vst [vmem:[#allocation5 + $0x10] sm:$0xf] %v1086_v29  ;;  %v823_v37 = vor.u32 %v821_v25, %v820_v50  ;;  %v824_v39 = vrot.slane %v820_v50, 4  ;;  %v4466_v45 = vadd.f32 %v4262_v7, %v940_v20 }
  0x42   : > { %v1714_v10 = vor.u32 %v1713_v15, %v1710_v27  ;;  %v1697_v9 = vshll.u32 %v4437_v47, 16  ;;  %v1890_v40 = vld [vmem:[#allocation4 + $0x14] sm:$0x1]  ;;  %v1918_v41 = vshrl.u32 %v1889_v35, 16  ;;  %v1921_v42 = vshll.u32 %v1889_v35, 16 }
  0x43   : > { %1090 = vst [vmem:[#allocation5 + $0x14] sm:$0x1] %v1089_v30  ;;  %v1927_v46 = vshll.u32 %v1890_v40, 16  ;;  %v894_v38 = vsel %vm4310_vm8, %v823_v37, %v893_v31  ;;  %v897_v11 = vsel %vm4239_vm3, %v824_v39, %v896_v4  ;;  %v577_v47 = vld [vmem:[#allocation3 + $0x18] sm:$0x1]  ;;  %v1703_v58 = vshll.u32 %v1678_v32, 16 }
  0x44   : > { %v1715_v16 = vrot.slane %v1714_v10, 4  ;;  %v1920_v51 = vrot.slane %v1918_v41, 4  ;;  %v1923_v54 = vrot.slane %v1921_v42, 5  ;;  %895 = vst [vmem:[#allocation4 + $0x18] sm:$0xf] %v894_v38  ;;  %v1699_v56 = vrot.slane %v1697_v9, 5 }
  0x45   : > { %v1929_v60 = vrot.slane %v1927_v46, 5  ;;  %898 = vst [vmem:[#allocation4 + $0x1c] sm:$0x1] %v897_v11  ;;  %v561_v61 = vmax.f32 %v4388_v57, 0.0  ;;  %v581_v63 = vsel %vm4239_vm3, 0, %v580_v55  ;;  %v4479_v19 = vrot.slane %v1703_v58, 5 }
  0x46   : > { %v1720_v59 = vsel %vm4285_vm7, %v1715_v16, %v1719_v28  ;;  %v1924_v12 = vor.u32 %v1923_v54, %v1920_v51  ;;  %v1700_v17 = vor.u32 %v1699_v56, %v1696_v33  ;;  %582 = vst [vmem:[#allocation3 + $0x20] sm:$0x1] %v581_v63  ;;  %v560_v20 = vmax.f32 %v4398_v5, 0.0  ;;  %v698_v10 = vld [vmem:[#allocation3 + $0x1c] sm:$0x1] }
  0x47   : > { %1807 = vrot.lane.b32.xlu0 %v1720_v59, %s4188_s16  ;;  %v598_v21 = vpack.c.bf16 %v561_v61, %v561_v61  ;;  %v578_v8 = vsel %vm4239_vm3, 0, %v577_v47  ;;  %v315_v57 = vmax.f32 %v4443_v62, 0.0  ;;  %v339_v22 = vsel %vm4239_vm3, 0, %v338_v48  ;;  %v1147_v35 = vld [vmem:[#allocation4 + $0x10] sm:$0xf] }
  0x48   : > { %v1925_v34 = vrot.slane %v1924_v12, 4  ;;  %v1839_v53 = vld [vmem:[#allocation5 + $0x10] sm:$0xf]  ;;  %v1701_v23 = vrot.slane %v1700_v17, 4  ;;  %v597_v24 = vpack.c.bf16 %v560_v20, %v560_v20  ;;  %v743_v25 = vmul.f32 %v4256_v6, %v3859_v3  ;;  %579 = vst [vmem:[#allocation3 + $0x18] sm:$0x1] %v578_v8 }
  0x49   : > { %v1311_v18 = vld [vmem:[#allocation5 + $0x10] sm:$0xf]  ;;  %1856 = vrot.lane.b32.xlu2 %v1839_v53, %s4185_s13  ;;  %v628_v15 = vshrl.u32 %v598_v21, 16  ;;  %v631_v50 = vshll.u32 %v598_v21, 16  ;;  %340 = vst [vmem:[#allocation2 + $0x20] sm:$0x1] %v339_v22  ;;  %v4498_v11 = vpack.c.bf16 %v315_v57, %v315_v57 }
  0x4a   : > { %v1312_v26 = vld [vmem:[#allocation5 + $0x14] sm:$0x1]  ;;  %v1352_v5 = vshrl.u32 %v1311_v18, 16  ;;  %v1355_v27 = vshll.u32 %v1311_v18, 16  ;;  %v1930_v62 = vsel %vm4285_vm7, %v1925_v34, %v1929_v60  ;;  %v1706_v28 = vsel %vm4285_vm7, %v1701_v23, %v4479_v19  ;;  %v1148_v61 = vld [vmem:[#allocation4 + $0x14] sm:$0x1] }
  0x4b   : > { %v1361_v4 = vshll.u32 %v1312_v26, 16  ;;  %v620_v29 = vshrl.u32 %v597_v24, 16  ;;  %2017 = vrot.lane.b32.xlu1 %v1930_v62, %s4189_s17  ;;  %v1149_v32 = vld [vmem:[#allocation4 + $0x18] sm:$0xf]  ;;  %v4495_v33 = vrot.slane %v628_v15, 7  ;;  %v623_v55 = vshll.u32 %v597_v24, 16 }
  0x4c   : > { %v1354_v30 = vrot.slane %v1352_v5, 4  ;;  %v1357_v31 = vrot.slane %v1355_v27, 5  ;;  %v1150_v39 = vld [vmem:[#allocation4 + $0x1c] sm:$0x1]  ;;  %v1205_v9 = vshrl.u32 %v1149_v32, 16  ;;  %v1208_v40 = vshll.u32 %v1149_v32, 16 }
  0x4d   : > { %v1363_v37 = vrot.slane %v1361_v4, 5  ;;  %v622_v41 = vrot.slane %v620_v29, 7  ;;  %v1214_v16 = vshll.u32 %v1150_v39, 16  ;;  %v633_v46 = vor.u32 %v631_v50, %v4495_v33  ;;  %v701_v38 = vld [vmem:[#allocation3 + $0x20] sm:$0xf]  ;;  %v284_v15 = vld [vmem:[%s4267_s10 + $0x10] sm:$0xff] }
  0x4e   : > { %v1358_v42 = vor.u32 %v1357_v31, %v1354_v30  ;;  %v1207_v47 = vrot.slane %v1205_v9, 4  ;;  %v1210_v48 = vrot.slane %v1208_v40, 5  ;;  %v386_v60 = vshrl.u32 %v4498_v11, 16  ;;  %v465_v52 = vld [vmem:[#allocation2 + $0x24] sm:$0x1] }
  0x4f   : > { %2015 = vrot.lane.b32.xlu0 %v1916_v14, %s4189_s17  ;;  %v625_v51 = vor.u32 %v623_v55, %v622_v41  ;;  %v626_v54 = vrot.slane %v622_v41, 4  ;;  %v1216_v58 = vrot.slane %v1214_v16, 5  ;;  %v702_v59 = vsel %vm4310_vm8, %v633_v46, %v701_v38  ;;  %v976_v12 = vld [vmem:[#allocation5 + $0x20] sm:$0x1]  ;;  %v695_v19 = vld [vmem:[#allocation3 + $0x18] sm:$0xf] }
  0x50   : > { %v1359_v56 = vrot.slane %v1358_v42, 4  ;;  %v1211_v63 = vor.u32 %v1210_v48, %v1207_v47  ;;  %703 = vst [vmem:[#allocation3 + $0x20] sm:$0xf] %v702_v59  ;;  %v389_v44 = vshll.u32 %v4498_v11, 16  ;;  %v1191_v14 = vshrl.u32 %v1147_v35, 16  ;;  %v3868_v29 = vld [vmem:[%s4267_s10 + $0xe0] sm:$0xff] }
  0x51   : > { %v699_v3 = vsel %vm4239_vm3, %v626_v54, %v698_v10  ;;  %1805 = vrot.lane.b32.xlu2 %v1706_v28, %s4188_s16  ;;  %v388_v20 = vrot.slane %v386_v60, 7  ;;  %v1194_v21 = vshll.u32 %v1147_v35, 16  ;;  %v973_v8 = vld [vmem:[#allocation5 + $0x18] sm:$0x1]  ;;  %v751_v57 = vadd.f32 %v4262_v7, %v743_v25  ;;  %v462_v50 = vld [vmem:[#allocation2 + $0x20] sm:$0xf] }
  0x52   : > { %v1364_v17 = vsel %vm4285_vm7, %v1359_v56, %v1363_v37  ;;  %700 = vst [vmem:[#allocation3 + $0x1c] sm:$0x1] %v699_v3  ;;  %v1212_v22 = vrot.slane %v1211_v63, 4  ;;  %v696_v34 = vsel %vm4310_vm8, %v625_v51, %v695_v19  ;;  %v1193_v53 = vrot.slane %v1191_v14, 4  ;;  %v778_v23 = vld [vmem:[#allocation4 + $0x20] sm:$0x1] }
  0x53   : > { %v1200_v18 = vshll.u32 %v1148_v61, 16  ;;  %1439 = vrot.lane.b32.xlu1 %v1364_v17, %s4183_s11  ;;  %697 = vst [vmem:[#allocation3 + $0x18] sm:$0xf] %v696_v34  ;;  %v391_v24 = vor.u32 %v389_v44, %v388_v20  ;;  %v392_v26 = vrot.slane %v388_v20, 4  ;;  %v1196_v5 = vrot.slane %v1194_v21, 5  ;;  %v286_v55 = vld [vmem:[%s4267_s10 + $0x20] sm:$0xff] }
  0x54   : > { %v957_v27 = vmax.f32 %v4463_v43, 0.0  ;;  %v1217_v25 = vsel %vm4285_vm7, %v1212_v22, %v1216_v58  ;;  %v977_v4 = vsel %vm4239_vm3, 0, %v976_v12  ;;  %v956_v28 = vmax.f32 %v4466_v45, 0.0  ;;  %v1094_v61 = vld [vmem:[#allocation5 + $0x1c] sm:$0x1] }
  0x55   : > { %v1202_v62 = vrot.slane %v1200_v18, 5  ;;  %v463_v30 = vsel %vm4310_vm8, %v391_v24, %v462_v50  ;;  %v466_v31 = vsel %vm4239_vm3, %v392_v26, %v465_v52  ;;  %v1197_v32 = vor.u32 %v1196_v5, %v1193_v53  ;;  %978 = vst [vmem:[#allocation5 + $0x20] sm:$0x1] %v977_v4  ;;  %v335_v19 = vld [vmem:[#allocation2 + $0x18] sm:$0x1] }
  0x56   : > { %v994_v43 = vpack.c.bf16 %v957_v27, %v957_v27  ;;  %464 = vst [vmem:[#allocation2 + $0x20] sm:$0xf] %v463_v30  ;;  %v974_v10 = vsel %vm4239_vm3, 0, %v973_v8  ;;  %v993_v35 = vpack.c.bf16 %v956_v28, %v956_v28  ;;  %v759_v37 = vmax.f32 %v751_v57, 0.0  ;;  %v902_v34 = vld [vmem:[#allocation4 + $0x24] sm:$0x1] }
  0x57   : > { %1280 = vrot.lane.b32.xlu0 %v1217_v25, %s4184_s12  ;;  %v779_v45 = vsel %vm4239_vm3, 0, %v778_v23  ;;  %v1470_v39 = vld [vmem:[#allocation3 + $0x20] sm:$0xf]  ;;  %467 = vst [vmem:[#allocation2 + $0x24] sm:$0x1] %v466_v31  ;;  %v1198_v9 = vrot.slane %v1197_v32, 4  ;;  %v295_v41 = vmul.f32 %v4256_v6, %v284_v15  ;;  %v942_v42 = vmul.f32 %v4256_v6, %v3868_v29 }
  0x58   : > { %v1024_v40 = vshrl.u32 %v994_v43, 16  ;;  %v1027_v46 = vshll.u32 %v994_v43, 16  ;;  %975 = vst [vmem:[#allocation5 + $0x18] sm:$0x1] %v974_v10  ;;  %v1016_v38 = vshrl.u32 %v993_v35, 16  ;;  %v796_v47 = vpack.c.bf16 %v759_v37, %v759_v37  ;;  %v3853_v37 = vld [vmem:[%s4267_s10 + $0x68] sm:$0xff] }
  0x59   : > { %v1682_v16 = vld [vmem:[#allocation3 + $0x1c] sm:$0x1]  ;;  %v4540_v48 = vmul.f32 %v4256_v6, %v286_v55  ;;  %v1203_v54 = vsel %vm4285_vm7, %v1198_v9, %v1202_v62  ;;  %v1019_v58 = vshll.u32 %v993_v35, 16  ;;  %780 = vst [vmem:[#allocation4 + $0x20] sm:$0x1] %v779_v45  ;;  %v306_v3 = vadd.f32 %v4262_v7, %v295_v41 }
  0x5a   : > { %v1731_v51 = vshll.u32 %v1682_v16, 16  ;;  %v4544_v56 = vrot.slane %v1024_v40, 7  ;;  %v1681_v59 = vld [vmem:[#allocation3 + $0x18] sm:$0xf]  ;;  %1278 = vrot.lane.b32.xlu2 %v1203_v54, %s4184_s12  ;;  %v1018_v60 = vrot.slane %v1016_v38, 7  ;;  %v826_v63 = vshrl.u32 %v796_v47, 16 }
  0x5b   : > { %v950_v44 = vadd.f32 %v4262_v7, %v942_v42  ;;  %1489 = vrot.lane.b32.xlu1 %v1470_v39, %s4186_s14  ;;  %v1469_v6 = vld [vmem:[#allocation3 + $0x18] sm:$0xf]  ;;  %v1722_v52 = vshrl.u32 %v1681_v59, 16  ;;  %v1725_v14 = vshll.u32 %v1681_v59, 16  ;;  %v829_v22 = vshll.u32 %v796_v47, 16 }
  0x5c   : > { %v1733_v12 = vrot.slane %v1731_v51, 5  ;;  %v1029_v17 = vor.u32 %v1027_v46, %v4544_v56  ;;  %v1097_v20 = vld [vmem:[#allocation5 + $0x20] sm:$0xf]  ;;  %v1021_v21 = vor.u32 %v1019_v58, %v1018_v60  ;;  %v1022_v8 = vrot.slane %v1018_v60, 4  ;;  %v979_v62 = vld [vmem:[#allocation5 + $0x28] sm:$0x1] }
  0x5d   : > { %v828_v57 = vrot.slane %v826_v63, 7  ;;  %v1724_v53 = vrot.slane %v1722_v52, 4  ;;  %v1727_v18 = vrot.slane %v1725_v14, 5  ;;  %v1522_v23 = vld [vmem:[#allocation2 + $0x20] sm:$0xf]  ;;  %v314_v26 = vmax.f32 %v306_v3, 0.0 }
  0x5e   : > { %v1098_v24 = vsel %vm4310_vm8, %v1029_v17, %v1097_v20  ;;  %v1523_v5 = vld [vmem:[#allocation2 + $0x24] sm:$0x1]  ;;  %v1575_v27 = vshrl.u32 %v1522_v23, 16  ;;  %v1578_v15 = vshll.u32 %v1522_v23, 16  ;;  %v1095_v25 = vsel %vm4239_vm3, %v1022_v8, %v1094_v61  ;;  %v1100_v41 = vld [vmem:[#allocation5 + $0x24] sm:$0x1] }
  0x5f   : > { %1487 = vrot.lane.b32.xlu0 %v1469_v6, %s4186_s14  ;;  %1099 = vst [vmem:[#allocation5 + $0x20] sm:$0xf] %v1098_v24  ;;  %v831_v50 = vor.u32 %v829_v22, %v828_v57  ;;  %v1728_v4 = vor.u32 %v1727_v18, %v1724_v53  ;;  %v1584_v28 = vshll.u32 %v1523_v5, 16  ;;  %v1091_v29 = vld [vmem:[#allocation5 + $0x18] sm:$0xf]  ;;  %v832_v30 = vrot.slane %v828_v57, 4 }
  0x60   : > { %1096 = vst [vmem:[#allocation5 + $0x1c] sm:$0x1] %v1095_v25  ;;  %v4556_v31 = vpack.c.bf16 %v314_v26, %v314_v26  ;;  %v1577_v32 = vrot.slane %v1575_v27, 4  ;;  %v1580_v43 = vrot.slane %v1578_v15, 5  ;;  %v1092_v55 = vsel %vm4310_vm8, %v1021_v21, %v1091_v29  ;;  %v899_v10 = vld [vmem:[#allocation4 + $0x20] sm:$0xf] }
  0x61   : > { %v336_v35 = vsel %vm4239_vm3, 0, %v335_v19  ;;  %v1729_v45 = vrot.slane %v1728_v4, 4  ;;  %v1586_v39 = vrot.slane %v1584_v28, 5  ;;  %1093 = vst [vmem:[#allocation5 + $0x18] sm:$0xf] %v1092_v55  ;;  %v900_v9 = vsel %vm4310_vm8, %v831_v50, %v899_v10  ;;  %v3852_v47 = vld [vmem:[%s4267_s10 + $0x60] sm:$0xff] }
  0x62   : > { %v903_v40 = vsel %vm4239_vm3, %v832_v30, %v902_v34  ;;  %v1581_v42 = vor.u32 %v1580_v43, %v1577_v32  ;;  %901 = vst [vmem:[#allocation4 + $0x20] sm:$0xf] %v900_v9  ;;  %v378_v16 = vshrl.u32 %v4556_v31, 16  ;;  %v381_v46 = vshll.u32 %v4556_v31, 16  ;;  %v704_v3 = vld [vmem:[#allocation3 + $0x24] sm:$0x1] }
  0x63   : > { %v958_v38 = vmax.f32 %v950_v44, 0.0  ;;  %v1734_v51 = vsel %vm4285_vm7, %v1729_v45, %v1733_v12  ;;  %904 = vst [vmem:[#allocation4 + $0x24] sm:$0x1] %v903_v40  ;;  %v980_v54 = vsel %vm4239_vm3, 0, %v979_v62  ;;  %v1030_v58 = vrot.slane %v4544_v56, 4 }
  0x64   : > { %v634_v59 = vrot.slane %v4495_v33, 4  ;;  %1809 = vrot.lane.b32.xlu1 %v1734_v51, %s4188_s16  ;;  %v1582_v60 = vrot.slane %v1581_v42, 4  ;;  %337 = vst [vmem:[#allocation2 + $0x18] sm:$0x1] %v336_v35  ;;  %v380_v61 = vrot.slane %v378_v16, 7  ;;  %v308_v44 = vadd.f32 %v4262_v7, %v4540_v48 }
  0x65   : > { %v995_v63 = vpack.c.bf16 %v958_v38, %v958_v38  ;;  %v459_v6 = vld [vmem:[#allocation2 + $0x1c] sm:$0x1]  ;;  %981 = vst [vmem:[#allocation5 + $0x28] sm:$0x1] %v980_v54  ;;  %v1101_v52 = vsel %vm4239_vm3, %v1030_v58, %v1100_v41  ;;  %v4588_v56 = vld [vmem:[%s5510_s1] ss:$0 sm:$0xff] }
  0x66   : > { %v4581_v14 = vld [vmem:[#allocation5 + $0x20] sm:$0xf]  ;;  %v705_v33 = vsel %vm4239_vm3, %v634_v59, %v704_v3  ;;  %v547_v12 = vmul.f32 %v4588_v56, %v3853_v37  ;;  %v546_v17 = vmul.f32 %v4588_v56, %v3852_v47  ;;  %v1587_v7 = vsel %vm4285_vm7, %v1582_v60, %v1586_v39  ;;  %1102 = vst [vmem:[#allocation5 + $0x24] sm:$0x1] %v1101_v52  ;;  %v4602_v5 = vld [vmem:[%s5511_s2] ss:$0 sm:$0xff] }
  0x67   : > { %v1314_v48 = vld [vmem:[#allocation5 + $0x1c] sm:$0x1]  ;;  %v383_v19 = vor.u32 %v381_v46, %v380_v61  ;;  %v384_v20 = vrot.slane %v380_v61, 4  ;;  %v1032_v21 = vshrl.u32 %v995_v63, 16  ;;  %1650 = vrot.lane.b32.xlu0 %v1587_v7, %s4187_s15  ;;  %v1035_v57 = vshll.u32 %v995_v63, 16  ;;  %v3860_v7 = vld [vmem:[%s4267_s10 + $0xa0] sm:$0xff] }
  0x68   : > { %v1375_v8 = vshll.u32 %v1314_v48, 16  ;;  %v1380_v22 = vshrl.u32 %v4581_v14, 16  ;;  %v1383_v34 = vshll.u32 %v4581_v14, 16  ;;  %706 = vst [vmem:[#allocation3 + $0x24] sm:$0x1] %v705_v33  ;;  %v316_v26 = vmax.f32 %v308_v44, 0.0 }
  0x69   : > { %v1841_v53 = vld [vmem:[#allocation5 + $0x20] sm:$0xf]  ;;  %v1313_v18 = vld [vmem:[#allocation5 + $0x18] sm:$0xf]  ;;  %v460_v23 = vsel %vm4239_vm3, %v384_v20, %v459_v6  ;;  %v1034_v24 = vrot.slane %v1032_v21, 7  ;;  %v4605_v27 = vadd.f32 %v4602_v5, %v547_v12  ;;  %v4616_v12 = vadd.f32 %v4602_v5, %v546_v17 }
  0x6a   : > { %v1366_v15 = vshrl.u32 %v1313_v18, 16  ;;  %v1369_v25 = vshll.u32 %v1313_v18, 16  ;;  %v1377_v50 = vrot.slane %v1375_v8, 5  ;;  %v1151_v62 = vld [vmem:[#allocation4 + $0x20] sm:$0xf]  ;;  %v1382_v4 = vrot.slane %v1380_v22, 4 }
  0x6b   : > { %v1840_v28 = vld [vmem:[#allocation5 + $0x18] sm:$0xf]  ;;  %v1152_v29 = vld [vmem:[#allocation4 + $0x24] sm:$0x1]  ;;  %v1219_v30 = vshrl.u32 %v1151_v62, 16  ;;  %v1222_v32 = vshll.u32 %v1151_v62, 16  ;;  %v1037_v55 = vor.u32 %v1035_v57, %v1034_v24  ;;  %v4607_v10 = vpack.c.bf16 %v316_v26, %v316_v26 }
  0x6c   : > { %v1893_v43 = vld [vmem:[#allocation4 + $0x20] sm:$0xf]  ;;  %v1368_v35 = vrot.slane %v1366_v15, 4  ;;  %v1371_v37 = vrot.slane %v1369_v25, 5  ;;  %v1228_v45 = vshll.u32 %v1152_v29, 16  ;;  %1860 = vrot.lane.b32.xlu1 %v1841_v53, %s4185_s13  ;;  %v1038_v3 = vrot.slane %v1034_v24, 4 }
  0x6d   : > { %v1894_v39 = vld [vmem:[#allocation4 + $0x24] sm:$0x1]  ;;  %v1946_v9 = vshrl.u32 %v1893_v43, 16  ;;  %v1106_v40 = vld [vmem:[#allocation5 + $0x2c] sm:$0x1]  ;;  %v1221_v41 = vrot.slane %v1219_v30, 4 }
  0x6e   : > { %v1224_v42 = vrot.slane %v1222_v32, 5  ;;  %v1949_v16 = vshll.u32 %v1893_v43, 16  ;;  %v1955_v46 = vshll.u32 %v1894_v39, 16  ;;  %v456_v38 = vld [vmem:[#allocation2 + $0x18] sm:$0xf]  ;;  %v1372_v47 = vor.u32 %v1371_v37, %v1368_v35 }
  0x6f   : > { %v1230_v51 = vrot.slane %v1228_v45, 5  ;;  %v1948_v54 = vrot.slane %v1946_v9, 4  ;;  %v457_v58 = vsel %vm4310_vm8, %v383_v19, %v456_v38  ;;  %461 = vst [vmem:[#allocation2 + $0x1c] sm:$0x1] %v460_v23  ;;  %v1103_v59 = vld [vmem:[#allocation5 + $0x28] sm:$0xf]  ;;  %1858 = vrot.lane.b32.xlu0 %v1840_v28, %s4185_s13  ;;  %v1107_v20 = vsel %vm4239_vm3, %v1038_v3, %v1106_v40 }
  0x70   : > { %v1225_v60 = vor.u32 %v1224_v42, %v1221_v41  ;;  %v1951_v61 = vrot.slane %v1949_v16, 5  ;;  %v1957_v63 = vrot.slane %v1955_v46, 5  ;;  %458 = vst [vmem:[#allocation2 + $0x18] sm:$0xf] %v457_v58  ;;  %v1373_v44 = vrot.slane %v1372_v47, 4 }
  0x71   : > { %v1104_v6 = vsel %vm4310_vm8, %v1037_v55, %v1103_v59  ;;  %v1316_v52 = vld [vmem:[#allocation5 + $0x24] sm:$0x1]  ;;  %v1385_v14 = vrot.slane %v1383_v34, 5  ;;  %v1683_v33 = vld [vmem:[#allocation3 + $0x20] sm:$0xf]  ;;  %v394_v32 = vshrl.u32 %v4607_v10, 16  ;;  %v4639_v43 = vmul.f32 %v4588_v56, %v3860_v7 }
  0x72   : > { %v1226_v48 = vrot.slane %v1225_v60, 4  ;;  %v1952_v19 = vor.u32 %v1951_v61, %v1948_v54  ;;  %1105 = vst [vmem:[#allocation5 + $0x28] sm:$0xf] %v1104_v6  ;;  %v1389_v21 = vshll.u32 %v1316_v52, 16  ;;  %v1684_v8 = vld [vmem:[#allocation3 + $0x24] sm:$0x1]  ;;  %v1378_v57 = vsel %vm4285_vm7, %v1373_v44, %v1377_v50 }
  0x73   : > { %1108 = vst [vmem:[#allocation5 + $0x2c] sm:$0x1] %v1107_v20  ;;  %v1386_v22 = vor.u32 %v1385_v14, %v1382_v4  ;;  %v1736_v53 = vshrl.u32 %v1683_v33, 16  ;;  %v1739_v34 = vshll.u32 %v1683_v33, 16  ;;  %v341_v18 = vld [vmem:[#allocation2 + $0x28] sm:$0x1]  ;;  %1441 = vrot.lane.b32.xlu2 %v1378_v57, %s4183_s11 }
  0x74   : > { %v1231_v17 = vsel %vm4285_vm7, %v1226_v48, %v1230_v51  ;;  %v1953_v23 = vrot.slane %v1952_v19, 4  ;;  %v4626_v24 = vrot.slane %v1389_v21, 5  ;;  %v1745_v26 = vshll.u32 %v1684_v8, 16  ;;  %v586_v4 = vld [vmem:[#allocation3 + $0x30] sm:$0x1] }
  0x75   : > { %v4628_v15 = vrot.slane %v1386_v22, 4  ;;  %v1738_v25 = vrot.slane %v1736_v53, 4  ;;  %v1741_v62 = vrot.slane %v1739_v34, 5  ;;  %v342_v50 = vsel %vm4239_vm3, 0, %v341_v18  ;;  %1282 = vrot.lane.b32.xlu1 %v1231_v17, %s4184_s12  ;;  %v1891_v9 = vld [vmem:[#allocation4 + $0x18] sm:$0xf] }
  0x76   : > { %v1958_v28 = vsel %vm4285_vm7, %v1953_v23, %v1957_v63  ;;  %v1521_v29 = vld [vmem:[#allocation2 + $0x1c] sm:$0x1]  ;;  %v4635_v30 = vrot.slane %v1745_v26, 5  ;;  %343 = vst [vmem:[#allocation2 + $0x28] sm:$0x1] %v342_v50  ;;  %v397_v39 = vshll.u32 %v4607_v10, 16 }
  0x77   : > { %v1520_v55 = vld [vmem:[#allocation2 + $0x18] sm:$0xf]  ;;  %v1570_v35 = vshll.u32 %v1521_v29, 16  ;;  %v1392_v37 = vsel %vm4285_vm7, %v4628_v15, %v4626_v24  ;;  %v1742_v45 = vor.u32 %v1741_v62, %v1738_v25  ;;  %v396_v42 = vrot.slane %v394_v32, 7  ;;  %v471_v16 = vld [vmem:[#allocation2 + $0x2c] sm:$0x1]  ;;  %2021 = vrot.lane.b32.xlu0 %v1958_v28, %s4189_s17 }
  0x78   : > { %v1561_v40 = vshrl.u32 %v1520_v55, 16  ;;  %v1564_v41 = vshll.u32 %v1520_v55, 16  ;;  %v563_v46 = vmax.f32 %v4605_v27, 0.0  ;;  %v587_v54 = vsel %vm4239_vm3, 0, %v586_v4  ;;  %v1892_v19 = vld [vmem:[#allocation4 + $0x1c] sm:$0x1] }
  0x79   : > { %v1572_v38 = vrot.slane %v1570_v35, 5  ;;  %v1317_v47 = vld [vmem:[#allocation5 + $0x28] sm:$0xf]  ;;  %v4648_v51 = vrot.slane %v1742_v45, 4  ;;  %v1932_v58 = vshrl.u32 %v1891_v9, 16  ;;  %v399_v6 = vor.u32 %v397_v39, %v396_v42  ;;  %v3869_v55 = vld [vmem:[%s4267_s10 + $0xe8] sm:$0xff] }
  0x7a   : > { %v1563_v59 = vrot.slane %v1561_v40, 4  ;;  %v1566_v60 = vrot.slane %v1564_v41, 5  ;;  %v1318_v61 = vld [vmem:[#allocation5 + $0x2c] sm:$0x1]  ;;  %v1394_v63 = vshrl.u32 %v1317_v47, 16  ;;  %v1397_v3 = vshll.u32 %v1317_v47, 16 }
  0x7b   : > { %v1403_v44 = vshll.u32 %v1318_v61, 16  ;;  %v1748_v27 = vsel %vm4285_vm7, %v4648_v51, %v4635_v30  ;;  %v400_v52 = vrot.slane %v396_v42, 4  ;;  %588 = vst [vmem:[#allocation3 + $0x30] sm:$0x1] %v587_v54  ;;  %v600_v48 = vpack.c.bf16 %v563_v46, %v563_v46  ;;  %v583_v20 = vld [vmem:[#allocation3 + $0x28] sm:$0x1] }
  0x7c   : > { %v1567_v14 = vor.u32 %v1566_v60, %v1563_v59  ;;  %v1396_v33 = vrot.slane %v1394_v63, 4  ;;  %v1399_v7 = vrot.slane %v1397_v3, 5  ;;  %v1934_v22 = vrot.slane %v1932_v58, 4  ;;  %v781_v24 = vld [vmem:[#allocation4 + $0x28] sm:$0x1]  ;;  %v3861_v60 = vld [vmem:[%s4267_s10 + $0xa8] sm:$0xff] }
  0x7d   : > { %v1405_v21 = vrot.slane %v1403_v44, 5  ;;  %v468_v8 = vld [vmem:[#allocation2 + $0x28] sm:$0xf]  ;;  %v472_v57 = vsel %vm4239_vm3, %v400_v52, %v471_v16  ;;  %v1935_v53 = vshll.u32 %v1891_v9, 16  ;;  %v644_v23 = vshrl.u32 %v600_v48, 16  ;;  %v3854_v30 = vld [vmem:[%s4267_s10 + $0x70] sm:$0xff] }
  0x7e   : > { %v1568_v34 = vrot.slane %v1567_v14, 4  ;;  %v1400_v18 = vor.u32 %v1399_v7, %v1396_v33  ;;  %v469_v17 = vsel %vm4310_vm8, %v399_v6, %v468_v8  ;;  %473 = vst [vmem:[#allocation2 + $0x2c] sm:$0x1] %v472_v57  ;;  %v647_v26 = vshll.u32 %v600_v48, 16  ;;  %v716_v29 = vld [vmem:[#allocation3 + $0x34] sm:$0x1] }
  0x7f   : > { %470 = vst [vmem:[#allocation2 + $0x28] sm:$0xf] %v469_v17  ;;  %v1937_v15 = vrot.slane %v1935_v53, 5  ;;  %v1941_v25 = vshll.u32 %v1892_v19, 16  ;;  %v562_v62 = vmax.f32 %v4616_v12, 0.0  ;;  %v646_v28 = vrot.slane %v644_v23, 7  ;;  %1443 = vrot.lane.b32.xlu0 %v1392_v37, %s4183_s11 }
  0x80   : > { %v1573_v50 = vsel %vm4285_vm7, %v1568_v34, %v1572_v38  ;;  %v1401_v4 = vrot.slane %v1400_v18, 4  ;;  %v584_v32 = vsel %vm4239_vm3, 0, %v583_v20  ;;  %v782_v39 = vsel %vm4239_vm3, 0, %v781_v24  ;;  %v982_v9 = vld [vmem:[#allocation5 + $0x30] sm:$0x1]  ;;  %v3862_v37 = vld [vmem:[%s4267_s10 + $0xb0] sm:$0xff] }
  0x81   : > { %1648 = vrot.lane.b32.xlu2 %v1573_v50, %s4187_s15  ;;  %v1938_v35 = vor.u32 %v1937_v15, %v1934_v22  ;;  %v4668_v45 = vrot.slane %v1941_v25, 5  ;;  %585 = vst [vmem:[#allocation3 + $0x28] sm:$0x1] %v584_v32  ;;  %v599_v12 = vpack.c.bf16 %v562_v62, %v562_v62  ;;  %v649_v41 = vor.u32 %v647_v26, %v646_v28  ;;  %v787_v59 = vld [vmem:[#allocation4 + $0x38] sm:$0x1] }
  0x82   : > { %v1406_v40 = vsel %vm4285_vm7, %v1401_v4, %v1405_v21  ;;  %v713_v42 = vld [vmem:[#allocation3 + $0x30] sm:$0xf]  ;;  %v650_v16 = vrot.slane %v646_v28, 4  ;;  %v752_v46 = vadd.f32 %v4602_v5, %v4639_v43  ;;  %783 = vst [vmem:[#allocation4 + $0x28] sm:$0x1] %v782_v39  ;;  %v943_v58 = vmul.f32 %v4588_v56, %v3869_v55  ;;  %v287_v17 = vld [vmem:[%s4267_s10 + $0x28] sm:$0xff] }
  0x83   : > { %1445 = vrot.lane.b32.xlu1 %v1406_v40, %s4183_s11  ;;  %v4678_v38 = vrot.slane %v1938_v35, 4  ;;  %v636_v47 = vshrl.u32 %v599_v12, 16  ;;  %v639_v54 = vshll.u32 %v599_v12, 16  ;;  %v714_v61 = vsel %vm4310_vm8, %v649_v41, %v713_v42  ;;  %v710_v3 = vld [vmem:[#allocation3 + $0x2c] sm:$0x1] }
  0x84   : > { %v717_v63 = vsel %vm4239_vm3, %v650_v16, %v716_v29  ;;  %v760_v43 = vmax.f32 %v752_v46, 0.0  ;;  %v983_v44 = vsel %vm4239_vm3, 0, %v982_v9  ;;  %715 = vst [vmem:[#allocation3 + $0x30] sm:$0xf] %v714_v61  ;;  %v951_v33 = vadd.f32 %v4602_v5, %v943_v58  ;;  %v784_v57 = vld [vmem:[#allocation4 + $0x30] sm:$0x1] }
  0x85   : > { %v1525_v6 = vld [vmem:[#allocation2 + $0x2c] sm:$0x1]  ;;  %v1944_v52 = vsel %vm4285_vm7, %v4678_v38, %v4668_v45  ;;  %v638_v14 = vrot.slane %v636_v47, 7  ;;  %v746_v7 = vmul.f32 %v4588_v56, %v3862_v37  ;;  %718 = vst [vmem:[#allocation3 + $0x34] sm:$0x1] %v717_v63  ;;  %v788_v21 = vsel %vm4239_vm3, 0, %v787_v59 }
  0x86   : > { %v1524_v48 = vld [vmem:[#allocation2 + $0x28] sm:$0xf]  ;;  %v1598_v19 = vshll.u32 %v1525_v6, 16  ;;  %v797_v20 = vpack.c.bf16 %v760_v43, %v760_v43  ;;  %v745_v8 = vmul.f32 %v4588_v56, %v3861_v60  ;;  %984 = vst [vmem:[#allocation5 + $0x30] sm:$0x1] %v983_v44  ;;  %v959_v25 = vmax.f32 %v951_v33, 0.0 }
  0x87   : > { %v1589_v22 = vshrl.u32 %v1524_v48, 16  ;;  %v1592_v53 = vshll.u32 %v1524_v48, 16  ;;  %v641_v34 = vor.u32 %v639_v54, %v638_v14  ;;  %v642_v18 = vrot.slane %v638_v14, 4  ;;  %789 = vst [vmem:[#allocation4 + $0x38] sm:$0x1] %v788_v21  ;;  %v3870_v29 = vld [vmem:[%s4267_s10 + $0xf0] sm:$0xff] }
  0x88   : > { %v1600_v23 = vrot.slane %v1598_v19, 5  ;;  %v707_v24 = vld [vmem:[#allocation3 + $0x28] sm:$0xf]  ;;  %v834_v26 = vshrl.u32 %v797_v20, 16  ;;  %v837_v15 = vshll.u32 %v797_v20, 16  ;;  %v996_v35 = vpack.c.bf16 %v959_v25, %v959_v25  ;;  %v289_v25 = vld [vmem:[%s4267_s10 + $0x38] sm:$0xff] }
  0x89   : > { %1811 = vrot.lane.b32.xlu2 %v1748_v27, %s4188_s16  ;;  %v1591_v62 = vrot.slane %v1589_v22, 4  ;;  %v1594_v50 = vrot.slane %v1592_v53, 5  ;;  %v708_v4 = vsel %vm4310_vm8, %v641_v34, %v707_v24  ;;  %v711_v28 = vsel %vm4239_vm3, %v642_v18, %v710_v3  ;;  %v908_v55 = vld [vmem:[#allocation4 + $0x2c] sm:$0x1]  ;;  %v905_v27 = vld [vmem:[#allocation4 + $0x28] sm:$0xf] }
  0x8a   : > { %709 = vst [vmem:[#allocation3 + $0x28] sm:$0xf] %v708_v4  ;;  %v836_v32 = vrot.slane %v834_v26, 7  ;;  %v754_v12 = vadd.f32 %v4602_v5, %v746_v7  ;;  %v753_v39 = vadd.f32 %v4602_v5, %v745_v8  ;;  %v785_v9 = vsel %vm4239_vm3, 0, %v784_v57 }
  0x8b   : > { %v1595_v51 = vor.u32 %v1594_v50, %v1591_v62  ;;  %712 = vst [vmem:[#allocation3 + $0x2c] sm:$0x1] %v711_v28  ;;  %v298_v40 = vmul.f32 %v4588_v56, %v287_v17  ;;  %v548_v41 = vmul.f32 %v4588_v56, %v3854_v30  ;;  %v1472_v42 = vld [vmem:[#allocation3 + $0x30] sm:$0xf]  ;;  %v1040_v47 = vshrl.u32 %v996_v35, 16 }
  0x8c   : > { %v1687_v16 = vld [vmem:[#allocation3 + $0x30] sm:$0xf]  ;;  %v839_v46 = vor.u32 %v837_v15, %v836_v32  ;;  %v840_v37 = vrot.slane %v836_v32, 4  ;;  %v944_v54 = vmul.f32 %v4588_v56, %v3870_v29  ;;  %1493 = vrot.lane.b32.xlu0 %v1472_v42, %s4186_s14  ;;  %v1688_v59 = vld [vmem:[#allocation3 + $0x34] sm:$0x1]  ;;  %v1043_v63 = vshll.u32 %v996_v35, 16 }
  0x8d   : > { %v1596_v58 = vrot.slane %v1595_v51, 4  ;;  %v1764_v60 = vshrl.u32 %v1687_v16, 16  ;;  %v1767_v61 = vshll.u32 %v1687_v16, 16  ;;  %v1773_v3 = vshll.u32 %v1688_v59, 16  ;;  %v1109_v14 = vld [vmem:[#allocation5 + $0x30] sm:$0xf] }
  0x8e   : > { %v906_v43 = vsel %vm4310_vm8, %v839_v46, %v905_v27  ;;  %v909_v44 = vsel %vm4239_vm3, %v840_v37, %v908_v55  ;;  %v4722_v6 = vrot.slane %v1040_v47, 7  ;;  %786 = vst [vmem:[#allocation4 + $0x30] sm:$0x1] %v785_v9  ;;  %v762_v19 = vmax.f32 %v754_v12, 0.0  ;;  %v1127_v15 = vld [vmem:[#allocation5] sm:$0xf] }
  0x8f   : > { %v1601_v33 = vsel %vm4285_vm7, %v1596_v58, %v1600_v23  ;;  %v1766_v7 = vrot.slane %v1764_v60, 4  ;;  %v1769_v48 = vrot.slane %v1767_v61, 5  ;;  %907 = vst [vmem:[#allocation4 + $0x28] sm:$0xf] %v906_v43  ;;  %v1775_v20 = vrot.slane %v1773_v3, 5  ;;  %v1436_v60 = vpop.permute.xlu1 %1435 }
  0x90   : > { %1652 = vrot.lane.b32.xlu1 %v1601_v33, %s4187_s15  ;;  %910 = vst [vmem:[#allocation4 + $0x2c] sm:$0x1] %v909_v44  ;;  %v1045_v21 = vor.u32 %v1043_v63, %v4722_v6  ;;  %v761_v8 = vmax.f32 %v753_v39, 0.0  ;;  %v4729_v57 = vadd.f32 %v4602_v5, %v298_v40  ;;  %v799_v34 = vpack.c.bf16 %v762_v19, %v762_v19  ;;  %v917_v9 = vld [vmem:[#allocation4 + $0x38] sm:$0xf] }
  0x91   : > { %2019 = vrot.lane.b32.xlu2 %v1944_v52, %s4189_s17  ;;  %v1770_v22 = vor.u32 %v1769_v48, %v1766_v7  ;;  %v1685_v53 = vld [vmem:[#allocation3 + $0x28] sm:$0xf]  ;;  %v1275_v38 = vpop.permute.xlu0 %1274  ;;  %1135 = vst.msk [vmem:[#allocation7] sm:$0xf] %vm320_vm0, %v1127_v15  ;;  %v556_v39 = vadd.f32 %v4602_v5, %v548_v41  ;;  %v920_v40 = vld [vmem:[#allocation4 + $0x3c] sm:$0x1]  ;;  %v952_v46 = vadd.f32 %v4602_v5, %v944_v54 }
  0x92   : > { %v1686_v18 = vld [vmem:[#allocation3 + $0x2c] sm:$0x1]  ;;  %v1750_v17 = vshrl.u32 %v1685_v53, 16  ;;  %v1753_v23 = vshll.u32 %v1685_v53, 16  ;;  %v1110_v24 = vsel %vm4310_vm8, %v1045_v21, %v1109_v14  ;;  %v798_v26 = vpack.c.bf16 %v761_v8, %v761_v8  ;;  %1299 = vst.msk [vmem:[#allocation7] sm:$0xf] %vm1298_vm10, %v1275_v38 }
  0x93   : > { %v1771_v62 = vrot.slane %v1770_v22, 4  ;;  %v1759_v50 = vshll.u32 %v1686_v18, 16  ;;  %1111 = vst [vmem:[#allocation5 + $0x30] sm:$0xf] %v1110_v24  ;;  %v850_v4 = vshrl.u32 %v799_v34, 16  ;;  %v853_v45 = vshll.u32 %v799_v34, 16 }
  0x94   : > { %v1752_v52 = vrot.slane %v1750_v17, 4  ;;  %v1755_v28 = vrot.slane %v1753_v23, 5  ;;  %v842_v29 = vshrl.u32 %v798_v26, 16  ;;  %v845_v32 = vshll.u32 %v798_v26, 16  ;;  %1459 = vst.msk [vmem:[#allocation7] sm:$0xf] %vm524_vm9, %v1436_v60 }
  0x95   : > { %v1776_v55 = vsel %vm4285_vm7, %v1771_v62, %v1775_v20  ;;  %v1761_v35 = vrot.slane %v1759_v50, 5  ;;  %v852_v12 = vrot.slane %v850_v4, 7  ;;  %v317_v16 = vmax.f32 %v4729_v57, 0.0  ;;  %v344_v48 = vld [vmem:[#allocation2 + $0x30] sm:$0x1]  ;;  %v4752_v57 = vpop.permute.xlu2 %1483 }
  0x96   : > { %v1756_v30 = vor.u32 %v1755_v28, %v1752_v52  ;;  %v1153_v51 = vld [vmem:[#allocation4 + $0x28] sm:$0xf]  ;;  %v844_v42 = vrot.slane %v842_v29, 7  ;;  %v300_v63 = vmul.f32 %v4588_v56, %v289_v25  ;;  %v914_v22 = vld [vmem:[#allocation4 + $0x34] sm:$0x1]  ;;  %v345_v62 = vsel %vm4239_vm3, 0, %v344_v48 }
  0x97   : > { %v1895_v27 = vld [vmem:[#allocation4 + $0x28] sm:$0xf]  ;;  %v1154_v37 = vld [vmem:[#allocation4 + $0x2c] sm:$0x1]  ;;  %v1233_v47 = vshrl.u32 %v1153_v51, 16  ;;  %v1236_v58 = vshll.u32 %v1153_v51, 16  ;;  %v855_v61 = vor.u32 %v853_v45, %v852_v12  ;;  %v4761_v45 = vpack.c.bf16 %v317_v16, %v317_v16 }
  0x98   : > { %v1896_v59 = vld [vmem:[#allocation4 + $0x2c] sm:$0x1]  ;;  %1815 = vrot.lane.b32.xlu1 %v1776_v55, %s4188_s16  ;;  %v1757_v41 = vrot.slane %v1756_v30, 4  ;;  %v1242_v3 = vshll.u32 %v1154_v37, 16  ;;  %v1960_v43 = vshrl.u32 %v1895_v27, 16  ;;  %v1963_v44 = vshll.u32 %v1895_v27, 16 }
  0x99   : > { %v1235_v14 = vrot.slane %v1233_v47, 4  ;;  %v1238_v33 = vrot.slane %v1236_v58, 5  ;;  %v1969_v7 = vshll.u32 %v1896_v59, 16  ;;  %v856_v54 = vrot.slane %v852_v12, 4  ;;  %v911_v23 = vld [vmem:[#allocation4 + $0x30] sm:$0xf] }
  0x9a   : > { %v1762_v19 = vsel %vm4285_vm7, %v1757_v41, %v1761_v35  ;;  %v1244_v20 = vrot.slane %v1242_v3, 5  ;;  %v1962_v21 = vrot.slane %v1960_v43, 4  ;;  %v1965_v8 = vrot.slane %v1963_v44, 5  ;;  %v589_v24 = vld [vmem:[#allocation3 + $0x38] sm:$0x1]  ;;  %v288_v35 = vld [vmem:[%s4267_s10 + $0x30] sm:$0xff] }
  0x9b   : > { %1813 = vrot.lane.b32.xlu0 %v1762_v19, %s4188_s16  ;;  %v1239_v53 = vor.u32 %v1238_v33, %v1235_v14  ;;  %v1971_v34 = vrot.slane %v1969_v7, 5  ;;  %v918_v18 = vsel %vm4310_vm8, %v855_v61, %v917_v9  ;;  %v921_v17 = vsel %vm4239_vm3, %v856_v54, %v920_v40  ;;  %v985_v50 = vld [vmem:[#allocation5 + $0x38] sm:$0x1]  ;;  %346 = vst [vmem:[#allocation2 + $0x30] sm:$0x1] %v345_v62  ;;  %v4115_v59 = vld [vmem:[%s5512_s3 + $0x38] sm:$0xff]  ;;  %v4785_v61 = vpop.permute.xlu1 %1854 }
  0x9c   : > { %v1966_v26 = vor.u32 %v1965_v8, %v1962_v21  ;;  %919 = vst [vmem:[#allocation4 + $0x38] sm:$0xf] %v918_v18  ;;  %v847_v15 = vor.u32 %v845_v32, %v844_v42  ;;  %v848_v25 = vrot.slane %v844_v42, 4  ;;  %v564_v38 = vmax.f32 %v556_v39, 0.0  ;;  %v1843_v9 = vld [vmem:[#allocation5 + $0x30] sm:$0xf]  ;;  %2325 = vmatpush.bf16.msra.mxu0 %v4115_v59 }
  0x9d   : > { %v1240_v4 = vrot.slane %v1239_v53, 4  ;;  %922 = vst [vmem:[#allocation4 + $0x3c] sm:$0x1] %v921_v17  ;;  %v590_v52 = vsel %vm4239_vm3, 0, %v589_v24  ;;  %v960_v55 = vmax.f32 %v952_v46, 0.0  ;;  %v402_v30 = vshrl.u32 %v4761_v45, 16  ;;  %v4793_v21 = vpop.permute.xlu2 %1485 }
  0x9e   : > { %v1967_v28 = vrot.slane %v1966_v26, 4  ;;  %v912_v29 = vsel %vm4310_vm8, %v847_v15, %v911_v23  ;;  %v915_v32 = vsel %vm4239_vm3, %v848_v25, %v914_v22  ;;  %v405_v39 = vshll.u32 %v4761_v45, 16  ;;  %v477_v40 = vld [vmem:[#allocation2 + $0x34] sm:$0x1]  ;;  %591 = vst [vmem:[#allocation3 + $0x38] sm:$0x1] %v590_v52 }
  0x9f   : > { %v1245_v12 = vsel %vm4285_vm7, %v1240_v4, %v1244_v20  ;;  %913 = vst [vmem:[#allocation4 + $0x30] sm:$0xf] %v912_v29  ;;  %v601_v51 = vpack.c.bf16 %v564_v38, %v564_v38  ;;  %v986_v42 = vsel %vm4239_vm3, 0, %v985_v50  ;;  %v997_v16 = vpack.c.bf16 %v960_v55, %v960_v55  ;;  %v1128_v43 = vld [vmem:[#allocation5 + $0x8] sm:$0xf]  ;;  %v3855_v15 = vld [vmem:[%s4267_s10 + $0x78] sm:$0xff] }
  0xa0   : > { %1284 = vrot.lane.b32.xlu2 %v1245_v12, %s4184_s12  ;;  %v1972_v27 = vsel %vm4285_vm7, %v1967_v28, %v1971_v34  ;;  %916 = vst [vmem:[#allocation4 + $0x34] sm:$0x1] %v915_v32  ;;  %v311_v46 = vadd.f32 %v4602_v5, %v300_v63  ;;  %v404_v37 = vrot.slane %v402_v30, 7  ;;  %v299_v60 = vmul.f32 %v4588_v56, %v288_v35  ;;  %v4787_v44 = vld [vmem:[#allocation2 + $0x40] sm:$0x1] }
  0xa1   : > { %2023 = vrot.lane.b32.xlu1 %v1972_v27, %s4189_s17  ;;  %v652_v47 = vshrl.u32 %v601_v51, 16  ;;  %v655_v58 = vshll.u32 %v601_v51, 16  ;;  %987 = vst [vmem:[#allocation5 + $0x38] sm:$0x1] %v986_v42  ;;  %v1048_v41 = vshrl.u32 %v997_v16, 16  ;;  %v1051_v3 = vshll.u32 %v997_v16, 16 }
  0xa2   : > { %v1471_v63 = vld [vmem:[#allocation3 + $0x28] sm:$0xf]  ;;  %v407_v33 = vor.u32 %v405_v39, %v404_v37  ;;  %v408_v7 = vrot.slane %v404_v37, 4  ;;  %1136 = vst.msk [vmem:[#allocation7 + $0x8] sm:$0xf] %vm320_vm0, %v1128_v43  ;;  %v319_v53 = vmax.f32 %v311_v46, 0.0  ;;  %v310_v26 = vadd.f32 %v4602_v5, %v299_v60 }
  0xa3   : > { %1864 = vrot.lane.b32.xlu0 %v1843_v9, %s4185_s13  ;;  %v1157_v14 = vld [vmem:[#allocation4 + $0x38] sm:$0xf]  ;;  %v4790_v54 = vrot.slane %v652_v47, 7  ;;  %v1050_v8 = vrot.slane %v1048_v41, 7  ;;  %v1118_v22 = vld [vmem:[#allocation5 + $0x3c] sm:$0x1]  ;;  %v549_v60 = vmul.f32 %v4588_v56, %v3855_v15 }
  0xa4   : > { %v1158_v48 = vld [vmem:[#allocation4 + $0x3c] sm:$0x1]  ;;  %v1261_v19 = vshrl.u32 %v1157_v14, 16  ;;  %v1264_v20 = vshll.u32 %v1157_v14, 16  ;;  %v474_v18 = vld [vmem:[#allocation2 + $0x30] sm:$0xf]  ;;  %v478_v17 = vsel %vm4239_vm3, %v408_v7, %v477_v40  ;;  %v4806_v27 = vpack.c.bf16 %v319_v53, %v319_v53 }
  0xa5   : > { %v1270_v34 = vshll.u32 %v1158_v48, 16  ;;  %v657_v23 = vor.u32 %v655_v58, %v4790_v54  ;;  %v325_v24 = vld [vmem:[#allocation2 + $0x4] sm:$0x1]  ;;  %v475_v4 = vsel %vm4310_vm8, %v407_v33, %v474_v18  ;;  %479 = vst [vmem:[#allocation2 + $0x34] sm:$0x1] %v478_v17  ;;  %v1053_v38 = vor.u32 %v1051_v3, %v1050_v8  ;;  %v1438_v33 = vpop.permute.xlu1 %1437  ;;  %v4828_v18 = vpop.permute.xlu2 %1856 }
  0xa6   : > { %v1263_v25 = vrot.slane %v1261_v19, 4  ;;  %v1266_v62 = vrot.slane %v1264_v20, 5  ;;  %v1155_v50 = vld [vmem:[#allocation4 + $0x30] sm:$0xf]  ;;  %v1054_v32 = vrot.slane %v1050_v8, 4  ;;  %v351_v55 = vsel %vm4239_vm3, 0, %v4787_v44  ;;  %v1277_v51 = vpop.permute.xlu0 %1276 }
  0xa7   : > { %v1156_v52 = vld [vmem:[#allocation4 + $0x34] sm:$0x1]  ;;  %v1247_v28 = vshrl.u32 %v1155_v50, 16  ;;  %v1250_v29 = vshll.u32 %v1155_v50, 16  ;;  %v1272_v12 = vrot.slane %v1270_v34, 5  ;;  %v326_v58 = vsel %vm4239_vm3, 0, %v325_v24 }
  0xa8   : > { %1491 = vrot.lane.b32.xlu2 %v1471_v63, %s4186_s14  ;;  %v1267_v35 = vor.u32 %v1266_v62, %v1263_v25  ;;  %v1256_v30 = vshll.u32 %v1156_v52, 16  ;;  %476 = vst [vmem:[#allocation2 + $0x30] sm:$0xf] %v475_v4  ;;  %v719_v39 = vld [vmem:[#allocation3 + $0x38] sm:$0xf]  ;;  %v1119_v46 = vsel %vm4239_vm3, %v1054_v32, %v1118_v22  ;;  %v418_v44 = vshrl.u32 %v4806_v27, 16 }
  0xa9   : > { %v1249_v9 = vrot.slane %v1247_v28, 4  ;;  %v1252_v40 = vrot.slane %v1250_v29, 5  ;;  %v720_v42 = vsel %vm4310_vm8, %v657_v23, %v719_v39  ;;  %v1115_v16 = vld [vmem:[#allocation5 + $0x38] sm:$0xf]  ;;  %1300 = vst.msk [vmem:[#allocation7 + $0x8] sm:$0xf] %vm1298_vm10, %v1277_v51  ;;  %v557_v62 = vadd.f32 %v4602_v5, %v549_v60 }
  0xaa   : > { %v1268_v37 = vrot.slane %v1267_v35, 4  ;;  %721 = vst [vmem:[#allocation3 + $0x38] sm:$0xf] %v720_v42  ;;  %v1116_v47 = vsel %vm4310_vm8, %v1053_v38, %v1115_v16  ;;  %v567_v59 = vld [vmem:[#allocation3 + $0x4] sm:$0x1]  ;;  %v1258_v3 = vrot.slane %v1256_v30, 5 }
  0xab   : > { %v1253_v41 = vor.u32 %v1252_v40, %v1249_v9  ;;  %1117 = vst [vmem:[#allocation5 + $0x38] sm:$0xf] %v1116_v47  ;;  %v568_v43 = vsel %vm4239_vm3, 0, %v567_v59  ;;  %v4114_v63 = vld [vmem:[%s5512_s3 + $0x30] sm:$0xff]  ;;  %v421_v7 = vshll.u32 %v4806_v27, 16  ;;  %v318_v19 = vmax.f32 %v310_v26, 0.0 }
  0xac   : > { %v1273_v14 = vsel %vm4285_vm7, %v1268_v37, %v1272_v12  ;;  %1120 = vst [vmem:[#allocation5 + $0x3c] sm:$0x1] %v1119_v46  ;;  %v489_v48 = vld [vmem:[#allocation2 + $0x44] sm:$0x1]  ;;  %v347_v20 = vld [vmem:[#allocation2 + $0x38] sm:$0x1]  ;;  %2326 = vmatpush.bf16.msra.mxu0 %v4114_v63 }
  0xad   : > { %1288 = vrot.lane.b32.xlu1 %v1273_v14, %s4184_s12  ;;  %v1254_v8 = vrot.slane %v1253_v41, 4  ;;  %v1527_v22 = vld [vmem:[#allocation2 + $0x34] sm:$0x1]  ;;  %327 = vst [vmem:[#allocation2 + $0x4] sm:$0x1] %v326_v58  ;;  %v420_v53 = vrot.slane %v418_v44, 7  ;;  %v4832_v23 = vpack.c.bf16 %v318_v19, %v318_v19 }
  0xae   : > { %v1612_v34 = vshll.u32 %v1527_v22, 16  ;;  %569 = vst [vmem:[#allocation3 + $0x4] sm:$0x1] %v568_v43  ;;  %v348_v17 = vsel %vm4239_vm3, 0, %v347_v20  ;;  %vm1507_vm11 = vcmask 519552   ;;  %v3863_v24 = vld [vmem:[%s4267_s10 + $0xb8] sm:$0xff]  ;;  %v1645_v28 = vpop.permute.xlu0 %1644 }
  0xaf   : > { %v1259_v26 = vsel %vm4285_vm7, %v1254_v8, %v1258_v3  ;;  %v1526_v15 = vld [vmem:[#allocation2 + $0x30] sm:$0xf]  ;;  %1460 = vst.msk [vmem:[#allocation7 + $0x8] sm:$0xf] %vm524_vm9, %v1438_v33  ;;  %v424_v25 = vrot.slane %v420_v53, 4  ;;  %vm1668_vm12 = vcmask 650752   ;;  %v747_v46 = vmul.f32 %v4588_v56, %v3863_v24 }
  0xb0   : > { %1286 = vrot.lane.b32.xlu0 %v1259_v26, %s4184_s12  ;;  %v1603_v50 = vshrl.u32 %v1526_v15, 16  ;;  %v1606_v4 = vshll.u32 %v1526_v15, 16  ;;  %v1614_v38 = vrot.slane %v1612_v34, 5  ;;  %352 = vst [vmem:[#allocation2 + $0x40] sm:$0x1] %v351_v55  ;;  %v410_v52 = vshrl.u32 %v4832_v23, 16 }
  0xb1   : > { %v1473_v29 = vld [vmem:[#allocation3 + $0x38] sm:$0xf]  ;;  %v490_v32 = vsel %vm4239_vm3, %v424_v25, %v489_v48  ;;  %349 = vst [vmem:[#allocation2 + $0x38] sm:$0x1] %v348_v17  ;;  %v413_v35 = vshll.u32 %v4832_v23, 16  ;;  %vm1829_vm13 = vcmask 781952   ;;  %v423_v58 = vor.u32 %v421_v7, %v420_v53  ;;  %v1806_v25 = vpop.permute.xlu2 %1805 }
  0xb2   : > { %v1605_v12 = vrot.slane %v1603_v50, 4  ;;  %v1608_v30 = vrot.slane %v1606_v4, 5  ;;  %v1321_v39 = vld [vmem:[#allocation5 + $0x38] sm:$0xf]  ;;  %491 = vst [vmem:[#allocation2 + $0x44] sm:$0x1] %v490_v32  ;;  %v1647_v53 = vpop.permute.xlu1 %1646  ;;  %v755_v4 = vadd.f32 %v4602_v5, %v747_v46 }
  0xb3   : > { %v483_v51 = vld [vmem:[#allocation2 + $0x3c] sm:$0x1]  ;;  %v1322_v9 = vld [vmem:[#allocation5 + $0x3c] sm:$0x1]  ;;  %v1422_v40 = vshrl.u32 %v1321_v39, 16  ;;  %v1425_v42 = vshll.u32 %v1321_v39, 16 }
  0xb4   : > { %v412_v55 = vrot.slane %v410_v52, 7  ;;  %v4113_v16 = vld [vmem:[%s5512_s3 + $0x28] sm:$0xff]  ;;  %v1609_v37 = vor.u32 %v1608_v30, %v1605_v12  ;;  %v1431_v47 = vshll.u32 %v1322_v9, 16  ;;  %v1897_v59 = vld [vmem:[#allocation4 + $0x30] sm:$0xf]  ;;  %v565_v41 = vmax.f32 %v557_v62, 0.0 }
  0xb5   : > { %v1898_v60 = vld [vmem:[#allocation4 + $0x34] sm:$0x1]  ;;  %1495 = vrot.lane.b32.xlu1 %v1473_v29, %s4186_s14  ;;  %v1424_v3 = vrot.slane %v1422_v40, 4  ;;  %v1427_v43 = vrot.slane %v1425_v42, 5  ;;  %1508 = vst.msk [vmem:[#allocation7] sm:$0xf] %vm1507_vm11, %v4752_v57  ;;  %2327 = vmatpush.bf16.msra.mxu0 %v4113_v16 }
  0xb6   : > { %v415_v44 = vor.u32 %v413_v35, %v412_v55  ;;  %v416_v63 = vrot.slane %v412_v55, 4  ;;  %v1610_v14 = vrot.slane %v1609_v37, 4  ;;  %v1433_v33 = vrot.slane %v1431_v47, 5  ;;  %1669 = vst.msk [vmem:[#allocation7] sm:$0xf] %vm1668_vm12, %v1645_v28  ;;  %v4112_v57 = vld [vmem:[%s5512_s3 + $0x20] sm:$0xff] }
  0xb7   : > { %v1974_v48 = vshrl.u32 %v1897_v59, 16  ;;  %v1977_v56 = vshll.u32 %v1897_v59, 16  ;;  %v1428_v7 = vor.u32 %v1427_v43, %v1424_v3  ;;  %v486_v19 = vld [vmem:[#allocation2 + $0x40] sm:$0xf]  ;;  %v1983_v8 = vshll.u32 %v1898_v60, 16  ;;  %v4111_v30 = vld [vmem:[%s5512_s3 + $0x18] sm:$0xff] }
  0xb8   : > { %v484_v20 = vsel %vm4239_vm3, %v416_v63, %v483_v51  ;;  %1509 = vst.msk [vmem:[#allocation7 + $0x8] sm:$0xf] %vm1507_vm11, %v4793_v21  ;;  %v602_v22 = vpack.c.bf16 %v565_v41, %v565_v41  ;;  %v1615_v34 = vsel %vm4285_vm7, %v1610_v14, %v1614_v38  ;;  %v487_v17 = vsel %vm4310_vm8, %v423_v58, %v486_v19  ;;  %v480_v24 = vld [vmem:[#allocation2 + $0x38] sm:$0xf]  ;;  %v592_v12 = vld [vmem:[#allocation3 + $0x40] sm:$0x1] }
  0xb9   : > { %485 = vst [vmem:[#allocation2 + $0x3c] sm:$0x1] %v484_v20  ;;  %v1976_v26 = vrot.slane %v1974_v48, 4  ;;  %v1979_v15 = vrot.slane %v1977_v56, 5  ;;  %1654 = vrot.lane.b32.xlu2 %v1615_v34, %s4187_s15  ;;  %v1429_v21 = vrot.slane %v1428_v7, 4  ;;  %v481_v50 = vsel %vm4310_vm8, %v415_v44, %v480_v24  ;;  %2328 = vmatpush.bf16.msra.mxu0 %v4112_v57  ;;  %v1808_v29 = vpop.permute.xlu0 %1807  ;;  %v4110_v14 = vld [vmem:[%s5512_s3 + $0x10] sm:$0xff] }
  0xba   : > { %488 = vst [vmem:[#allocation2 + $0x40] sm:$0xf] %v487_v17  ;;  %v1531_v62 = vld [vmem:[#allocation2 + $0x44] sm:$0x1]  ;;  %v660_v28 = vshrl.u32 %v602_v22, 16  ;;  %v4869_v35 = vrot.slane %v1983_v8, 5 }
  0xbb   : > { %v1640_v38 = vshll.u32 %v1531_v62, 16  ;;  %482 = vst [vmem:[#allocation2 + $0x38] sm:$0xf] %v481_v50  ;;  %v1980_v52 = vor.u32 %v1979_v15, %v1976_v26  ;;  %v1434_v32 = vsel %vm4285_vm7, %v1429_v21, %v1433_v33  ;;  %v1842_v5 = vld [vmem:[#allocation5 + $0x28] sm:$0xf]  ;;  %v593_v51 = vsel %vm4239_vm3, 0, %v592_v12 }
  0xbc   : > { %1830 = vst.msk [vmem:[#allocation7] sm:$0xf] %vm1829_vm13, %v1806_v25  ;;  %1449 = vrot.lane.b32.xlu0 %v1434_v32, %s4183_s11  ;;  %v662_v9 = vrot.slane %v660_v28, 7  ;;  %v663_v40 = vshll.u32 %v602_v22, 16  ;;  %v728_v42 = vld [vmem:[#allocation3 + $0x44] sm:$0x1] }
  0xbd   : > { %v4876_v39 = vrot.slane %v1640_v38, 5  ;;  %594 = vst [vmem:[#allocation3 + $0x40] sm:$0x1] %v593_v51  ;;  %2329 = vmatpush.bf16.msra.mxu0 %v4111_v30  ;;  %v1046_v55 = vrot.slane %v4722_v6, 4  ;;  %v1112_v16 = vld [vmem:[#allocation5 + $0x34] sm:$0x1]  ;;  %v4887_v43 = vpop.permute.xlu1 %2017 }
  0xbe   : > { %v763_v46 = vmax.f32 %v755_v4, 0.0  ;;  %v4881_v37 = vrot.slane %v1980_v52, 4  ;;  %v666_v47 = vrot.slane %v662_v9, 4  ;;  %1670 = vst.msk [vmem:[#allocation7 + $0x8] sm:$0xf] %vm1668_vm12, %v1647_v53  ;;  %vm1878_vm14 = vcmask 913152  }
  0xbf   : > { %v1319_v58 = vld [vmem:[#allocation5 + $0x30] sm:$0xf]  ;;  %1831 = vst.msk [vmem:[#allocation7 + $0x8] sm:$0xf] %vm1829_vm13, %v1808_v29  ;;  %v1113_v60 = vsel %vm4239_vm3, %v1046_v55, %v1112_v16  ;;  %v665_v7 = vor.u32 %v663_v40, %v662_v9  ;;  %v790_v57 = vld [vmem:[#allocation4 + $0x40] sm:$0x1]  ;;  %v1279_v16 = vpop.permute.xlu2 %1278 }
  0xc0   : > { %v1529_v59 = vld [vmem:[#allocation2 + $0x3c] sm:$0x1]  ;;  %v1408_v41 = vshrl.u32 %v1319_v58, 16  ;;  %v1411_v3 = vshll.u32 %v1319_v58, 16  ;;  %v729_v63 = vsel %vm4239_vm3, %v666_v47, %v728_v42  ;;  %1114 = vst [vmem:[#allocation5 + $0x34] sm:$0x1] %v1113_v60  ;;  %v800_v19 = vpack.c.bf16 %v763_v46, %v763_v46 }
  0xc1   : > { %v1530_v6 = vld [vmem:[#allocation2 + $0x40] sm:$0xf]  ;;  %v1626_v44 = vshll.u32 %v1529_v59, 16  ;;  %1862 = vrot.lane.b32.xlu2 %v1842_v5, %s4185_s13  ;;  %730 = vst [vmem:[#allocation3 + $0x44] sm:$0x1] %v729_v63  ;;  %2330 = vmatpush.bf16.msra.mxu0 %v4110_v14  ;;  %v4895_v34 = vpop.permute.xlu0 %2015  ;;  %v791_v15 = vsel %vm4239_vm3, 0, %v790_v57  ;;  %v1986_v4 = vsel %vm4285_vm7, %v4881_v37, %v4869_v35 }
  0xc2   : > { %v1631_v33 = vshrl.u32 %v1530_v6, 16  ;;  %v1634_v48 = vshll.u32 %v1530_v6, 16  ;;  %v1528_v56 = vld [vmem:[#allocation2 + $0x38] sm:$0xf]  ;;  %v1410_v53 = vrot.slane %v1408_v41, 4  ;;  %v1413_v26 = vrot.slane %v1411_v3, 5 }
  0xc3   : > { %v1617_v20 = vshrl.u32 %v1528_v56, 16  ;;  %v1620_v8 = vshll.u32 %v1528_v56, 16  ;;  %v1628_v22 = vrot.slane %v1626_v44, 5  ;;  %792 = vst [vmem:[#allocation4 + $0x40] sm:$0x1] %v791_v15  ;;  %v858_v52 = vshrl.u32 %v800_v19, 16 }
  0xc4   : > { %v1633_v17 = vrot.slane %v1631_v33, 4  ;;  %v1636_v24 = vrot.slane %v1634_v48, 5  ;;  %v725_v62 = vld [vmem:[#allocation3 + $0x40] sm:$0xf]  ;;  %v1900_v29 = vld [vmem:[#allocation4 + $0x3c] sm:$0x1]  ;;  %v1414_v30 = vor.u32 %v1413_v26, %v1410_v53 }
  0xc5   : > { %v1619_v25 = vrot.slane %v1617_v20, 4  ;;  %v1622_v21 = vrot.slane %v1620_v8, 5  ;;  %v726_v38 = vsel %vm4310_vm8, %v665_v7, %v725_v62  ;;  %v1899_v28 = vld [vmem:[#allocation4 + $0x38] sm:$0xf]  ;;  %v861_v5 = vshll.u32 %v800_v19, 16  ;;  %v4108_v46 = vld [vmem:[%s5512_s3] sm:$0xff]  ;;  %v1440_v37 = vpop.permute.xlu1 %1439 }
  0xc6   : > { %v1637_v50 = vor.u32 %v1636_v24, %v1633_v17  ;;  %v4109_v32 = vld [vmem:[%s5512_s3 + $0x8] sm:$0xff]  ;;  %727 = vst [vmem:[#allocation3 + $0x40] sm:$0xf] %v726_v38  ;;  %v926_v51 = vld [vmem:[#allocation4 + $0x44] sm:$0x1]  ;;  %v1988_v9 = vshrl.u32 %v1899_v28, 16 }
  0xc7   : > { %v1623_v12 = vor.u32 %v1622_v21, %v1619_v25  ;;  %v1320_v42 = vld [vmem:[#allocation5 + $0x34] sm:$0x1]  ;;  %v860_v55 = vrot.slane %v858_v52, 7  ;;  %v1991_v35 = vshll.u32 %v1899_v28, 16  ;;  %2331 = vmatpush.bf16.msra.mxu0 %v4109_v32  ;;  %v1997_v60 = vshll.u32 %v1900_v29, 16  ;;  %s4099_s12 = sshll.u32 %s5557_s25, 6 }
  0xc8   : > { %v1638_v40 = vrot.slane %v1637_v50, 4  ;;  %v1692_v58 = vld [vmem:[#allocation3 + $0x44] sm:$0x1]  ;;  %v1417_v59 = vshll.u32 %v1320_v42, 16  ;;  %1880 = vst.msk [vmem:[#allocation7 + $0x8] sm:$0xf] %vm1878_vm14, %v4828_v18  ;;  %s5488_s20 = scalar_lea.vmem %s5516_s7, %s4099_s12 }
  0xc9   : > { %v1624_v47 = vrot.slane %v1623_v12, 4  ;;  %2025 = vrot.lane.b32.xlu2 %v1986_v4, %s4189_s17  ;;  %v863_v3 = vor.u32 %v861_v5, %v860_v55  ;;  %v864_v6 = vrot.slane %v860_v55, 4  ;;  %v1129_v44 = vld [vmem:[#allocation5 + $0x10] sm:$0xf]  ;;  %v1415_v14 = vrot.slane %v1414_v30, 4  ;;  %v3871_v55 = vld [vmem:[%s4267_s10 + $0xf8] sm:$0xff] }
  0xca   : > { %v1643_v41 = vsel %vm4285_vm7, %v1638_v40, %v4876_v39  ;;  %v1419_v33 = vrot.slane %v1417_v59, 5  ;;  %v1990_v48 = vrot.slane %v1988_v9, 4  ;;  %1879 = vst.msk [vmem:[#allocation7] sm:$0xf] %vm1878_vm14, %v4785_v61  ;;  %v1281_v39 = vpop.permute.xlu0 %1280  ;;  %v923_v56 = vld [vmem:[#allocation4 + $0x40] sm:$0xf] }
  0xcb   : > { %1658 = vrot.lane.b32.xlu1 %v1643_v41, %s4187_s15  ;;  %v1629_v63 = vsel %vm4285_vm7, %v1624_v47, %v1628_v22  ;;  %v927_v7 = vsel %vm4239_vm3, %v864_v6, %v926_v51  ;;  %v1993_v18 = vrot.slane %v1991_v35, 5  ;;  %vm2039_vm15 = vcmask 1044352   ;;  %1137 = vst.msk [vmem:[#allocation7 + $0x10] sm:$0xf] %vm320_vm0, %v1129_v44  ;;  %2332 = vmatpush.bf16.msra.mxu0 %v4108_v46  ;;  %v4116_v61 = vld [vmem:[%s5512_s3 + $0x40] sm:$0xff] }
  0xcc   : > { %1656 = vrot.lane.b32.xlu0 %v1629_v63, %s4187_s15  ;;  %v1801_v19 = vshll.u32 %v1692_v58, 16  ;;  %v924_v20 = vsel %vm4310_vm8, %v863_v3, %v923_v56  ;;  %928 = vst [vmem:[#allocation4 + $0x44] sm:$0x1] %v927_v7  ;;  %v4928_v8 = vrot.slane %v1997_v60, 5  ;;  %v1844_v22 = vld [vmem:[#allocation5 + $0x38] sm:$0xf]  ;;  %v1420_v15 = vsel %vm4285_vm7, %v1415_v14, %v1419_v33  ;;  %2361 = vmatpush.bf16.msra.mxu1 %v4116_v61 }
  0xcd   : > { %v1691_v53 = vld [vmem:[#allocation3 + $0x40] sm:$0xf]  ;;  %925 = vst [vmem:[#allocation4 + $0x40] sm:$0xf] %v924_v20  ;;  %v1130_v57 = vld [vmem:[#allocation5 + $0x18] sm:$0xf]  ;;  %4148 = vmatpush.bf16.msra.mxu2 %v4116_v61  ;;  %v1994_v21 = vor.u32 %v1993_v18, %v1990_v48  ;;  %v1490_v4 = vpop.permute.xlu1 %1489 }
  0xce   : > { %v2048_v17 = vld [vmem:[#allocation5 + $0x8] sm:$0xf]  ;;  %v1792_v24 = vshrl.u32 %v1691_v53, 16  ;;  %v1795_v26 = vshll.u32 %v1691_v53, 16  ;;  %2041 = vst.msk [vmem:[#allocation7 + $0x8] sm:$0xf] %vm2039_vm15, %v4887_v43  ;;  %v1442_v43 = vpop.permute.xlu2 %1441 }
  0xcf   : > { %v2049_v25 = vld [vmem:[#allocation5 + $0xc] sm:$0x1]  ;;  %2040 = vst.msk [vmem:[#allocation7] sm:$0xf] %vm2039_vm15, %v4895_v34  ;;  %v2050_v62 = vld [vmem:[#allocation5 + $0x10] sm:$0xf] }
  0xd0   : > { %v2051_v50 = vld [vmem:[#allocation5 + $0x14] sm:$0x1]  ;;  %v1794_v38 = vrot.slane %v1792_v24, 4  ;;  %v1797_v52 = vrot.slane %v1795_v26, 5  ;;  %1301 = vst.msk [vmem:[#allocation7 + $0x10] sm:$0xf] %vm1298_vm10, %v1279_v16 }
  0xd1   : > { %v2065_v28 = vshrl.u32 %v2048_v17, 16  ;;  %v2068_v29 = vshll.u32 %v2048_v17, 16  ;;  %v1803_v32 = vrot.slane %v1801_v19, 5  ;;  %1447 = vrot.lane.b32.xlu2 %v1420_v15, %s4183_s11  ;;  %1461 = vst.msk [vmem:[#allocation7 + $0x10] sm:$0xf] %vm524_vm9, %v1440_v37  ;;  %v2074_v12 = vshll.u32 %v2049_v25, 16 }
  0xd2   : > { %v2079_v30 = vshrl.u32 %v2050_v62, 16  ;;  %v2082_v5 = vshll.u32 %v2050_v62, 16  ;;  %v1798_v34 = vor.u32 %v1797_v52, %v1794_v38  ;;  %1138 = vst.msk [vmem:[#allocation7 + $0x18] sm:$0xf] %vm320_vm0, %v1130_v57  ;;  %v2088_v40 = vshll.u32 %v2051_v50, 16  ;;  %v1488_v42 = vpop.permute.xlu0 %1487 }
  0xd3   : > { %1866 = vrot.lane.b32.xlu1 %v1844_v22, %s4185_s13  ;;  %v2067_v51 = vrot.slane %v2065_v28, 4  ;;  %v2070_v9 = vrot.slane %v2068_v29, 5  ;;  %v1902_v35 = vld [vmem:[#allocation4 + $0x44] sm:$0x1]  ;;  %v1995_v16 = vrot.slane %v1994_v21, 4  ;;  %v2076_v60 = vrot.slane %v2074_v12, 5 }
  0xd4   : > { %1302 = vst.msk [vmem:[#allocation7 + $0x18] sm:$0xf] %vm1298_vm10, %v1281_v39  ;;  %v2081_v46 = vrot.slane %v2079_v30, 4  ;;  %v1799_v37 = vrot.slane %v1798_v34, 4  ;;  %v1901_v47 = vld [vmem:[#allocation4 + $0x40] sm:$0xf] }
  0xd5   : > { %v1474_v58 = vld [vmem:[#allocation3 + $0x40] sm:$0xf]  ;;  %1462 = vst.msk [vmem:[#allocation7 + $0x18] sm:$0xf] %vm524_vm9, %v1442_v43  ;;  %v2071_v59 = vor.u32 %v2070_v9, %v2067_v51  ;;  %v4171_v41 = vld [vmem:[%s5510_s1] ss:$0 sm:$0xff]  ;;  %v2000_v34 = vsel %vm4285_vm7, %v1995_v16, %v4928_v8 }
  0xd6   : > { %v945_v3 = vmul.f32 %v4171_v41, %v3871_v55  ;;  %v2002_v6 = vshrl.u32 %v1901_v47, 16  ;;  %v2005_v44 = vshll.u32 %v1901_v47, 16  ;;  %v2011_v63 = vshll.u32 %v1902_v35, 16  ;;  %v4101_v14 = vld [vmem:[#allocation7 + $0x4] sm:$0xf0] }
  0xd7   : > { %v2084_v33 = vrot.slane %v2082_v5, 5  ;;  %v1804_v48 = vsel %vm4285_vm7, %v1799_v37, %v1803_v32  ;;  %v3874_v39 = vld [vmem:[#allocation7] sm:$0xf]  ;;  %v2072_v56 = vrot.slane %v2071_v59, 4  ;;  %v2090_v7 = vrot.slane %v2088_v40, 5 }
  0xd8   : > { %v658_v18 = vrot.slane %v4790_v54, 4  ;;  %1819 = vrot.lane.b32.xlu0 %v1804_v48, %s4188_s16  ;;  %v2004_v19 = vrot.slane %v2002_v6, 4  ;;  %v2007_v20 = vrot.slane %v2005_v44, 5  ;;  %v3875_v61 = vor.u32 %v4101_v14, %v3874_v39  ;;  %v722_v53 = vld [vmem:[#allocation3 + $0x3c] sm:$0x1]  ;;  %v1810_v54 = vpop.permute.xlu1 %1809 }
  0xd9   : > { %v2085_v22 = vor.u32 %v2084_v33, %v2081_v46  ;;  %v1689_v57 = vld [vmem:[#allocation3 + $0x38] sm:$0xf]  ;;  %v2077_v17 = vsel %vm4285_vm7, %v2072_v56, %v2076_v60  ;;  %1511 = vst.msk [vmem:[#allocation7 + $0x18] sm:$0xf] %vm1507_vm11, %v1490_v4  ;;  %v988_v25 = vld [vmem:[#allocation5 + $0x40] sm:$0x1]  ;;  %1497 = vrot.lane.b32.xlu2 %v1474_v58, %s4186_s14 }
  0xda   : > { %v723_v24 = vsel %vm4239_vm3, %v658_v18, %v722_v53  ;;  %v1778_v26 = vshrl.u32 %v1689_v57, 16  ;;  %v1781_v15 = vshll.u32 %v1689_v57, 16  ;;  %v2008_v21 = vor.u32 %v2007_v20, %v2004_v19  ;;  %2333 = vmatmul.bf16.vlgmr.msra.gmra.mxu0 %v3875_v61  ;;  %2184 = vst.msk [vmem:[#allocation7 + $0x4] sm:$0xf] %vm320_vm0, %v2077_v17  ;;  %v4172_v38 = vld [vmem:[%s5511_s2] ss:$0 sm:$0xff]  ;;  %v1651_v5 = vpop.permute.xlu0 %1650 }
  0xdb   : > { %v2013_v62 = vrot.slane %v2011_v63, 5  ;;  %v2086_v50 = vrot.slane %v2085_v22, 4  ;;  %v953_v52 = vadd.f32 %v4172_v38, %v945_v3  ;;  %724 = vst [vmem:[#allocation3 + $0x3c] sm:$0x1] %v723_v24  ;;  %v1649_v43 = vpop.permute.xlu2 %1648  ;;  %v989_v30 = vsel %vm4239_vm3, 0, %v988_v25 }
  0xdc   : > { %v1780_v28 = vrot.slane %v1778_v26, 4  ;;  %v1783_v29 = vrot.slane %v1781_v15, 5  ;;  %v2009_v32 = vrot.slane %v2008_v21, 4  ;;  %1510 = vst.msk [vmem:[#allocation7 + $0x10] sm:$0xf] %vm1507_vm11, %v1488_v42  ;;  %vm2312_vm1 = vcmask 130048  }
  0xdd   : > { %v2091_v4 = vsel %vm4285_vm7, %v2086_v50, %v2090_v7  ;;  %v961_v12 = vmax.f32 %v953_v52, 0.0  ;;  %1671 = vst.msk [vmem:[#allocation7 + $0x10] sm:$0xf] %vm1668_vm12, %v1649_v43  ;;  %v1131_v42 = vld [vmem:[#allocation5 + $0x20] sm:$0xf]  ;;  %vm2393_vm4 = vcmask 253952  }
  0xde   : > { %2185 = vst.msk [vmem:[#allocation7 + $0xc] sm:$0xf] %vm320_vm0, %v2091_v4  ;;  %v2014_v51 = vsel %vm4285_vm7, %v2009_v32, %v2013_v62  ;;  %v1784_v40 = vor.u32 %v1783_v29, %v1780_v28  ;;  %v1132_v8 = vld [vmem:[#allocation5 + $0x28] sm:$0xf]  ;;  %v1124_v46 = vld [vmem:[#allocation5 + $0x44] sm:$0x1] }
  0xdf   : > { %v998_v9 = vpack.c.bf16 %v961_v12, %v961_v12  ;;  %2029 = vrot.lane.b32.xlu1 %v2014_v51, %s4189_s17  ;;  %990 = vst [vmem:[#allocation5 + $0x40] sm:$0x1] %v989_v30  ;;  %v2052_v41 = vld [vmem:[#allocation5 + $0x18] sm:$0xf]  ;;  %v2053_v33 = vld [vmem:[#allocation5 + $0x1c] sm:$0x1] }
  0xe0   : > { %2027 = vrot.lane.b32.xlu0 %v2000_v34, %s4189_s17  ;;  %1832 = vst.msk [vmem:[#allocation7 + $0x10] sm:$0xf] %vm1829_vm13, %v1810_v54  ;;  %v1861_v37 = vpop.permute.xlu1 %1860  ;;  %v1785_v59 = vrot.slane %v1784_v40, 4  ;;  %v2093_v48 = vshrl.u32 %v2052_v41, 16  ;;  %v2054_v7 = vld [vmem:[#allocation5 + $0x20] sm:$0xf] }
  0xe1   : > { %v1056_v55 = vshrl.u32 %v998_v9, 16  ;;  %v1059_v35 = vshll.u32 %v998_v9, 16  ;;  %v4100_v16 = vld [vmem:[#allocation7 + $0x4] sm:$0xf]  ;;  %1672 = vst.msk [vmem:[#allocation7 + $0x18] sm:$0xf] %vm1668_vm12, %v1651_v5 }
  0xe2   : > { %v1690_v47 = vld [vmem:[#allocation3 + $0x3c] sm:$0x1]  ;;  %1139 = vst.msk [vmem:[#allocation7 + $0x20] sm:$0xf] %vm320_vm0, %v1131_v42  ;;  %v1859_v14 = vpop.permute.xlu0 %1858  ;;  %v2096_v18 = vshll.u32 %v2052_v41, 16  ;;  %v2095_v57 = vrot.slane %v2093_v48, 4 }
  0xe3   : > { %v1058_v58 = vrot.slane %v1056_v55, 7  ;;  %v1787_v60 = vshll.u32 %v1690_v47, 16  ;;  %1140 = vst.msk [vmem:[#allocation7 + $0x28] sm:$0xf] %vm320_vm0, %v1132_v8  ;;  %v1812_v63 = vpop.permute.xlu2 %1811  ;;  %v2055_v61 = vld [vmem:[#allocation5 + $0x24] sm:$0x1] }
  0xe4   : > { %1833 = vst.msk [vmem:[#allocation7 + $0x18] sm:$0xf] %vm1829_vm13, %v1812_v63  ;;  %v2098_v17 = vrot.slane %v2096_v18, 5  ;;  %v2102_v24 = vshll.u32 %v2053_v33, 16  ;;  %v2107_v0 = vshrl.u32 %v2054_v7, 16  ;;  %v2110_v26 = vshll.u32 %v2054_v7, 16 }
  0xe5   : > { %v3876_v3 = vld [vmem:[#allocation7 + $0x8] sm:$0xf0]  ;;  %v1061_v6 = vor.u32 %v1059_v35, %v1058_v58  ;;  %v1062_v44 = vrot.slane %v1058_v58, 4  ;;  %v1789_v56 = vrot.slane %v1787_v60, 5  ;;  %1882 = vst.msk [vmem:[#allocation7 + $0x18] sm:$0xf] %vm1878_vm14, %v1861_v37 }
  0xe6   : > { %v3879_v39 = vor.u32 %v4100_v16, %v3876_v3  ;;  %v1121_v19 = vld [vmem:[#allocation5 + $0x40] sm:$0xf]  ;;  %v2116_v15 = vshll.u32 %v2055_v61, 16  ;;  %1881 = vst.msk [vmem:[#allocation7 + $0x10] sm:$0xf] %vm1878_vm14, %v1859_v14  ;;  %v2099_v54 = vor.u32 %v2098_v17, %v2095_v57  ;;  %v2104_v13 = vrot.slane %v2102_v24, 5 }
  0xe7   : > { %v1125_v20 = vsel %vm4239_vm3, %v1062_v44, %v1124_v46  ;;  %v1790_v22 = vsel %vm4285_vm7, %v1785_v59, %v1789_v56  ;;  %v1122_v53 = vsel %vm4310_vm8, %v1061_v6, %v1121_v19  ;;  %v2109_v21 = vrot.slane %v2107_v0, 4  ;;  %2394 = vst.msk [vmem:[#allocation6 + $0x4] sm:$0x1] %vm2393_vm4, %v4182_v1  ;;  %v2056_v55 = vld [vmem:[#allocation5 + $0x28] sm:$0xf] }
  0xe8   : > { %3940 = vmatmul.msk.bf16.vlgmr.msra.gmra.mxu1 %vm2312_vm1, %v3879_v39  ;;  %1126 = vst [vmem:[#allocation5 + $0x44] sm:$0x1] %v1125_v20  ;;  %1817 = vrot.lane.b32.xlu2 %v1790_v22, %s4188_s16  ;;  %v1283_v25 = vpop.permute.xlu1 %1282  ;;  %v2112_v62 = vrot.slane %v2110_v26, 5  ;;  %v2100_v50 = vrot.slane %v2099_v54, 4  ;;  %v2118_v29 = vrot.slane %v2116_v15, 5  ;;  %vm5517_vm3 = vcmask 257024  }
  0xe9   : > { %1123 = vst [vmem:[#allocation5 + $0x40] sm:$0xf] %v1122_v53  ;;  %502 = vrot.lane.b32.xlu0 %v4342_v49, %s4183_s11  ;;  %v2058_v35 = vld [vmem:[#allocation5 + $0x30] sm:$0xf]  ;;  %v2121_v16 = vshrl.u32 %v2056_v55, 16  ;;  %v2124_v46 = vshll.u32 %v2056_v55, 16 }
  0xea   : > { %1303 = vst.msk [vmem:[#allocation7 + $0x20] sm:$0xf] %vm1298_vm10, %v1283_v25  ;;  %v2022_v52 = vpop.permute.xlu0 %2021  ;;  %v2113_v28 = vor.u32 %v2112_v62, %v2109_v21  ;;  %v2105_v32 = vsel %vm4285_vm7, %v2100_v50, %v2104_v13  ;;  %v2135_v59 = vshrl.u32 %v2058_v35, 16  ;;  %v2138_v60 = vshll.u32 %v2058_v35, 16  ;;  %v2057_v63 = vld [vmem:[#allocation5 + $0x2c] sm:$0x1] }
  0xeb   : > { %v2020_v38 = vpop.permute.xlu2 %2019  ;;  %2043 = vst.msk [vmem:[#allocation7 + $0x18] sm:$0xf] %vm2039_vm15, %v2022_v52  ;;  %v2123_v41 = vrot.slane %v2121_v16, 4  ;;  %v2126_v3 = vrot.slane %v2124_v46, 5  ;;  %v2059_v14 = vld [vmem:[#allocation5 + $0x34] sm:$0x1] }
  0xec   : > { %2042 = vst.msk [vmem:[#allocation7 + $0x10] sm:$0xf] %vm2039_vm15, %v2020_v38  ;;  %v2114_v49 = vrot.slane %v2113_v28, 4  ;;  %v2130_v56 = vshll.u32 %v2057_v63, 16  ;;  %v2140_v7 = vrot.slane %v2138_v60, 5  ;;  %v2144_v19 = vshll.u32 %v2059_v14, 16 }
  0xed   : > { %2186 = vst.msk [vmem:[#allocation7 + $0x14] sm:$0xf] %vm320_vm0, %v2105_v32  ;;  %v2127_v39 = vor.u32 %v2126_v3, %v2123_v41  ;;  %v1134_v0 = vld [vmem:[#allocation5 + $0x38] sm:$0xf]  ;;  %v1133_v25 = vld [vmem:[#allocation5 + $0x30] sm:$0xf] }
  0xee   : > { %v2119_v43 = vsel %vm4285_vm7, %v2114_v49, %v2118_v29  ;;  %2392 = vst.msk [vmem:[#allocation6] sm:$0xf] %vm5517_vm3, %v4182_v1  ;;  %v2605_v20 = vld [vmem:[#allocation6 + $0x4] sm:$0x1]  ;;  %v2132_v22 = vrot.slane %v2130_v56, 5  ;;  %v2146_v24 = vrot.slane %v2144_v19, 5 }
  0xef   : > { %2187 = vst.msk [vmem:[#allocation7 + $0x1c] sm:$0xf] %vm320_vm0, %v2119_v43  ;;  %v2128_v61 = vrot.slane %v2127_v39, 4  ;;  %v2630_v17 = vshll.u32 %v2605_v20, 16  ;;  %v2766_v28 = vld [vmem:[#allocation6 + $0x4] sm:$0x1] }
  0xf0   : > { %v1845_v4 = vld [vmem:[#allocation5 + $0x40] sm:$0xf]  ;;  %2396 = vst.msk [vmem:[#allocation6 + $0x48] sm:$0xf] %vm5517_vm3, %v4182_v1  ;;  %vm2797_vm5 = vcmask 1042432   ;;  %vm2798_vm8 = vcmask 1046532  }
  0xf1   : > { %1868 = vrot.lane.b32.xlu2 %v1845_v4, %s4185_s13  ;;  %508 = vrot.lane.b32.xlu0 %v4607_v10, %s4183_s11  ;;  %2397 = vst.msk [vmem:[#allocation6 + $0x4c] sm:$0x1] %vm2393_vm4, %v4182_v1  ;;  %v2137_v1 = vrot.slane %v2135_v59, 4  ;;  %v2133_v26 = vsel %vm4285_vm7, %v2128_v61, %v2132_v22  ;;  %v2632_v54 = vrot.slane %v2630_v17, 5  ;;  %vm5034_vm3 = vmor %vm2797_vm5, %vm2798_vm8  ;;  %v2802_v4 = vrot.slane %v2766_v28, 5 }
  0xf2   : > { %v1444_v12 = vpop.permute.xlu0 %1443  ;;  %v4103_v5 = vld [vmem:[#allocation7 + $0x14] sm:$0xf0]  ;;  %1142 = vst.msk [vmem:[#allocation7 + $0x38] sm:$0xf] %vm320_vm0, %v1134_v0  ;;  %v2429_v28 = vld [vmem:[#allocation6 + $0x14] sm:$0x1] }
  0xf3   : > { %v3882_v30 = vld [vmem:[#allocation7 + $0x10] sm:$0xf]  ;;  %1463 = vst.msk [vmem:[#allocation7 + $0x20] sm:$0xf] %vm524_vm9, %v1444_v12  ;;  %v2141_v53 = vor.u32 %v2140_v7, %v2137_v1  ;;  %vm3675_vm5 = vcmask 392192  }
  0xf4   : > { %v3883_v34 = vor.u32 %v4103_v5, %v3882_v30  ;;  %v4102_v51 = vld [vmem:[#allocation7 + $0x14] sm:$0xf]  ;;  %2188 = vst.msk [vmem:[#allocation7 + $0x24] sm:$0xf] %vm320_vm0, %v2133_v26  ;;  %v2401_v26 = vld [vmem:[#allocation6 + $0x8] sm:$0x1] }
  0xf5   : > { %v1446_v40 = vpop.permute.xlu1 %1445  ;;  %v2604_v8 = vld [vmem:[#allocation6] sm:$0xf]  ;;  %v2142_v15 = vrot.slane %v2141_v53, 4  ;;  %1141 = vst.msk [vmem:[#allocation7 + $0x30] sm:$0xf] %vm320_vm0, %v1133_v25 }
  0xf6   : > { %2338 = vmatmul.bf16.gmra.mxu0 %v3883_v34  ;;  %v3884_v9 = vld [vmem:[#allocation7 + $0x18] sm:$0xf0]  ;;  %v2621_v47 = vshrl.u32 %v2604_v8, 16  ;;  %v2624_v58 = vshll.u32 %v2604_v8, 16  ;;  %v2765_v52 = vld [vmem:[#allocation6] sm:$0xe] }
  0xf7   : > { %v3887_v42 = vor.u32 %v4102_v51, %v3884_v9  ;;  %v2147_v13 = vsel %vm4285_vm7, %v2142_v15, %v2146_v24  ;;  %v3944_v29 = vrot.slane %v2765_v52, 9  ;;  %v2060_v51 = vld [vmem:[#allocation5 + $0x38] sm:$0xf]  ;;  %v2062_v9 = vld [vmem:[#allocation5 + $0x40] sm:$0xf] }
  0xf8   : > { %v2623_v6 = vrot.slane %v2621_v47, 4  ;;  %v2626_v44 = vrot.slane %v2624_v58, 5  ;;  %2189 = vst.msk [vmem:[#allocation7 + $0x2c] sm:$0xf] %vm320_vm0, %v2147_v13  ;;  %v2166_v55 = vshll.u32 %v2062_v9, 16 }
  0xf9   : > { %3941 = vmatmul.msk.bf16.gmra.mxu1 %vm2312_vm1, %v3887_v42  ;;  %v2803_v12 = vsel %vm5034_vm3, %v3944_v29, %v2802_v4  ;;  %v2152_v42 = vshll.u32 %v2060_v51, 16  ;;  %v2063_v47 = vld [vmem:[#allocation5 + $0x44] sm:$0x1]  ;;  %v2426_v25 = vld [vmem:[#allocation6 + $0xc] sm:$0x1] }
  0xfa   : > { %v1285_v10 = vpop.permute.xlu2 %1284  ;;  %v2627_v18 = vor.u32 %v2626_v44, %v2623_v6  ;;  %2832 = vrot.lane.b32.xlu1 %v2803_v12, %s4187_s15  ;;  %v2172_v60 = vshll.u32 %v2063_v47, 16  ;;  %v2404_v52 = vld [vmem:[#allocation6 + $0x10] sm:$0x1] }
  0xfb   : > { %1304 = vst.msk [vmem:[#allocation7 + $0x28] sm:$0xf] %vm1298_vm10, %v1285_v10  ;;  %v4104_v38 = vld [vmem:[#allocation7 + $0x24] sm:$0xf]  ;;  %v2163_v10 = vshrl.u32 %v2062_v9, 16  ;;  %v2154_v16 = vrot.slane %v2152_v42, 5 }
  0xfc   : > { %1464 = vst.msk [vmem:[#allocation7 + $0x28] sm:$0xf] %vm524_vm9, %v1446_v40  ;;  %v2628_v57 = vrot.slane %v2627_v18, 4  ;;  %v2149_v40 = vshrl.u32 %v2060_v51, 16  ;;  %v2174_v14 = vrot.slane %v2172_v60, 5 }
  0xfd   : > { %v2165_v46 = vrot.slane %v2163_v10, 4 }
  0xfe   : > { %v1494_v37 = vpop.permute.xlu0 %1493  ;;  %v2633_v21 = vsel %vm4285_vm7, %v2628_v57, %v2632_v54  ;;  %v2151_v8 = vrot.slane %v2149_v40, 4 }
  0xff   : > { %1513 = vst.msk [vmem:[#allocation7 + $0x28] sm:$0xf] %vm1507_vm11, %v1494_v37  ;;  %2732 = vrot.lane.b32.xlu2 %v2633_v21, %s4183_s11  ;;  %v3892_v32 = vld [vmem:[#allocation7 + $0x28] sm:$0xf0]  ;;  %v2168_v37 = vrot.slane %v2166_v55, 5 }
 0x100   : > { %v3895_v43 = vor.u32 %v4104_v38, %v3892_v32 }
 0x101   : > { %v2169_v59 = vor.u32 %v2168_v37, %v2165_v46  ;;  %v2407_v37 = vld [vmem:[#allocation6 + $0x18] sm:$0x1] }
 0x102   : > { %v1492_v33 = vpop.permute.xlu2 %1491  ;;  %v1653_v48 = vpop.permute.xlu1 %1652  ;;  %3942 = vmatmul.msk.bf16.vlgmr.msra.gmra.mxu2 %vm2312_vm1, %v3895_v43  ;;  %504 = vrot.lane.b32.xlu1 %v4556_v31, %s4183_s11  ;;  %v2155_v31 = vor.u32 %v2154_v16, %v2151_v8 }
 0x103   : > { %1512 = vst.msk [vmem:[#allocation7 + $0x20] sm:$0xf] %vm1507_vm11, %v1492_v33  ;;  %v2170_v63 = vrot.slane %v2169_v59, 4 }
 0x104   : > { %1673 = vst.msk [vmem:[#allocation7 + $0x20] sm:$0xf] %vm1668_vm12, %v1653_v48  ;;  %v2156_v6 = vrot.slane %v2155_v31, 4 }
 0x105   : > { %v2175_v48 = vsel %vm4285_vm7, %v2170_v63, %v2174_v14 }
 0x106   : > { %2191 = vst.msk [vmem:[#allocation7 + $0x3c] sm:$0xf] %vm320_vm0, %v2175_v48 }
 0x107   : > { %500 = vrot.lane.b32.xlu2 %v4300_v2, %s4183_s11 }
 0x10a   : > { %v1816_v62 = vpop.permute.xlu1 %1815  ;;  %510 = vrot.lane.b32.xlu1 %v4761_v45, %s4183_s11 }
 0x10d   : > { %v1814_v50 = vpop.permute.xlu0 %1813  ;;  %v3900_v20 = vld [vmem:[#allocation7 + $0x38] sm:$0xf0] }
 0x10e   : > { %1834 = vst.msk [vmem:[#allocation7 + $0x20] sm:$0xf] %vm1829_vm13, %v1814_v50 }
 0x10f   : > { %506 = vrot.lane.b32.xlu2 %v4498_v11, %s4183_s11  ;;  %v2061_v11 = vld [vmem:[#allocation5 + $0x3c] sm:$0x1] }
 0x110   : > { %v2158_v58 = vshll.u32 %v2061_v11, 16  ;;  %v2432_v11 = vld [vmem:[#allocation6 + $0x1c] sm:$0x1] }
 0x112   : > { %v2160_v44 = vrot.slane %v2158_v58, 5 }
 0x113   : > { %v1655_v30 = vpop.permute.xlu2 %1654  ;;  %v2024_v5 = vpop.permute.xlu1 %2023 }
 0x114   : > { %1674 = vst.msk [vmem:[#allocation7 + $0x28] sm:$0xf] %vm1668_vm12, %v1655_v30  ;;  %v2161_v33 = vsel %vm4285_vm7, %v2156_v6, %v2160_v44  ;;  %v2588_v30 = vld [vmem:[#allocation6] sm:$0xf] }
 0x115   : > { %1835 = vst.msk [vmem:[#allocation7 + $0x28] sm:$0xf] %vm1829_vm13, %v1816_v62  ;;  %v1865_v34 = vpop.permute.xlu0 %1864 }
 0x116   : > { %1884 = vst.msk [vmem:[#allocation7 + $0x28] sm:$0xf] %vm1878_vm14, %v1865_v34  ;;  %v5101_v34 = vld [vmem:[%s5513_s4] ss:$0 sm:$0xff] }
 0x117   : > { %2190 = vst.msk [vmem:[#allocation7 + $0x34] sm:$0xf] %vm320_vm0, %v2161_v33  ;;  %vm5074_vm0 = vmand %vm2393_vm4, %vm323_vm2  ;;  %vm5530_vm2 = vcmask 257024  }
 0x118   : > { %v2402_v54 = vsel %vm5074_vm0, 0, %v2401_v26  ;;  %v2405_v29 = vsel %vm5074_vm0, 0, %v2404_v52  ;;  %2596 = vst.msk [vmem:[#allocation8] sm:$0xf] %vm5530_vm2, %v2588_v30  ;;  %v2408_v59 = vsel %vm5074_vm0, 0, %v2407_v37 }
 0x119   : > { %2403 = vst [vmem:[#allocation6 + $0x8] sm:$0x1] %v2402_v54 }
 0x11a   : > { %2406 = vst [vmem:[#allocation6 + $0x10] sm:$0x1] %v2405_v29 }
 0x11b   : > { %v1863_v2 = vpop.permute.xlu2 %1862  ;;  %2409 = vst [vmem:[#allocation6 + $0x18] sm:$0x1] %v2408_v59 }
 0x11c   : > { %1883 = vst.msk [vmem:[#allocation7 + $0x20] sm:$0xf] %vm1878_vm14, %v1863_v2 }
 0x11d   : > { %2044 = vst.msk [vmem:[#allocation7 + $0x20] sm:$0xf] %vm2039_vm15, %v2024_v5 }
 0x11e   : > { %v4106_v45 = vld [vmem:[#allocation7 + $0x34] sm:$0xf] }
 0x11f   : > { %v1289_v35 = vpop.permute.xlu1 %1288  ;;  %v3903_v61 = vor.u32 %v4106_v45, %v3900_v20 }
 0x120   : > { %1306 = vst.msk [vmem:[#allocation7 + $0x38] sm:$0xf] %vm1298_vm10, %v1289_v35 }
 0x121   : > { %3943 = vmatmul.msk.bf16.gmra.mxu2 %vm2312_vm1, %v3903_v61  ;;  %vm5536_vm1 = vmmov %vm5530_vm2 }
 0x122   : > { %v1287_v41 = vpop.permute.xlu0 %1286  ;;  %vm5538_vm8 = vmmov %vm5536_vm1 }
 0x123   : > { %v2026_v3 = vpop.permute.xlu2 %2025  ;;  %1305 = vst.msk [vmem:[#allocation7 + $0x30] sm:$0xf] %vm1298_vm10, %v1287_v41  ;;  %vm5081_vm10 = vmand %vm2393_vm4, %vm442_vm6 }
 0x124   : > { %2045 = vst.msk [vmem:[#allocation7 + $0x28] sm:$0xf] %vm2039_vm15, %v2026_v3  ;;  %v3890_v39 = vld [vmem:[#allocation7 + $0x20] sm:$0xf]  ;;  %v2427_v13 = vsel %vm5081_vm10, 0, %v2426_v25  ;;  %v2430_v32 = vsel %vm5081_vm10, 0, %v2429_v28  ;;  %vm5537_vm4 = vmmov %vm5536_vm1 }
 0x125   : > { %2428 = vst [vmem:[#allocation6 + $0xc] sm:$0x1] %v2427_v13  ;;  %v2433_v60 = vsel %vm5081_vm10, 0, %v2432_v11  ;;  %v2540_v3 = vld [vmem:[#allocation6 + $0x8] sm:$0xf] }
 0x126   : > { %2431 = vst [vmem:[#allocation6 + $0x14] sm:$0x1] %v2430_v32 }
 0x127   : > { %v1496_v56 = vpop.permute.xlu1 %1495  ;;  %2434 = vst [vmem:[#allocation6 + $0x1c] sm:$0x1] %v2433_v60 }
 0x12b   : > { %v4105_v1 = vld [vmem:[#allocation7 + $0x24] sm:$0xf0]  ;;  %v1448_v7 = vpop.permute.xlu2 %1447 }
 0x12c   : > { %v3891_v18 = vor.u32 %v4105_v1, %v3890_v39  ;;  %1465 = vst.msk [vmem:[#allocation7 + $0x30] sm:$0xf] %vm524_vm9, %v1448_v7  ;;  %v2543_v6 = vld [vmem:[#allocation6 + $0xc] sm:$0x1]  ;;  %v2410_v1 = vld [vmem:[#allocation6 + $0x20] sm:$0x1] }
 0x12d   : > { %1514 = vst.msk [vmem:[#allocation7 + $0x30] sm:$0xf] %vm1507_vm11, %v1496_v56  ;;  %v2435_v7 = vld [vmem:[#allocation6 + $0x24] sm:$0x1]  ;;  %v2411_v20 = vsel %vm5074_vm0, 0, %v2410_v1 }
 0x12e   : > { %2343 = vmatmul.bf16.gmra.mxu0 %v3891_v18  ;;  %v1450_v19 = vpop.permute.xlu0 %1449  ;;  %v2436_v61 = vsel %vm5081_vm10, 0, %v2435_v7  ;;  %2412 = vst [vmem:[#allocation6 + $0x20] sm:$0x1] %v2411_v20  ;;  %v2555_v20 = vld [vmem:[#allocation6 + $0x1c] sm:$0x1] }
 0x12f   : > { %1466 = vst.msk [vmem:[#allocation7 + $0x38] sm:$0xf] %vm524_vm9, %v1450_v19 }
 0x130   : > { %2437 = vst [vmem:[#allocation6 + $0x24] sm:$0x1] %v2436_v61 }
 0x133   : > { %v1498_v22 = vpop.permute.xlu2 %1497 }
 0x134   : > { %1515 = vst.msk [vmem:[#allocation7 + $0x38] sm:$0xf] %vm1507_vm11, %v1498_v22  ;;  %vm2756_vm11 = vcmask 519424   ;;  %v2546_v22 = vld [vmem:[#allocation6 + $0x10] sm:$0xf] }
 0x13d   : > { %v1659_v53 = vpop.permute.xlu1 %1658 }
 0x13e   : > { %1676 = vst.msk [vmem:[#allocation7 + $0x38] sm:$0xf] %vm1668_vm12, %v1659_v53  ;;  %v1657_v57 = vpop.permute.xlu0 %1656  ;;  %v2549_v53 = vld [vmem:[#allocation6 + $0x14] sm:$0x1] }
 0x13f   : > { %1675 = vst.msk [vmem:[#allocation7 + $0x30] sm:$0xf] %vm1668_vm12, %v1657_v57  ;;  %vm5531_vm12 = vmmov %vm5530_vm2 }
 0x142   : > { %v1818_v17 = vpop.permute.xlu2 %1817 }
 0x143   : > { %1836 = vst.msk [vmem:[#allocation7 + $0x30] sm:$0xf] %vm1829_vm13, %v1818_v17 }
 0x145   : > { %v1867_v0 = vpop.permute.xlu1 %1866 }
 0x146   : > { %1885 = vst.msk [vmem:[#allocation7 + $0x30] sm:$0xf] %vm1878_vm14, %v1867_v0 }
 0x14a   : > { %v1820_v21 = vpop.permute.xlu0 %1819 }
 0x14b   : > { %v1869_v62 = vpop.permute.xlu2 %1868  ;;  %1837 = vst.msk [vmem:[#allocation7 + $0x38] sm:$0xf] %vm1829_vm13, %v1820_v21  ;;  %vm5112_vm13 = vmand %vm5531_vm12, %vm442_vm6  ;;  %vm2856_vm6 = vcmask 781824  }
 0x14c   : > { %1886 = vst.msk [vmem:[#allocation7 + $0x38] sm:$0xf] %vm1878_vm14, %v1869_v62  ;;  %vm5534_vm14 = vmmov %vm5530_vm2 }
 0x14d   : > { %vm5540_vm12 = vmmov %vm5536_vm1 }
 0x151   : > { %v2030_v50 = vpop.permute.xlu1 %2029 }
 0x152   : > { %2047 = vst.msk [vmem:[#allocation7 + $0x38] sm:$0xf] %vm2039_vm15, %v2030_v50  ;;  %v2028_v38 = vpop.permute.xlu0 %2027 }
 0x153   : > { %2046 = vst.msk [vmem:[#allocation7 + $0x30] sm:$0xf] %vm2039_vm15, %v2028_v38  ;;  %vm5535_vm15 = vmmov %vm5530_vm2 }
 0x154   : > { %vm5539_vm2 = vmmov %vm5536_vm1 }
 0x157   : > { %v2334_v5 = vpop.f32.mrf.mxu0 }
 0x158   : > { %v2335_v2 = vadd.f32 %v5101_v34, %v2334_v5 }
 0x159   : > { %v4107_v4 = vld [vmem:[#allocation7 + $0x34] sm:$0xf0]  ;;  %v2733_v40 = vpop.permute.xlu2 %2732 }
 0x15a   : > { %v3898_v43 = vld [vmem:[#allocation7 + $0x30] sm:$0xf]  ;;  %2757 = vst.msk [vmem:[#allocation8] sm:$0xf] %vm2756_vm11, %v2733_v40 }
 0x15b   : > { %v3899_v12 = vor.u32 %v4107_v4, %v3898_v43  ;;  %v503_v30 = vpop.permute.xlu0 %502 }
 0x15c   : > { %526 = vst.msk [vmem:[#allocation8 + $0x14] sm:$0xf] %vm524_vm9, %v503_v30 }
 0x15d   : > { %2348 = vmatmul.bf16.gmra.mxu0 %v3899_v12 }
 0x15f   : > { %v2336_v42 = vpop.f32.mrf.mxu0 }
 0x160   : > { %v2337_v35 = vadd.f32 %v5101_v34, %v2336_v42  ;;  %v4147_v42 = vld [vmem:[%s5514_s5 + $0x90] sm:$0xff] }
 0x161   : > { %v501_v58 = vpop.permute.xlu2 %500  ;;  %3751 = vmatpush.bf16.msrb.mxu1 %v4147_v42 }
 0x162   : > { %525 = vst.msk [vmem:[#allocation8 + $0x8] sm:$0xf] %vm524_vm9, %v501_v58 }
 0x165   : > { %v2363_v51 = vpop.f32.mrf.mxu1 }
 0x166   : > { %v2364_v9 = vadd.f32 %v2363_v51, %v2335_v2 }
 0x168   : > { %v2383_v10 = vmax.f32 %v2364_v9, 0.0 }
 0x16a   : > { %v2450_v55 = vpack.c.bf16 %v2383_v10, %v2383_v10 }
 0x16c   : > { %v2459_v8 = vshrl.u32 %v2450_v55, 16  ;;  %v2462_v16 = vshll.u32 %v2450_v55, 16 }
 0x16d   : > { %v2365_v46 = vpop.f32.mrf.mxu1 }
 0x16e   : > { %v2461_v47 = vrot.slane %v2459_v8, 7  ;;  %v2366_v31 = vadd.f32 %v2365_v46, %v2337_v35  ;;  %v4146_v8 = vld [vmem:[%s5514_s5 + $0x88] sm:$0xff] }
 0x16f   : > { %3752 = vmatpush.bf16.msrb.mxu1 %v4146_v8 }
 0x170   : > { %v2464_v44 = vor.u32 %v2462_v16, %v2461_v47  ;;  %v2465_v63 = vrot.slane %v2461_v47, 4  ;;  %v2384_v14 = vmax.f32 %v2366_v31, 0.0 }
 0x172   : > { %v2541_v33 = vsel %vm5112_vm13, %v2464_v44, %v2540_v3  ;;  %v2544_v48 = vsel %vm5074_vm0, %v2465_v63, %v2543_v6  ;;  %v2451_v39 = vpack.c.bf16 %v2384_v14, %v2384_v14 }
 0x173   : > { %2542 = vst [vmem:[#allocation6 + $0x8] sm:$0xf] %v2541_v33  ;;  %v2339_v19 = vpop.f32.mrf.mxu0 }
 0x174   : > { %2545 = vst [vmem:[#allocation6 + $0xc] sm:$0x1] %v2544_v48  ;;  %v2467_v56 = vshrl.u32 %v2451_v39, 16  ;;  %v2470_v45 = vshll.u32 %v2451_v39, 16  ;;  %v2340_v57 = vadd.f32 %v5101_v34, %v2339_v19  ;;  %v2552_v19 = vld [vmem:[#allocation6 + $0x18] sm:$0xf] }
 0x176   : > { %v2469_v18 = vrot.slane %v2467_v56, 7  ;;  %v2368_v26 = vpop.f32.mrf.mxu1 }
 0x177   : > { %v2369_v28 = vadd.f32 %v2368_v26, %v2340_v57 }
 0x178   : > { %v2472_v17 = vor.u32 %v2470_v45, %v2469_v18  ;;  %v2473_v0 = vrot.slane %v2469_v18, 4 }
 0x179   : > { %v2385_v10 = vmax.f32 %v2369_v28, 0.0 }
 0x17a   : > { %v2547_v25 = vsel %vm5112_vm13, %v2472_v17, %v2546_v22  ;;  %v2550_v54 = vsel %vm5074_vm0, %v2473_v0, %v2549_v53  ;;  %v2865_v13 = vld [vmem:[#allocation6 + $0x8] sm:$0xf]  ;;  %v2833_v17 = vpop.permute.xlu1 %2832 }
 0x17b   : > { %v2767_v21 = vld [vmem:[#allocation6 + $0x8] sm:$0xe]  ;;  %2548 = vst [vmem:[#allocation6 + $0x10] sm:$0xf] %v2547_v25  ;;  %2881 = vrot.lane.b32.xlu0 %v2865_v13, %s4185_s13  ;;  %v2768_v50 = vld [vmem:[#allocation6 + $0xc] sm:$0x1]  ;;  %v2341_v40 = vpop.f32.mrf.mxu0  ;;  %v2452_v37 = vpack.c.bf16 %v2385_v10, %v2385_v10 }
 0x17c   : > { %v2606_v62 = vld [vmem:[#allocation6 + $0x8] sm:$0xf]  ;;  %v3945_v38 = vrot.slane %v2767_v21, 9  ;;  %2551 = vst [vmem:[#allocation6 + $0x14] sm:$0x1] %v2550_v54  ;;  %v2806_v29 = vrot.slane %v2768_v50, 5  ;;  %v2342_v55 = vadd.f32 %v5101_v34, %v2341_v40 }
 0x17d   : > { %v2635_v52 = vshrl.u32 %v2606_v62, 16  ;;  %v2607_v32 = vld [vmem:[#allocation6 + $0xc] sm:$0x1]  ;;  %v2638_v4 = vshll.u32 %v2606_v62, 16  ;;  %v3058_v51 = vld [vmem:[#allocation6 + $0x8] sm:$0xe] }
 0x17e   : > { %v2644_v12 = vshll.u32 %v2607_v32, 16  ;;  %v2807_v5 = vsel %vm5034_vm3, %v3945_v38, %v2806_v29  ;;  %v3059_v9 = vld [vmem:[#allocation6 + $0xc] sm:$0x1]  ;;  %v3952_v16 = vrot.slane %v3058_v51, 9  ;;  %v2370_v11 = vpop.f32.mrf.mxu1  ;;  %v2475_v44 = vshrl.u32 %v2452_v37, 16 }
 0x17f   : > { %v2637_v43 = vrot.slane %v2635_v52, 4  ;;  %v2640_v2 = vrot.slane %v2638_v4, 5  ;;  %2834 = vrot.lane.b32.xlu2 %v2807_v5, %s4187_s15  ;;  %v3092_v46 = vrot.slane %v3059_v9, 5  ;;  %v2371_v60 = vadd.f32 %v2370_v11, %v2342_v55  ;;  %v5152_v0 = vld [vmem:[#allocation6 + $0x8] sm:$0xf]  ;;  %v4145_v11 = vld [vmem:[%s5514_s5 + $0x80] sm:$0xff] }
 0x180   : > { %v2646_v59 = vrot.slane %v2644_v12, 5  ;;  %v2477_v39 = vrot.slane %v2475_v44, 7  ;;  %v2478_v56 = vshll.u32 %v2452_v37, 16  ;;  %2857 = vst.msk [vmem:[#allocation8] sm:$0xf] %vm2856_vm6, %v2833_v17  ;;  %v2931_v42 = vshrl.u32 %v5152_v0, 16  ;;  %3753 = vmatpush.bf16.msrb.mxu1 %v4145_v11 }
 0x181   : > { %v2641_v35 = vor.u32 %v2640_v2, %v2637_v43  ;;  %v2386_v7 = vmax.f32 %v2371_v60, 0.0  ;;  %v3093_v45 = vsel %vm5034_vm3, %v3952_v16, %v3092_v46  ;;  %v2589_v28 = vld [vmem:[#allocation6 + $0x8] sm:$0xf]  ;;  %v2558_v9 = vld [vmem:[#allocation6 + $0x20] sm:$0xf] }
 0x182   : > { %v2866_v47 = vld [vmem:[#allocation6 + $0x10] sm:$0xf]  ;;  %v2480_v53 = vor.u32 %v2478_v56, %v2477_v39  ;;  %v2481_v57 = vrot.slane %v2477_v39, 4  ;;  %v2561_v40 = vld [vmem:[#allocation6 + $0x24] sm:$0x1] }
 0x183   : > { %v3363_v31 = vld [vmem:[#allocation6 + $0x10] sm:$0xe]  ;;  %v2642_v58 = vrot.slane %v2641_v35, 4  ;;  %2883 = vrot.lane.b32.xlu1 %v2866_v47, %s4185_s13  ;;  %v3364_v3 = vld [vmem:[#allocation6 + $0x14] sm:$0x1]  ;;  %v2453_v52 = vpack.c.bf16 %v2386_v7, %v2386_v7 }
 0x184   : > { %v3960_v6 = vrot.slane %v3363_v31, 9  ;;  %v3397_v63 = vrot.slane %v3364_v3, 5  ;;  %v3060_v33 = vld [vmem:[#allocation6 + $0x10] sm:$0xe]  ;;  %v3061_v48 = vld [vmem:[#allocation6 + $0x14] sm:$0x1]  ;;  %v2553_v62 = vsel %vm5112_vm13, %v2480_v53, %v2552_v19  ;;  %v2556_v50 = vsel %vm5074_vm0, %v2481_v57, %v2555_v20  ;;  %v505_v3 = vpop.permute.xlu1 %504 }
 0x185   : > { %v2647_v14 = vsel %vm4285_vm7, %v2642_v58, %v2646_v59  ;;  %v2608_v1 = vld [vmem:[#allocation6 + $0x10] sm:$0xf]  ;;  %v3953_v26 = vrot.slane %v3060_v33, 9  ;;  %v3096_v25 = vrot.slane %v3061_v48, 5  ;;  %v2609_v38 = vld [vmem:[#allocation6 + $0x14] sm:$0x1] }
 0x186   : > { %2734 = vrot.lane.b32.xlu0 %v2647_v14, %s4183_s11  ;;  %v3398_v18 = vsel %vm5034_vm3, %v3960_v6, %v3397_v63  ;;  %v2649_v61 = vshrl.u32 %v2608_v1, 16  ;;  %v2652_v22 = vshll.u32 %v2608_v1, 16  ;;  %v3203_v21 = vld [vmem:[#allocation6 + $0x10] sm:$0xf]  ;;  %2554 = vst [vmem:[#allocation6 + $0x18] sm:$0xf] %v2553_v62 }
 0x187   : > { %3435 = vst.msk [vmem:[#allocation8 + $0x8] sm:$0xf] %vm5534_vm14, %v3398_v18  ;;  %3122 = vrot.lane.b32.xlu2 %v3093_v45, %s4183_s11  ;;  %v3155_v29 = vld [vmem:[#allocation6 + $0x10] sm:$0xf]  ;;  %v3220_v4 = vshrl.u32 %v3203_v21, 16  ;;  %v3223_v43 = vshll.u32 %v3203_v21, 16  ;;  %v3097_v5 = vsel %vm5034_vm3, %v3953_v26, %v3096_v25  ;;  %vm5541_vm14 = vmmov %vm5536_vm1 }
 0x188   : > { %v2651_v54 = vrot.slane %v2649_v61, 4  ;;  %v2654_v13 = vrot.slane %v2652_v22, 5  ;;  %2557 = vst [vmem:[#allocation6 + $0x1c] sm:$0x1] %v2556_v50  ;;  %v2769_v12 = vld [vmem:[#allocation6 + $0x10] sm:$0xe] }
 0x189   : > { %v2483_v30 = vshrl.u32 %v2453_v52, 16  ;;  %v2658_v2 = vshll.u32 %v2609_v38, 16  ;;  %v2770_v51 = vld [vmem:[#allocation6 + $0x14] sm:$0x1]  ;;  %2597 = vst.msk [vmem:[#allocation8 + $0xc] sm:$0xf] %vm5535_vm15, %v2589_v28  ;;  %vm5542_vm15 = vmmov %vm5536_vm1 }
 0x18a   : > { %v2655_v32 = vor.u32 %v2654_v13, %v2651_v54  ;;  %v2486_v55 = vshll.u32 %v2453_v52, 16  ;;  %v3204_v35 = vld [vmem:[#allocation6 + $0x14] sm:$0x1]  ;;  %v2916_v8 = vld [vmem:[#allocation6 + $0x10] sm:$0xf]  ;;  %v3222_v46 = vrot.slane %v3220_v4, 4 }
 0x18b   : > { %3171 = vrot.lane.b32.xlu1 %v3155_v29, %s4187_s15  ;;  %v2485_v10 = vrot.slane %v2483_v30, 7  ;;  %v3225_v37 = vrot.slane %v3223_v43, 5  ;;  %v5168_v47 = vld [vmem:[#allocation6 + $0xc] sm:$0x1]  ;;  %v2590_v31 = vld [vmem:[#allocation6 + $0x10] sm:$0xf] }
 0x18c   : > { %v2656_v16 = vrot.slane %v2655_v32, 4  ;;  %v3946_v58 = vrot.slane %v2769_v12, 9  ;;  %v2934_v6 = vshll.u32 %v5152_v0, 16  ;;  %2598 = vst.msk [vmem:[#allocation8 + $0x18] sm:$0xf] %vm5536_vm1, %v2590_v31  ;;  %v2660_v44 = vrot.slane %v2658_v2, 5 }
 0x18d   : > { %v2488_v59 = vor.u32 %v2486_v55, %v2485_v10  ;;  %v2489_v60 = vrot.slane %v2485_v10, 4  ;;  %v2810_v63 = vrot.slane %v2770_v51, 5  ;;  %v3229_v14 = vshll.u32 %v3204_v35, 16  ;;  %527 = vst.msk [vmem:[#allocation8 + $0x20] sm:$0xf] %vm524_vm9, %v505_v3 }
 0x18e   : > { %3124 = vrot.lane.b32.xlu0 %v3097_v5, %s4183_s11  ;;  %v2945_v33 = vshrl.u32 %v2916_v8, 16  ;;  %v3156_v56 = vld [vmem:[#allocation6 + $0x18] sm:$0xf]  ;;  %v2661_v18 = vsel %vm4285_vm7, %v2656_v16, %v2660_v44  ;;  %v3226_v45 = vor.u32 %v3225_v37, %v3222_v46  ;;  %v2948_v61 = vshll.u32 %v2916_v8, 16  ;;  %v2413_v25 = vld [vmem:[#allocation6 + $0x28] sm:$0x1] }
 0x18f   : > { %v2559_v48 = vsel %vm5112_vm13, %v2488_v59, %v2558_v9  ;;  %v2562_v39 = vsel %vm5074_vm0, %v2489_v60, %v2561_v40  ;;  %v3365_v1 = vld [vmem:[#allocation6 + $0x18] sm:$0xe]  ;;  %3173 = vrot.lane.b32.xlu2 %v3156_v56, %s4187_s15  ;;  %v3366_v19 = vld [vmem:[#allocation6 + $0x1c] sm:$0x1]  ;;  %v2940_v57 = vshll.u32 %v5168_v47, 16  ;;  %v2811_v17 = vsel %vm5034_vm3, %v3946_v58, %v2810_v63 }
 0x190   : > { %v2771_v7 = vld [vmem:[#allocation6 + $0x18] sm:$0xe]  ;;  %2560 = vst [vmem:[#allocation6 + $0x20] sm:$0xf] %v2559_v48  ;;  %v3961_v20 = vrot.slane %v3365_v1, 9  ;;  %v3401_v22 = vrot.slane %v3366_v19, 5 }
 0x191   : > { %2563 = vst [vmem:[#allocation6 + $0x24] sm:$0x1] %v2562_v39  ;;  %v2772_v53 = vld [vmem:[#allocation6 + $0x1c] sm:$0x1]  ;;  %v3947_v0 = vrot.slane %v2771_v7, 9  ;;  %v2933_v54 = vrot.slane %v2931_v42, 4 }
 0x192   : > { %v2814_v26 = vrot.slane %v2772_v53, 5  ;;  %v3231_v13 = vrot.slane %v3229_v14, 5  ;;  %v3402_v21 = vsel %vm5034_vm3, %v3961_v20, %v3401_v22  ;;  %v2414_v62 = vsel %vm5074_vm0, 0, %v2413_v25  ;;  %v2438_v50 = vld [vmem:[#allocation6 + $0x2c] sm:$0x1] }
 0x193   : > { %2736 = vrot.lane.b32.xlu1 %v2661_v18, %s4183_s11  ;;  %v2936_v38 = vrot.slane %v2934_v6, 5  ;;  %v3227_v52 = vrot.slane %v3226_v45, 4  ;;  %3436 = vst.msk [vmem:[#allocation8 + $0x14] sm:$0xf] %vm5537_vm4, %v3402_v21  ;;  %v2439_v28 = vsel %vm5081_vm10, 0, %v2438_v50  ;;  %v2947_v32 = vrot.slane %v2945_v33, 4  ;;  %vm5543_vm4 = vmmov %vm5536_vm1 }
 0x194   : > { %v5192_v29 = vld [vmem:[#allocation6 + $0x14] sm:$0x1]  ;;  %v2950_v4 = vrot.slane %v2948_v61, 5  ;;  %v2867_v43 = vld [vmem:[#allocation6 + $0x18] sm:$0xf]  ;;  %v2815_v30 = vsel %vm5034_vm3, %v3947_v0, %v2814_v26  ;;  %v2942_v0 = vrot.slane %v2940_v57, 5 }
 0x195   : > { %2415 = vst [vmem:[#allocation6 + $0x28] sm:$0x1] %v2414_v62  ;;  %v2610_v12 = vld [vmem:[#allocation6 + $0x18] sm:$0xf]  ;;  %v2611_v5 = vld [vmem:[#allocation6 + $0x1c] sm:$0x1]  ;;  %v2937_v16 = vor.u32 %v2936_v38, %v2933_v54  ;;  %v3232_v46 = vsel %vm4285_vm7, %v3227_v52, %v3231_v13 }
 0x196   : > { %2836 = vrot.lane.b32.xlu0 %v2811_v17, %s4187_s15  ;;  %2440 = vst [vmem:[#allocation6 + $0x2c] sm:$0x1] %v2439_v28  ;;  %v2663_v2 = vshrl.u32 %v2610_v12, 16  ;;  %v2666_v51 = vshll.u32 %v2610_v12, 16  ;;  %v3062_v40 = vld [vmem:[#allocation6 + $0x18] sm:$0xe]  ;;  %v2951_v44 = vor.u32 %v2950_v4, %v2947_v32 }
 0x197   : > { %v3367_v9 = vld [vmem:[#allocation6 + $0x20] sm:$0xe]  ;;  %v3063_v42 = vld [vmem:[#allocation6 + $0x1c] sm:$0x1]  ;;  %2885 = vrot.lane.b32.xlu2 %v2867_v43, %s4185_s13  ;;  %v2672_v11 = vshll.u32 %v2611_v5, 16  ;;  %v2954_v58 = vshll.u32 %v5192_v29, 16 }
 0x198   : > { %v3368_v10 = vld [vmem:[#allocation6 + $0x24] sm:$0x1]  ;;  %v3962_v55 = vrot.slane %v3367_v9, 9  ;;  %v2665_v35 = vrot.slane %v2663_v2, 4  ;;  %v2668_v8 = vrot.slane %v2666_v51, 5  ;;  %v3954_v14 = vrot.slane %v3062_v40, 9  ;;  %v507_v2 = vpop.permute.xlu2 %506 }
 0x199   : > { %v3405_v37 = vrot.slane %v3368_v10, 5  ;;  %v3205_v31 = vld [vmem:[#allocation6 + $0x18] sm:$0xf]  ;;  %v3100_v33 = vrot.slane %v3063_v42, 5  ;;  %v3206_v1 = vld [vmem:[#allocation6 + $0x1c] sm:$0x1] }
 0x19a   : > { %v3978_v59 = vld [vmem:[#allocation8 + $0x8] sm:$0xf]  ;;  %v2669_v60 = vor.u32 %v2668_v8, %v2665_v35  ;;  %v3234_v3 = vshrl.u32 %v3205_v31, 16  ;;  %v3237_v6 = vshll.u32 %v3205_v31, 16  ;;  %v4119_v48 = vld [vmem:[#allocation8 + $0x10] sm:$0xf0] }
 0x19b   : > { %2838 = vrot.lane.b32.xlu1 %v2815_v30, %s4187_s15  ;;  %v3406_v63 = vsel %vm5034_vm3, %v3962_v55, %v3405_v37  ;;  %v3979_v39 = vor.u32 %v4119_v48, %v3978_v59  ;;  %v2674_v18 = vrot.slane %v2672_v11, 5  ;;  %v2416_v45 = vld [vmem:[#allocation6 + $0x30] sm:$0x1]  ;;  %v2441_v19 = vld [vmem:[#allocation6 + $0x34] sm:$0x1]  ;;  %v2938_v20 = vrot.slane %v2937_v16, 4 }
 0x19c   : > { %3437 = vst.msk [vmem:[#allocation8 + $0x20] sm:$0xf] %vm5538_vm8, %v3406_v63  ;;  %v2670_v56 = vrot.slane %v2669_v60, 4  ;;  %v3236_v7 = vrot.slane %v3234_v3, 4  ;;  %v2417_v61 = vsel %vm5074_vm0, 0, %v2416_v45  ;;  %v2442_v22 = vsel %vm5081_vm10, 0, %v2441_v19  ;;  %vm5544_vm8 = vmmov %vm5536_vm1 }
 0x19d   : > { %4092 = vmatmul.msk.bf16.vlgmr.msrb.gmra.mxu1 %vm3675_vm5, %v3979_v39  ;;  %v3239_v53 = vrot.slane %v3237_v6, 5  ;;  %v2612_v17 = vld [vmem:[#allocation6 + $0x20] sm:$0xf]  ;;  %2418 = vst [vmem:[#allocation6 + $0x30] sm:$0x1] %v2417_v61  ;;  %v3243_v54 = vshll.u32 %v3206_v1, 16  ;;  %v3101_v21 = vsel %vm5034_vm3, %v3954_v14, %v3100_v33  ;;  %v2943_v57 = vsel %vm4285_vm7, %v2938_v20, %v2942_v0 }
 0x19e   : > { %3331 = vrot.lane.b32.xlu0 %v3232_v46, %s4185_s13  ;;  %v2868_v26 = vld [vmem:[#allocation6 + $0x20] sm:$0xf]  ;;  %v2675_v25 = vsel %vm4285_vm7, %v2670_v56, %v2674_v18  ;;  %v2952_v13 = vrot.slane %v2951_v44, 4  ;;  %2443 = vst [vmem:[#allocation6 + $0x34] sm:$0x1] %v2442_v22  ;;  %v2677_v47 = vshrl.u32 %v2612_v17, 16 }
 0x19f   : > { %2738 = vrot.lane.b32.xlu2 %v2675_v25, %s4183_s11  ;;  %v3240_v62 = vor.u32 %v3239_v53, %v3236_v7  ;;  %v3064_v50 = vld [vmem:[#allocation6 + $0x20] sm:$0xe]  ;;  %v3065_v38 = vld [vmem:[#allocation6 + $0x24] sm:$0x1]  ;;  %v2956_v52 = vrot.slane %v2954_v58, 5  ;;  %v2680_v28 = vshll.u32 %v2612_v17, 16  ;;  %v2373_v58 = vpop.f32.mrf.mxu2 }
 0x1a0   : > { %v3207_v29 = vld [vmem:[#allocation6 + $0x20] sm:$0xf]  ;;  %v3955_v32 = vrot.slane %v3064_v50, 9  ;;  %v3104_v4 = vrot.slane %v3065_v38, 5  ;;  %v3245_v30 = vrot.slane %v3243_v54, 5  ;;  %v2679_v9 = vrot.slane %v2677_v47, 4 }
 0x1a1   : > { %v2957_v43 = vsel %vm4285_vm7, %v2952_v13, %v2956_v52  ;;  %v3241_v12 = vrot.slane %v3240_v62, 4  ;;  %v2773_v5 = vld [vmem:[#allocation6 + $0x20] sm:$0xe]  ;;  %3050 = vst.msk [vmem:[#allocation8 + $0x4] sm:$0xf] %vm5539_vm2, %v2943_v57  ;;  %v3248_v40 = vshrl.u32 %v3207_v29, 16  ;;  %v509_v13 = vpop.permute.xlu0 %508  ;;  %vm5545_vm2 = vmmov %vm5536_vm1 }
 0x1a2   : > { %v2591_v51 = vld [vmem:[#allocation6 + $0x18] sm:$0xf]  ;;  %528 = vst.msk [vmem:[#allocation8 + $0x2c] sm:$0xf] %vm524_vm9, %v507_v2  ;;  %v2682_v10 = vrot.slane %v2680_v28, 5  ;;  %v3251_v35 = vshll.u32 %v3207_v29, 16  ;;  %v3105_v8 = vsel %vm5034_vm3, %v3955_v32, %v3104_v4 }
 0x1a3   : > { %3126 = vrot.lane.b32.xlu1 %v3101_v21, %s4183_s11  ;;  %v2918_v42 = vld [vmem:[#allocation6 + $0x18] sm:$0xf]  ;;  %v2774_v55 = vld [vmem:[#allocation6 + $0x24] sm:$0x1]  ;;  %3051 = vst.msk [vmem:[#allocation8 + $0x10] sm:$0xf] %vm5540_vm12, %v2957_v43  ;;  %v3246_v46 = vsel %vm4285_vm7, %v3241_v12, %v3245_v30  ;;  %vm5547_vm12 = vmmov %vm5536_vm1 }
 0x1a4   : > { %2599 = vst.msk [vmem:[#allocation8 + $0x24] sm:$0xf] %vm5541_vm14, %v2591_v51  ;;  %v3157_v16 = vld [vmem:[#allocation6 + $0x20] sm:$0xf]  ;;  %v2919_v37 = vld [vmem:[#allocation6 + $0x1c] sm:$0x1]  ;;  %v2683_v44 = vor.u32 %v2682_v10, %v2679_v9  ;;  %vm5548_vm14 = vmmov %vm5536_vm1 }
 0x1a5   : > { %v2959_v11 = vshrl.u32 %v2918_v42, 16  ;;  %v2962_v31 = vshll.u32 %v2918_v42, 16  ;;  %v2613_v59 = vld [vmem:[#allocation6 + $0x24] sm:$0x1]  ;;  %v3948_v60 = vrot.slane %v2773_v5, 9  ;;  %v2818_v3 = vrot.slane %v2774_v55, 5 }
 0x1a6   : > { %2887 = vrot.lane.b32.xlu0 %v2868_v26, %s4185_s13  ;;  %v3250_v6 = vrot.slane %v3248_v40, 4  ;;  %v3253_v63 = vrot.slane %v3251_v35, 5  ;;  %v2920_v14 = vld [vmem:[#allocation6 + $0x20] sm:$0xf]  ;;  %v2921_v33 = vld [vmem:[#allocation6 + $0x24] sm:$0x1] }
 0x1a7   : > { %3128 = vrot.lane.b32.xlu2 %v3105_v8, %s4183_s11  ;;  %v2961_v48 = vrot.slane %v2959_v11, 4  ;;  %v2973_v56 = vshrl.u32 %v2920_v14, 16  ;;  %v2976_v1 = vshll.u32 %v2920_v14, 16  ;;  %v2964_v7 = vrot.slane %v2962_v31, 5  ;;  %v2592_v45 = vld [vmem:[#allocation6 + $0x20] sm:$0xf]  ;;  %v2375_v30 = vpop.f32.mrf.mxu2 }
 0x1a8   : > { %v2968_v18 = vshll.u32 %v2919_v37, 16  ;;  %v2686_v20 = vshll.u32 %v2613_v59, 16  ;;  %2600 = vst.msk [vmem:[#allocation8 + $0x30] sm:$0xf] %vm5542_vm15, %v2592_v45  ;;  %v2982_v53 = vshll.u32 %v2921_v33, 16  ;;  %v2684_v26 = vrot.slane %v2683_v44, 4  ;;  %vm5549_vm15 = vmmov %vm5536_vm1 }
 0x1a9   : > { %v2975_v61 = vrot.slane %v2973_v56, 4  ;;  %v2978_v22 = vrot.slane %v2976_v1, 5  ;;  %v2965_v17 = vor.u32 %v2964_v7, %v2961_v48  ;;  %v2819_v25 = vsel %vm5034_vm3, %v3948_v60, %v2818_v3  ;;  %v3208_v54 = vld [vmem:[#allocation6 + $0x24] sm:$0x1]  ;;  %529 = vst.msk [vmem:[#allocation8 + $0x38] sm:$0xf] %vm524_vm9, %v509_v13 }
 0x1aa   : > { %v3254_v21 = vor.u32 %v3253_v63, %v3250_v6  ;;  %v2970_v38 = vrot.slane %v2968_v18, 5  ;;  %v2688_v57 = vrot.slane %v2686_v20, 5  ;;  %v3257_v52 = vshll.u32 %v3208_v54, 16  ;;  %v2564_v35 = vld [vmem:[#allocation6 + $0x28] sm:$0xf] }
 0x1ab   : > { %3333 = vrot.lane.b32.xlu1 %v3246_v46, %s4185_s13  ;;  %v2344_v39 = vpop.f32.mrf.mxu0  ;;  %v2979_v62 = vor.u32 %v2978_v22, %v2975_v61  ;;  %v2966_v50 = vrot.slane %v2965_v17, 4  ;;  %v2984_v29 = vrot.slane %v2982_v53, 5  ;;  %v2567_v8 = vld [vmem:[#allocation6 + $0x2c] sm:$0x1]  ;;  %v2419_v44 = vld [vmem:[#allocation6 + $0x38] sm:$0x1] }
 0x1ac   : > { %v2345_v19 = vadd.f32 %v5101_v34, %v2344_v39  ;;  %v2689_v43 = vsel %vm4285_vm7, %v2684_v26, %v2688_v57  ;;  %v3255_v5 = vrot.slane %v3254_v21, 4  ;;  %v3259_v40 = vrot.slane %v3257_v52, 5  ;;  %v2444_v63 = vld [vmem:[#allocation6 + $0x3c] sm:$0x1]  ;;  %v2570_v14 = vld [vmem:[#allocation6 + $0x30] sm:$0xf] }
 0x1ad   : > { %v2980_v28 = vrot.slane %v2979_v62, 4  ;;  %v2971_v32 = vsel %vm4285_vm7, %v2966_v50, %v2970_v38  ;;  %v2573_v33 = vld [vmem:[#allocation6 + $0x34] sm:$0x1]  ;;  %v2420_v48 = vsel %vm5074_vm0, 0, %v2419_v44  ;;  %v2445_v39 = vsel %vm5081_vm10, 0, %v2444_v63 }
 0x1ae   : > { %3175 = vrot.lane.b32.xlu0 %v3157_v16, %s4187_s15  ;;  %v2374_v0 = vadd.f32 %v2373_v58, %v2345_v19  ;;  %3052 = vst.msk [vmem:[#allocation8 + $0x1c] sm:$0xf] %vm5536_vm1, %v2971_v32  ;;  %v3260_v16 = vsel %vm4285_vm7, %v3255_v5, %v3259_v40  ;;  %v3990_v40 = vld [vmem:[#allocation8 + $0x20] sm:$0xf] }
 0x1af   : > { %2840 = vrot.lane.b32.xlu2 %v2819_v25, %s4187_s15  ;;  %v2985_v2 = vsel %vm4285_vm7, %v2980_v28, %v2984_v29  ;;  %2421 = vst [vmem:[#allocation6 + $0x38] sm:$0x1] %v2420_v48 }
 0x1b0   : > { %v2387_v47 = vmax.f32 %v2374_v0, 0.0  ;;  %3053 = vst.msk [vmem:[#allocation8 + $0x28] sm:$0xf] %vm5543_vm4, %v2985_v2 }
 0x1b1   : > { %2446 = vst [vmem:[#allocation6 + $0x3c] sm:$0x1] %v2445_v39 }
 0x1b2   : > { %v2454_v4 = vpack.c.bf16 %v2387_v47, %v2387_v47 }
 0x1b3   : > { %v2346_v12 = vpop.f32.mrf.mxu0 }
 0x1b4   : > { %v2491_v51 = vshrl.u32 %v2454_v4, 16  ;;  %v2347_v9 = vadd.f32 %v5101_v34, %v2346_v12  ;;  %v2494_v10 = vshll.u32 %v2454_v4, 16 }
 0x1b6   : > { %2740 = vrot.lane.b32.xlu0 %v2689_v43, %s4183_s11  ;;  %v2493_v42 = vrot.slane %v2491_v51, 7  ;;  %v2376_v55 = vadd.f32 %v2375_v30, %v2347_v9 }
 0x1b7   : > { %3335 = vrot.lane.b32.xlu2 %v3260_v16, %s4185_s13 }
 0x1b8   : > { %v2496_v46 = vor.u32 %v2494_v10, %v2493_v42  ;;  %v2497_v37 = vrot.slane %v2493_v42, 4  ;;  %v2388_v11 = vmax.f32 %v2376_v55, 0.0 }
 0x1ba   : > { %v2565_v31 = vsel %vm5112_vm13, %v2496_v46, %v2564_v35  ;;  %v2568_v58 = vsel %vm5074_vm0, %v2497_v37, %v2567_v8  ;;  %v2455_v59 = vpack.c.bf16 %v2388_v11, %v2388_v11  ;;  %v2422_v35 = vld [vmem:[#allocation6 + $0x40] sm:$0x1]  ;;  %v2447_v37 = vld [vmem:[#allocation6 + $0x44] sm:$0x1] }
 0x1bb   : > { %2566 = vst [vmem:[#allocation6 + $0x28] sm:$0xf] %v2565_v31  ;;  %v2423_v46 = vsel %vm5074_vm0, 0, %v2422_v35 }
 0x1bc   : > { %2569 = vst [vmem:[#allocation6 + $0x2c] sm:$0x1] %v2568_v58  ;;  %v2499_v60 = vshrl.u32 %v2455_v59, 16  ;;  %v2502_v6 = vshll.u32 %v2455_v59, 16  ;;  %v2448_v59 = vsel %vm5081_vm10, 0, %v2447_v37  ;;  %vm5546_vm10 = vmmov %vm5536_vm1  ;;  %vm2905_vm1 = vcmask 1044224  }
 0x1bd   : > { %2424 = vst [vmem:[#allocation6 + $0x40] sm:$0x1] %v2423_v46 }
 0x1be   : > { %v2501_v3 = vrot.slane %v2499_v60, 7  ;;  %2449 = vst [vmem:[#allocation6 + $0x44] sm:$0x1] %v2448_v59 }
 0x1c0   : > { %v2504_v56 = vor.u32 %v2502_v6, %v2501_v3  ;;  %v2505_v1 = vrot.slane %v2501_v3, 4 }
 0x1c2   : > { %v2571_v7 = vsel %vm5112_vm13, %v2504_v56, %v2570_v14  ;;  %v2574_v18 = vsel %vm5074_vm0, %v2505_v1, %v2573_v33  ;;  %v3158_v45 = vld [vmem:[#allocation6 + $0x28] sm:$0xf] }
 0x1c3   : > { %v3369_v19 = vld [vmem:[#allocation6 + $0x28] sm:$0xe]  ;;  %2572 = vst [vmem:[#allocation6 + $0x30] sm:$0xf] %v2571_v7  ;;  %3177 = vrot.lane.b32.xlu1 %v3158_v45, %s4187_s15  ;;  %v3370_v61 = vld [vmem:[#allocation6 + $0x2c] sm:$0x1]  ;;  %v511_v45 = vpop.permute.xlu1 %510 }
 0x1c4   : > { %v2775_v20 = vld [vmem:[#allocation6 + $0x28] sm:$0xe]  ;;  %v3963_v22 = vrot.slane %v3369_v19, 9  ;;  %2575 = vst [vmem:[#allocation6 + $0x34] sm:$0x1] %v2574_v18  ;;  %v3409_v17 = vrot.slane %v3370_v61, 5 }
 0x1c5   : > { %v3949_v53 = vrot.slane %v2775_v20, 9  ;;  %v2776_v0 = vld [vmem:[#allocation6 + $0x2c] sm:$0x1]  ;;  %v2614_v54 = vld [vmem:[#allocation6 + $0x28] sm:$0xf]  ;;  %v4136_v18 = vld [vmem:[%s5514_s5 + $0x38] sm:$0xff] }
 0x1c6   : > { %v2822_v26 = vrot.slane %v2776_v0, 5  ;;  %v3410_v25 = vsel %vm5034_vm3, %v3963_v22, %v3409_v17  ;;  %v2691_v21 = vshrl.u32 %v2614_v54, 16  ;;  %v2869_v62 = vld [vmem:[#allocation6 + $0x28] sm:$0xf]  ;;  %v3067_v38 = vld [vmem:[#allocation6 + $0x2c] sm:$0x1]  ;;  %3688 = vmatpush.bf16.msrb.mxu2 %v4136_v18 }
 0x1c7   : > { %3438 = vst.msk [vmem:[#allocation8 + $0x2c] sm:$0xf] %vm5544_vm8, %v3410_v25  ;;  %v3066_v50 = vld [vmem:[#allocation6 + $0x28] sm:$0xe]  ;;  %v2694_v47 = vshll.u32 %v2614_v54, 16  ;;  %v3108_v2 = vrot.slane %v3067_v38, 5 }
 0x1c8   : > { %v2823_v13 = vsel %vm5034_vm3, %v3949_v53, %v2822_v26  ;;  %v2615_v57 = vld [vmem:[#allocation6 + $0x2c] sm:$0x1]  ;;  %v2693_v52 = vrot.slane %v2691_v21, 4  ;;  %v3209_v28 = vld [vmem:[#allocation6 + $0x28] sm:$0xf]  ;;  %v3956_v5 = vrot.slane %v3066_v50, 9 }
 0x1c9   : > { %2842 = vrot.lane.b32.xlu0 %v2823_v13, %s4187_s15  ;;  %v2696_v4 = vrot.slane %v2694_v47, 5  ;;  %v3262_v43 = vshrl.u32 %v3209_v28, 16  ;;  %v3265_v51 = vshll.u32 %v3209_v28, 16  ;;  %v2700_v10 = vshll.u32 %v2615_v57, 16  ;;  %v3210_v8 = vld [vmem:[#allocation6 + $0x2c] sm:$0x1] }
 0x1ca   : > { %v3371_v29 = vld [vmem:[#allocation6 + $0x30] sm:$0xe]  ;;  %v3109_v60 = vsel %vm5034_vm3, %v3956_v5, %v3108_v2  ;;  %v3271_v63 = vshll.u32 %v3210_v8, 16  ;;  %530 = vst.msk [vmem:[#allocation8 + $0x44] sm:$0xf] %vm524_vm9, %v511_v45  ;;  %v4134_v57 = vld [vmem:[%s5514_s5 + $0x28] sm:$0xff] }
 0x1cb   : > { %v2870_v32 = vld [vmem:[#allocation6 + $0x30] sm:$0xf]  ;;  %2889 = vrot.lane.b32.xlu1 %v2869_v62, %s4185_s13  ;;  %v3372_v12 = vld [vmem:[#allocation6 + $0x34] sm:$0x1]  ;;  %v3964_v30 = vrot.slane %v3371_v29, 9  ;;  %v2697_v42 = vor.u32 %v2696_v4, %v2693_v52  ;;  %v3264_v55 = vrot.slane %v3262_v43, 4  ;;  %v2378_v29 = vpop.f32.mrf.mxu2 }
 0x1cc   : > { %2891 = vrot.lane.b32.xlu2 %v2870_v32, %s4185_s13  ;;  %v3413_v9 = vrot.slane %v3372_v12, 5  ;;  %v3267_v16 = vrot.slane %v3265_v51, 5  ;;  %v2702_v44 = vrot.slane %v2700_v10, 5  ;;  %v2616_v14 = vld [vmem:[#allocation6 + $0x30] sm:$0xf]  ;;  %v3273_v17 = vrot.slane %v3271_v63, 5 }
 0x1cd   : > { %v2698_v58 = vrot.slane %v2697_v42, 4  ;;  %v3159_v33 = vld [vmem:[#allocation6 + $0x30] sm:$0xf]  ;;  %v2617_v48 = vld [vmem:[#allocation6 + $0x34] sm:$0x1]  ;;  %v2705_v39 = vshrl.u32 %v2616_v14, 16 }
 0x1ce   : > { %v3414_v11 = vsel %vm5034_vm3, %v3964_v30, %v3413_v9  ;;  %v4122_v31 = vld [vmem:[#allocation8 + $0x28] sm:$0xf0]  ;;  %v3268_v6 = vor.u32 %v3267_v16, %v3264_v55  ;;  %v2708_v15 = vshll.u32 %v2616_v14, 16  ;;  %v3068_v1 = vld [vmem:[#allocation6 + $0x30] sm:$0xe]  ;;  %v2714_v22 = vshll.u32 %v2617_v48, 16 }
 0x1cf   : > { %3439 = vst.msk [vmem:[#allocation8 + $0x38] sm:$0xf] %vm5545_vm2, %v3414_v11  ;;  %v3991_v3 = vor.u32 %v4122_v31, %v3990_v40  ;;  %v2703_v56 = vsel %vm4285_vm7, %v2698_v58, %v2702_v44  ;;  %v3069_v7 = vld [vmem:[#allocation6 + $0x34] sm:$0x1]  ;;  %v2707_v20 = vrot.slane %v2705_v39, 4  ;;  %v3957_v0 = vrot.slane %v3068_v1, 9 }
 0x1d0   : > { %v3269_v19 = vrot.slane %v3268_v6, 4  ;;  %v2710_v61 = vrot.slane %v2708_v15, 5  ;;  %v4135_v53 = vld [vmem:[%s5514_s5 + $0x30] sm:$0xff]  ;;  %v3112_v26 = vrot.slane %v3069_v7, 5  ;;  %v2716_v50 = vrot.slane %v2714_v22, 5  ;;  %v4132_v48 = vld [vmem:[%s5514_s5 + $0x18] sm:$0xff] }
 0x1d1   : > { %3130 = vrot.lane.b32.xlu0 %v3109_v60, %s4183_s11  ;;  %4093 = vmatmul.msk.bf16.gmra.mxu1 %vm3675_vm5, %v3991_v3  ;;  %v3211_v54 = vld [vmem:[#allocation6 + $0x30] sm:$0xf]  ;;  %v2778_v47 = vld [vmem:[#allocation6 + $0x34] sm:$0x1]  ;;  %v2922_v28 = vld [vmem:[#allocation6 + $0x28] sm:$0xf] }
 0x1d2   : > { %v2711_v25 = vor.u32 %v2710_v61, %v2707_v20  ;;  %v3274_v13 = vsel %vm4285_vm7, %v3269_v19, %v3273_v17  ;;  %v2777_v38 = vld [vmem:[#allocation6 + $0x30] sm:$0xe]  ;;  %3689 = vmatpush.bf16.msrb.mxu2 %v4135_v53  ;;  %v3113_v4 = vsel %vm5034_vm3, %v3957_v0, %v3112_v26  ;;  %v3276_v43 = vshrl.u32 %v3211_v54, 16  ;;  %v2923_v12 = vld [vmem:[#allocation6 + $0x2c] sm:$0x1] }
 0x1d3   : > { %2742 = vrot.lane.b32.xlu1 %v2703_v56, %s4183_s11  ;;  %v2594_v52 = vld [vmem:[#allocation6 + $0x30] sm:$0xf]  ;;  %v2987_v30 = vshrl.u32 %v2922_v28, 16  ;;  %v3279_v51 = vshll.u32 %v3211_v54, 16  ;;  %v2990_v9 = vshll.u32 %v2922_v28, 16  ;;  %v2996_v8 = vshll.u32 %v2923_v12, 16  ;;  %v2380_v53 = vpop.f32.mrf.mxu2 }
 0x1d4   : > { %3179 = vrot.lane.b32.xlu2 %v3159_v33, %s4187_s15  ;;  %v2712_v62 = vrot.slane %v2711_v25, 4  ;;  %2602 = vst.msk [vmem:[#allocation8 + $0x48] sm:$0xf] %vm5546_vm10, %v2594_v52  ;;  %v2593_v40 = vld [vmem:[#allocation6 + $0x28] sm:$0xf]  ;;  %v3950_v37 = vrot.slane %v2777_v38, 9 }
 0x1d5   : > { %v2924_v42 = vld [vmem:[#allocation6 + $0x30] sm:$0xf]  ;;  %v2989_v10 = vrot.slane %v2987_v30, 4  ;;  %2601 = vst.msk [vmem:[#allocation8 + $0x3c] sm:$0xf] %vm5547_vm12, %v2593_v40  ;;  %v2992_v35 = vrot.slane %v2990_v9, 5 }
 0x1d6   : > { %v2717_v2 = vsel %vm4285_vm7, %v2712_v62, %v2716_v50  ;;  %3690 = vmatpush.bf16.msrb.mxu2 %v4134_v57  ;;  %v2925_v16 = vld [vmem:[#allocation6 + $0x34] sm:$0x1]  ;;  %v3001_v46 = vshrl.u32 %v2924_v42, 16  ;;  %v2826_v11 = vrot.slane %v2778_v47, 5  ;;  %v3278_v31 = vrot.slane %v3276_v43, 4  ;;  %v4130_v30 = vld [vmem:[%s5514_s5 + $0x8] sm:$0xff] }
 0x1d7   : > { %v3004_v58 = vshll.u32 %v2924_v42, 16  ;;  %v3281_v60 = vrot.slane %v3279_v51, 5  ;;  %v2993_v3 = vor.u32 %v2992_v35, %v2989_v10  ;;  %v3010_v14 = vshll.u32 %v2925_v16, 16  ;;  %v3212_v7 = vld [vmem:[#allocation6 + $0x34] sm:$0x1]  ;;  %v4129_v10 = vld [vmem:[%s5514_s5] sm:$0xff] }
 0x1d8   : > { %v3003_v6 = vrot.slane %v3001_v46, 4  ;;  %v2998_v15 = vrot.slane %v2996_v8, 5  ;;  %v2827_v1 = vsel %vm5034_vm3, %v3950_v37, %v2826_v11  ;;  %v4173_v19 = vld [vmem:[%s5513_s4] ss:$0 sm:$0xff]  ;;  %v4131_v62 = vld [vmem:[%s5514_s5 + $0x10] sm:$0xff] }
 0x1d9   : > { %v5298_v21 = vpop.permute.xlu2 %2834  ;;  %3337 = vrot.lane.b32.xlu0 %v3274_v13, %s4185_s13  ;;  %v3006_v63 = vrot.slane %v3004_v58, 5  ;;  %v2994_v39 = vrot.slane %v2993_v3, 4  ;;  %v3282_v61 = vor.u32 %v3281_v60, %v3278_v31  ;;  %v3012_v0 = vrot.slane %v3010_v14, 5  ;;  %v2576_v50 = vld [vmem:[#allocation6 + $0x38] sm:$0xf] }
 0x1da   : > { %v2349_v32 = vpop.f32.mrf.mxu0  ;;  %v3285_v13 = vshll.u32 %v3212_v7, 16  ;;  %v2579_v38 = vld [vmem:[#allocation6 + $0x3c] sm:$0x1]  ;;  %v3217_v16 = vld [vmem:[#allocation6 + $0x48] sm:$0xf] }
 0x1db   : > { %v2350_v5 = vadd.f32 %v5101_v34, %v2349_v32  ;;  %3132 = vrot.lane.b32.xlu1 %v3113_v4, %s4183_s11  ;;  %v4133_v34 = vld [vmem:[%s5514_s5 + $0x20] sm:$0xff]  ;;  %v3007_v18 = vor.u32 %v3006_v63, %v3003_v6  ;;  %v2999_v22 = vsel %vm4285_vm7, %v2994_v39, %v2998_v15  ;;  %v3318_v24 = vshrl.u32 %v3217_v16, 16 }
 0x1dc   : > { %2744 = vrot.lane.b32.xlu2 %v2717_v2, %s4183_s11  ;;  %3691 = vmatpush.bf16.msrb.mxu2 %v4133_v34  ;;  %3054 = vst.msk [vmem:[#allocation8 + $0x34] sm:$0xf] %vm5548_vm14, %v2999_v22  ;;  %v3287_v12 = vrot.slane %v3285_v13, 5  ;;  %v2585_v34 = vld [vmem:[#allocation6 + $0x44] sm:$0x1] }
 0x1dd   : > { %v2379_v55 = vadd.f32 %v2378_v29, %v2350_v5  ;;  %v3008_v17 = vrot.slane %v3007_v18, 4  ;;  %v3283_v29 = vrot.slane %v3282_v61, 4  ;;  %v5363_v61 = vld [vmem:[#allocation6 + $0x4c] sm:$0x1] }
 0x1df   : > { %v2389_v59 = vmax.f32 %v2379_v55, 0.0  ;;  %v3013_v47 = vsel %vm4285_vm7, %v3008_v17, %v3012_v0  ;;  %v3288_v2 = vsel %vm4285_vm7, %v3283_v29, %v3287_v12  ;;  %v2582_v55 = vld [vmem:[#allocation6 + $0x40] sm:$0xf]  ;;  %v3327_v29 = vshll.u32 %v5363_v61, 16 }
 0x1e0   : > { %3692 = vmatpush.bf16.msrb.mxu2 %v4132_v48  ;;  %3055 = vst.msk [vmem:[#allocation8 + $0x40] sm:$0xf] %vm5549_vm15, %v3013_v47  ;;  %v3321_v48 = vshll.u32 %v3217_v16, 16 }
 0x1e1   : > { %v3123_v44 = vpop.permute.xlu2 %3122  ;;  %v2456_v33 = vpack.c.bf16 %v2389_v59, %v2389_v59 }
 0x1e2   : > { %3146 = vst.msk [vmem:[#allocation8 + $0x4] sm:$0xf] %vm2756_vm11, %v3123_v44  ;;  %v2351_v56 = vpop.f32.mrf.mxu0  ;;  %v3323_v13 = vrot.slane %v3321_v48, 5  ;;  %v3329_v48 = vrot.slane %v3327_v29, 5 }
 0x1e3   : > { %v2507_v45 = vshrl.u32 %v2456_v33, 16  ;;  %v2352_v20 = vadd.f32 %v4173_v19, %v2351_v56  ;;  %2844 = vrot.lane.b32.xlu1 %v2827_v1, %s4187_s15  ;;  %v2510_v25 = vshll.u32 %v2456_v33, 16 }
 0x1e4   : > { %3693 = vmatpush.bf16.msrb.mxu2 %v4131_v62 }
 0x1e5   : > { %v2509_v26 = vrot.slane %v2507_v45, 7  ;;  %v2381_v54 = vadd.f32 %v2380_v53, %v2352_v20 }
 0x1e7   : > { %v2512_v57 = vor.u32 %v2510_v25, %v2509_v26  ;;  %v2513_v52 = vrot.slane %v2509_v26, 4  ;;  %v2390_v28 = vmax.f32 %v2381_v54, 0.0  ;;  %v3320_v54 = vrot.slane %v3318_v24, 4 }
 0x1e8   : > { %3694 = vmatpush.bf16.msrb.mxu2 %v4130_v30  ;;  %v4144_v30 = vld [vmem:[%s5514_s5 + $0x78] sm:$0xff] }
 0x1e9   : > { %v2577_v32 = vsel %vm5112_vm13, %v2512_v57, %v2576_v50  ;;  %v2580_v4 = vsel %vm5074_vm0, %v2513_v52, %v2579_v38  ;;  %v2457_v43 = vpack.c.bf16 %v2390_v28, %v2390_v28  ;;  %v5344_v51 = vpop.permute.xlu2 %3173  ;;  %v4002_v52 = vld [vmem:[#allocation8 + $0x38] sm:$0xf]  ;;  %3717 = vmatpush.bf16.msra.mxu3 %v4144_v30 }
 0x1ea   : > { %2578 = vst [vmem:[#allocation6 + $0x38] sm:$0xf] %v2577_v32 }
 0x1eb   : > { %2581 = vst [vmem:[#allocation6 + $0x3c] sm:$0x1] %v2580_v4  ;;  %v2515_v5 = vshrl.u32 %v2457_v43, 16  ;;  %3339 = vrot.lane.b32.xlu1 %v3288_v2, %s4185_s13  ;;  %v2518_v42 = vshll.u32 %v2457_v43, 16 }
 0x1ec   : > { %3695 = vmatpush.bf16.msrb.mxu2 %v4129_v10 }
 0x1ed   : > { %v2882_v9 = vpop.permute.xlu0 %2881  ;;  %v2517_v40 = vrot.slane %v2515_v5, 7 }
 0x1ee   : > { %2906 = vst.msk [vmem:[#allocation8] sm:$0xf] %vm2905_vm1, %v2882_v9 }
 0x1ef   : > { %v2520_v35 = vor.u32 %v2518_v42, %v2517_v40  ;;  %v2521_v8 = vrot.slane %v2517_v40, 4  ;;  %v3324_v42 = vor.u32 %v3323_v13, %v3320_v54 }
 0x1f1   : > { %v2583_v46 = vsel %vm5112_vm13, %v2520_v35, %v2582_v55  ;;  %v2586_v37 = vsel %vm5074_vm0, %v2521_v8, %v2585_v34  ;;  %v3160_v11 = vld [vmem:[#allocation6 + $0x38] sm:$0xf]  ;;  %v5356_v63 = vpop.permute.xlu2 %2885  ;;  %vm5550_vm0 = vmmov %vm5545_vm2 }
 0x1f2   : > { %v3373_v31 = vld [vmem:[#allocation6 + $0x38] sm:$0xe]  ;;  %2584 = vst [vmem:[#allocation6 + $0x40] sm:$0xf] %v2583_v46  ;;  %3181 = vrot.lane.b32.xlu0 %v3160_v11, %s4187_s15  ;;  %v3374_v59 = vld [vmem:[#allocation6 + $0x3c] sm:$0x1]  ;;  %vm5551_vm13 = vmmov %vm5550_vm0 }
 0x1f3   : > { %v2779_v58 = vld [vmem:[#allocation6 + $0x38] sm:$0xe]  ;;  %v3965_v60 = vrot.slane %v3373_v31, 9  ;;  %2587 = vst [vmem:[#allocation6 + $0x44] sm:$0x1] %v2586_v37  ;;  %v3417_v6 = vrot.slane %v3374_v59, 5  ;;  %vm5552_vm4 = vmmov %vm5550_vm0 }
 0x1f4   : > { %v3951_v3 = vrot.slane %v2779_v58, 9  ;;  %v2780_v44 = vld [vmem:[#allocation6 + $0x3c] sm:$0x1]  ;;  %v3213_v33 = vld [vmem:[#allocation6 + $0x38] sm:$0xf]  ;;  %v4143_v37 = vld [vmem:[%s5514_s5 + $0x70] sm:$0xff] }
 0x1f5   : > { %v2830_v41 = vrot.slane %v2780_v44, 5  ;;  %v2884_v14 = vpop.permute.xlu1 %2883  ;;  %v3418_v39 = vsel %vm5034_vm3, %v3965_v60, %v3417_v6  ;;  %v3214_v15 = vld [vmem:[#allocation6 + $0x3c] sm:$0x1]  ;;  %v3290_v56 = vshrl.u32 %v3213_v33, 16  ;;  %v3293_v1 = vshll.u32 %v3213_v33, 16  ;;  %3718 = vmatpush.bf16.msra.mxu3 %v4143_v37  ;;  %vm5553_vm8 = vmmov %vm5550_vm0 }
 0x1f6   : > { %v2618_v7 = vld [vmem:[#allocation6 + $0x38] sm:$0xf]  ;;  %3440 = vst.msk [vmem:[#allocation8 + $0x44] sm:$0xf] %vm5550_vm0, %v3418_v39  ;;  %v2619_v19 = vld [vmem:[#allocation6 + $0x3c] sm:$0x1] }
 0x1f7   : > { %v2831_v18 = vsel %vm5034_vm3, %v3951_v3, %v2830_v41  ;;  %v2719_v20 = vshrl.u32 %v2618_v7, 16  ;;  %v2871_v22 = vld [vmem:[#allocation6 + $0x38] sm:$0xf]  ;;  %v3292_v53 = vrot.slane %v3290_v56, 4  ;;  %v3295_v17 = vrot.slane %v3293_v1, 5 }
 0x1f8   : > { %v2735_v45 = vpop.permute.xlu0 %2734  ;;  %2846 = vrot.lane.b32.xlu2 %v2831_v18, %s4187_s15  ;;  %v2722_v0 = vshll.u32 %v2618_v7, 16  ;;  %v3299_v26 = vshll.u32 %v3214_v15, 16  ;;  %v2728_v47 = vshll.u32 %v2619_v19, 16  ;;  %v3070_v43 = vld [vmem:[#allocation6 + $0x38] sm:$0xe]  ;;  %v3325_v44 = vrot.slane %v3324_v42, 4 }
 0x1f9   : > { %2758 = vst.msk [vmem:[#allocation8 + $0xc] sm:$0xf] %vm2756_vm11, %v2735_v45  ;;  %v2721_v25 = vrot.slane %v2719_v20, 4  ;;  %v2872_v62 = vld [vmem:[#allocation6 + $0x40] sm:$0xf]  ;;  %v3296_v50 = vor.u32 %v3295_v17, %v3292_v53  ;;  %v2739_v32 = vpop.permute.xlu2 %2738  ;;  %v3958_v11 = vrot.slane %v3070_v43, 9 }
 0x1fa   : > { %2858 = vst.msk [vmem:[#allocation8 + $0xc] sm:$0xf] %vm2856_vm6, %v5298_v21  ;;  %v2724_v38 = vrot.slane %v2722_v0, 5  ;;  %2893 = vrot.lane.b32.xlu0 %v2871_v22, %s4185_s13  ;;  %2895 = vrot.lane.b32.xlu1 %v2872_v62, %s4185_s13  ;;  %v3301_v21 = vrot.slane %v3299_v26, 5  ;;  %v3071_v12 = vld [vmem:[#allocation6 + $0x3c] sm:$0x1]  ;;  %v3330_v26 = vsel %vm4285_vm7, %v3325_v44, %v3329_v48 }
 0x1fb   : > { %2907 = vst.msk [vmem:[#allocation8 + $0xc] sm:$0xf] %vm2905_vm1, %v2884_v14  ;;  %v3297_v57 = vrot.slane %v3296_v50, 4  ;;  %v2730_v9 = vrot.slane %v2728_v47, 5  ;;  %v3072_v40 = vld [vmem:[#allocation6 + $0x40] sm:$0xe] }
 0x1fc   : > { %v2725_v28 = vor.u32 %v2724_v38, %v2721_v25  ;;  %v3073_v35 = vld [vmem:[#allocation6 + $0x44] sm:$0x1]  ;;  %v3215_v8 = vld [vmem:[#allocation6 + $0x40] sm:$0xf]  ;;  %2760 = vst.msk [vmem:[#allocation8 + $0x24] sm:$0xf] %vm2756_vm11, %v2739_v32 }
 0x1fd   : > { %v3172_v4 = vpop.permute.xlu1 %3171  ;;  %v4125_v5 = vld [vmem:[#allocation8 + $0x40] sm:$0xf0]  ;;  %v3302_v10 = vsel %vm4285_vm7, %v3297_v57, %v3301_v21  ;;  %v3970_v16 = vld [vmem:[#allocation8] sm:$0xf]  ;;  %v3304_v46 = vshrl.u32 %v3215_v8, 16  ;;  %v3307_v58 = vshll.u32 %v3215_v8, 16 }
 0x1fe   : > { %v2726_v2 = vrot.slane %v2725_v28, 4  ;;  %3195 = vst.msk [vmem:[#allocation8 + $0x4] sm:$0xf] %vm2856_vm6, %v3172_v4  ;;  %v4003_v55 = vor.u32 %v4125_v5, %v4002_v52  ;;  %v3161_v60 = vld [vmem:[#allocation6 + $0x40] sm:$0xf]  ;;  %v3116_v3 = vrot.slane %v3071_v12, 5 }
 0x1ff   : > { %v3959_v41 = vrot.slane %v3072_v40, 9  ;;  %v3120_v14 = vrot.slane %v3073_v35, 5  ;;  %v2926_v33 = vld [vmem:[#allocation6 + $0x38] sm:$0xf]  ;;  %v2927_v24 = vld [vmem:[#allocation6 + $0x3c] sm:$0x1] }
 0x200   : > { %v3125_v34 = vpop.permute.xlu0 %3124  ;;  %3341 = vrot.lane.b32.xlu2 %v3302_v10, %s4185_s13  ;;  %4094 = vmatmul.msk.bf16.gmra.mxu1 %vm3675_vm5, %v4003_v55  ;;  %v2731_v59 = vsel %vm4285_vm7, %v2726_v2, %v2730_v9  ;;  %v4142_v15 = vld [vmem:[%s5514_s5 + $0x68] sm:$0xff]  ;;  %v3015_v56 = vshrl.u32 %v2926_v33, 16  ;;  %v3018_v1 = vshll.u32 %v2926_v33, 16  ;;  %v3309_v18 = vrot.slane %v3307_v58, 5  ;;  %v2595_v19 = vld [vmem:[#allocation6 + $0x38] sm:$0xf] }
 0x201   : > { %3147 = vst.msk [vmem:[#allocation8 + $0x10] sm:$0xf] %vm2756_vm11, %v3125_v34  ;;  %v3129_v39 = vpop.permute.xlu2 %3128  ;;  %v3024_v45 = vshll.u32 %v2927_v24, 16  ;;  %v3117_v22 = vsel %vm5034_vm3, %v3958_v11, %v3116_v3  ;;  %v2928_v17 = vld [vmem:[#allocation6 + $0x40] sm:$0xf]  ;;  %3719 = vmatpush.bf16.msra.mxu3 %v4142_v15  ;;  %v3121_v50 = vsel %vm5034_vm3, %v3959_v41, %v3120_v14  ;;  %v4140_v4 = vld [vmem:[%s5514_s5 + $0x58] sm:$0xff] }
 0x202   : > { %3196 = vst.msk [vmem:[#allocation8 + $0x10] sm:$0xf] %vm2856_vm6, %v5344_v51  ;;  %v4118_v31 = vld [vmem:[#allocation8 + $0x8] sm:$0xf0]  ;;  %2746 = vrot.lane.b32.xlu0 %v2731_v59, %s4183_s11  ;;  %3183 = vrot.lane.b32.xlu1 %v3161_v60, %s4187_s15  ;;  %v3306_v51 = vrot.slane %v3304_v46, 4  ;;  %v3017_v20 = vrot.slane %v3015_v56, 4 }
 0x203   : > { %v3971_v6 = vor.u32 %v4118_v31, %v3970_v16  ;;  %3149 = vst.msk [vmem:[#allocation8 + $0x28] sm:$0xf] %vm2756_vm11, %v3129_v39  ;;  %v3020_v61 = vrot.slane %v3018_v1, 5  ;;  %v2929_v0 = vld [vmem:[#allocation6 + $0x44] sm:$0x1]  ;;  %v3029_v13 = vshrl.u32 %v2928_v17, 16 }
 0x204   : > { %2603 = vst.msk [vmem:[#allocation8 + $0x54] sm:$0xf] %vm5551_vm13, %v2595_v19  ;;  %v4141_v25 = vld [vmem:[%s5514_s5 + $0x60] sm:$0xff]  ;;  %v3032_v62 = vshll.u32 %v2928_v17, 16  ;;  %v3310_v47 = vor.u32 %v3309_v18, %v3306_v51  ;;  %v3026_v57 = vrot.slane %v3024_v45, 5  ;;  %v3038_v32 = vshll.u32 %v2929_v0, 16 }
 0x205   : > { %3696 = vmatmul.bf16.vlgmr.msrb.gmra.mxu2 %v3971_v6  ;;  %v2737_v7 = vpop.permute.xlu1 %2736  ;;  %v3021_v54 = vor.u32 %v3020_v61, %v3017_v20  ;;  %v3216_v38 = vld [vmem:[#allocation6 + $0x44] sm:$0x1]  ;;  %v3031_v28 = vrot.slane %v3029_v13, 4  ;;  %3720 = vmatpush.bf16.msra.mxu3 %v4141_v25  ;;  %v3162_v12 = vld [vmem:[#allocation6 + $0x48] sm:$0xf]  ;;  %v4139_v10 = vld [vmem:[%s5514_s5 + $0x50] sm:$0xff] }
 0x206   : > { %2759 = vst.msk [vmem:[#allocation8 + $0x18] sm:$0xf] %vm2756_vm11, %v2737_v7  ;;  %v3034_v29 = vrot.slane %v3032_v62, 5  ;;  %v3313_v21 = vshll.u32 %v3216_v38, 16  ;;  %v3311_v5 = vrot.slane %v3310_v47, 4  ;;  %v3040_v9 = vrot.slane %v3038_v32, 5 }
 0x207   : > { %v3022_v52 = vrot.slane %v3021_v54, 4  ;;  %v4138_v8 = vld [vmem:[%s5514_s5 + $0x48] sm:$0xff]  ;;  %v3375_v54 = vld [vmem:[#allocation6 + $0x40] sm:$0xe]  ;;  %v3376_v13 = vld [vmem:[#allocation6 + $0x44] sm:$0x1] }
 0x208   : > { %v2837_v53 = vpop.permute.xlu0 %2836  ;;  %3134 = vrot.lane.b32.xlu2 %v3117_v22, %s4183_s11  ;;  %v3035_v43 = vor.u32 %v3034_v29, %v3031_v28  ;;  %v3315_v42 = vrot.slane %v3313_v21, 5 }
 0x209   : > { %2859 = vst.msk [vmem:[#allocation8 + $0x18] sm:$0xf] %vm2856_vm6, %v2837_v53  ;;  %3721 = vmatpush.bf16.msra.mxu3 %v4140_v4  ;;  %v2841_v35 = vpop.permute.xlu2 %2840 }
 0x20a   : > { %2908 = vst.msk [vmem:[#allocation8 + $0x18] sm:$0xf] %vm2905_vm1, %v5356_v63  ;;  %3136 = vrot.lane.b32.xlu0 %v3121_v50, %s4183_s11  ;;  %3345 = vrot.lane.b32.xlu1 %v3330_v26, %s4185_s13  ;;  %v3027_v63 = vsel %vm4285_vm7, %v3022_v52, %v3026_v57  ;;  %v3036_v2 = vrot.slane %v3035_v43, 4  ;;  %v3316_v34 = vsel %vm4285_vm7, %v3311_v5, %v3315_v42  ;;  %v3966_v57 = vrot.slane %v3375_v54, 9 }
 0x20b   : > { %3056 = vst.msk [vmem:[#allocation8 + $0x4c] sm:$0xf] %vm5552_vm4, %v3027_v63  ;;  %v3421_v52 = vrot.slane %v3376_v13, 5 }
 0x20c   : > { %v3041_v55 = vsel %vm4285_vm7, %v3036_v2, %v3040_v9  ;;  %vm5554_vm7 = vmmov %vm5550_vm0  ;;  %v3377_v9 = vld [vmem:[#allocation6 + $0x48] sm:$0xe] }
 0x20d   : > { %v2839_v30 = vpop.permute.xlu1 %2838  ;;  %3057 = vst.msk [vmem:[#allocation8 + $0x58] sm:$0xf] %vm5553_vm8, %v3041_v55  ;;  %3722 = vmatpush.bf16.msra.mxu3 %v4139_v10  ;;  %v3422_v32 = vsel %vm5034_vm3, %v3966_v57, %v3421_v52  ;;  %v3967_v42 = vrot.slane %v3377_v9, 9 }
 0x20e   : > { %2860 = vst.msk [vmem:[#allocation8 + $0x24] sm:$0xf] %vm2856_vm6, %v2839_v30 }
 0x210   : > { %v3332_v40 = vpop.permute.xlu0 %3331  ;;  %3185 = vrot.lane.b32.xlu2 %v3162_v12, %s4187_s15 }
 0x211   : > { %3355 = vst.msk [vmem:[#allocation8 + $0x4] sm:$0xf] %vm2905_vm1, %v3332_v40  ;;  %3723 = vmatpush.bf16.msra.mxu3 %v4138_v8  ;;  %v3336_v37 = vpop.permute.xlu2 %3335  ;;  %v3982_v58 = vld [vmem:[#allocation8 + $0x18] sm:$0xf]  ;;  %v3378_v40 = vld [vmem:[#allocation6 + $0x4c] sm:$0x1] }
 0x212   : > { %3343 = vrot.lane.b32.xlu0 %v3316_v34, %s4185_s13  ;;  %v3425_v10 = vrot.slane %v3378_v40, 5 }
 0x214   : > { %v3426_v34 = vsel %vm5034_vm3, %v3967_v42, %v3425_v10 }
 0x215   : > { %v3127_v16 = vpop.permute.xlu1 %3126  ;;  %3724 = vmatpush.bf16.msra.mxu3 %v4137_v36 }
 0x216   : > { %3148 = vst.msk [vmem:[#allocation8 + $0x1c] sm:$0xf] %vm2756_vm11, %v3127_v16 }
 0x218   : > { %v2888_v46 = vpop.permute.xlu0 %2887  ;;  %512 = vrot.lane.b32.xlu2 %v4832_v23, %s4183_s11  ;;  %v4117_v60 = vld [vmem:[#allocation8 + $0x4] sm:$0xf] }
 0x219   : > { %2909 = vst.msk [vmem:[#allocation8 + $0x24] sm:$0xf] %vm2905_vm1, %v2888_v46 }
 0x21a   : > { %514 = vrot.lane.b32.xlu0 %v4806_v27, %s4183_s11 }
 0x21d   : > { %v3334_v11 = vpop.permute.xlu1 %3333 }
 0x21e   : > { %3356 = vst.msk [vmem:[#allocation8 + $0x10] sm:$0xf] %vm2905_vm1, %v3334_v11 }
 0x220   : > { %v3176_v31 = vpop.permute.xlu0 %3175  ;;  %v4121_v59 = vld [vmem:[#allocation8 + $0x20] sm:$0xf0] }
 0x221   : > { %3197 = vst.msk [vmem:[#allocation8 + $0x1c] sm:$0xf] %vm2856_vm6, %v3176_v31  ;;  %v3983_v23 = vor.u32 %v4121_v59, %v3982_v58  ;;  %v4168_v31 = vld [vmem:[%s5515_s6] ss:$0 sm:$0xff]  ;;  %v3755_v58 = vpop.f32.mrf.mxu1 }
 0x222   : > { %3357 = vst.msk [vmem:[#allocation8 + $0x1c] sm:$0xf] %vm2905_vm1, %v3336_v37 }
 0x223   : > { %3701 = vmatmul.bf16.gmra.mxu2 %v3983_v23 }
 0x225   : > { %v3972_v3 = vld [vmem:[#allocation8 + $0xc] sm:$0xf0] }
 0x226   : > { %v3975_v6 = vor.u32 %v4117_v60, %v3972_v3  ;;  %v2892_v44 = vpop.permute.xlu2 %2891 }
 0x228   : > { %v2741_v41 = vpop.permute.xlu0 %2740  ;;  %3725 = vmatmul.bf16.vlgmr.msra.gmra.mxu3 %v3975_v6 }
 0x229   : > { %2761 = vst.msk [vmem:[#allocation8 + $0x30] sm:$0xf] %vm2756_vm11, %v2741_v41  ;;  %v4120_v19 = vld [vmem:[#allocation8 + $0x1c] sm:$0xf] }
 0x22a   : > { %2861 = vst.msk [vmem:[#allocation8 + $0x30] sm:$0xf] %vm2856_vm6, %v2841_v35 }
 0x22e   : > { %v3180_v27 = vpop.permute.xlu2 %3179 }
 0x235   : > { %v3178_v14 = vpop.permute.xlu1 %3177 }
 0x236   : > { %v2745_v33 = vpop.permute.xlu2 %2744  ;;  %3198 = vst.msk [vmem:[#allocation8 + $0x28] sm:$0xf] %vm2856_vm6, %v3178_v14 }
 0x237   : > { %2763 = vst.msk [vmem:[#allocation8 + $0x48] sm:$0xf] %vm2756_vm11, %v2745_v33 }
 0x23b   : > { %v2843_v24 = vpop.permute.xlu0 %2842 }
 0x23d   : > { %v2890_v48 = vpop.permute.xlu1 %2889 }
 0x23e   : > { %2910 = vst.msk [vmem:[#allocation8 + $0x30] sm:$0xf] %vm2905_vm1, %v2890_v48 }
 0x243   : > { %v3131_v51 = vpop.permute.xlu0 %3130 }
 0x244   : > { %3150 = vst.msk [vmem:[#allocation8 + $0x34] sm:$0xf] %vm2756_vm11, %v3131_v51 }
 0x245   : > { %3199 = vst.msk [vmem:[#allocation8 + $0x34] sm:$0xf] %vm2856_vm6, %v3180_v27  ;;  %v2743_v39 = vpop.permute.xlu1 %2742  ;;  %v3994_v1 = vld [vmem:[#allocation8 + $0x30] sm:$0xf]  ;;  %v3757_v27 = vpop.f32.mrf.mxu1 }
 0x246   : > { %2762 = vst.msk [vmem:[#allocation8 + $0x3c] sm:$0xf] %vm2756_vm11, %v2743_v39 }
 0x247   : > { %2862 = vst.msk [vmem:[#allocation8 + $0x3c] sm:$0xf] %vm2856_vm6, %v2843_v24 }
 0x248   : > { %2911 = vst.msk [vmem:[#allocation8 + $0x3c] sm:$0xf] %vm2905_vm1, %v2892_v44 }
 0x24b   : > { %v3338_v15 = vpop.permute.xlu0 %3337 }
 0x24c   : > { %3358 = vst.msk [vmem:[#allocation8 + $0x28] sm:$0xf] %vm2905_vm1, %v3338_v15 }
 0x24d   : > { %v3133_v56 = vpop.permute.xlu1 %3132 }
 0x24e   : > { %3151 = vst.msk [vmem:[#allocation8 + $0x40] sm:$0xf] %vm2756_vm11, %v3133_v56  ;;  %v3760_v48 = vpop.f32.mrf.mxu1 }
 0x24f   : > { %v4124_v7 = vld [vmem:[#allocation8 + $0x38] sm:$0xf0] }
 0x250   : > { %v3995_v45 = vor.u32 %v4124_v7, %v3994_v1 }
 0x252   : > { %v2847_v18 = vpop.permute.xlu2 %2846  ;;  %3706 = vmatmul.bf16.gmra.mxu2 %v3995_v45 }
 0x253   : > { %v3984_v20 = vld [vmem:[#allocation8 + $0x24] sm:$0xf0] }
 0x254   : > { %v3987_v61 = vor.u32 %v4120_v19, %v3984_v20 }
 0x255   : > { %v2845_v22 = vpop.permute.xlu1 %2844 }
 0x256   : > { %3730 = vmatmul.bf16.gmra.mxu3 %v3987_v61  ;;  %2863 = vst.msk [vmem:[#allocation8 + $0x48] sm:$0xf] %vm2856_vm6, %v2845_v22  ;;  %v3762_v45 = vpop.f32.mrf.mxu1 }
 0x25a   : > { %v3342_v53 = vpop.permute.xlu2 %3341 }
 0x25d   : > { %v3340_v17 = vpop.permute.xlu1 %3339 }
 0x25e   : > { %3359 = vst.msk [vmem:[#allocation8 + $0x34] sm:$0xf] %vm2905_vm1, %v3340_v17 }
 0x262   : > { %v3135_v0 = vpop.permute.xlu2 %3134 }
 0x263   : > { %3152 = vst.msk [vmem:[#allocation8 + $0x4c] sm:$0xf] %vm2756_vm11, %v3135_v0 }
 0x264   : > { %v3182_v26 = vpop.permute.xlu0 %3181 }
 0x265   : > { %3200 = vst.msk [vmem:[#allocation8 + $0x40] sm:$0xf] %vm2856_vm6, %v3182_v26  ;;  %v4123_v62 = vld [vmem:[#allocation8 + $0x34] sm:$0xf] }
 0x266   : > { %3360 = vst.msk [vmem:[#allocation8 + $0x40] sm:$0xf] %vm2905_vm1, %v3342_v53 }
 0x26a   : > { %v3186_v25 = vpop.permute.xlu2 %3185 }
 0x26c   : > { %v2894_v50 = vpop.permute.xlu0 %2893  ;;  %v2896_v38 = vpop.permute.xlu1 %2895 }
 0x26d   : > { %2912 = vst.msk [vmem:[#allocation8 + $0x48] sm:$0xf] %vm2905_vm1, %v2894_v50  ;;  %v3996_v47 = vld [vmem:[#allocation8 + $0x3c] sm:$0xf0] }
 0x26e   : > { %v3999_v28 = vor.u32 %v4123_v62, %v3996_v47 }
 0x270   : > { %3735 = vmatmul.bf16.gmra.mxu3 %v3999_v28 }
 0x272   : > { %v513_v29 = vpop.permute.xlu2 %512 }
 0x273   : > { %531 = vst.msk [vmem:[#allocation8 + $0x50] sm:$0xf] %vm524_vm9, %v513_v29 }
 0x274   : > { %3441 = vst.msk [vmem:[#allocation8 + $0x50] sm:$0xf] %vm5554_vm7, %v3422_v32  ;;  %v2747_v21 = vpop.permute.xlu0 %2746  ;;  %v3184_v4 = vpop.permute.xlu1 %3183  ;;  %v4006_v12 = vld [vmem:[#allocation8 + $0x48] sm:$0xf] }
 0x275   : > { %2764 = vst.msk [vmem:[#allocation8 + $0x54] sm:$0xf] %vm2756_vm11, %v2747_v21 }
 0x276   : > { %2864 = vst.msk [vmem:[#allocation8 + $0x54] sm:$0xf] %vm2856_vm6, %v2847_v18 }
 0x277   : > { %2913 = vst.msk [vmem:[#allocation8 + $0x54] sm:$0xf] %vm2905_vm1, %v2896_v38 }
 0x278   : > { %3201 = vst.msk [vmem:[#allocation8 + $0x4c] sm:$0xf] %vm2856_vm6, %v3184_v4 }
 0x27b   : > { %v4014_v46 = vld [vmem:[#allocation8 + $0x50] sm:$0xf] }
 0x27c   : > { %v3137_v63 = vpop.permute.xlu0 %3136  ;;  %v3346_v43 = vpop.permute.xlu1 %3345 }
 0x27d   : > { %3153 = vst.msk [vmem:[#allocation8 + $0x58] sm:$0xf] %vm2756_vm11, %v3137_v63  ;;  %vm5555_vm11 = vmmov %vm5550_vm0  ;;  %v3765_v22 = vpop.f32.mrf.mxu1 }
 0x27e   : > { %3202 = vst.msk [vmem:[#allocation8 + $0x58] sm:$0xf] %vm2856_vm6, %v3186_v25  ;;  %v4127_v30 = vld [vmem:[#allocation8 + $0x50] sm:$0xf0] }
 0x27f   : > { %v4007_v5 = vor.u32 %v4127_v30, %v4006_v12  ;;  %3362 = vst.msk [vmem:[#allocation8 + $0x58] sm:$0xf] %vm2905_vm1, %v3346_v43 }
 0x281   : > { %3711 = vmatmul.bf16.gmra.mxu2 %v4007_v5 }
 0x284   : > { %v3344_v2 = vpop.permute.xlu0 %3343 }
 0x285   : > { %3361 = vst.msk [vmem:[#allocation8 + $0x4c] sm:$0xf] %vm2905_vm1, %v3344_v2  ;;  %v3767_v62 = vpop.f32.mrf.mxu1 }
 0x286   : > { %v4008_v55 = vld [vmem:[#allocation8 + $0x54] sm:$0xf0] }
 0x288   : > { %v3697_v11 = vpop.f32.mrf.mxu2 }
 0x289   : > { %v3698_v49 = vadd.f32 %v4168_v31, %v3697_v11 }
 0x28c   : > { %v515_v35 = vpop.permute.xlu0 %514  ;;  %v4126_v8 = vld [vmem:[#allocation8 + $0x4c] sm:$0xf] }
 0x28d   : > { %532 = vst.msk [vmem:[#allocation8 + $0x5c] sm:$0xf] %vm524_vm9, %v515_v35  ;;  %v4011_v16 = vor.u32 %v4126_v8, %v4008_v55  ;;  %vm3775_vm9 = vcmask 261120  }
 0x28e   : > { %3442 = vst.msk [vmem:[#allocation8 + $0x5c] sm:$0xf] %vm5555_vm11, %v3426_v34 }
 0x28f   : > { %3740 = vmatmul.bf16.gmra.mxu3 %v4011_v16 }
 0x290   : > { %v3699_v3 = vpop.f32.mrf.mxu2 }
 0x291   : > { %v3700_v6 = vadd.f32 %v4168_v31, %v3699_v3 }
 0x295   : > { %v4128_v36 = vld [vmem:[#allocation8 + $0x58] sm:$0xf0] }
 0x296   : > { %v4015_v37 = vor.u32 %v4128_v36, %v4014_v46 }
 0x298   : > { %4095 = vmatmul.msk.bf16.gmra.mxu1 %vm3675_vm5, %v4015_v37 }
 0x2a6   : > { %v3702_v33 = vpop.f32.mrf.mxu2 }
 0x2a7   : > { %v3703_v24 = vadd.f32 %v4168_v31, %v3702_v33 }
 0x2ab   : > { %v3726_v59 = vpop.f32.mrf.mxu3 }
 0x2ac   : > { %v3727_v23 = vadd.f32 %v3726_v59, %v3698_v49 }
 0x2ae   : > { %v3756_v60 = vadd.f32 %v3755_v58, %v3727_v23  ;;  %v3704_v56 = vpop.f32.mrf.mxu2 }
 0x2af   : > { %v3705_v1 = vadd.f32 %v4168_v31, %v3704_v56 }
 0x2b0   : > { %3776 = vst.msk [vmem:[%s5488_s20] sm:$0xff] %vm3775_vm9, %v3756_v60 }
 0x2b3   : > { %v3728_v44 = vpop.f32.mrf.mxu3 }
 0x2b4   : > { %v3729_v41 = vadd.f32 %v3728_v44, %v3700_v6 }
 0x2b6   : > { %v3758_v14 = vadd.f32 %v3757_v27, %v3729_v41 }
 0x2b8   : > { %3777 = vst.msk [vmem:[%s5488_s20 + $0x8] sm:$0xff] %vm3775_vm9, %v3758_v14 }
 0x2d5   : > { %v3707_v20 = vpop.f32.mrf.mxu2 }
 0x2d6   : > { %v3708_v61 = vadd.f32 %v4168_v31, %v3707_v20 }
 0x2d9   : > { %v3731_v51 = vpop.f32.mrf.mxu3 }
 0x2da   : > { %v3732_v39 = vadd.f32 %v3731_v51, %v3703_v24 }
 0x2dc   : > { %v3761_v15 = vadd.f32 %v3760_v48, %v3732_v39 }
 0x2dd   : > { %v3709_v26 = vpop.f32.mrf.mxu2 }
 0x2de   : > { %3778 = vst.msk [vmem:[%s5488_s20 + $0x10] sm:$0xff] %vm3775_vm9, %v3761_v15  ;;  %v3710_v25 = vadd.f32 %v4168_v31, %v3709_v26 }
 0x2e1   : > { %v3733_v7 = vpop.f32.mrf.mxu3 }
 0x2e2   : > { %v3734_v18 = vadd.f32 %v3733_v7, %v3705_v1 }
 0x2e4   : > { %v3763_v19 = vadd.f32 %v3762_v45, %v3734_v18 }
 0x2e6   : > { %3779 = vst.msk [vmem:[%s5488_s20 + $0x18] sm:$0xff] %vm3775_vm9, %v3763_v19 }
 0x2f3   : > { %v3736_v53 = vpop.f32.mrf.mxu3 }
 0x2f4   : > { %v3737_v17 = vadd.f32 %v3736_v53, %v3708_v61 }
 0x2f6   : > { %v3766_v0 = vadd.f32 %v3765_v22, %v3737_v17 }
 0x2f8   : > { %3780 = vst.msk [vmem:[%s5488_s20 + $0x20] sm:$0xff] %vm3775_vm9, %v3766_v0 }
 0x2fb   : > { %v3738_v54 = vpop.f32.mrf.mxu3 }
 0x2fc   : > { %v3739_v13 = vadd.f32 %v3738_v54, %v3710_v25 }
 0x2fe   : > { %v3768_v50 = vadd.f32 %v3767_v62, %v3739_v13 }
 0x300   : > { %3781 = vst.msk [vmem:[%s5488_s20 + $0x28] sm:$0xff] %vm3775_vm9, %v3768_v50 }
 0x304   : > { %v3712_v38 = vpop.f32.mrf.mxu2 }
 0x305   : > { %v3713_v47 = vadd.f32 %v4168_v31, %v3712_v38 }
 0x30c   : > { %v3714_v29 = vpop.f32.mrf.mxu2 }
 0x30d   : > { %v3715_v21 = vadd.f32 %v4168_v31, %v3714_v29 }
 0x312   : > { %v3741_v57 = vpop.f32.mrf.mxu3 }
 0x313   : > { %v3742_v52 = vadd.f32 %v3741_v57, %v3713_v47 }
 0x315   : > { %v3770_v28 = vpop.f32.mrf.mxu1 }
 0x316   : > { %v3771_v32 = vadd.f32 %v3770_v28, %v3742_v52 }
 0x318   : > { %3782 = vst.msk [vmem:[%s5488_s20 + $0x30] sm:$0xff] %vm3775_vm9, %v3771_v32 }
 0x31a   : > { %v3743_v4 = vpop.f32.mrf.mxu3 }
 0x31b   : > { %v3744_v63 = vadd.f32 %v3743_v4, %v3715_v21 }
 0x31d   : > { %v3772_v43 = vpop.f32.mrf.mxu1 }
 0x31e   : > { %v3773_v12 = vadd.f32 %v3772_v43, %v3744_v63 }
 0x320   : > { %3783 = vst.msk [vmem:[%s5488_s20 + $0x38] sm:$0xff] %vm3775_vm9, %v3773_v12 }
 0x321 PF: > { %s17_s24 = sadd.s32 1, %s4180_s24  }
 0x322   : > { %p14_p4 = scmp.ge.s32.totalorder %s17_s24, 4  }
 0x324   :  { %16 = sbr.rel (!%p14_p4) target bundleno = 1 (0x1), region = 88 }

</bundles_post_ra>
